<compile_context>
chip_gen: v6e
topology: v6e:2x2x1
jax: 0.10.0
libtpu: 0.0.40
codegen_flags: <defaults>
</compile_context>

<pallas_src>
import math
import functools

import jax
import jax.numpy as jnp
from jax.experimental import pallas as pl
from jax.experimental.pallas import tpu as pltpu

# ---------------- model hyper-parameters (MRM defaults) ----------------
LATENT_DIM = 256
COND_DIM = 128
MODEL_CHANNELS = LATENT_DIM // 4  # 64
FF_SIZE = 1024
NUM_LAYERS = 8
NUM_HEADS = 4
LN_EPS = 1e-5
MAX_PE_LEN = 256      # only pe[:T+1] is read; values identical to max_len=5000
OUT_PAD = 128         # lane-dense padded width of the output projection
NEG_INF = -1e30       # additive mask for pad / cross-batch keys


# ---------------- in-kernel math helpers ----------------
def _erf_approx(x):
    # Abramowitz & Stegun 7.1.26 polynomial, |abs err| < 1.5e-7 (exact-GELU surrogate).
    # TODO(synk): exact erf is approximated because Mosaic erf lowering is not guaranteed.
    a1, a2, a3, a4, a5 = 0.254829592, -0.284496736, 1.421413741, -1.453152027, 1.061405429
    pc = 0.3275911
    ax = jnp.abs(x)
    t = pl.reciprocal(1.0 + pc * ax, approx=True)          # divide on the EUP, not VALU
    poly = ((((a5 * t + a4) * t + a3) * t + a2) * t + a1) * t
    y = 1.0 - poly * jnp.exp(-ax * ax)
    return jnp.where(x >= 0, y, -y)


def _gelu_exact(x):
    return 0.5 * x * (1.0 + _erf_approx(x * 0.7071067811865476))


def _layernorm(x, g, b):
    # PyTorch LayerNorm: biased variance, eps=1e-5, all f32.
    mu = jnp.mean(x, axis=-1, keepdims=True)
    var = jnp.mean((x - mu) * (x - mu), axis=-1, keepdims=True)
    return (x - mu) * jax.lax.rsqrt(var + LN_EPS) * g + b


# ---------------- BlockSpec helpers ----------------
def _const_spec(shape):
    # Full-array block, constant index -> fetched once, resident for all grid steps.
    nd = len(shape)
    return pl.BlockSpec(tuple(shape), lambda l, _n=nd: (0,) * _n)


def _layer_spec(shape):
    # Stacked per-layer weights [L, ...]: stream layer l's slice each grid step.
    nd = len(shape)
    return pl.BlockSpec((1,) + tuple(shape[1:]), lambda l, _n=nd: (l,) + (0,) * (_n - 1))


# ---------------- the single fused kernel ----------------
def _mrm_kernel(
    # data (constant block, fetched once)
    te_ref, xbt_ref, cbt_ref, pe_ref, mask_ref,
    # prologue / epilogue weights (constant block)
    in_w_ref, in_b_ref, cond_w_ref, cond_b_ref,
    ew1_ref, eb1_ref, ew2_ref, eb2_ref,
    out_w_ref, out_b_ref,
    # per-layer weights (streamed along the grid's layer axis)
    wqkv_ref, bqkv_ref, wo_ref, bo_ref,
    w1_ref, b1_ref, w2_ref, b2_ref,
    g1_ref, be1_ref, g2_ref, be2_ref,
    # output
    o_ref,
    # VMEM scratch (persists across grid steps)
    act_ref,
    *, t_len, bsz, nheads,
):
    layer = pl.program_id(0)
    seq = t_len + 1                       # +1 timestep token
    n_pad, d = act_ref.shape              # n_pad = bsz * stride (sublane-aligned)
    stride = n_pad // bsz
    dh = d // nheads
    scale = 1.0 / math.sqrt(dh)

    def mm(a, w, b):
        # bf16 MXU operands, f32 accumulation, f32 bias add.
        return jnp.dot(a.astype(w.dtype), w, preferred_element_type=jnp.float32) + b

    # ---- prologue (grid step 0): build the padded, aligned token matrix in VMEM ----
    @pl.when(layer == 0)
    def _prologue():
        h = mm(te_ref[...], ew1_ref[...], eb1_ref[...])           # timestep-embed MLP
        h = h * pl.reciprocal(1.0 + jnp.exp(-h), approx=True)     # SiLU (exp+rcp on EUP)
        emb = mm(h, ew2_ref[...], eb2_ref[...])                   # [B, D]
        xp = mm(xbt_ref[...], in_w_ref[...], in_b_ref[...])       # [B*T, D-CD]
        cp = mm(cbt_ref[...], cond_w_ref[...], cond_b_ref[...])   # [B*T, CD]
        pe = pe_ref[...]                                          # [S, D], shared by batches
        # NOTE: B=2 here so the static Python loop is fine; convert to
        # lax.fori_loop(..., unroll=True) if B grows (vreg-pressure caution).
        for b in range(bsz):
            frames = jnp.concatenate(
                [xp[b * t_len:(b + 1) * t_len, :],                # lanes 0..D-CD-1
                 cp[b * t_len:(b + 1) * t_len, :]],               # lanes D-CD..D-1
                axis=1) + pe[1:seq, :]
            parts = [emb[b:b + 1, :] + pe[0:1, :], frames]
            if stride > seq:                                      # zero the pad rows once
                parts.append(jnp.zeros((stride - seq, d), jnp.float32))
            # one fully aligned [stride, D] store per batch (stride is a multiple of 8)
            act_ref[b * stride:(b + 1) * stride, :] = jnp.concatenate(parts, axis=0)

    # ---- one transformer encoder layer (post-norm, GELU) per grid step ----
    x = act_ref[...]                                              # [N_pad, D] f32
    qkv = mm(x, wqkv_ref[0], bqkv_ref[0])                         # fused QKV: [N_pad, 3D]
    q = qkv[:, 0:d] * scale                                       # fold 1/sqrt(dh) into q
    k = qkv[:, d:2 * d]
    v = qkv[:, 2 * d:3 * d]
    mask = mask_ref[...]                                          # [N_pad, N_pad] 0 / -1e30

    heads = []
    for hh in range(nheads):                                      # 4 matmuls over all tokens
        c0 = hh * dh
        qh, kh, vh = q[:, c0:c0 + dh], k[:, c0:c0 + dh], v[:, c0:c0 + dh]
        s = jax.lax.dot_general(qh, kh, (((1,), (1,)), ((), ())),
                                preferred_element_type=jnp.float32) + mask
        s = s - jnp.max(s, axis=-1, keepdims=True)
        p = jnp.exp(s)
        p = p * pl.reciprocal(jnp.sum(p, axis=-1, keepdims=True), approx=True)
        heads.append(jnp.dot(p, vh, preferred_element_type=jnp.float32))
    attn = jnp.concatenate(heads, axis=1)                         # [N_pad, D] (no scratch)

    proj = mm(attn, wo_ref[0], bo_ref[0])                         # attention out-proj
    h1 = _layernorm(x + proj, g1_ref[0], be1_ref[0])              # residual + LN1
    f = _gelu_exact(mm(h1, w1_ref[0], b1_ref[0]))                 # FF1 + GELU
    y = _layernorm(h1 + mm(f, w2_ref[0], b2_ref[0]),              # FF2 + residual + LN2
                   g2_ref[0], be2_ref[0])
    act_ref[...] = y                                              # carry to next layer

    # ---- epilogue (last grid step): one lane-dense matmul over ALL rows ----
    @pl.when(layer == pl.num_programs(0) - 1)
    def _epilogue():
        o_ref[...] = mm(y, out_w_ref[...], out_b_ref[...])        # [N_pad, 128], unmasked vst


# ---------------- JAX wrapper reproducing MRM.forward ----------------
def timestep_embedding(timesteps, dim, max_period=10000):
    half = dim // 2
    freqs = jnp.exp(-math.log(max_period) * jnp.arange(half, dtype=jnp.float32) / half)
    args = timesteps.astype(jnp.float32)[:, None] * freqs[None]
    return jnp.concatenate([jnp.cos(args), jnp.sin(args)], axis=-1)


def make_pe(max_len, d_model):
    position = jnp.arange(max_len, dtype=jnp.float32)[:, None]
    div_term = jnp.exp(jnp.arange(0, d_model, 2, dtype=jnp.float32)
                       * (-math.log(10000.0) / d_model))
    pe = jnp.zeros((max_len, d_model), jnp.float32)
    pe = pe.at[:, 0::2].set(jnp.sin(position * div_term))
    pe = pe.at[:, 1::2].set(jnp.cos(position * div_term))
    return pe[:, None, :]  # [max_len, 1, d_model]


def mrm_forward(params, x, timesteps, cond):
    """
    x:         [T, B, input_feats]
    timesteps: [B] int
    cond:      [B, T, cond_feats]
    returns:   [T, B, input_feats]
    """
    t_len, bsz, in_feats = x.shape
    cf = cond.shape[-1]
    d = LATENT_DIM
    seq = t_len + 1
    assert seq <= MAX_PE_LEN, "positional-encoding table too short for this T"
    stride = -(-seq // 8) * 8             # per-batch row stride, padded to sublane tile
    n_pad = stride * bsz
    n_layers = params["wqkv"].shape[0]

    # Tiny host-side prep only (sin/cos, reorder, mask constants); all matmuls in-kernel.
    te = timestep_embedding(timesteps, MODEL_CHANNELS)                   # [B, 64]
    xbt = jnp.transpose(x, (1, 0, 2)).reshape(bsz * t_len, in_feats)     # batch-major tokens
    cbt = cond.reshape(bsz * t_len, cf)
    pe = params["pe"][:seq, 0, :]                                        # [S, D]

    # Block-diagonal attention mask: a query may only see real keys of its own batch.
    rows = jnp.arange(n_pad)
    same_batch = (rows[:, None] // stride) == (rows[None, :] // stride)
    real_key = (rows[None, :] % stride) < seq
    mask = jnp.where(same_batch & real_key, 0.0, NEG_INF).astype(jnp.float32)

    const_args = (te, xbt, cbt, pe, mask,
                  params["in_w"], params["in_b"], params["cond_w"], params["cond_b"],
                  params["emb_w1"], params["emb_b1"], params["emb_w2"], params["emb_b2"],
                  params["out_w"], params["out_b"])
    layer_args = (params["wqkv"], params["bqkv"], params["wo"], params["bo"],
                  params["w1"], params["b1"], params["w2"], params["b2"],
                  params["ln1_g"], params["ln1_b"], params["ln2_g"], params["ln2_b"])

    in_specs = ([_const_spec(a.shape) for a in const_args]
                + [_layer_spec(a.shape) for a in layer_args])

    kernel = functools.partial(_mrm_kernel, t_len=t_len, bsz=bsz, nheads=NUM_HEADS)
    out128 = pl.pallas_call(
        kernel,
        grid=(n_layers,),
        in_specs=in_specs,
        out_specs=pl.BlockSpec((n_pad, OUT_PAD), lambda l: (0, 0)),
        out_shape=jax.ShapeDtypeStruct((n_pad, OUT_PAD), jnp.float32),
        scratch_shapes=[pltpu.VMEM((n_pad, d), jnp.float32)],   # activations (layer carry)
        compiler_params=pltpu.CompilerParams(
            # Layers are sequentially dependent -> "arbitrary" (no parallel axis usable).
            dimension_semantics=("arbitrary",)),
    )(*const_args, *layer_args)

    # Lane-dense [B*stride, 128] slab -> drop timestep-token + pad rows -> [T, B, feats]
    out = out128.reshape(bsz, stride, OUT_PAD)[:, 1:1 + t_len, :in_feats]
    return jnp.transpose(out, (1, 0, 2))


# ---------------- deterministic parameter init ----------------
def init_params(key, input_feats, cond_feats):
    keys = iter(jax.random.split(key, 32))
    d, cd, mc, ff, L = LATENT_DIM, COND_DIM, MODEL_CHANNELS, FF_SIZE, NUM_LAYERS

    def w(shape, scale=0.02):
        # bf16 MXU operands (halves weight HBM traffic / VMEM residency).
        return (jax.random.normal(next(keys), shape, jnp.float32) * scale).astype(jnp.bfloat16)

    def zeros(shape):
        return jnp.zeros(shape, jnp.float32)

    def ones(shape):
        return jnp.ones(shape, jnp.float32)

    assert input_feats <= OUT_PAD
    out_w = jax.random.normal(next(keys), (d, input_feats), jnp.float32) * 0.02
    out_w = jnp.pad(out_w, ((0, 0), (0, OUT_PAD - input_feats))).astype(jnp.bfloat16)

    params = {
        "in_w": w((input_feats, d - cd)), "in_b": zeros((1, d - cd)),
        "cond_w": w((cond_feats, cd)), "cond_b": zeros((1, cd)),
        "emb_w1": w((mc, d)), "emb_b1": zeros((1, d)),
        "emb_w2": w((d, d)), "emb_b2": zeros((1, d)),
        "out_w": out_w, "out_b": zeros((1, OUT_PAD)),
        "pe": make_pe(MAX_PE_LEN, d),
        # stacked per-layer weights (leading layer axis, streamed by the kernel grid)
        "wqkv": w((L, d, 3 * d)), "bqkv": zeros((L, 1, 3 * d)),
        "wo": w((L, d, d)), "bo": zeros((L, 1, d)),
        "w1": w((L, d, ff)), "b1": zeros((L, 1, ff)),
        "w2": w((L, ff, d)), "b2": zeros((L, 1, d)),
        "ln1_g": ones((L, 1, d)), "ln1_b": zeros((L, 1, d)),
        "ln2_g": ones((L, 1, d)), "ln2_b": zeros((L, 1, d)),
    }
    return params


# ---------------- main ----------------
if __name__ == "__main__":
    key = jax.random.PRNGKey(0)
    k_x, k_t, k_c, k_p = jax.random.split(key, 4)

    T, B = 8, 2
    NJOINTS, NFEATS = 12, 1
    INPUT_FEATS = NJOINTS * NFEATS          # 12
    COND_FEATS = 5 * 3 + 2                  # 17 (cond_mode='concat')

    x = jax.random.normal(k_x, (T, B, INPUT_FEATS), jnp.float32)
    timesteps = jax.random.randint(k_t, (B,), 0, 1000)
    cond = jax.random.normal(k_c, (B, T, COND_FEATS), jnp.float32)

    params = init_params(k_p, INPUT_FEATS, COND_FEATS)

    out = jax.jit(mrm_forward)(params, x, timesteps, cond)
    out = jax.block_until_ready(out)

    assert out.shape == (T, B, INPUT_FEATS), out.shape
    assert bool(jnp.all(jnp.isfinite(out)))
    print("KERNEL_OK")
</pallas_src>

<mosaic_0001>
module attributes {stable_mosaic.version = 11 : i64} {
  func.func @_mrm_kernel(%arg0: i32, %arg1: memref<2x64xf32, #tpu.memory_space<vmem>>, %arg2: memref<16x12xf32, #tpu.memory_space<vmem>>, %arg3: memref<16x17xf32, #tpu.memory_space<vmem>>, %arg4: memref<9x256xf32, #tpu.memory_space<vmem>>, %arg5: memref<32x32xf32, #tpu.memory_space<vmem>>, %arg6: memref<12x128xbf16, #tpu.memory_space<vmem>>, %arg7: memref<1x128xf32, #tpu.memory_space<vmem>>, %arg8: memref<17x128xbf16, #tpu.memory_space<vmem>>, %arg9: memref<1x128xf32, #tpu.memory_space<vmem>>, %arg10: memref<64x256xbf16, #tpu.memory_space<vmem>>, %arg11: memref<1x256xf32, #tpu.memory_space<vmem>>, %arg12: memref<256x256xbf16, #tpu.memory_space<vmem>>, %arg13: memref<1x256xf32, #tpu.memory_space<vmem>>, %arg14: memref<256x128xbf16, #tpu.memory_space<vmem>>, %arg15: memref<1x128xf32, #tpu.memory_space<vmem>>, %arg16: memref<1x256x768xbf16, #tpu.memory_space<vmem>>, %arg17: memref<1x1x768xf32, #tpu.memory_space<vmem>>, %arg18: memref<1x256x256xbf16, #tpu.memory_space<vmem>>, %arg19: memref<1x1x256xf32, #tpu.memory_space<vmem>>, %arg20: memref<1x256x1024xbf16, #tpu.memory_space<vmem>>, %arg21: memref<1x1x1024xf32, #tpu.memory_space<vmem>>, %arg22: memref<1x1024x256xbf16, #tpu.memory_space<vmem>>, %arg23: memref<1x1x256xf32, #tpu.memory_space<vmem>>, %arg24: memref<1x1x256xf32, #tpu.memory_space<vmem>>, %arg25: memref<1x1x256xf32, #tpu.memory_space<vmem>>, %arg26: memref<1x1x256xf32, #tpu.memory_space<vmem>>, %arg27: memref<1x1x256xf32, #tpu.memory_space<vmem>>, %arg28: memref<32x128xf32, #tpu.memory_space<vmem>>, %arg29: memref<32x256xf32, #tpu.memory_space<vmem>>) attributes {dimension_semantics = [#tpu.dimension_semantics<arbitrary>], iteration_bounds = array<i64: 8>, scalar_prefetch = 0 : i64, scratch_operands = 1 : i64, tpu.core_type = #tpu.core_type<tc>, window_params = [{pipeline_mode = #tpu.pipeline_mode<synchronous>, transform_indices = @transform_0, window_bounds = array<i64: 2, 64>}, {pipeline_mode = #tpu.pipeline_mode<synchronous>, transform_indices = @transform_1, window_bounds = array<i64: 16, 12>}, {pipeline_mode = #tpu.pipeline_mode<synchronous>, transform_indices = @transform_2, window_bounds = array<i64: 16, 17>}, {pipeline_mode = #tpu.pipeline_mode<synchronous>, transform_indices = @transform_3, window_bounds = array<i64: 9, 256>}, {pipeline_mode = #tpu.pipeline_mode<synchronous>, transform_indices = @transform_4, window_bounds = array<i64: 32, 32>}, {pipeline_mode = #tpu.pipeline_mode<synchronous>, transform_indices = @transform_5, window_bounds = array<i64: 12, 128>}, {pipeline_mode = #tpu.pipeline_mode<synchronous>, transform_indices = @transform_6, window_bounds = array<i64: 1, 128>}, {pipeline_mode = #tpu.pipeline_mode<synchronous>, transform_indices = @transform_7, window_bounds = array<i64: 17, 128>}, {pipeline_mode = #tpu.pipeline_mode<synchronous>, transform_indices = @transform_8, window_bounds = array<i64: 1, 128>}, {pipeline_mode = #tpu.pipeline_mode<synchronous>, transform_indices = @transform_9, window_bounds = array<i64: 64, 256>}, {pipeline_mode = #tpu.pipeline_mode<synchronous>, transform_indices = @transform_10, window_bounds = array<i64: 1, 256>}, {pipeline_mode = #tpu.pipeline_mode<synchronous>, transform_indices = @transform_11, window_bounds = array<i64: 256, 256>}, {pipeline_mode = #tpu.pipeline_mode<synchronous>, transform_indices = @transform_12, window_bounds = array<i64: 1, 256>}, {pipeline_mode = #tpu.pipeline_mode<synchronous>, transform_indices = @transform_13, window_bounds = array<i64: 256, 128>}, {pipeline_mode = #tpu.pipeline_mode<synchronous>, transform_indices = @transform_14, window_bounds = array<i64: 1, 128>}, {transform_indices = @transform_15, window_bounds = array<i64: 1, 256, 768>}, {transform_indices = @transform_16, window_bounds = array<i64: 1, 1, 768>}, {transform_indices = @transform_17, window_bounds = array<i64: 1, 256, 256>}, {transform_indices = @transform_18, window_bounds = array<i64: 1, 1, 256>}, {transform_indices = @transform_19, window_bounds = array<i64: 1, 256, 1024>}, {transform_indices = @transform_20, window_bounds = array<i64: 1, 1, 1024>}, {transform_indices = @transform_21, window_bounds = array<i64: 1, 1024, 256>}, {transform_indices = @transform_22, window_bounds = array<i64: 1, 1, 256>}, {transform_indices = @transform_23, window_bounds = array<i64: 1, 1, 256>}, {transform_indices = @transform_24, window_bounds = array<i64: 1, 1, 256>}, {transform_indices = @transform_25, window_bounds = array<i64: 1, 1, 256>}, {transform_indices = @transform_26, window_bounds = array<i64: 1, 1, 256>}, {pipeline_mode = #tpu.pipeline_mode<synchronous>, transform_indices = @transform_27, window_bounds = array<i64: 32, 128>}]} {
    %c0_i32 = arith.constant 0 : i32
    %0 = arith.cmpi eq, %arg0, %c0_i32 : i32
    %1 = arith.extui %0 : i1 to i32
    %c0_i32_0 = arith.constant 0 : i32
    %2 = arith.cmpi ne, %1, %c0_i32_0 : i32
    scf.if %2 {
      %c0_87 = arith.constant 0 : index
      %c0_88 = arith.constant 0 : index
      %208 = vector.load %arg1[%c0_87, %c0_88] : memref<2x64xf32, #tpu.memory_space<vmem>>, vector<2x64xf32>
      %c0_89 = arith.constant 0 : index
      %c0_90 = arith.constant 0 : index
      %209 = vector.load %arg10[%c0_89, %c0_90] : memref<64x256xbf16, #tpu.memory_space<vmem>>, vector<64x256xbf16>
      %c0_91 = arith.constant 0 : index
      %c0_92 = arith.constant 0 : index
      %210 = vector.load %arg11[%c0_91, %c0_92] : memref<1x256xf32, #tpu.memory_space<vmem>>, vector<1x256xf32>
      %211 = arith.truncf %208 : vector<2x64xf32> to vector<2x64xbf16>
      %cst_93 = arith.constant dense<0.000000e+00> : vector<2x256xf32>
      %212 = tpu.matmul %211, %209, %cst_93 {dimension_numbers = #tpu.dot_dimension_numbers<[1], [0], [0], [1], [0, 0, 1, 1], [], []>} : vector<2x64xbf16>, vector<64x256xbf16>, vector<2x256xf32> -> vector<2x256xf32>
      %213 = vector.broadcast %210 : vector<1x256xf32> to vector<2x256xf32>
      %214 = arith.addf %212, %213 : vector<2x256xf32>
      %cst_94 = arith.constant 0.000000e+00 : f32
      %215 = vector.broadcast %cst_94 : f32 to vector<2x256xf32>
      %216 = arith.subf %215, %214 : vector<2x256xf32>
      %217 = math.exp %216 : vector<2x256xf32>
      %cst_95 = arith.constant 1.000000e+00 : f32
      %218 = vector.broadcast %cst_95 : f32 to vector<2x256xf32>
      %219 = arith.addf %218, %217 : vector<2x256xf32>
      %220 = tpu.reciprocal %219 {approx = true} : vector<2x256xf32> -> vector<2x256xf32>
      %221 = arith.mulf %214, %220 : vector<2x256xf32>
      %c0_96 = arith.constant 0 : index
      %c0_97 = arith.constant 0 : index
      %222 = vector.load %arg12[%c0_96, %c0_97] : memref<256x256xbf16, #tpu.memory_space<vmem>>, vector<256x256xbf16>
      %c0_98 = arith.constant 0 : index
      %c0_99 = arith.constant 0 : index
      %223 = vector.load %arg13[%c0_98, %c0_99] : memref<1x256xf32, #tpu.memory_space<vmem>>, vector<1x256xf32>
      %224 = arith.truncf %221 : vector<2x256xf32> to vector<2x256xbf16>
      %cst_100 = arith.constant dense<0.000000e+00> : vector<2x256xf32>
      %225 = tpu.matmul %224, %222, %cst_100 {dimension_numbers = #tpu.dot_dimension_numbers<[1], [0], [0], [1], [0, 0, 1, 1], [], []>} : vector<2x256xbf16>, vector<256x256xbf16>, vector<2x256xf32> -> vector<2x256xf32>
      %226 = vector.broadcast %223 : vector<1x256xf32> to vector<2x256xf32>
      %227 = arith.addf %225, %226 : vector<2x256xf32>
      %c0_101 = arith.constant 0 : index
      %c0_102 = arith.constant 0 : index
      %228 = vector.load %arg2[%c0_101, %c0_102] : memref<16x12xf32, #tpu.memory_space<vmem>>, vector<16x12xf32>
      %c0_103 = arith.constant 0 : index
      %c0_104 = arith.constant 0 : index
      %229 = vector.load %arg6[%c0_103, %c0_104] : memref<12x128xbf16, #tpu.memory_space<vmem>>, vector<12x128xbf16>
      %c0_105 = arith.constant 0 : index
      %c0_106 = arith.constant 0 : index
      %230 = vector.load %arg7[%c0_105, %c0_106] : memref<1x128xf32, #tpu.memory_space<vmem>>, vector<1x128xf32>
      %231 = arith.truncf %228 : vector<16x12xf32> to vector<16x12xbf16>
      %cst_107 = arith.constant dense<0.000000e+00> : vector<16x128xf32>
      %232 = tpu.matmul %231, %229, %cst_107 {dimension_numbers = #tpu.dot_dimension_numbers<[1], [0], [0], [1], [0, 0, 1, 1], [], []>} : vector<16x12xbf16>, vector<12x128xbf16>, vector<16x128xf32> -> vector<16x128xf32>
      %233 = vector.broadcast %230 : vector<1x128xf32> to vector<16x128xf32>
      %234 = arith.addf %232, %233 : vector<16x128xf32>
      %c0_108 = arith.constant 0 : index
      %c0_109 = arith.constant 0 : index
      %235 = vector.load %arg3[%c0_108, %c0_109] : memref<16x17xf32, #tpu.memory_space<vmem>>, vector<16x17xf32>
      %c0_110 = arith.constant 0 : index
      %c0_111 = arith.constant 0 : index
      %236 = vector.load %arg8[%c0_110, %c0_111] : memref<17x128xbf16, #tpu.memory_space<vmem>>, vector<17x128xbf16>
      %c0_112 = arith.constant 0 : index
      %c0_113 = arith.constant 0 : index
      %237 = vector.load %arg9[%c0_112, %c0_113] : memref<1x128xf32, #tpu.memory_space<vmem>>, vector<1x128xf32>
      %238 = arith.truncf %235 : vector<16x17xf32> to vector<16x17xbf16>
      %cst_114 = arith.constant dense<0.000000e+00> : vector<16x128xf32>
      %239 = tpu.matmul %238, %236, %cst_114 {dimension_numbers = #tpu.dot_dimension_numbers<[1], [0], [0], [1], [0, 0, 1, 1], [], []>} : vector<16x17xbf16>, vector<17x128xbf16>, vector<16x128xf32> -> vector<16x128xf32>
      %240 = vector.broadcast %237 : vector<1x128xf32> to vector<16x128xf32>
      %241 = arith.addf %239, %240 : vector<16x128xf32>
      %c0_115 = arith.constant 0 : index
      %c0_116 = arith.constant 0 : index
      %242 = vector.load %arg4[%c0_115, %c0_116] : memref<9x256xf32, #tpu.memory_space<vmem>>, vector<9x256xf32>
      %243 = vector.extract_strided_slice %234 {offsets = [0, 0], sizes = [8, 128], strides = [1, 1]} : vector<16x128xf32> to vector<8x128xf32>
      %244 = vector.extract_strided_slice %241 {offsets = [0, 0], sizes = [8, 128], strides = [1, 1]} : vector<16x128xf32> to vector<8x128xf32>
      %245 = tpu.concatenate %243, %244 in 1 : vector<8x128xf32>, vector<8x128xf32> -> vector<8x256xf32>
      %246 = vector.extract_strided_slice %242 {offsets = [1, 0], sizes = [8, 256], strides = [1, 1]} : vector<9x256xf32> to vector<8x256xf32>
      %247 = arith.addf %245, %246 : vector<8x256xf32>
      %248 = vector.extract_strided_slice %227 {offsets = [0, 0], sizes = [1, 256], strides = [1, 1]} : vector<2x256xf32> to vector<1x256xf32>
      %249 = vector.extract_strided_slice %242 {offsets = [0, 0], sizes = [1, 256], strides = [1, 1]} : vector<9x256xf32> to vector<1x256xf32>
      %250 = arith.addf %248, %249 : vector<1x256xf32>
      %cst_117 = arith.constant 0.000000e+00 : f32
      %251 = vector.broadcast %cst_117 : f32 to vector<7x256xf32>
      %252 = tpu.concatenate %250, %247, %251 in 0 : vector<1x256xf32>, vector<8x256xf32>, vector<7x256xf32> -> vector<16x256xf32>
      %c0_118 = arith.constant 0 : index
      %c0_119 = arith.constant 0 : index
      %253 = vector.load %arg29[%c0_118, %c0_119] : memref<32x256xf32, #tpu.memory_space<vmem>>, vector<16x256xf32>
      tpu.vector_store %arg29[%c0_118, %c0_119], %252 {strides = array<i32>} : memref<32x256xf32, #tpu.memory_space<vmem>>, vector<16x256xf32>,
      %254 = vector.extract_strided_slice %234 {offsets = [8, 0], sizes = [8, 128], strides = [1, 1]} : vector<16x128xf32> to vector<8x128xf32>
      %255 = vector.extract_strided_slice %241 {offsets = [8, 0], sizes = [8, 128], strides = [1, 1]} : vector<16x128xf32> to vector<8x128xf32>
      %256 = tpu.concatenate %254, %255 in 1 : vector<8x128xf32>, vector<8x128xf32> -> vector<8x256xf32>
      %257 = vector.extract_strided_slice %242 {offsets = [1, 0], sizes = [8, 256], strides = [1, 1]} : vector<9x256xf32> to vector<8x256xf32>
      %258 = arith.addf %256, %257 : vector<8x256xf32>
      %259 = vector.extract_strided_slice %227 {offsets = [1, 0], sizes = [1, 256], strides = [1, 1]} : vector<2x256xf32> to vector<1x256xf32>
      %260 = vector.extract_strided_slice %242 {offsets = [0, 0], sizes = [1, 256], strides = [1, 1]} : vector<9x256xf32> to vector<1x256xf32>
      %261 = arith.addf %259, %260 : vector<1x256xf32>
      %cst_120 = arith.constant 0.000000e+00 : f32
      %262 = vector.broadcast %cst_120 : f32 to vector<7x256xf32>
      %263 = tpu.concatenate %261, %258, %262 in 0 : vector<1x256xf32>, vector<8x256xf32>, vector<7x256xf32> -> vector<16x256xf32>
      %c16 = arith.constant 16 : index
      %c0_121 = arith.constant 0 : index
      %264 = vector.load %arg29[%c16, %c0_121] : memref<32x256xf32, #tpu.memory_space<vmem>>, vector<16x256xf32>
      tpu.vector_store %arg29[%c16, %c0_121], %263 {strides = array<i32>} : memref<32x256xf32, #tpu.memory_space<vmem>>, vector<16x256xf32>,
    } else {
    }
    %c0 = arith.constant 0 : index
    %c0_1 = arith.constant 0 : index
    %3 = vector.load %arg29[%c0, %c0_1] : memref<32x256xf32, #tpu.memory_space<vmem>>, vector<32x256xf32>
    %c0_2 = arith.constant 0 : index
    %c0_3 = arith.constant 0 : index
    %c0_4 = arith.constant 0 : index
    %4 = vector.load %arg16[%c0_2, %c0_3, %c0_4] : memref<1x256x768xbf16, #tpu.memory_space<vmem>>, vector<1x256x768xbf16>
    %5 = vector.shape_cast %4 : vector<1x256x768xbf16> to vector<256x768xbf16>
    %c0_5 = arith.constant 0 : index
    %c0_6 = arith.constant 0 : index
    %c0_7 = arith.constant 0 : index
    %6 = vector.load %arg17[%c0_5, %c0_6, %c0_7] : memref<1x1x768xf32, #tpu.memory_space<vmem>>, vector<1x1x768xf32>
    %7 = vector.shape_cast %6 : vector<1x1x768xf32> to vector<1x768xf32>
    %8 = arith.truncf %3 : vector<32x256xf32> to vector<32x256xbf16>
    %cst = arith.constant dense<0.000000e+00> : vector<32x768xf32>
    %9 = tpu.matmul %8, %5, %cst {dimension_numbers = #tpu.dot_dimension_numbers<[1], [0], [0], [1], [0, 0, 1, 1], [], []>} : vector<32x256xbf16>, vector<256x768xbf16>, vector<32x768xf32> -> vector<32x768xf32>
    %10 = vector.broadcast %7 : vector<1x768xf32> to vector<32x768xf32>
    %11 = arith.addf %9, %10 : vector<32x768xf32>
    %12 = vector.extract_strided_slice %11 {offsets = [0, 0], sizes = [32, 256], strides = [1, 1]} : vector<32x768xf32> to vector<32x256xf32>
    %cst_8 = arith.constant 1.250000e-01 : f32
    %13 = vector.broadcast %cst_8 : f32 to vector<32x256xf32>
    %14 = arith.mulf %12, %13 : vector<32x256xf32>
    %15 = vector.extract_strided_slice %11 {offsets = [0, 256], sizes = [32, 256], strides = [1, 1]} : vector<32x768xf32> to vector<32x256xf32>
    %16 = vector.extract_strided_slice %11 {offsets = [0, 512], sizes = [32, 256], strides = [1, 1]} : vector<32x768xf32> to vector<32x256xf32>
    %c0_9 = arith.constant 0 : index
    %c0_10 = arith.constant 0 : index
    %17 = vector.load %arg5[%c0_9, %c0_10] : memref<32x32xf32, #tpu.memory_space<vmem>>, vector<32x32xf32>
    %18 = vector.extract_strided_slice %14 {offsets = [0, 0], sizes = [32, 64], strides = [1, 1]} : vector<32x256xf32> to vector<32x64xf32>
    %19 = vector.extract_strided_slice %15 {offsets = [0, 0], sizes = [32, 64], strides = [1, 1]} : vector<32x256xf32> to vector<32x64xf32>
    %20 = vector.extract_strided_slice %16 {offsets = [0, 0], sizes = [32, 64], strides = [1, 1]} : vector<32x256xf32> to vector<32x64xf32>
    %cst_11 = arith.constant dense<0.000000e+00> : vector<32x32xf32>
    %21 = tpu.matmul %18, %19, %cst_11 {dimension_numbers = #tpu.dot_dimension_numbers<[1], [1], [0], [0], [0, 0, 1, 0], [], []>} : vector<32x64xf32>, vector<32x64xf32>, vector<32x32xf32> -> vector<32x32xf32>
    %22 = arith.addf %21, %17 : vector<32x32xf32>
    %cst_12 = arith.constant dense<0xFF800000> : vector<32xf32>
    %23 = vector.multi_reduction <maximumf>, %22, %cst_12 [1] : vector<32x32xf32> to vector<32xf32>
    %24 = vector.shape_cast %23 : vector<32xf32> to vector<32x1xf32>
    %25 = vector.broadcast %24 : vector<32x1xf32> to vector<32x32xf32>
    %26 = arith.subf %22, %25 : vector<32x32xf32>
    %27 = math.exp %26 : vector<32x32xf32>
    %cst_13 = arith.constant dense<0.000000e+00> : vector<32xf32>
    %28 = vector.multi_reduction <add>, %27, %cst_13 [1] : vector<32x32xf32> to vector<32xf32>
    %29 = vector.shape_cast %28 : vector<32xf32> to vector<32x1xf32>
    %30 = tpu.reciprocal %29 {approx = true} : vector<32x1xf32> -> vector<32x1xf32>
    %31 = vector.broadcast %30 : vector<32x1xf32> to vector<32x32xf32>
    %32 = arith.mulf %27, %31 : vector<32x32xf32>
    %cst_14 = arith.constant dense<0.000000e+00> : vector<32x64xf32>
    %33 = tpu.matmul %32, %20, %cst_14 {dimension_numbers = #tpu.dot_dimension_numbers<[1], [0], [0], [1], [0, 0, 1, 1], [], []>} : vector<32x32xf32>, vector<32x64xf32>, vector<32x64xf32> -> vector<32x64xf32>
    %34 = vector.extract_strided_slice %14 {offsets = [0, 64], sizes = [32, 64], strides = [1, 1]} : vector<32x256xf32> to vector<32x64xf32>
    %35 = vector.extract_strided_slice %15 {offsets = [0, 64], sizes = [32, 64], strides = [1, 1]} : vector<32x256xf32> to vector<32x64xf32>
    %36 = vector.extract_strided_slice %16 {offsets = [0, 64], sizes = [32, 64], strides = [1, 1]} : vector<32x256xf32> to vector<32x64xf32>
    %cst_15 = arith.constant dense<0.000000e+00> : vector<32x32xf32>
    %37 = tpu.matmul %34, %35, %cst_15 {dimension_numbers = #tpu.dot_dimension_numbers<[1], [1], [0], [0], [0, 0, 1, 0], [], []>} : vector<32x64xf32>, vector<32x64xf32>, vector<32x32xf32> -> vector<32x32xf32>
    %38 = arith.addf %37, %17 : vector<32x32xf32>
    %cst_16 = arith.constant dense<0xFF800000> : vector<32xf32>
    %39 = vector.multi_reduction <maximumf>, %38, %cst_16 [1] : vector<32x32xf32> to vector<32xf32>
    %40 = vector.shape_cast %39 : vector<32xf32> to vector<32x1xf32>
    %41 = vector.broadcast %40 : vector<32x1xf32> to vector<32x32xf32>
    %42 = arith.subf %38, %41 : vector<32x32xf32>
    %43 = math.exp %42 : vector<32x32xf32>
    %cst_17 = arith.constant dense<0.000000e+00> : vector<32xf32>
    %44 = vector.multi_reduction <add>, %43, %cst_17 [1] : vector<32x32xf32> to vector<32xf32>
    %45 = vector.shape_cast %44 : vector<32xf32> to vector<32x1xf32>
    %46 = tpu.reciprocal %45 {approx = true} : vector<32x1xf32> -> vector<32x1xf32>
    %47 = vector.broadcast %46 : vector<32x1xf32> to vector<32x32xf32>
    %48 = arith.mulf %43, %47 : vector<32x32xf32>
    %cst_18 = arith.constant dense<0.000000e+00> : vector<32x64xf32>
    %49 = tpu.matmul %48, %36, %cst_18 {dimension_numbers = #tpu.dot_dimension_numbers<[1], [0], [0], [1], [0, 0, 1, 1], [], []>} : vector<32x32xf32>, vector<32x64xf32>, vector<32x64xf32> -> vector<32x64xf32>
    %50 = vector.extract_strided_slice %14 {offsets = [0, 128], sizes = [32, 64], strides = [1, 1]} : vector<32x256xf32> to vector<32x64xf32>
    %51 = vector.extract_strided_slice %15 {offsets = [0, 128], sizes = [32, 64], strides = [1, 1]} : vector<32x256xf32> to vector<32x64xf32>
    %52 = vector.extract_strided_slice %16 {offsets = [0, 128], sizes = [32, 64], strides = [1, 1]} : vector<32x256xf32> to vector<32x64xf32>
    %cst_19 = arith.constant dense<0.000000e+00> : vector<32x32xf32>
    %53 = tpu.matmul %50, %51, %cst_19 {dimension_numbers = #tpu.dot_dimension_numbers<[1], [1], [0], [0], [0, 0, 1, 0], [], []>} : vector<32x64xf32>, vector<32x64xf32>, vector<32x32xf32> -> vector<32x32xf32>
    %54 = arith.addf %53, %17 : vector<32x32xf32>
    %cst_20 = arith.constant dense<0xFF800000> : vector<32xf32>
    %55 = vector.multi_reduction <maximumf>, %54, %cst_20 [1] : vector<32x32xf32> to vector<32xf32>
    %56 = vector.shape_cast %55 : vector<32xf32> to vector<32x1xf32>
    %57 = vector.broadcast %56 : vector<32x1xf32> to vector<32x32xf32>
    %58 = arith.subf %54, %57 : vector<32x32xf32>
    %59 = math.exp %58 : vector<32x32xf32>
    %cst_21 = arith.constant dense<0.000000e+00> : vector<32xf32>
    %60 = vector.multi_reduction <add>, %59, %cst_21 [1] : vector<32x32xf32> to vector<32xf32>
    %61 = vector.shape_cast %60 : vector<32xf32> to vector<32x1xf32>
    %62 = tpu.reciprocal %61 {approx = true} : vector<32x1xf32> -> vector<32x1xf32>
    %63 = vector.broadcast %62 : vector<32x1xf32> to vector<32x32xf32>
    %64 = arith.mulf %59, %63 : vector<32x32xf32>
    %cst_22 = arith.constant dense<0.000000e+00> : vector<32x64xf32>
    %65 = tpu.matmul %64, %52, %cst_22 {dimension_numbers = #tpu.dot_dimension_numbers<[1], [0], [0], [1], [0, 0, 1, 1], [], []>} : vector<32x32xf32>, vector<32x64xf32>, vector<32x64xf32> -> vector<32x64xf32>
    %66 = vector.extract_strided_slice %14 {offsets = [0, 192], sizes = [32, 64], strides = [1, 1]} : vector<32x256xf32> to vector<32x64xf32>
    %67 = vector.extract_strided_slice %15 {offsets = [0, 192], sizes = [32, 64], strides = [1, 1]} : vector<32x256xf32> to vector<32x64xf32>
    %68 = vector.extract_strided_slice %16 {offsets = [0, 192], sizes = [32, 64], strides = [1, 1]} : vector<32x256xf32> to vector<32x64xf32>
    %cst_23 = arith.constant dense<0.000000e+00> : vector<32x32xf32>
    %69 = tpu.matmul %66, %67, %cst_23 {dimension_numbers = #tpu.dot_dimension_numbers<[1], [1], [0], [0], [0, 0, 1, 0], [], []>} : vector<32x64xf32>, vector<32x64xf32>, vector<32x32xf32> -> vector<32x32xf32>
    %70 = arith.addf %69, %17 : vector<32x32xf32>
    %cst_24 = arith.constant dense<0xFF800000> : vector<32xf32>
    %71 = vector.multi_reduction <maximumf>, %70, %cst_24 [1] : vector<32x32xf32> to vector<32xf32>
    %72 = vector.shape_cast %71 : vector<32xf32> to vector<32x1xf32>
    %73 = vector.broadcast %72 : vector<32x1xf32> to vector<32x32xf32>
    %74 = arith.subf %70, %73 : vector<32x32xf32>
    %75 = math.exp %74 : vector<32x32xf32>
    %cst_25 = arith.constant dense<0.000000e+00> : vector<32xf32>
    %76 = vector.multi_reduction <add>, %75, %cst_25 [1] : vector<32x32xf32> to vector<32xf32>
    %77 = vector.shape_cast %76 : vector<32xf32> to vector<32x1xf32>
    %78 = tpu.reciprocal %77 {approx = true} : vector<32x1xf32> -> vector<32x1xf32>
    %79 = vector.broadcast %78 : vector<32x1xf32> to vector<32x32xf32>
    %80 = arith.mulf %75, %79 : vector<32x32xf32>
    %cst_26 = arith.constant dense<0.000000e+00> : vector<32x64xf32>
    %81 = tpu.matmul %80, %68, %cst_26 {dimension_numbers = #tpu.dot_dimension_numbers<[1], [0], [0], [1], [0, 0, 1, 1], [], []>} : vector<32x32xf32>, vector<32x64xf32>, vector<32x64xf32> -> vector<32x64xf32>
    %82 = tpu.concatenate %33, %49, %65, %81 in 1 : vector<32x64xf32>, vector<32x64xf32>, vector<32x64xf32>, vector<32x64xf32> -> vector<32x256xf32>
    %c0_27 = arith.constant 0 : index
    %c0_28 = arith.constant 0 : index
    %c0_29 = arith.constant 0 : index
    %83 = vector.load %arg18[%c0_27, %c0_28, %c0_29] : memref<1x256x256xbf16, #tpu.memory_space<vmem>>, vector<1x256x256xbf16>
    %84 = vector.shape_cast %83 : vector<1x256x256xbf16> to vector<256x256xbf16>
    %c0_30 = arith.constant 0 : index
    %c0_31 = arith.constant 0 : index
    %c0_32 = arith.constant 0 : index
    %85 = vector.load %arg19[%c0_30, %c0_31, %c0_32] : memref<1x1x256xf32, #tpu.memory_space<vmem>>, vector<1x1x256xf32>
    %86 = vector.shape_cast %85 : vector<1x1x256xf32> to vector<1x256xf32>
    %87 = arith.truncf %82 : vector<32x256xf32> to vector<32x256xbf16>
    %cst_33 = arith.constant dense<0.000000e+00> : vector<32x256xf32>
    %88 = tpu.matmul %87, %84, %cst_33 {dimension_numbers = #tpu.dot_dimension_numbers<[1], [0], [0], [1], [0, 0, 1, 1], [], []>} : vector<32x256xbf16>, vector<256x256xbf16>, vector<32x256xf32> -> vector<32x256xf32>
    %89 = vector.broadcast %86 : vector<1x256xf32> to vector<32x256xf32>
    %90 = arith.addf %88, %89 : vector<32x256xf32>
    %91 = arith.addf %3, %90 : vector<32x256xf32>
    %c0_34 = arith.constant 0 : index
    %c0_35 = arith.constant 0 : index
    %c0_36 = arith.constant 0 : index
    %92 = vector.load %arg24[%c0_34, %c0_35, %c0_36] : memref<1x1x256xf32, #tpu.memory_space<vmem>>, vector<1x1x256xf32>
    %93 = vector.shape_cast %92 : vector<1x1x256xf32> to vector<1x256xf32>
    %c0_37 = arith.constant 0 : index
    %c0_38 = arith.constant 0 : index
    %c0_39 = arith.constant 0 : index
    %94 = vector.load %arg25[%c0_37, %c0_38, %c0_39] : memref<1x1x256xf32, #tpu.memory_space<vmem>>, vector<1x1x256xf32>
    %95 = vector.shape_cast %94 : vector<1x1x256xf32> to vector<1x256xf32>
    %cst_40 = arith.constant dense<0.000000e+00> : vector<32xf32>
    %96 = vector.multi_reduction <add>, %91, %cst_40 [1] : vector<32x256xf32> to vector<32xf32>
    %97 = vector.shape_cast %96 : vector<32xf32> to vector<32x1xf32>
    %cst_41 = arith.constant 2.560000e+02 : f32
    %98 = vector.broadcast %cst_41 : f32 to vector<32x1xf32>
    %99 = arith.divf %97, %98 : vector<32x1xf32>
    %100 = vector.broadcast %99 : vector<32x1xf32> to vector<32x256xf32>
    %101 = arith.subf %91, %100 : vector<32x256xf32>
    %102 = vector.broadcast %99 : vector<32x1xf32> to vector<32x256xf32>
    %103 = arith.subf %91, %102 : vector<32x256xf32>
    %104 = arith.mulf %101, %103 : vector<32x256xf32>
    %cst_42 = arith.constant dense<0.000000e+00> : vector<32xf32>
    %105 = vector.multi_reduction <add>, %104, %cst_42 [1] : vector<32x256xf32> to vector<32xf32>
    %106 = vector.shape_cast %105 : vector<32xf32> to vector<32x1xf32>
    %cst_43 = arith.constant 2.560000e+02 : f32
    %107 = vector.broadcast %cst_43 : f32 to vector<32x1xf32>
    %108 = arith.divf %106, %107 : vector<32x1xf32>
    %109 = vector.broadcast %99 : vector<32x1xf32> to vector<32x256xf32>
    %110 = arith.subf %91, %109 : vector<32x256xf32>
    %cst_44 = arith.constant 9.99999974E-6 : f32
    %111 = vector.broadcast %cst_44 : f32 to vector<32x1xf32>
    %112 = arith.addf %108, %111 : vector<32x1xf32>
    %113 = math.rsqrt %112 : vector<32x1xf32>
    %114 = vector.broadcast %113 : vector<32x1xf32> to vector<32x256xf32>
    %115 = arith.mulf %110, %114 : vector<32x256xf32>
    %116 = vector.broadcast %93 : vector<1x256xf32> to vector<32x256xf32>
    %117 = arith.mulf %115, %116 : vector<32x256xf32>
    %118 = vector.broadcast %95 : vector<1x256xf32> to vector<32x256xf32>
    %119 = arith.addf %117, %118 : vector<32x256xf32>
    %c0_45 = arith.constant 0 : index
    %c0_46 = arith.constant 0 : index
    %c0_47 = arith.constant 0 : index
    %120 = vector.load %arg20[%c0_45, %c0_46, %c0_47] : memref<1x256x1024xbf16, #tpu.memory_space<vmem>>, vector<1x256x1024xbf16>
    %121 = vector.shape_cast %120 : vector<1x256x1024xbf16> to vector<256x1024xbf16>
    %c0_48 = arith.constant 0 : index
    %c0_49 = arith.constant 0 : index
    %c0_50 = arith.constant 0 : index
    %122 = vector.load %arg21[%c0_48, %c0_49, %c0_50] : memref<1x1x1024xf32, #tpu.memory_space<vmem>>, vector<1x1x1024xf32>
    %123 = vector.shape_cast %122 : vector<1x1x1024xf32> to vector<1x1024xf32>
    %124 = arith.truncf %119 : vector<32x256xf32> to vector<32x256xbf16>
    %cst_51 = arith.constant dense<0.000000e+00> : vector<32x1024xf32>
    %125 = tpu.matmul %124, %121, %cst_51 {dimension_numbers = #tpu.dot_dimension_numbers<[1], [0], [0], [1], [0, 0, 1, 1], [], []>} : vector<32x256xbf16>, vector<256x1024xbf16>, vector<32x1024xf32> -> vector<32x1024xf32>
    %126 = vector.broadcast %123 : vector<1x1024xf32> to vector<32x1024xf32>
    %127 = arith.addf %125, %126 : vector<32x1024xf32>
    %cst_52 = arith.constant 5.000000e-01 : f32
    %128 = vector.broadcast %cst_52 : f32 to vector<32x1024xf32>
    %129 = arith.mulf %128, %127 : vector<32x1024xf32>
    %cst_53 = arith.constant 0.707106769 : f32
    %130 = vector.broadcast %cst_53 : f32 to vector<32x1024xf32>
    %131 = arith.mulf %127, %130 : vector<32x1024xf32>
    %132 = math.absf %131 : vector<32x1024xf32>
    %cst_54 = arith.constant 0.327591091 : f32
    %133 = vector.broadcast %cst_54 : f32 to vector<32x1024xf32>
    %134 = arith.mulf %133, %132 : vector<32x1024xf32>
    %cst_55 = arith.constant 1.000000e+00 : f32
    %135 = vector.broadcast %cst_55 : f32 to vector<32x1024xf32>
    %136 = arith.addf %135, %134 : vector<32x1024xf32>
    %137 = tpu.reciprocal %136 {approx = true} : vector<32x1024xf32> -> vector<32x1024xf32>
    %cst_56 = arith.constant 1.06140542 : f32
    %138 = vector.broadcast %cst_56 : f32 to vector<32x1024xf32>
    %139 = arith.mulf %138, %137 : vector<32x1024xf32>
    %cst_57 = arith.constant -1.45315206 : f32
    %140 = vector.broadcast %cst_57 : f32 to vector<32x1024xf32>
    %141 = arith.addf %139, %140 : vector<32x1024xf32>
    %142 = arith.mulf %141, %137 : vector<32x1024xf32>
    %cst_58 = arith.constant 1.42141378 : f32
    %143 = vector.broadcast %cst_58 : f32 to vector<32x1024xf32>
    %144 = arith.addf %142, %143 : vector<32x1024xf32>
    %145 = arith.mulf %144, %137 : vector<32x1024xf32>
    %cst_59 = arith.constant -0.284496725 : f32
    %146 = vector.broadcast %cst_59 : f32 to vector<32x1024xf32>
    %147 = arith.addf %145, %146 : vector<32x1024xf32>
    %148 = arith.mulf %147, %137 : vector<32x1024xf32>
    %cst_60 = arith.constant 0.254829586 : f32
    %149 = vector.broadcast %cst_60 : f32 to vector<32x1024xf32>
    %150 = arith.addf %148, %149 : vector<32x1024xf32>
    %151 = arith.mulf %150, %137 : vector<32x1024xf32>
    %cst_61 = arith.constant 0.000000e+00 : f32
    %152 = vector.broadcast %cst_61 : f32 to vector<32x1024xf32>
    %153 = arith.subf %152, %132 : vector<32x1024xf32>
    %154 = arith.mulf %153, %132 : vector<32x1024xf32>
    %155 = math.exp %154 : vector<32x1024xf32>
    %156 = arith.mulf %151, %155 : vector<32x1024xf32>
    %cst_62 = arith.constant 1.000000e+00 : f32
    %157 = vector.broadcast %cst_62 : f32 to vector<32x1024xf32>
    %158 = arith.subf %157, %156 : vector<32x1024xf32>
    %cst_63 = arith.constant 0.000000e+00 : f32
    %159 = vector.broadcast %cst_63 : f32 to vector<32x1024xf32>
    %160 = arith.cmpf oge, %131, %159 : vector<32x1024xf32>
    %cst_64 = arith.constant 0.000000e+00 : f32
    %161 = vector.broadcast %cst_64 : f32 to vector<32x1024xf32>
    %162 = arith.subf %161, %158 : vector<32x1024xf32>
    %163 = arith.select %160, %158, %162 : vector<32x1024xi1>, vector<32x1024xf32>
    %cst_65 = arith.constant 1.000000e+00 : f32
    %164 = vector.broadcast %cst_65 : f32 to vector<32x1024xf32>
    %165 = arith.addf %164, %163 : vector<32x1024xf32>
    %166 = arith.mulf %129, %165 : vector<32x1024xf32>
    %c0_66 = arith.constant 0 : index
    %c0_67 = arith.constant 0 : index
    %c0_68 = arith.constant 0 : index
    %167 = vector.load %arg22[%c0_66, %c0_67, %c0_68] : memref<1x1024x256xbf16, #tpu.memory_space<vmem>>, vector<1x1024x256xbf16>
    %168 = vector.shape_cast %167 : vector<1x1024x256xbf16> to vector<1024x256xbf16>
    %c0_69 = arith.constant 0 : index
    %c0_70 = arith.constant 0 : index
    %c0_71 = arith.constant 0 : index
    %169 = vector.load %arg23[%c0_69, %c0_70, %c0_71] : memref<1x1x256xf32, #tpu.memory_space<vmem>>, vector<1x1x256xf32>
    %170 = vector.shape_cast %169 : vector<1x1x256xf32> to vector<1x256xf32>
    %171 = arith.truncf %166 : vector<32x1024xf32> to vector<32x1024xbf16>
    %cst_72 = arith.constant dense<0.000000e+00> : vector<32x256xf32>
    %172 = tpu.matmul %171, %168, %cst_72 {dimension_numbers = #tpu.dot_dimension_numbers<[1], [0], [0], [1], [0, 0, 1, 1], [], []>} : vector<32x1024xbf16>, vector<1024x256xbf16>, vector<32x256xf32> -> vector<32x256xf32>
    %173 = vector.broadcast %170 : vector<1x256xf32> to vector<32x256xf32>
    %174 = arith.addf %172, %173 : vector<32x256xf32>
    %175 = arith.addf %119, %174 : vector<32x256xf32>
    %c0_73 = arith.constant 0 : index
    %c0_74 = arith.constant 0 : index
    %c0_75 = arith.constant 0 : index
    %176 = vector.load %arg26[%c0_73, %c0_74, %c0_75] : memref<1x1x256xf32, #tpu.memory_space<vmem>>, vector<1x1x256xf32>
    %177 = vector.shape_cast %176 : vector<1x1x256xf32> to vector<1x256xf32>
    %c0_76 = arith.constant 0 : index
    %c0_77 = arith.constant 0 : index
    %c0_78 = arith.constant 0 : index
    %178 = vector.load %arg27[%c0_76, %c0_77, %c0_78] : memref<1x1x256xf32, #tpu.memory_space<vmem>>, vector<1x1x256xf32>
    %179 = vector.shape_cast %178 : vector<1x1x256xf32> to vector<1x256xf32>
    %cst_79 = arith.constant dense<0.000000e+00> : vector<32xf32>
    %180 = vector.multi_reduction <add>, %175, %cst_79 [1] : vector<32x256xf32> to vector<32xf32>
    %181 = vector.shape_cast %180 : vector<32xf32> to vector<32x1xf32>
    %cst_80 = arith.constant 2.560000e+02 : f32
    %182 = vector.broadcast %cst_80 : f32 to vector<32x1xf32>
    %183 = arith.divf %181, %182 : vector<32x1xf32>
    %184 = vector.broadcast %183 : vector<32x1xf32> to vector<32x256xf32>
    %185 = arith.subf %175, %184 : vector<32x256xf32>
    %186 = vector.broadcast %183 : vector<32x1xf32> to vector<32x256xf32>
    %187 = arith.subf %175, %186 : vector<32x256xf32>
    %188 = arith.mulf %185, %187 : vector<32x256xf32>
    %cst_81 = arith.constant dense<0.000000e+00> : vector<32xf32>
    %189 = vector.multi_reduction <add>, %188, %cst_81 [1] : vector<32x256xf32> to vector<32xf32>
    %190 = vector.shape_cast %189 : vector<32xf32> to vector<32x1xf32>
    %cst_82 = arith.constant 2.560000e+02 : f32
    %191 = vector.broadcast %cst_82 : f32 to vector<32x1xf32>
    %192 = arith.divf %190, %191 : vector<32x1xf32>
    %193 = vector.broadcast %183 : vector<32x1xf32> to vector<32x256xf32>
    %194 = arith.subf %175, %193 : vector<32x256xf32>
    %cst_83 = arith.constant 9.99999974E-6 : f32
    %195 = vector.broadcast %cst_83 : f32 to vector<32x1xf32>
    %196 = arith.addf %192, %195 : vector<32x1xf32>
    %197 = math.rsqrt %196 : vector<32x1xf32>
    %198 = vector.broadcast %197 : vector<32x1xf32> to vector<32x256xf32>
    %199 = arith.mulf %194, %198 : vector<32x256xf32>
    %200 = vector.broadcast %177 : vector<1x256xf32> to vector<32x256xf32>
    %201 = arith.mulf %199, %200 : vector<32x256xf32>
    %202 = vector.broadcast %179 : vector<1x256xf32> to vector<32x256xf32>
    %203 = arith.addf %201, %202 : vector<32x256xf32>
    %c0_84 = arith.constant 0 : index
    %c0_85 = arith.constant 0 : index
    %204 = vector.load %arg29[%c0_84, %c0_85] : memref<32x256xf32, #tpu.memory_space<vmem>>, vector<32x256xf32>
    tpu.vector_store %arg29[%c0_84, %c0_85], %203 {strides = array<i32>} : memref<32x256xf32, #tpu.memory_space<vmem>>, vector<32x256xf32>,
    %c7_i32 = arith.constant 7 : i32
    %205 = arith.cmpi eq, %arg0, %c7_i32 : i32
    %206 = arith.extui %205 : i1 to i32
    %c0_i32_86 = arith.constant 0 : i32
    %207 = arith.cmpi ne, %206, %c0_i32_86 : i32
    scf.if %207 {
      %c0_87 = arith.constant 0 : index
      %c0_88 = arith.constant 0 : index
      %208 = vector.load %arg14[%c0_87, %c0_88] : memref<256x128xbf16, #tpu.memory_space<vmem>>, vector<256x128xbf16>
      %c0_89 = arith.constant 0 : index
      %c0_90 = arith.constant 0 : index
      %209 = vector.load %arg15[%c0_89, %c0_90] : memref<1x128xf32, #tpu.memory_space<vmem>>, vector<1x128xf32>
      %210 = arith.truncf %203 : vector<32x256xf32> to vector<32x256xbf16>
      %cst_91 = arith.constant dense<0.000000e+00> : vector<32x128xf32>
      %211 = tpu.matmul %210, %208, %cst_91 {dimension_numbers = #tpu.dot_dimension_numbers<[1], [0], [0], [1], [0, 0, 1, 1], [], []>} : vector<32x256xbf16>, vector<256x128xbf16>, vector<32x128xf32> -> vector<32x128xf32>
      %212 = vector.broadcast %209 : vector<1x128xf32> to vector<32x128xf32>
      %213 = arith.addf %211, %212 : vector<32x128xf32>
      %c0_92 = arith.constant 0 : index
      %c0_93 = arith.constant 0 : index
      %214 = vector.load %arg28[%c0_92, %c0_93] : memref<32x128xf32, #tpu.memory_space<vmem>>, vector<32x128xf32>
      tpu.vector_store %arg28[%c0_92, %c0_93], %213 {strides = array<i32>} : memref<32x128xf32, #tpu.memory_space<vmem>>, vector<32x128xf32>,
    } else {
    }
    return
  }
  func.func @transform_0(%arg0: i32) -> (i32, i32) {
    %c0_i32 = arith.constant 0 : i32
    %c0_i32_0 = arith.constant 0 : i32
    %c0_i32_1 = arith.constant 0 : i32
    return %c0_i32, %c0_i32_0 : i32, i32
  }
  func.func @transform_1(%arg0: i32) -> (i32, i32) {
    %c0_i32 = arith.constant 0 : i32
    %c0_i32_0 = arith.constant 0 : i32
    %c0_i32_1 = arith.constant 0 : i32
    return %c0_i32, %c0_i32_0 : i32, i32
  }
  func.func @transform_2(%arg0: i32) -> (i32, i32) {
    %c0_i32 = arith.constant 0 : i32
    %c0_i32_0 = arith.constant 0 : i32
    %c0_i32_1 = arith.constant 0 : i32
    return %c0_i32, %c0_i32_0 : i32, i32
  }
  func.func @transform_3(%arg0: i32) -> (i32, i32) {
    %c0_i32 = arith.constant 0 : i32
    %c0_i32_0 = arith.constant 0 : i32
    %c0_i32_1 = arith.constant 0 : i32
    return %c0_i32, %c0_i32_0 : i32, i32
  }
  func.func @transform_4(%arg0: i32) -> (i32, i32) {
    %c0_i32 = arith.constant 0 : i32
    %c0_i32_0 = arith.constant 0 : i32
    %c0_i32_1 = arith.constant 0 : i32
    return %c0_i32, %c0_i32_0 : i32, i32
  }
  func.func @transform_5(%arg0: i32) -> (i32, i32) {
    %c0_i32 = arith.constant 0 : i32
    %c0_i32_0 = arith.constant 0 : i32
    %c0_i32_1 = arith.constant 0 : i32
    return %c0_i32, %c0_i32_0 : i32, i32
  }
  func.func @transform_6(%arg0: i32) -> (i32, i32) {
    %c0_i32 = arith.constant 0 : i32
    %c0_i32_0 = arith.constant 0 : i32
    %c0_i32_1 = arith.constant 0 : i32
    return %c0_i32, %c0_i32_0 : i32, i32
  }
  func.func @transform_7(%arg0: i32) -> (i32, i32) {
    %c0_i32 = arith.constant 0 : i32
    %c0_i32_0 = arith.constant 0 : i32
    %c0_i32_1 = arith.constant 0 : i32
    return %c0_i32, %c0_i32_0 : i32, i32
  }
  func.func @transform_8(%arg0: i32) -> (i32, i32) {
    %c0_i32 = arith.constant 0 : i32
    %c0_i32_0 = arith.constant 0 : i32
    %c0_i32_1 = arith.constant 0 : i32
    return %c0_i32, %c0_i32_0 : i32, i32
  }
  func.func @transform_9(%arg0: i32) -> (i32, i32) {
    %c0_i32 = arith.constant 0 : i32
    %c0_i32_0 = arith.constant 0 : i32
    %c0_i32_1 = arith.constant 0 : i32
    return %c0_i32, %c0_i32_0 : i32, i32
  }
  func.func @transform_10(%arg0: i32) -> (i32, i32) {
    %c0_i32 = arith.constant 0 : i32
    %c0_i32_0 = arith.constant 0 : i32
    %c0_i32_1 = arith.constant 0 : i32
    return %c0_i32, %c0_i32_0 : i32, i32
  }
  func.func @transform_11(%arg0: i32) -> (i32, i32) {
    %c0_i32 = arith.constant 0 : i32
    %c0_i32_0 = arith.constant 0 : i32
    %c0_i32_1 = arith.constant 0 : i32
    return %c0_i32, %c0_i32_0 : i32, i32
  }
  func.func @transform_12(%arg0: i32) -> (i32, i32) {
    %c0_i32 = arith.constant 0 : i32
    %c0_i32_0 = arith.constant 0 : i32
    %c0_i32_1 = arith.constant 0 : i32
    return %c0_i32, %c0_i32_0 : i32, i32
  }
  func.func @transform_13(%arg0: i32) -> (i32, i32) {
    %c0_i32 = arith.constant 0 : i32
    %c0_i32_0 = arith.constant 0 : i32
    %c0_i32_1 = arith.constant 0 : i32
    return %c0_i32, %c0_i32_0 : i32, i32
  }
  func.func @transform_14(%arg0: i32) -> (i32, i32) {
    %c0_i32 = arith.constant 0 : i32
    %c0_i32_0 = arith.constant 0 : i32
    %c0_i32_1 = arith.constant 0 : i32
    return %c0_i32, %c0_i32_0 : i32, i32
  }
  func.func @transform_15(%arg0: i32) -> (i32, i32, i32) {
    %c0_i32 = arith.constant 0 : i32
    %c0_i32_0 = arith.constant 0 : i32
    %c0_i32_1 = arith.constant 0 : i32
    return %arg0, %c0_i32, %c0_i32_0 : i32, i32, i32
  }
  func.func @transform_16(%arg0: i32) -> (i32, i32, i32) {
    %c0_i32 = arith.constant 0 : i32
    %c0_i32_0 = arith.constant 0 : i32
    %c0_i32_1 = arith.constant 0 : i32
    return %arg0, %c0_i32, %c0_i32_0 : i32, i32, i32
  }
  func.func @transform_17(%arg0: i32) -> (i32, i32, i32) {
    %c0_i32 = arith.constant 0 : i32
    %c0_i32_0 = arith.constant 0 : i32
    %c0_i32_1 = arith.constant 0 : i32
    return %arg0, %c0_i32, %c0_i32_0 : i32, i32, i32
  }
  func.func @transform_18(%arg0: i32) -> (i32, i32, i32) {
    %c0_i32 = arith.constant 0 : i32
    %c0_i32_0 = arith.constant 0 : i32
    %c0_i32_1 = arith.constant 0 : i32
    return %arg0, %c0_i32, %c0_i32_0 : i32, i32, i32
  }
  func.func @transform_19(%arg0: i32) -> (i32, i32, i32) {
    %c0_i32 = arith.constant 0 : i32
    %c0_i32_0 = arith.constant 0 : i32
    %c0_i32_1 = arith.constant 0 : i32
    return %arg0, %c0_i32, %c0_i32_0 : i32, i32, i32
  }
  func.func @transform_20(%arg0: i32) -> (i32, i32, i32) {
    %c0_i32 = arith.constant 0 : i32
    %c0_i32_0 = arith.constant 0 : i32
    %c0_i32_1 = arith.constant 0 : i32
    return %arg0, %c0_i32, %c0_i32_0 : i32, i32, i32
  }
  func.func @transform_21(%arg0: i32) -> (i32, i32, i32) {
    %c0_i32 = arith.constant 0 : i32
    %c0_i32_0 = arith.constant 0 : i32
    %c0_i32_1 = arith.constant 0 : i32
    return %arg0, %c0_i32, %c0_i32_0 : i32, i32, i32
  }
  func.func @transform_22(%arg0: i32) -> (i32, i32, i32) {
    %c0_i32 = arith.constant 0 : i32
    %c0_i32_0 = arith.constant 0 : i32
    %c0_i32_1 = arith.constant 0 : i32
    return %arg0, %c0_i32, %c0_i32_0 : i32, i32, i32
  }
  func.func @transform_23(%arg0: i32) -> (i32, i32, i32) {
    %c0_i32 = arith.constant 0 : i32
    %c0_i32_0 = arith.constant 0 : i32
    %c0_i32_1 = arith.constant 0 : i32
    return %arg0, %c0_i32, %c0_i32_0 : i32, i32, i32
  }
  func.func @transform_24(%arg0: i32) -> (i32, i32, i32) {
    %c0_i32 = arith.constant 0 : i32
    %c0_i32_0 = arith.constant 0 : i32
    %c0_i32_1 = arith.constant 0 : i32
    return %arg0, %c0_i32, %c0_i32_0 : i32, i32, i32
  }
  func.func @transform_25(%arg0: i32) -> (i32, i32, i32) {
    %c0_i32 = arith.constant 0 : i32
    %c0_i32_0 = arith.constant 0 : i32
    %c0_i32_1 = arith.constant 0 : i32
    return %arg0, %c0_i32, %c0_i32_0 : i32, i32, i32
  }
  func.func @transform_26(%arg0: i32) -> (i32, i32, i32) {
    %c0_i32 = arith.constant 0 : i32
    %c0_i32_0 = arith.constant 0 : i32
    %c0_i32_1 = arith.constant 0 : i32
    return %arg0, %c0_i32, %c0_i32_0 : i32, i32, i32
  }
  func.func @transform_27(%arg0: i32) -> (i32, i32) {
    %c0_i32 = arith.constant 0 : i32
    %c0_i32_0 = arith.constant 0 : i32
    %c0_i32_1 = arith.constant 0 : i32
    return %c0_i32, %c0_i32_0 : i32, i32
  }
}

</mosaic_0001>

<bundles_post_ra>
// kernel: mrm_forward.1
= control target key start
LH: loop header
LB: loop body
LE: loop exit
PB: predicated region body
PF: predicated region fallthrough
CT: control target
= control target key end

     0   :  { %s12909_s0 = inlined_call_operand.vmem [shape: f32[2,64], index: 0, kind: input, shape index: {}]   ;;  %s12910_s1 = inlined_call_operand.vmem [shape: f32[16,12], index: 1, kind: input, shape index: {}]   ;;  %s12911_s2 = inlined_call_operand.hbm [shape: f32[16,17], index: 2, kind: input, shape index: {}]   ;;  %s12912_s3 = inlined_call_operand.vmem [shape: f32[9,256], index: 3, kind: input, shape index: {}]   ;;  %s12913_s4 = inlined_call_operand.vmem [shape: f32[32,32], index: 4, kind: input, shape index: {}]   ;;  %s12914_s5 = inlined_call_operand.hbm [shape: bf16[12,128], index: 5, kind: input, shape index: {}]   ;;  %s12915_s6 = inlined_call_operand.hbm [shape: f32[1,128], index: 6, kind: input, shape index: {}]   ;;  %s12916_s7 = inlined_call_operand.hbm [shape: bf16[17,128], index: 7, kind: input, shape index: {}]   ;;  %s12917_s8 = inlined_call_operand.hbm [shape: f32[1,128], index: 8, kind: input, shape index: {}]   ;;  %s12918_s9 = inlined_call_operand.hbm [shape: bf16[64,256], index: 9, kind: input, shape index: {}]   ;;  %s12919_s10 = inlined_call_operand.hbm [shape: f32[1,256], index: 10, kind: input, shape index: {}]   ;;  %s12920_s11 = inlined_call_operand.hbm [shape: bf16[256,256], index: 11, kind: input, shape index: {}]   ;;  %s12921_s12 = inlined_call_operand.hbm [shape: f32[1,256], index: 12, kind: input, shape index: {}]   ;;  %s12922_s13 = inlined_call_operand.hbm [shape: bf16[256,128], index: 13, kind: input, shape index: {}]   ;;  %s12923_s14 = inlined_call_operand.hbm [shape: f32[1,128], index: 14, kind: input, shape index: {}]   ;;  %s12924_s15 = inlined_call_operand.hbm [shape: bf16[8,256,768], index: 15, kind: input, shape index: {}]   ;;  %s12925_s16 = inlined_call_operand.hbm [shape: f32[8,1,768], index: 16, kind: input, shape index: {}]   ;;  %s12926_s17 = inlined_call_operand.hbm [shape: bf16[8,256,256], index: 17, kind: input, shape index: {}]   ;;  %s12927_s18 = inlined_call_operand.hbm [shape: f32[8,1,256], index: 18, kind: input, shape index: {}]   ;;  %s12928_s19 = inlined_call_operand.hbm [shape: bf16[8,256,1024], index: 19, kind: input, shape index: {}]   ;;  %s12929_s20 = inlined_call_operand.hbm [shape: f32[8,1,1024], index: 20, kind: input, shape index: {}]   ;;  %s12930_s21 = inlined_call_operand.hbm [shape: bf16[8,1024,256], index: 21, kind: input, shape index: {}]   ;;  %s12931_s22 = inlined_call_operand.hbm [shape: f32[8,1,256], index: 22, kind: input, shape index: {}]   ;;  %s12932_s23 = inlined_call_operand.hbm [shape: f32[8,1,256], index: 23, kind: input, shape index: {}]   ;;  %s12933_s24 = inlined_call_operand.hbm [shape: f32[8,1,256], index: 24, kind: input, shape index: {}]   ;;  %s12934_s25 = inlined_call_operand.hbm [shape: f32[8,1,256], index: 25, kind: input, shape index: {}]   ;;  %s12935_s26 = inlined_call_operand.hbm [shape: f32[8,1,256], index: 26, kind: input, shape index: {}]   ;;  %s12936_s27 = inlined_call_operand.vmem [shape: f32[32,128], index: 27, kind: output, shape index: {}]  }
   0x1   :  { %13011 = sst [smem:[#allocation85_spill]] %s12909_s0 }
   0x2   :  { %13012 = sst [smem:[#allocation86_spill]] %s12910_s1 }
   0x3   :  { %13013 = sst [smem:[#allocation87_spill]] %s12911_s2 }
   0x4   :  { %13014 = sst [smem:[#allocation88_spill]] %s12912_s3 }
   0x5   :  { %13015 = sst [smem:[#allocation89_spill]] %s12913_s4 }
   0x6   :  { %13016 = sst [smem:[#allocation90_spill]] %s12914_s5 }
   0x7   :  { %13017 = sst [smem:[#allocation91_spill]] %s12915_s6 }
   0x8   :  { %13018 = sst [smem:[#allocation92_spill]] %s12916_s7 }
   0x9   :  { %13019 = sst [smem:[#allocation93_spill]] %s12917_s8 }
   0xa   :  { %13020 = sst [smem:[#allocation94_spill]] %s12918_s9 }
   0xb   :  { %13021 = sst [smem:[#allocation95_spill]] %s12919_s10 }
   0xc   :  { %13022 = sst [smem:[#allocation96_spill]] %s12920_s11 }
   0xd   :  { %13023 = sst [smem:[#allocation97_spill]] %s12922_s13 }
   0xe   :  { %13024 = sst [smem:[#allocation98_spill]] %s12924_s15 }
   0xf   :  { %13025 = sst [smem:[#allocation99_spill]] %s12926_s17 }
  0x10   :  { %13026 = sst [smem:[#allocation100_spill]] %s12928_s19 }
  0x11   :  { %13027 = sst [smem:[#allocation101_spill]] %s12929_s20 }
  0x12   :  { %13028 = sst [smem:[#allocation102_spill]] %s12931_s22 }
  0x13   :  { %13029 = sst [smem:[#allocation103_spill]] %s12933_s24 }
  0x14   :  { %13030 = sst [smem:[#allocation104_spill]] %s12935_s26 }
  0x15   :  { %13031 = sst [smem:[#allocation105_spill]] %s12936_s27 }
  0x16   :  { %32 = vsyncpa [#allocation4], 0 }
  0x17   :  { %33 = vsyncpa [#allocation6], 0 }
  0x18   :  { %34 = vsyncpa [#allocation9], 0 }
  0x19   :  { %35 = vsyncpa [#allocation12], 0 }
  0x1a   :  { %36 = vsyncpa [#allocation15], 0 }
  0x1b   :  { %37 = vsyncpa [#allocation18], 0 }
  0x1c   :  { %38 = vsyncpa [#allocation21], 0 }
  0x1d   :  { %40 = vsyncpa [#allocation21 + $0x1], 0 }
  0x1e   :  { %41 = vsyncpa [#allocation24], 0 }
  0x1f   :  { %43 = vsyncpa [#allocation24 + $0x1], 0 }
  0x20   :  { %44 = vsyncpa [#allocation27], 0 }
  0x21   :  { %46 = vsyncpa [#allocation27 + $0x1], 0 }
  0x22   :  { %47 = vsyncpa [#allocation30], 0 }
  0x23   :  { %49 = vsyncpa [#allocation30 + $0x1], 0 }
  0x24   :  { %50 = vsyncpa [#allocation33], 0 }
  0x25   :  { %52 = vsyncpa [#allocation33 + $0x1], 0 }
  0x26   :  { %53 = vsyncpa [#allocation36], 0 }
  0x27   :  { %55 = vsyncpa [#allocation36 + $0x1], 0  ;;  %s10396_s7 = smov 0   ;;  %s10398_s4 = smov 0  }
  0x28   :  { %s10400_s8 = smov 0   ;;  %s10402_s30 = smov 0  }
  0x29 LB: > { %13032 = sst [smem:[#allocation50_spill]] %s10211_s4  ;;  %s10221_s9 = smov [#allocation5]   ;;  %s10219_s30 = sphi %s10402_s30, %s13172_s30   ;;  %s10215_s8 = sphi %s10400_s8, %s13175_s8   ;;  %s10211_s4 = sphi %s10398_s4, %s13174_s4   ;;  %s10207_s7 = sphi %s10396_s7, %s13173_s7  }
  0x2a   : > { %13033 = sst [smem:[#allocation51_spill]] %s10215_s8  ;;  %s751_s5 = sshll.u32 %s10221_s9, 4  ;;  %s752_s5 = int_to_ptr.vmem [resolvable:$true] %s751_s5 }
  0x2b   : > { %s10417_s28 = sadd.s32 4294967295, %s10219_s30   ;;  %p7772_p0 = scmp.ge.s32.totalorder %s10219_s30, 1 }
  0x2c   : > { %13034 = sst [smem:[#allocation52_spill]] %s10417_s28  ;;  %p12951_p1 = scmp.eq.s32.totalorder %s10417_s28, 0 }
  0x2d   : > { %p714_p2 = scmp.lt.s32.totalorder %s10219_s30, 9  ;;  %s10222_s10 = smov [#allocation8]  }
  0x2e   : > { %s775_s29 = sshll.u32 %s10222_s10, 4  ;;  %s10223_s6 = smov [#allocation11]   ;;  %s776_s29 = int_to_ptr.vmem [resolvable:$true] %s775_s29 }
  0x2f   : > { %p10423_p4 = pnand %p7772_p0, %p714_p2  ;;  %s799_s11 = sshll.u32 %s10223_s6, 4  ;;  %s800_s11 = int_to_ptr.vmem [resolvable:$true] %s799_s11 }
  0x30   : > { %s9530_s3 = scalar_lea.vmem %s752_s5, 128  ;;  %p9538_p11 = scmp.lt.s32.totalorder %s752_s5, %s752_s5 }
  0x31   : > { %s13035_s0 = scalar_select %p10423_p4, 1, 0 }
  0x32   : > { %p8663_p5 = pneg %p10423_p4  ;;  %p9531_p8 = scmp.ne.s32.totalorder %s752_s5, %s9530_s3 }
  0x33   : > { %13036 = sst [smem:[#allocation53_spill]] %s13035_s0  ;;  %p9539_p12 = scmp.lt.s32.totalorder %s9530_s3, %s9530_s3 }
  0x34   : > { %p10431_p6 = pnand %p8663_p5, %p12951_p1 }
  0x35   : > { %p9540_p13 = por %p9539_p12, %p9538_p11 }
  0x36   : > { %s13037_s1 = scalar_select %p10431_p6, 1, 0 }
  0x37   : > { %p10437_p7 = pneg %p10431_p6 }
  0x39   : > { %s13038_s2 = scalar_select %p10437_p7, 1, 0 }
  0x3a   : > { %p9533_p9 = pnand %p9531_p8, %p10437_p7 }
  0x3c   : > { %p9534_p10 = pneg %p9533_p9 }
  0x3e   : > { %p9541_p0 = pnand %p9540_p13, %p9534_p10 }
  0x40   : > { %9544 = shalt.err (!%p9541_p0)
}
  0x41   : > { %s12945_s9 = smov 64   ;;  %s10225_s10 = smov 4  }
  0x42   : > { %s13039_s0 = sld [smem:[#allocation90_spill]]  ;;  %s9556_s26 = scalar_lea.vmem %s776_s29, 192 }
  0x43   : > { %p9557_p2 = scmp.ne.s32.totalorder %s776_s29, %s9556_s26  ;;  %p9564_p9 = scmp.lt.s32.totalorder %s776_s29, %s776_s29 }
  0x44   : > { %p9565_p10 = scmp.lt.s32.totalorder %s9556_s26, %s9556_s26 }
  0x45   : > { %p9559_p5 = pnand %p9557_p2, %p10437_p7 }
  0x46   : > { %p9566_p11 = por %p9565_p10, %p9564_p9 }
  0x47   : > { %p9560_p8 = pneg %p9559_p5 }
  0x48   : > { %8669 = dma.hbm_to_vmem [thread:$0]  (!%p10431_p6), %s13039_s0, 128, %s752_s5, [#allocation6], %s12945_s9, %s12945_s9, %s10225_s10  }
  0x49   : > { %p9567_p12 = pnand %p9566_p11, %p9560_p8 }
  0x4b   : > { %9570 = shalt.err (!%p9567_p12)
}
  0x4c   : > { %s13040_s22 = sld [smem:[#allocation92_spill]]  ;;  %s9582_s27 = scalar_lea.vmem %s800_s11, 1024 }
  0x4d   : > { %p9583_p13 = scmp.ne.s32.totalorder %s800_s11, %s9582_s27  ;;  %p9590_p5 = scmp.lt.s32.totalorder %s800_s11, %s800_s11 }
  0x4e   : > { %p9591_p9 = scmp.lt.s32.totalorder %s9582_s27, %s9582_s27 }
  0x4f   : > { %p9585_p0 = pnand %p9583_p13, %p10437_p7 }
  0x50   : > { %p9592_p8 = por %p9591_p9, %p9590_p5 }
  0x51   : > { %p9586_p2 = pneg %p9585_p0 }
  0x52   : > { %8675 = dma.hbm_to_vmem [thread:$0]  (!%p10431_p6), %s13040_s22, 192, %s776_s29, [#allocation9], %s12945_s9, %s12945_s9, %s10225_s10  }
  0x53   : > { %p9593_p10 = pnand %p9592_p8, %p9586_p2 }
  0x55   : > { %9596 = shalt.err (!%p9593_p10)
}
  0x56   : > { %s12946_s26 = smov 128   ;;  %s12948_s5 = smov 8  }
  0x57   : > { %s13041_s0 = sld [smem:[#allocation94_spill]]  ;;  %s10228_s29 = smov [#allocation14]  }
  0x58   : > { %s823_s6 = sshll.u32 %s10228_s29, 4  ;;  %s10229_s3 = smov [#allocation17]   ;;  %s824_s6 = int_to_ptr.vmem [resolvable:$true] %s823_s6 }
  0x59   : > { %s847_s27 = sshll.u32 %s10229_s3, 4  ;;  %s9608_s9 = scalar_lea.vmem %s824_s6, 4096  ;;  %s848_s27 = int_to_ptr.vmem [resolvable:$true] %s847_s27 }
  0x5a   : > { %p9609_p11 = scmp.ne.s32.totalorder %s824_s6, %s9608_s9  ;;  %p9616_p0 = scmp.lt.s32.totalorder %s824_s6, %s824_s6 }
  0x5b   : > { %p9617_p2 = scmp.lt.s32.totalorder %s9608_s9, %s9608_s9 }
  0x5c   : > { %p9611_p12 = pnand %p9609_p11, %p10437_p7 }
  0x5d   : > { %8681 = dma.hbm_to_vmem [thread:$0]  (!%p10431_p6), %s13041_s0, 1024, %s800_s11, [#allocation12], %s12946_s26, %s12946_s26, %s12948_s5  }
  0x5e   : > { %p9612_p13 = pneg %p9611_p12  ;;  %p9618_p5 = por %p9617_p2, %p9616_p0 }
  0x60   : > { %p9619_p9 = pnand %p9618_p5, %p9612_p13 }
  0x62   : > { %9622 = shalt.err (!%p9619_p9)
}
  0x63   : > { %s13042_s24 = sld [smem:[#allocation96_spill]]  ;;  %s9634_s0 = scalar_lea.vmem %s848_s27, 2048 }
  0x64   : > { %p9635_p8 = scmp.ne.s32.totalorder %s848_s27, %s9634_s0  ;;  %p9642_p12 = scmp.lt.s32.totalorder %s848_s27, %s848_s27 }
  0x65   : > { %p9643_p0 = scmp.lt.s32.totalorder %s9634_s0, %s9634_s0 }
  0x66   : > { %p9637_p10 = pnand %p9635_p8, %p10437_p7 }
  0x67   : > { %p9644_p13 = por %p9643_p0, %p9642_p12 }
  0x68   : > { %p9638_p11 = pneg %p9637_p10 }
  0x69   : > { %8687 = dma.hbm_to_vmem [thread:$0]  (!%p10431_p6), %s13042_s24, 4096, %s824_s6, [#allocation15], %s12946_s26, %s12946_s26, %s12948_s5  }
  0x6a   : > { %p9645_p2 = pnand %p9644_p13, %p9638_p11 }
  0x6c   : > { %9648 = shalt.err (!%p9645_p2)
}
  0x6d   : > { %s13043_s9 = smov 64   ;;  %s13044_s13 = sld [smem:[#allocation97_spill]] }
  0x6e   : > { %s10492_s6 = sadd.s32 1, %s10219_s30   ;;  %s383_s22 = sadd.s32 1, %s10215_s8 }
  0x6f   : > { %13045 = sst [smem:[#allocation54_spill]] %s10492_s6  ;;  %s380_s11 = ssub.s32 %s10219_s30, %s10492_s6 }
  0x70   : > { %p381_p5 = scmp.eq.s32.totalorder %s380_s11, 0  ;;  %p390_p9 = scmp.ne.s32.totalorder %s10215_s8, %s10211_s4 }
  0x71   : > { %p391_p8 = scmp.eq.s32.totalorder %s10219_s30, 0  ;;  %p396_p10 = scmp.ne.s32.totalorder %s10211_s4, %s10207_s7 }
  0x72   : > { %s10503_s24 = scalar_select %p381_p5, %s10215_s8, %s383_s22  }
  0x73   : > { %8693 = dma.hbm_to_vmem [thread:$0]  (!%p10431_p6), %s13044_s13, 2048, %s848_s27, [#allocation18], %s13043_s9, %s13043_s9, %s10225_s10  }
  0x74   : > { %13046 = sst [smem:[#allocation55_spill]] %s10503_s24  ;;  %p392_p11 = por %p391_p8, %p390_p9 }
  0x75   : > { %p10507_p12 = por %p12951_p1, %p396_p10  ;;  %p8745_p0 = scmp.lt.s32.totalorder %s10219_s30, 8 }
  0x76   : > { %s10513_s10 = sand.u32 1, %s10219_s30   ;;  %s10516_s27 = sand.u32 1, %s10215_s8  }
  0x77   : > { %s13047_s0 = scalar_select %p10507_p12, 1, 0 }
  0x78   : > { %s8589_s9 = smul.u32 768, %s10516_s27  ;;  %p10519_p13 = pnand %p8745_p0, %p392_p11 }
  0x79   : > { %13048 = sst [smem:[#allocation56_spill]] %s13047_s0  ;;  %s8590_s7 = smul.u32 12288, %s10219_s30 }
  0x7a   : > { %s13049_s29 = scalar_select %p10519_p13, 1, 0 }
  0x7b   : > { %s13050_s15 = sld [smem:[#allocation98_spill]]  ;;  %s876_s26 = scalar_lea.vmem [#allocation20], %s8589_s9 }
  0x7c   : > { %s883_s5 = sshll.u32 %s876_s26, 4  ;;  %p10536_p5 = pneg %p10519_p13  ;;  %s10529_s5 = int_to_ptr.vmem [resolvable:$true] %s883_s5 }
  0x7e   : > { %s13051_s8 = scalar_select %p10536_p5, 1, 0 }
  0x81   : > { %s10527_s22 = scalar_lea.hbm %s13050_s15, %s8590_s7  ;;  %s9654_s11 = scalar_lea.hbm %s13050_s15, 98304 }
  0x82   : > { %s9649_s24 = scalar_lea.hbm %s10527_s22, 12288  ;;  %p9655_p10 = scmp.lt.s32.totalorder %s10527_s22, %s13050_s15 }
  0x83   : > { %p9650_p2 = scmp.ne.s32.totalorder %s10527_s22, %s9649_s24  ;;  %p9656_p11 = scmp.lt.s32.totalorder %s9654_s11, %s9649_s24 }
  0x85   : > { %p9652_p9 = pnand %p10536_p5, %p9650_p2  ;;  %p9657_p0 = por %p9656_p11, %p9655_p10 }
  0x87   : > { %p9653_p8 = pneg %p9652_p9 }
  0x89   : > { %p9658_p3 = pnand %p9657_p0, %p9653_p8 }
  0x8b   : > { %9661 = shalt.err (!%p9658_p3)
}
  0x8c   : > { %s9662_s13 = scalar_lea.vmem %s10529_s5, 12288  ;;  %s10230_s6 = smov [#allocation20]  }
  0x8d   : > { %p9663_p1 = scmp.ne.s32.totalorder %s10529_s5, %s9662_s13  ;;  %s9667_s7 = sshll.u32 %s10230_s6, 4  ;;  %s9668_s7 = int_to_ptr.vmem [resolvable:$false] %s9667_s7 }
  0x8e   : > { %s9669_s3 = scalar_lea.vmem %s9668_s7, 24576  ;;  %p9670_p12 = scmp.lt.s32.totalorder %s10529_s5, %s9668_s7 }
  0x8f   : > { %p9665_p2 = pnand %p9663_p1, %p10536_p5  ;;  %p9671_p4 = scmp.lt.s32.totalorder %s9669_s3, %s9662_s13 }
  0x91   : > { %p9666_p9 = pneg %p9665_p2  ;;  %p9672_p6 = por %p9671_p4, %p9670_p12 }
  0x93   : > { %p9673_p7 = pnand %p9672_p6, %p9666_p9 }
  0x95   : > { %9676 = shalt.err (!%p9673_p7)
}
  0x96   : > { %s10231_s24 = smov 384   ;;  %s10232_s11 = smov 24  }
  0x97   : > { %s13052_s9 = scalar_lea.sflag [#allocation21], %s10513_s10  ;;  %s7787_s6 = sshll.u32 %s10516_s27, 8 }
  0x98   : > { %8700 = dma.hbm_to_vmem [thread:$0]  (!%p10519_p13), %s10527_s22, 12288, %s10529_s5, %s13052_s9, %s10231_s24, %s10231_s24, %s10232_s11  }
  0x99   : > { %s8340_s26 = sshll.u32 %s10219_s30, 12  ;;  %s13053_s17 = sld [smem:[#allocation99_spill]] }
  0x9a   : > { %s916_s15 = scalar_lea.vmem [#allocation23], %s7787_s6  ;;  %s12965_s4 = scalar_lea.sflag [#allocation24], %s10513_s10 }
  0x9b   : > { %s923_s0 = sshll.u32 %s916_s15, 4  ;;  %s10567_s0 = int_to_ptr.vmem [resolvable:$true] %s923_s0 }
  0x9f   : > { %s10565_s3 = scalar_lea.hbm %s13053_s17, %s8340_s26  ;;  %s9682_s24 = scalar_lea.hbm %s13053_s17, 32768 }
  0xa0   : > { %s9677_s28 = scalar_lea.hbm %s10565_s3, 4096  ;;  %p9683_p6 = scmp.lt.s32.totalorder %s10565_s3, %s13053_s17 }
  0xa1   : > { %p9678_p1 = scmp.ne.s32.totalorder %s10565_s3, %s9677_s28  ;;  %p9684_p7 = scmp.lt.s32.totalorder %s9682_s24, %s9677_s28 }
  0xa3   : > { %p9680_p3 = pnand %p9678_p1, %p10536_p5  ;;  %p9685_p12 = por %p9684_p7, %p9683_p6 }
  0xa5   : > { %p9681_p4 = pneg %p9680_p3 }
  0xa7   : > { %p9686_p8 = pnand %p9685_p12, %p9681_p4 }
  0xa9   : > { %9689 = shalt.err (!%p9686_p8)
}
  0xaa   : > { %s9690_s15 = scalar_lea.vmem %s10567_s0, 4096  ;;  %s10233_s6 = smov [#allocation23]  }
  0xab   : > { %p9691_p10 = scmp.ne.s32.totalorder %s10567_s0, %s9690_s15  ;;  %s9695_s26 = sshll.u32 %s10233_s6, 4  ;;  %s9696_s26 = int_to_ptr.vmem [resolvable:$false] %s9695_s26 }
  0xac   : > { %s9697_s7 = scalar_lea.vmem %s9696_s26, 8192  ;;  %p9698_p2 = scmp.lt.s32.totalorder %s10567_s0, %s9696_s26 }
  0xad   : > { %p9693_p11 = pnand %p9691_p10, %p10536_p5  ;;  %p9699_p9 = scmp.lt.s32.totalorder %s9697_s7, %s9690_s15 }
  0xaf   : > { %p9694_p0 = pneg %p9693_p11  ;;  %p9700_p1 = por %p9699_p9, %p9698_p2 }
  0xb1   : > { %p9701_p3 = pnand %p9700_p1, %p9694_p0 }
  0xb3   : > { %9704 = shalt.err (!%p9701_p3)
}
  0xb4   : > { %s13054_s28 = smov 8   ;;  %s13055_s13 = smov 128  }
  0xb5   : > { %8706 = dma.hbm_to_vmem [thread:$0]  (!%p10519_p13), %s10565_s3, 4096, %s10567_s0, %s12965_s4, %s13055_s13, %s13055_s13, %s13054_s28  }
  0xb6   : > { %s12966_s5 = sshll.u32 %s10516_s27, 10  ;;  %s8342_s22 = sshll.u32 %s10219_s30, 14 }
  0xb7   : > { %s13056_s19 = sld [smem:[#allocation100_spill]]  ;;  %s956_s15 = scalar_lea.vmem [#allocation26], %s12966_s5 }
  0xb8   : > { %s963_s6 = sshll.u32 %s956_s15, 4  ;;  %s12969_s26 = scalar_lea.sflag [#allocation27], %s10513_s10  ;;  %s10606_s6 = int_to_ptr.vmem [resolvable:$true] %s963_s6 }
  0xbd   : > { %s10602_s9 = scalar_lea.hbm %s13056_s19, %s8342_s22  ;;  %s9710_s24 = scalar_lea.hbm %s13056_s19, 131072 }
  0xbe   : > { %s9705_s7 = scalar_lea.hbm %s10602_s9, 16384  ;;  %p9711_p12 = scmp.lt.s32.totalorder %s10602_s9, %s13056_s19 }
  0xbf   : > { %p9706_p4 = scmp.ne.s32.totalorder %s10602_s9, %s9705_s7  ;;  %p9712_p8 = scmp.lt.s32.totalorder %s9710_s24, %s9705_s7 }
  0xc1   : > { %p9708_p6 = pnand %p9706_p4, %p10536_p5  ;;  %p9713_p10 = por %p9712_p8, %p9711_p12 }
  0xc3   : > { %p9709_p7 = pneg %p9708_p6 }
  0xc5   : > { %p9714_p11 = pnand %p9713_p10, %p9709_p7 }
  0xc7   : > { %9717 = shalt.err (!%p9714_p11)
}
  0xc8   : > { %s9718_s15 = scalar_lea.vmem %s10606_s6, 16384  ;;  %s10234_s5 = smov [#allocation26]  }
  0xc9   : > { %p9719_p0 = scmp.ne.s32.totalorder %s10606_s6, %s9718_s15  ;;  %s9723_s0 = sshll.u32 %s10234_s5, 4  ;;  %s9724_s0 = int_to_ptr.vmem [resolvable:$false] %s9723_s0 }
  0xca   : > { %s9725_s3 = scalar_lea.vmem %s9724_s0, 32768  ;;  %p9726_p1 = scmp.lt.s32.totalorder %s10606_s6, %s9724_s0 }
  0xcb   : > { %p9721_p2 = pnand %p9719_p0, %p10536_p5  ;;  %p9727_p3 = scmp.lt.s32.totalorder %s9725_s3, %s9718_s15 }
  0xcd   : > { %p9722_p9 = pneg %p9721_p2  ;;  %p9728_p4 = por %p9727_p3, %p9726_p1 }
  0xcf   : > { %p9729_p6 = pnand %p9728_p4, %p9722_p9 }
  0xd1   : > { %9732 = shalt.err (!%p9729_p6)
}
  0xd2   : > { %s10235_s4 = smov 512   ;;  %s10236_s7 = smov 32  }
  0xd3   : > { %8712 = dma.hbm_to_vmem [thread:$0]  (!%p10519_p13), %s10602_s9, 16384, %s10606_s6, %s12969_s26, %s10235_s4, %s10235_s4, %s10236_s7  }
  0xd4   : > { %s10636_s11 = scalar_lea.hbm %s12930_s21, %s8342_s22  ;;  %s13057_s15 = sshll.u32 %s10516_s27, 10 }
  0xd5   : > { %s996_s0 = scalar_lea.vmem [#allocation29], %s13057_s15  ;;  %s10643_s17 = sshll.u32 %s10516_s27, 1 }
  0xd6   : > { %s1003_s3 = sshll.u32 %s996_s0, 4  ;;  %s12968_s19 = scalar_lea.sflag [#allocation30], %s10513_s10  ;;  %s10640_s3 = int_to_ptr.vmem [resolvable:$true] %s1003_s3 }
  0xd7   : > { %s9733_s20 = scalar_lea.hbm %s10636_s11, 16384  ;;  %s9738_s22 = scalar_lea.hbm %s12930_s21, 131072 }
  0xd8   : > { %p9734_p7 = scmp.ne.s32.totalorder %s10636_s11, %s9733_s20  ;;  %p9739_p10 = scmp.lt.s32.totalorder %s10636_s11, %s12930_s21 }
  0xd9   : > { %p9740_p11 = scmp.lt.s32.totalorder %s9738_s22, %s9733_s20 }
  0xda   : > { %p9736_p12 = pnand %p9734_p7, %p10536_p5 }
  0xdb   : > { %p9741_p0 = por %p9740_p11, %p9739_p10 }
  0xdc   : > { %p9737_p8 = pneg %p9736_p12 }
  0xde   : > { %p9742_p2 = pnand %p9741_p0, %p9737_p8 }
  0xe0   : > { %9745 = shalt.err (!%p9742_p2)
}
  0xe1   : > { %s9746_s5 = scalar_lea.vmem %s10640_s3, 16384  ;;  %s10237_s24 = smov [#allocation29]  }
  0xe2   : > { %p9747_p9 = scmp.ne.s32.totalorder %s10640_s3, %s9746_s5  ;;  %s9751_s15 = sshll.u32 %s10237_s24, 4  ;;  %s9752_s15 = int_to_ptr.vmem [resolvable:$false] %s9751_s15 }
  0xe3   : > { %s9753_s0 = scalar_lea.vmem %s9752_s15, 32768  ;;  %p9754_p4 = scmp.lt.s32.totalorder %s10640_s3, %s9752_s15 }
  0xe4   : > { %p9749_p1 = pnand %p9747_p9, %p10536_p5  ;;  %p9755_p6 = scmp.lt.s32.totalorder %s9753_s0, %s9746_s5 }
  0xe6   : > { %p9750_p3 = pneg %p9749_p1  ;;  %p9756_p7 = por %p9755_p6, %p9754_p4 }
  0xe8   : > { %p9757_p12 = pnand %p9756_p7, %p9750_p3 }
  0xea   : > { %9760 = shalt.err (!%p9757_p12)
}
  0xeb   : > { %8718 = dma.hbm_to_vmem [thread:$0]  (!%p10519_p13), %s10636_s11, 16384, %s10640_s3, %s12968_s19, %s13055_s13, %s13055_s13, %s13054_s28  }
  0xec   : > { %s10672_s20 = sshll.u32 %s10219_s30, 5  ;;  %s1036_s4 = scalar_lea.vmem [#allocation32], %s10643_s17 }
  0xed   : > { %s10678_s22 = scalar_lea.hbm %s12932_s23, %s10672_s20  ;;  %s1044_s7 = sshll.u32 %s1036_s4, 4  ;;  %s1045_s7 = int_to_ptr.vmem [resolvable:$true] %s1044_s7 }
  0xee   : > { %s12970_s5 = scalar_lea.sflag [#allocation33], %s10513_s10  ;;  %s9761_s24 = scalar_lea.hbm %s10678_s22, 32 }
  0xef   : > { %p9762_p8 = scmp.ne.s32.totalorder %s10678_s22, %s9761_s24  ;;  %s9766_s15 = scalar_lea.hbm %s12932_s23, 256 }
  0xf0   : > { %p9767_p0 = scmp.lt.s32.totalorder %s10678_s22, %s12932_s23  ;;  %p9768_p2 = scmp.lt.s32.totalorder %s9766_s15, %s9761_s24 }
  0xf1   : > { %p9764_p10 = pnand %p9762_p8, %p10536_p5 }
  0xf2   : > { %p9769_p9 = por %p9768_p2, %p9767_p0 }
  0xf3   : > { %p9765_p11 = pneg %p9764_p10 }
  0xf5   : > { %p9770_p1 = pnand %p9769_p9, %p9765_p11 }
  0xf7   : > { %9773 = shalt.err (!%p9770_p1)
}
  0xf8   : > { %s9774_s6 = scalar_lea.vmem %s1045_s7, 32  ;;  %s10238_s4 = smov [#allocation32]  }
  0xf9   : > { %p9775_p3 = scmp.ne.s32.totalorder %s1045_s7, %s9774_s6  ;;  %s9779_s19 = sshll.u32 %s10238_s4, 4  ;;  %s9780_s19 = int_to_ptr.vmem [resolvable:$false] %s9779_s19 }
  0xfa   : > { %s9781_s26 = scalar_lea.vmem %s9780_s19, 64  ;;  %p9782_p7 = scmp.lt.s32.totalorder %s1045_s7, %s9780_s19 }
  0xfb   : > { %p9777_p4 = pnand %p9775_p3, %p10536_p5  ;;  %p9783_p12 = scmp.lt.s32.totalorder %s9781_s26, %s9774_s6 }
  0xfd   : > { %p9778_p6 = pneg %p9777_p4  ;;  %p9784_p8 = por %p9783_p12, %p9782_p7 }
  0xff   : > { %p9785_p10 = pnand %p9784_p8, %p9778_p6 }
 0x101   : > { %9788 = shalt.err (!%p9785_p10)
}
 0x102   : > { %8724 = dma.hbm_to_vmem [thread:$0]  (!%p10519_p13), %s10678_s22, 32, %s1045_s7, %s12970_s5  }
 0x103   : > { %s10704_s3 = scalar_lea.hbm %s12934_s25, %s10672_s20  ;;  %s1074_s19 = scalar_lea.vmem [#allocation35], %s10643_s17 }
 0x104   : > { %s1082_s26 = sshll.u32 %s1074_s19, 4  ;;  %s12975_s15 = scalar_lea.sflag [#allocation36], %s10513_s10  ;;  %s1083_s26 = int_to_ptr.vmem [resolvable:$true] %s1082_s26 }
 0x105   : > { %s9789_s0 = scalar_lea.hbm %s10704_s3, 32  ;;  %s9794_s22 = scalar_lea.hbm %s12934_s25, 256 }
 0x106   : > { %p9790_p11 = scmp.ne.s32.totalorder %s10704_s3, %s9789_s0  ;;  %p9795_p9 = scmp.lt.s32.totalorder %s10704_s3, %s12934_s25 }
 0x107   : > { %p9796_p1 = scmp.lt.s32.totalorder %s9794_s22, %s9789_s0 }
 0x108   : > { %p9792_p0 = pnand %p9790_p11, %p10536_p5 }
 0x109   : > { %p9797_p3 = por %p9796_p1, %p9795_p9 }
 0x10a   : > { %p9793_p2 = pneg %p9792_p0 }
 0x10c   : > { %p9798_p4 = pnand %p9797_p3, %p9793_p2 }
 0x10e   : > { %9801 = shalt.err (!%p9798_p4)
}
 0x10f   : > { %s9802_s24 = scalar_lea.vmem %s1083_s26, 32  ;;  %s10239_s11 = smov [#allocation35]  }
 0x110   : > { %p9803_p6 = scmp.ne.s32.totalorder %s1083_s26, %s9802_s24  ;;  %s9807_s19 = sshll.u32 %s10239_s11, 4  ;;  %s9808_s19 = int_to_ptr.vmem [resolvable:$false] %s9807_s19 }
 0x111   : > { %s9809_s5 = scalar_lea.vmem %s9808_s19, 64  ;;  %p9810_p8 = scmp.lt.s32.totalorder %s1083_s26, %s9808_s19 }
 0x112   : > { %p9805_p7 = pnand %p9803_p6, %p10536_p5  ;;  %p9811_p10 = scmp.lt.s32.totalorder %s9809_s5, %s9802_s24 }
 0x114   : > { %p9806_p12 = pneg %p9805_p7  ;;  %p9812_p11 = por %p9811_p10, %p9810_p8 }
 0x116   : > { %p9813_p0 = pnand %p9812_p11, %p9806_p12 }
 0x118   : > { %9816 = shalt.err (!%p9813_p0)
}
 0x119   : > { %8730 = dma.hbm_to_vmem [thread:$0]  (!%p10519_p13), %s10704_s3, 32, %s1083_s26, %s12975_s15  }
 0x11a   : > { %s10240_s0 = smov [#allocation3]   ;;  %s10241_s6 = smov [#allocation7]  }
 0x11b   : > { %s732_s9 = sshll.u32 %s10240_s0, 4  ;;  %s765_s22 = sshll.u32 %s10241_s6, 4  ;;  %s733_s9 = int_to_ptr.vmem [resolvable:$true] %s732_s9  ;;  %s766_s22 = int_to_ptr.vmem [resolvable:$true] %s765_s22 }
 0x11c   : > { %s9828_s7 = scalar_lea.vmem %s733_s9, 256  ;;  %p13058_p9 = scmp.ne.s32.totalorder %s13038_s2, 0 }
 0x11d   : > { %p9829_p2 = scmp.ne.s32.totalorder %s733_s9, %s9828_s7  ;;  %p9836_p4 = scmp.lt.s32.totalorder %s733_s9, %s733_s9 }
 0x11e   : > { %p9837_p6 = scmp.lt.s32.totalorder %s9828_s7, %s9828_s7 }
 0x11f   : > { %p9831_p1 = pnand %p9829_p2, %p13058_p9 }
 0x120   : > { %p9838_p7 = por %p9837_p6, %p9836_p4 }
 0x121   : > { %p9832_p3 = pneg %p9831_p1 }
 0x123   : > { %p9839_p12 = pnand %p9838_p7, %p9832_p3 }
 0x125   : > { %9842 = shalt.err (!%p9839_p12)
}
 0x126   : > { %p13059_p8 = scmp.ne.s32.totalorder %s13037_s1, 0  ;;  %s13060_s26 = sld [smem:[#allocation87_spill]] }
 0x127   : > { %s9854_s4 = scalar_lea.vmem %s766_s22, 16  ;;  %s9861_s24 = scalar_lea.vmem %s766_s22, 32 }
 0x128   : > { %p9855_p10 = scmp.ne.s32.totalorder %s766_s22, %s9854_s4  ;;  %p9862_p2 = scmp.lt.s32.totalorder %s766_s22, %s766_s22 }
 0x129   : > { %p9863_p1 = scmp.lt.s32.totalorder %s9861_s24, %s9854_s4 }
 0x12a   : > { %p9857_p11 = pnand %p9855_p10, %p13058_p9 }
 0x12b   : > { %p9864_p3 = por %p9863_p1, %p9862_p2 }
 0x12c   : > { %8666 = dma.hbm_to_vmem [thread:$0]  (!%p13059_p8), %s13060_s26, 256, %s733_s9, [#allocation4], %s13055_s13, %s13055_s13, %s13054_s28  }
 0x12d   : > { %p9858_p0 = pneg %p9857_p11 }
 0x12f   : > { %p9865_p4 = pnand %p9864_p3, %p9858_p0 }
 0x131   : > { %9868 = shalt.err (!%p9865_p4)
}
 0x132   : > { %s13061_s0 = sld [smem:[#allocation91_spill]]  ;;  %s10242_s28 = smov [#allocation10]  }
 0x133   : > { %s789_s13 = sshll.u32 %s10242_s28, 4  ;;  %s10243_s9 = smov [#allocation13]   ;;  %s790_s13 = int_to_ptr.vmem [resolvable:$true] %s789_s13 }
 0x134   : > { %s813_s6 = sshll.u32 %s10243_s9, 4  ;;  %s9880_s7 = scalar_lea.vmem %s790_s13, 16  ;;  %s814_s6 = int_to_ptr.vmem [resolvable:$true] %s813_s6 }
 0x135   : > { %p9881_p6 = scmp.ne.s32.totalorder %s790_s13, %s9880_s7  ;;  %s9887_s5 = scalar_lea.vmem %s790_s13, 32 }
 0x136   : > { %p9888_p10 = scmp.lt.s32.totalorder %s790_s13, %s790_s13  ;;  %p9889_p11 = scmp.lt.s32.totalorder %s9887_s5, %s9880_s7 }
 0x137   : > { %p9883_p7 = pnand %p9881_p6, %p13058_p9 }
 0x138   : > { %8672 = dma.hbm_to_vmem [thread:$0]  (!%p13059_p8), %s13061_s0, 16, %s766_s22, [#allocation6]  }
 0x139   : > { %p9884_p12 = pneg %p9883_p7  ;;  %p9890_p0 = por %p9889_p11, %p9888_p10 }
 0x13b   : > { %p9891_p2 = pnand %p9890_p0, %p9884_p12 }
 0x13d   : > { %9894 = shalt.err (!%p9891_p2)
}
 0x13e   : > { %s13062_s26 = sld [smem:[#allocation93_spill]]  ;;  %s9906_s4 = scalar_lea.vmem %s814_s6, 32 }
 0x13f   : > { %p9907_p1 = scmp.ne.s32.totalorder %s814_s6, %s9906_s4  ;;  %p9914_p6 = scmp.lt.s32.totalorder %s814_s6, %s814_s6 }
 0x140   : > { %p9915_p7 = scmp.lt.s32.totalorder %s9906_s4, %s9906_s4 }
 0x141   : > { %p9909_p3 = pnand %p9907_p1, %p13058_p9 }
 0x142   : > { %p9916_p13 = por %p9915_p7, %p9914_p6 }
 0x143   : > { %p9910_p4 = pneg %p9909_p3 }
 0x144   : > { %8678 = dma.hbm_to_vmem [thread:$0]  (!%p13059_p8), %s13062_s26, 16, %s790_s13, [#allocation9]  }
 0x145   : > { %p9917_p5 = pnand %p9916_p13, %p9910_p4 }
 0x147   : > { %9920 = shalt.err (!%p9917_p5)
}
 0x148   : > { %s13063_s19 = sld [smem:[#allocation95_spill]]  ;;  %s10244_s0 = smov [#allocation16]  }
 0x149   : > { %s837_s28 = sshll.u32 %s10244_s0, 4  ;;  %s10245_s13 = smov [#allocation19]   ;;  %s838_s28 = int_to_ptr.vmem [resolvable:$true] %s837_s28 }
 0x14a   : > { %s861_s9 = sshll.u32 %s10245_s13, 4  ;;  %s9932_s7 = scalar_lea.vmem %s838_s28, 32  ;;  %s862_s9 = int_to_ptr.vmem [resolvable:$true] %s861_s9 }
 0x14b   : > { %p9933_p12 = scmp.ne.s32.totalorder %s838_s28, %s9932_s7  ;;  %p9940_p0 = scmp.lt.s32.totalorder %s838_s28, %s838_s28 }
 0x14c   : > { %p9941_p13 = scmp.lt.s32.totalorder %s9932_s7, %s9932_s7 }
 0x14d   : > { %p9935_p10 = pnand %p9933_p12, %p13058_p9 }
 0x14e   : > { %8684 = dma.hbm_to_vmem [thread:$0]  (!%p13059_p8), %s13063_s19, 32, %s814_s6, [#allocation12]  }
 0x14f   : > { %p9936_p11 = pneg %p9935_p10  ;;  %p9942_p5 = por %p9941_p13, %p9940_p0 }
 0x151   : > { %p9943_p2 = pnand %p9942_p5, %p9936_p11 }
 0x153   : > { %9946 = shalt.err (!%p9943_p2)
}
 0x154   : > { %8690 = dma.hbm_to_vmem [thread:$0]  (!%p13059_p8), %s12921_s12, 32, %s838_s28, [#allocation15]  }
 0x155   : > { %s8591_s6 = smul.u32 6, %s10516_s27  ;;  %s9958_s22 = scalar_lea.vmem %s862_s9, 16 }
 0x156   : > { %p9959_p1 = scmp.ne.s32.totalorder %s862_s9, %s9958_s22  ;;  %s9965_s26 = scalar_lea.vmem %s862_s9, 32 }
 0x157   : > { %p9966_p6 = scmp.lt.s32.totalorder %s862_s9, %s862_s9  ;;  %p9967_p7 = scmp.lt.s32.totalorder %s9965_s26, %s9958_s22 }
 0x158   : > { %p9961_p3 = pnand %p9959_p1, %p13058_p9 }
 0x159   : > { %p9968_p12 = por %p9967_p7, %p9966_p6 }
 0x15a   : > { %p9962_p4 = pneg %p9961_p3 }
 0x15c   : > { %p9969_p10 = pnand %p9968_p12, %p9962_p4 }
 0x15e   : > { %9972 = shalt.err (!%p9969_p10)
}
 0x15f   : > { %8696 = dma.hbm_to_vmem [thread:$0]  (!%p13059_p8), %s12923_s14, 16, %s862_s9, [#allocation18]  }
 0x160   : > { %s8592_s11 = smul.u32 96, %s10219_s30  ;;  %s897_s19 = scalar_lea.vmem [#allocation22], %s8591_s6 }
 0x161   : > { %s905_s0 = sshll.u32 %s897_s19, 4  ;;  %p13064_p11 = scmp.ne.s32.totalorder %s13051_s8, 0  ;;  %s906_s0 = int_to_ptr.vmem [resolvable:$true] %s905_s0 }
 0x162   : > { %s903_s13 = scalar_lea.hbm %s12925_s16, %s8592_s11  ;;  %s9978_s3 = scalar_lea.hbm %s12925_s16, 768 }
 0x163   : > { %s9973_s7 = scalar_lea.hbm %s903_s13, 96  ;;  %p9979_p8 = scmp.lt.s32.totalorder %s903_s13, %s12925_s16 }
 0x164   : > { %p9974_p9 = scmp.ne.s32.totalorder %s903_s13, %s9973_s7  ;;  %p9980_p5 = scmp.lt.s32.totalorder %s9978_s3, %s9973_s7 }
 0x166   : > { %p9976_p0 = pnand %p9974_p9, %p13064_p11  ;;  %p9981_p2 = por %p9980_p5, %p9979_p8 }
 0x168   : > { %p9977_p13 = pneg %p9976_p0 }
 0x16a   : > { %p9982_p1 = pnand %p9981_p2, %p9977_p13 }
 0x16c   : > { %9985 = shalt.err (!%p9982_p1)
}
 0x16d   : > { %s9986_s9 = scalar_lea.vmem %s906_s0, 96  ;;  %s10246_s6 = smov [#allocation22]  }
 0x16e   : > { %p9987_p3 = scmp.ne.s32.totalorder %s906_s0, %s9986_s9  ;;  %s9991_s4 = sshll.u32 %s10246_s6, 4  ;;  %s9992_s4 = int_to_ptr.vmem [resolvable:$false] %s9991_s4 }
 0x16f   : > { %s9993_s24 = scalar_lea.vmem %s9992_s4, 192  ;;  %p9994_p7 = scmp.lt.s32.totalorder %s906_s0, %s9992_s4 }
 0x170   : > { %p9989_p4 = pnand %p9987_p3, %p13064_p11  ;;  %p9995_p12 = scmp.lt.s32.totalorder %s9993_s24, %s9986_s9 }
 0x172   : > { %p9990_p6 = pneg %p9989_p4  ;;  %p9996_p10 = por %p9995_p12, %p9994_p7 }
 0x174   : > { %p9997_p9 = pnand %p9996_p10, %p9990_p6 }
 0x176   : > { %10000 = shalt.err (!%p9997_p9)
}
 0x177   : > { %p13065_p0 = scmp.ne.s32.totalorder %s13049_s29, 0  ;;  %s13066_s11 = scalar_lea.sflag [#allocation21], %s10513_s10 }
 0x178   : > { %s10794_s28 = scalar_lea.hbm %s12927_s18, %s10672_s20  ;;  %s937_s7 = scalar_lea.vmem [#allocation25], %s10643_s17 }
 0x179   : > { %8703 = dma.hbm_to_vmem [thread:$0]  (!%p13065_p0), %s903_s13, 96, %s906_s0, %s13066_s11  }
 0x17a   : > { %s945_s1 = sshll.u32 %s937_s7, 4  ;;  %s7796_s5 = sshll.u32 %s10516_s27, 3  ;;  %s946_s1 = int_to_ptr.vmem [resolvable:$true] %s945_s1 }
 0x17b   : > { %s10001_s3 = scalar_lea.hbm %s10794_s28, 32  ;;  %s10006_s0 = scalar_lea.hbm %s12927_s18, 256 }
 0x17c   : > { %p10002_p13 = scmp.ne.s32.totalorder %s10794_s28, %s10001_s3  ;;  %p10007_p2 = scmp.lt.s32.totalorder %s10794_s28, %s12927_s18 }
 0x17d   : > { %p10008_p1 = scmp.lt.s32.totalorder %s10006_s0, %s10001_s3 }
 0x17e   : > { %p10004_p8 = pnand %p10002_p13, %p13064_p11 }
 0x17f   : > { %p10009_p3 = por %p10008_p1, %p10007_p2 }
 0x180   : > { %p10005_p5 = pneg %p10004_p8 }
 0x182   : > { %p10010_p4 = pnand %p10009_p3, %p10005_p5 }
 0x184   : > { %10013 = shalt.err (!%p10010_p4)
}
 0x185   : > { %s10014_s6 = scalar_lea.vmem %s946_s1, 32  ;;  %s10247_s27 = smov [#allocation25]  }
 0x186   : > { %p10015_p6 = scmp.ne.s32.totalorder %s946_s1, %s10014_s6  ;;  %s10019_s4 = sshll.u32 %s10247_s27, 4  ;;  %s10020_s4 = int_to_ptr.vmem [resolvable:$false] %s10019_s4 }
 0x187   : > { %s10021_s24 = scalar_lea.vmem %s10020_s4, 64  ;;  %p10022_p10 = scmp.lt.s32.totalorder %s946_s1, %s10020_s4 }
 0x188   : > { %p10017_p7 = pnand %p10015_p6, %p13064_p11  ;;  %p10023_p9 = scmp.lt.s32.totalorder %s10021_s24, %s10014_s6 }
 0x18a   : > { %p10018_p12 = pneg %p10017_p7  ;;  %p10024_p13 = por %p10023_p9, %p10022_p10 }
 0x18c   : > { %p10025_p8 = pnand %p10024_p13, %p10018_p12 }
 0x18e   : > { %10028 = shalt.err (!%p10025_p8)
}
 0x18f   : > { %s13067_s11 = scalar_lea.sflag [#allocation24], %s10513_s10  ;;  %s8343_s19 = sshll.u32 %s10219_s30, 7 }
 0x190   : > { %8709 = dma.hbm_to_vmem [thread:$0]  (!%p13065_p0), %s10794_s28, 32, %s946_s1, %s13067_s11  }
 0x191   : > { %s13068_s3 = sld [smem:[#allocation101_spill]]  ;;  %s977_s26 = scalar_lea.vmem [#allocation28], %s7796_s5 }
 0x192   : > { %s985_s0 = sshll.u32 %s977_s26, 4  ;;  %s986_s0 = int_to_ptr.vmem [resolvable:$true] %s985_s0 }
 0x197   : > { %s983_s22 = scalar_lea.hbm %s13068_s3, %s8343_s19  ;;  %s10034_s27 = scalar_lea.hbm %s13068_s3, 1024 }
 0x198   : > { %s10029_s13 = scalar_lea.hbm %s983_s22, 128  ;;  %p10035_p3 = scmp.lt.s32.totalorder %s983_s22, %s13068_s3 }
 0x199   : > { %p10030_p5 = scmp.ne.s32.totalorder %s983_s22, %s10029_s13  ;;  %p10036_p4 = scmp.lt.s32.totalorder %s10034_s27, %s10029_s13 }
 0x19b   : > { %p10032_p2 = pnand %p10030_p5, %p13064_p11  ;;  %p10037_p6 = por %p10036_p4, %p10035_p3 }
 0x19d   : > { %p10033_p1 = pneg %p10032_p2 }
 0x19f   : > { %p10038_p7 = pnand %p10037_p6, %p10033_p1 }
 0x1a1   : > { %10041 = shalt.err (!%p10038_p7)
}
 0x1a2   : > { %s10042_s30 = scalar_lea.vmem %s986_s0, 128  ;;  %s10248_s28 = smov [#allocation28]  }
 0x1a3   : > { %p10043_p12 = scmp.ne.s32.totalorder %s986_s0, %s10042_s30  ;;  %s10047_s1 = sshll.u32 %s10248_s28, 4  ;;  %s10048_s1 = int_to_ptr.vmem [resolvable:$false] %s10047_s1 }
 0x1a4   : > { %s10049_s5 = scalar_lea.vmem %s10048_s1, 256  ;;  %p10050_p13 = scmp.lt.s32.totalorder %s986_s0, %s10048_s1 }
 0x1a5   : > { %p10045_p10 = pnand %p10043_p12, %p13064_p11  ;;  %p10051_p8 = scmp.lt.s32.totalorder %s10049_s5, %s10042_s30 }
 0x1a7   : > { %p10046_p9 = pneg %p10045_p10  ;;  %p10052_p5 = por %p10051_p8, %p10050_p13 }
 0x1a9   : > { %p10053_p2 = pnand %p10052_p5, %p10046_p9 }
 0x1ab   : > { %10056 = shalt.err (!%p10053_p2)
}
 0x1ac   : > { %s13069_s11 = scalar_lea.sflag [#allocation27], %s10513_s10  ;;  %s13070_s7 = sld [smem:[#allocation102_spill]] }
 0x1ad   : > { %8715 = dma.hbm_to_vmem [thread:$0]  (!%p13065_p0), %s983_s22, 128, %s986_s0, %s13069_s11  }
 0x1ae   : > { %s1017_s9 = scalar_lea.vmem [#allocation31], %s10643_s17 }
 0x1af   : > { %s1025_s6 = sshll.u32 %s1017_s9, 4  ;;  %s1026_s6 = int_to_ptr.vmem [resolvable:$true] %s1025_s6 }
 0x1b2   : > { %s13071_s26 = smov %s13070_s7  ;;  %s1023_s13 = scalar_lea.hbm %s13070_s7, %s10672_s20 }
 0x1b3   : > { %s10057_s27 = scalar_lea.hbm %s1023_s13, 32  ;;  %s10062_s30 = scalar_lea.hbm %s13071_s26, 256 }
 0x1b4   : > { %p10058_p1 = scmp.ne.s32.totalorder %s1023_s13, %s10057_s27  ;;  %p10063_p6 = scmp.lt.s32.totalorder %s1023_s13, %s13071_s26 }
 0x1b5   : > { %p10064_p7 = scmp.lt.s32.totalorder %s10062_s30, %s10057_s27 }
 0x1b6   : > { %p10060_p3 = pnand %p10058_p1, %p13064_p11 }
 0x1b7   : > { %p10065_p12 = por %p10064_p7, %p10063_p6 }
 0x1b8   : > { %p10061_p4 = pneg %p10060_p3 }
 0x1ba   : > { %p10066_p10 = pnand %p10065_p12, %p10061_p4 }
 0x1bc   : > { %10069 = shalt.err (!%p10066_p10)
}
 0x1bd   : > { %s10070_s22 = scalar_lea.vmem %s1026_s6, 32  ;;  %s10249_s0 = smov [#allocation31]  }
 0x1be   : > { %p10071_p9 = scmp.ne.s32.totalorder %s1026_s6, %s10070_s22  ;;  %s10075_s5 = sshll.u32 %s10249_s0, 4  ;;  %s10076_s5 = int_to_ptr.vmem [resolvable:$false] %s10075_s5 }
 0x1bf   : > { %s10077_s11 = scalar_lea.vmem %s10076_s5, 64  ;;  %p10078_p5 = scmp.lt.s32.totalorder %s1026_s6, %s10076_s5 }
 0x1c0   : > { %p10073_p13 = pnand %p10071_p9, %p13064_p11  ;;  %p10079_p2 = scmp.lt.s32.totalorder %s10077_s11, %s10070_s22 }
 0x1c2   : > { %p10074_p8 = pneg %p10073_p13  ;;  %p10080_p1 = por %p10079_p2, %p10078_p5 }
 0x1c4   : > { %p10081_p3 = pnand %p10080_p1, %p10074_p8 }
 0x1c6   : > { %10084 = shalt.err (!%p10081_p3)
}
 0x1c7   : > { %s13072_s19 = scalar_lea.sflag [#allocation30], %s10513_s10  ;;  %s13073_s9 = sld [smem:[#allocation103_spill]] }
 0x1c8   : > { %8721 = dma.hbm_to_vmem [thread:$0]  (!%p13065_p0), %s1023_s13, 32, %s1026_s6, %s13072_s19  }
 0x1c9   : > { %s1055_s4 = scalar_lea.vmem [#allocation34], %s10643_s17 }
 0x1ca   : > { %s1063_s24 = sshll.u32 %s1055_s4, 4  ;;  %s1064_s24 = int_to_ptr.vmem [resolvable:$true] %s1063_s24 }
 0x1cd   : > { %s1061_s27 = scalar_lea.hbm %s13073_s9, %s10672_s20  ;;  %s10090_s22 = scalar_lea.hbm %s13073_s9, 256 }
 0x1ce   : > { %s10085_s30 = scalar_lea.hbm %s1061_s27, 32  ;;  %p10091_p12 = scmp.lt.s32.totalorder %s1061_s27, %s13073_s9 }
 0x1cf   : > { %p10086_p4 = scmp.ne.s32.totalorder %s1061_s27, %s10085_s30  ;;  %p10092_p10 = scmp.lt.s32.totalorder %s10090_s22, %s10085_s30 }
 0x1d1   : > { %p10088_p6 = pnand %p10086_p4, %p13064_p11  ;;  %p10093_p9 = por %p10092_p10, %p10091_p12 }
 0x1d3   : > { %p10089_p7 = pneg %p10088_p6 }
 0x1d5   : > { %p10094_p13 = pnand %p10093_p9, %p10089_p7 }
 0x1d7   : > { %10097 = shalt.err (!%p10094_p13)
}
 0x1d8   : > { %s10098_s13 = scalar_lea.vmem %s1064_s24, 32  ;;  %s10250_s6 = smov [#allocation34]  }
 0x1d9   : > { %p10099_p8 = scmp.ne.s32.totalorder %s1064_s24, %s10098_s13  ;;  %s10103_s11 = sshll.u32 %s10250_s6, 4  ;;  %s10104_s11 = int_to_ptr.vmem [resolvable:$false] %s10103_s11 }
 0x1da   : > { %s10105_s19 = scalar_lea.vmem %s10104_s11, 64  ;;  %p10106_p1 = scmp.lt.s32.totalorder %s1064_s24, %s10104_s11 }
 0x1db   : > { %p10101_p5 = pnand %p10099_p8, %p13064_p11  ;;  %p10107_p3 = scmp.lt.s32.totalorder %s10105_s19, %s10098_s13 }
 0x1dd   : > { %p10102_p2 = pneg %p10101_p5  ;;  %p10108_p4 = por %p10107_p3, %p10106_p1 }
 0x1df   : > { %p10109_p6 = pnand %p10108_p4, %p10102_p2 }
 0x1e1   : > { %10112 = shalt.err (!%p10109_p6)
}
 0x1e2   : > { %s13074_s2 = scalar_lea.sflag [#allocation33], %s10513_s10  ;;  %s13075_s30 = sld [smem:[#allocation104_spill]] }
 0x1e3   : > { %8727 = dma.hbm_to_vmem [thread:$0]  (!%p13065_p0), %s1061_s27, 32, %s1064_s24, %s13074_s2  }
 0x1e4   : > { %s1093_s22 = scalar_lea.vmem [#allocation37], %s10643_s17 }
 0x1e5   : > { %s1101_s0 = sshll.u32 %s1093_s22, 4  ;;  %s1102_s0 = int_to_ptr.vmem [resolvable:$true] %s1101_s0 }
 0x1e8   : > { %s13076_s28 = smov %s13075_s30  ;;  %s1099_s1 = scalar_lea.hbm %s13075_s30, %s10672_s20 }
 0x1e9   : > { %s10113_s5 = scalar_lea.hbm %s1099_s1, 32  ;;  %s10118_s11 = scalar_lea.hbm %s13076_s28, 256 }
 0x1ea   : > { %p10114_p7 = scmp.ne.s32.totalorder %s1099_s1, %s10113_s5  ;;  %p10119_p9 = scmp.lt.s32.totalorder %s1099_s1, %s13076_s28 }
 0x1eb   : > { %p10120_p13 = scmp.lt.s32.totalorder %s10118_s11, %s10113_s5 }
 0x1ec   : > { %p10116_p12 = pnand %p10114_p7, %p13064_p11 }
 0x1ed   : > { %p10121_p8 = por %p10120_p13, %p10119_p9 }
 0x1ee   : > { %p10117_p10 = pneg %p10116_p12 }
 0x1f0   : > { %p10122_p5 = pnand %p10121_p8, %p10117_p10 }
 0x1f2   : > { %10125 = shalt.err (!%p10122_p5)
}
 0x1f3   : > { %s10126_s17 = scalar_lea.vmem %s1102_s0, 32  ;;  %s10251_s20 = smov [#allocation37]  }
 0x1f4   : > { %p10127_p2 = scmp.ne.s32.totalorder %s1102_s0, %s10126_s17  ;;  %s10131_s27 = sshll.u32 %s10251_s20, 4  ;;  %s10132_s27 = int_to_ptr.vmem [resolvable:$false] %s10131_s27 }
 0x1f5   : > { %s10133_s24 = scalar_lea.vmem %s10132_s27, 64  ;;  %p10134_p4 = scmp.lt.s32.totalorder %s1102_s0, %s10132_s27 }
 0x1f6   : > { %p10129_p1 = pnand %p10127_p2, %p13064_p11  ;;  %p10135_p6 = scmp.lt.s32.totalorder %s10133_s24, %s10126_s17 }
 0x1f8   : > { %p10130_p3 = pneg %p10129_p1  ;;  %p10136_p7 = por %p10135_p6, %p10134_p4 }
 0x1fa   : > { %p10137_p12 = pnand %p10136_p7, %p10130_p3 }
 0x1fc   : > { %10140 = shalt.err (!%p10137_p12)
}
 0x1fd   : > { %s13077_s15 = scalar_lea.sflag [#allocation36], %s10513_s10  ;;  %s13078_s2 = sld [smem:[#allocation53_spill]] }
 0x1fe   : > { %8733 = dma.hbm_to_vmem [thread:$0]  (!%p13065_p0), %s1099_s1, 32, %s1102_s0, %s13077_s15  }
 0x203   : > { %p13079_p10 = scmp.ne.s32.totalorder %s13078_s2, 0 }
 0x205   : > { %1110 = sbr.rel (%p13079_p10) target bundleno = 5448 (0x1548), region = 128 }
 0x20a   : > { %s13080_s8 = sld [smem:[#allocation52_spill]] }
 0x210   : > { %p13081_p11 = scmp.eq.s32.totalorder %s13080_s8, 0 }
 0x212   : > { %10158 = dma.done.wait (%p13081_p11), [#allocation4], 256   ;;  %p13082_p9 = pmov %p13081_p11 }
 0x214   : > { %10160 = vsyncadd (%p13082_p9), [#allocation4], 4294967040  ;;  %p13083_p13 = pmov %p13082_p9 }
 0x215   : > { %p13084_p8 = pmov %p13082_p9 }
 0x216   : > { %10162 = dma.done.wait (%p13083_p13), [#allocation6], 144  }
 0x217   : > { %10164 = vsyncadd (%p13084_p8), [#allocation6], 4294967152  ;;  %p13085_p5 = pmov %p13084_p8 }
 0x219   : > { %10166 = dma.done.wait (%p13085_p5), [#allocation9], 208   ;;  %p13086_p0 = pmov %p13085_p5 }
 0x21b   : > { %10168 = vsyncadd (%p13086_p0), [#allocation9], 4294967088  ;;  %p13087_p2 = pmov %p13086_p0 }
 0x21c   : > { %p13088_p1 = pmov %p13086_p0 }
 0x21d   : > { %10170 = dma.done.wait (%p13087_p2), [#allocation12], 1056  }
 0x21e   : > { %10172 = vsyncadd (%p13088_p1), [#allocation12], 4294966240  ;;  %p13089_p3 = pmov %p13086_p0 }
 0x21f   : > { %p13090_p4 = pmov %p13086_p0 }
 0x220   : > { %10174 = dma.done.wait (%p13089_p3), [#allocation15], 4128  }
 0x221   : > { %10176 = vsyncadd (%p13090_p4), [#allocation15], 4294963168  ;;  %p13091_p6 = pmov %p13086_p0 }
 0x222   : > { %p13092_p7 = pmov %p13086_p0 }
 0x223   : > { %10178 = dma.done.wait (%p13091_p6), [#allocation18], 2064  }
 0x224   : > { %10180 = vsyncadd (%p13092_p7), [#allocation18], 4294965232  ;;  %s13093_s10 = sld [smem:[#allocation50_spill]]  ;;  %s10918_s7 = sand.u32 1, %s13080_s8  }
 0x225   : > { %s13094_s29 = sld [smem:[#allocation56_spill]]  ;;  %s1157_s1 = scalar_lea.sflag [#allocation21], %s10918_s7 }
 0x22a   : > { %s1158_s4 = sand.u32 1, %s13093_s10  }
 0x22b   : > { %s8593_s30 = smul.u32 768, %s1158_s4  ;;  %p13095_p12 = scmp.ne.s32.totalorder %s13094_s29, 0 }
 0x22d   : > { %s10922_s22 = scalar_lea.vmem [#allocation20], %s8593_s30 }
 0x22e   : > { %10182 = dma.done.wait (%p13095_p12), %s1157_s1, 12384  }
 0x22f   : > { %10184 = vsyncadd (%p13095_p12), %s1157_s1, 4294954912  ;;  %s8594_s0 = smul.u32 6, %s1158_s4  ;;  %s7829_s5 = sshll.u32 %s1158_s4, 8 }
 0x230   : > { %s1175_s6 = scalar_lea.sflag [#allocation24], %s10918_s7  ;;  %s10931_s11 = scalar_lea.vmem [#allocation23], %s7829_s5 }
 0x231   : > { %s10928_s13 = scalar_lea.vmem [#allocation22], %s8594_s0 }
 0x232   : > { %10186 = dma.done.wait (%p13095_p12), %s1175_s6, 4128  }
 0x233   : > { %10188 = vsyncadd (%p13095_p12), %s1175_s6, 4294963168  ;;  %s10937_s19 = sshll.u32 %s1158_s4, 1  ;;  %s7831_s17 = sshll.u32 %s1158_s4, 10 }
 0x234   : > { %s1187_s20 = scalar_lea.vmem [#allocation25], %s10937_s19  ;;  %s1193_s27 = scalar_lea.sflag [#allocation27], %s10918_s7 }
 0x235   : > { %s10941_s24 = scalar_lea.vmem [#allocation26], %s7831_s17 }
 0x236   : > { %10190 = dma.done.wait (%p13095_p12), %s1193_s27, 16512  }
 0x237   : > { %10192 = vsyncadd (%p13095_p12), %s1193_s27, 4294950784  ;;  %s7832_s15 = sshll.u32 %s1158_s4, 3  ;;  %s1211_s10 = scalar_lea.sflag [#allocation30], %s10918_s7 }
 0x238   : > { %s10947_s2 = scalar_lea.vmem [#allocation28], %s7832_s15  ;;  %s10950_s30 = scalar_lea.vmem [#allocation29], %s7831_s17 }
 0x239   : > { %10194 = dma.done.wait (%p13095_p12), %s1211_s10, 16416  }
 0x23a   : > { %10196 = vsyncadd (%p13095_p12), %s1211_s10, 4294950880  ;;  %s1229_s0 = scalar_lea.sflag [#allocation33], %s10918_s7  ;;  %s1232_s5 = scalar_lea.vmem [#allocation32], %s10937_s19 }
 0x23b   : > { %10198 = dma.done.wait (%p13095_p12), %s1229_s0, 64  }
 0x23c   : > { %10200 = vsyncadd (%p13095_p12), %s1229_s0, 4294967232  ;;  %s1241_s4 = scalar_lea.vmem [#allocation34], %s10937_s19  ;;  %s1247_s6 = scalar_lea.sflag [#allocation36], %s10918_s7 }
 0x23d   : > { %10202 = dma.done.wait (%p13095_p12), %s1247_s6, 64  }
 0x23e   : > { %10204 = vsyncadd (%p13095_p12), %s1247_s6, 4294967232  ;;  %p13096_p10 = scmp.ne.s32.totalorder %s13080_s8, 0 }
 0x23f   : > { %s13097_s7 = sld [smem:[#allocation85_spill]] (!%p13096_p10) }
 0x240   : > { %1384 = sbr.rel (%p13096_p10) target bundleno = 1037 (0x40d), region = 224  ;;  %s13098_s0 = sld [smem:[#allocation86_spill]] (!%p13096_p10) }
 0x241   : > { %s13099_s15 = sld [smem:[#allocation88_spill]] (!%p13096_p10) }
 0x245   : > { %v8812_v0 = vld [vmem:[#allocation11 + $0x34] ss:$8 sps:$4 sm:$0xff]   ;;  %v8814_v1 = vld [vmem:[#allocation11 + $0x30] ss:$8 sps:$4 sm:$0xff]   ;;  %v10252_v2 = vmov 0   ;;  %vm1447_vm0 = vcmask 523264   ;;  %v1397_v56 = vlaneseq }
 0x246   : > { %1483 = vmatprep.mubr.bf16.mxu0 %v10252_v2  ;;  %1459 = vmatprep.subr.bf16.mxu0 %v8812_v0  ;;  %v8815_v3 = vld [vmem:[#allocation11 + $0x24] ss:$8 sps:$4 sm:$0xff]   ;;  %v8817_v4 = vld [vmem:[#allocation11 + $0x20] ss:$8 sps:$4 sm:$0xff]   ;;  %v8818_v5 = vld [vmem:[#allocation11 + $0x14] ss:$8 sps:$4 sm:$0xff]  }
 0x247   : > { %1460 = vmatpush1.bf16.msra.mxu0 %v8814_v1  ;;  %v8820_v6 = vld [vmem:[#allocation11 + $0x10] ss:$8 sps:$4 sm:$0xff]   ;;  %v8821_v9 = vld [vmem:[#allocation11 + $0x4] ss:$8 sps:$4 sm:$0xff]   ;;  %v8823_v11 = vld [vmem:[#allocation11] ss:$8 sps:$4 sm:$0xff]  }
 0x248   : > { %1461 = vmatprep.subr.bf16.mxu0 %v8815_v3  ;;  %v8825_v7 = vld [vmem:[#allocation14 + $0x74] ss:$8 sps:$4 sm:$0xff]   ;;  %v8827_v8 = vld [vmem:[#allocation14 + $0x70] ss:$8 sps:$4 sm:$0xff]   ;;  %v8828_v10 = vld [vmem:[#allocation14 + $0x64] ss:$8 sps:$4 sm:$0xff]  }
 0x249   : > { %1710 = vmatprep.subr.bf16.mxu1 %v8825_v7  ;;  %v8830_v12 = vld [vmem:[#allocation14 + $0x60] ss:$8 sps:$4 sm:$0xff]   ;;  %v1385_v13 = vld [vmem:[%s13097_s7] sm:$0x3]  ;;  %v8833_v15 = vld [vmem:[#allocation14 + $0x50] ss:$8 sps:$4 sm:$0xff]  }
 0x24a   : > { %1711 = vmatpush1.bf16.msra.mxu1 %v8827_v8  ;;  %v8831_v14 = vld [vmem:[#allocation14 + $0x54] ss:$8 sps:$4 sm:$0xff]   ;;  %v8834_v16 = vld [vmem:[#allocation14 + $0x44] ss:$8 sps:$4 sm:$0xff]   ;;  %v1395_v17 = vpack.c.bf16 %v1385_v13, %v1385_v13  ;;  %v8836_v18 = vld [vmem:[#allocation14 + $0x40] ss:$8 sps:$4 sm:$0xff]  }
 0x24b   : > { %1462 = vmatpush1.bf16.msra.mxu0 %v8817_v4  ;;  %1712 = vmatprep.subr.bf16.mxu1 %v8828_v10  ;;  %v8837_v19 = vld [vmem:[#allocation14 + $0x34] ss:$8 sps:$4 sm:$0xff]   ;;  %v8839_v20 = vld [vmem:[#allocation14 + $0x30] ss:$8 sps:$4 sm:$0xff]   ;;  %v8840_v21 = vld [vmem:[#allocation14 + $0x24] ss:$8 sps:$4 sm:$0xff]  }
 0x24c   : > { %1463 = vmatprep.subr.bf16.mxu0 %v8818_v5  ;;  %v8842_v22 = vld [vmem:[#allocation14 + $0x20] ss:$8 sps:$4 sm:$0xff]   ;;  %v8843_v23 = vld [vmem:[#allocation14 + $0x14] ss:$8 sps:$4 sm:$0xff]   ;;  %v8845_v24 = vld [vmem:[#allocation14 + $0x10] ss:$8 sps:$4 sm:$0xff]  }
 0x24d   : > { %v8846_v25 = vld [vmem:[#allocation14 + $0x4] ss:$8 sps:$4 sm:$0xff]   ;;  %v8848_v26 = vld [vmem:[#allocation14] ss:$8 sps:$4 sm:$0xff]   ;;  %v8849_v27 = vld [vmem:[#allocation14 + $0xf4] ss:$8 sps:$4 sm:$0xff]  }
 0x24e   : > { %1713 = vmatpush1.bf16.msra.mxu1 %v8830_v12  ;;  %v8851_v28 = vld [vmem:[#allocation14 + $0xf0] ss:$8 sps:$4 sm:$0xff]   ;;  %v8852_v29 = vld [vmem:[#allocation14 + $0xe4] ss:$8 sps:$4 sm:$0xff]   ;;  %v8854_v30 = vld [vmem:[#allocation14 + $0xe0] ss:$8 sps:$4 sm:$0xff]  }
 0x24f   : > { %1464 = vmatpush1.bf16.msra.mxu0 %v8820_v6  ;;  %1714 = vmatprep.subr.bf16.mxu1 %v8831_v14  ;;  %v8855_v31 = vld [vmem:[#allocation14 + $0xd4] ss:$8 sps:$4 sm:$0xff]   ;;  %vm1843_vm1 = vcmask 1040384   ;;  %v8857_v32 = vld [vmem:[#allocation14 + $0xd0] ss:$8 sps:$4 sm:$0xff]   ;;  %vm1772_vm2 = vcmask 1045504  }
 0x250   : > { %1465 = vmatprep.subr.bf16.mxu0 %v8821_v9  ;;  %v8824_v33 = vld [vmem:[#allocation8 + $0x8] ss:$0 sps:$4 sm:$0x11]   ;;  %v1845_v34 = vsel %vm1843_vm1, 65535, %v10252_v2  ;;  %v8858_v35 = vld [vmem:[#allocation14 + $0xc4] ss:$8 sps:$4 sm:$0xff]  }
 0x251   : > { %v8861_v36 = vld [vmem:[#allocation5] sm:$0x3f]   ;;  %v10253_v38 = vmov 0.0   ;;  %v1847_v40 = vand.u32 %v8824_v33, %v1845_v34  ;;  %v1751_v41 = vld [vmem:[%s13098_s0] sm:$0xff]  ;;  %v1752_v42 = vld [vmem:[%s13098_s0 + $0x8] sm:$0xff]  ;;  %vm10254_vm3 = vmmov 0  }
 0x252   : > { %1715 = vmatpush1.bf16.msra.mxu1 %v8833_v15  ;;  %v8860_v37 = vld [vmem:[#allocation14 + $0xc0] ss:$8 sps:$4 sm:$0xff]   ;;  %v1774_v39 = vsel %vm1772_vm2, %v8861_v36, 0  ;;  %v8862_v43 = vld [vmem:[#allocation14 + $0xb4] ss:$8 sps:$4 sm:$0xff]   ;;  %v1756_v44 = vpack.c.bf16 %v1752_v42, %v1751_v41  ;;  %vm1768_vm4 = vcmask 97280  }
 0x253   : > { %1466 = vmatpush1.bf16.msra.mxu0 %v8823_v11  ;;  %1716 = vmatprep.subr.bf16.mxu1 %v8834_v16  ;;  %v8864_v45 = vld [vmem:[#allocation14 + $0xb0] ss:$8 sps:$4 sm:$0xff]   ;;  %v8865_v46 = vld [vmem:[#allocation14 + $0xa4] ss:$8 sps:$4 sm:$0xff]   ;;  %v8867_v47 = vld [vmem:[#allocation14 + $0xa0] ss:$8 sps:$4 sm:$0xff]  }
 0x254   : > { %8447 = vmatprep.subr.bf16.mxu0 %v10253_v38  ;;  %v8868_v48 = vld [vmem:[#allocation8] sm:$0xff]   ;;  %v1818_v50 = vld [vmem:[#allocation3 + $0x8] sm:$0xff]  ;;  %vm1839_vm5 = vcmask 138240   ;;  %v10985_v57 = vshrl.u32 %v1397_v56, 7  ;;  %vm1898_vm6 = vcmask 1046528  }
 0x255   : > { %v1817_v49 = vld [vmem:[#allocation3] sm:$0xff]  ;;  %v8872_v54 = vld [vmem:[#allocation14 + $0x84] ss:$8 sps:$4 sm:$0xff]   ;;  %v8874_v55 = vld [vmem:[#allocation14 + $0x80] ss:$8 sps:$4 sm:$0xff]  }
 0x256   : > { %7848 = vmatmul.mubr.msk.bf16.vlgmr.msra.gmra.mxu0 %vm1447_vm0, %v1395_v17  ;;  %1717 = vmatpush1.bf16.msra.mxu1 %v8836_v18  ;;  %v8869_v51 = vld [vmem:[#allocation14 + $0x94] ss:$8 sps:$4 sm:$0xff]   ;;  %v1823_v52 = vpack.c.bf16 %v1818_v50, %v1817_v49  ;;  %v8871_v53 = vld [vmem:[#allocation14 + $0x90] ss:$8 sps:$4 sm:$0xff]   ;;  %v1399_v58 = vsub.s32 0, %v10985_v57  ;;  %v1403_v60 = vsub.s32 1, %v10985_v57 }
 0x257   : > { %1718 = vmatprep.subr.bf16.mxu1 %v8837_v19  ;;  %8448 = vmatpush3.bf16.msra.mxu0 %v1774_v39  ;;  %v1394_v59 = vld [vmem:[#allocation13] sm:$0x3]  ;;  %v1890_v19 = vld [vmem:[%s13099_s15] sm:$0xff] }
 0x258   : > { %8453 = vmatprep.subr.bf16.mxu0 %v10253_v38  ;;  %8449 = vmatprep.mubr.msk.bf16.mxu0 %vm10254_vm3, %v10253_v38  ;;  %v1400_v61 = vrot.slane %v1394_v59, %v1399_v58  ;;  %v1404_v62 = vrot.slane %v1394_v59, %v1403_v60  ;;  %v1927_v59 = vrot.slane %v1890_v19, 7 }
 0x25a   : > { %1719 = vmatpush1.bf16.msra.mxu1 %v8839_v20  ;;  %v1892_v20 = vld [vmem:[%s13099_s15 + $0x10] sm:$0x1] }
 0x25b   : > { %1720 = vmatprep.subr.bf16.mxu1 %v8840_v21  ;;  %v1899_v21 = vrot.slane %v1890_v19, 1 }
 0x25e   : > { %1721 = vmatpush1.bf16.msra.mxu1 %v8842_v22  ;;  %8450 = vmatmul.mubr.msk.bf16.vlgmr.msra.gmra.mxu0 %vm1768_vm4, %v1756_v44  ;;  %v1900_v22 = vrot.slane %v1892_v20, 1 }
 0x25f   : > { %1722 = vmatprep.subr.bf16.mxu1 %v8843_v23  ;;  %8454 = vmatpush3.bf16.msra.mxu0 %v1847_v40  ;;  %v7881_v23 = vld [vmem:[#allocation7] ss:$0 sm:$0xff] }
 0x260   : > { %8455 = vmatprep.subr.bf16.mxu0 %v10253_v38  ;;  %8457 = vmatprep.mubr.msk.bf16.mxu0 %vm10254_vm3, %v10253_v38 }
 0x262   : > { %1723 = vmatpush1.bf16.msra.mxu1 %v8845_v24 }
 0x263   : > { %1724 = vmatprep.subr.bf16.mxu1 %v8846_v25  ;;  %8456 = vmatpush3.bf16.msra.mxu0 %v8868_v48  ;;  %v1901_v25 = vsel %vm1898_vm6, %v1899_v21, %v1900_v22 }
 0x266   : > { %1725 = vmatpush1.bf16.msra.mxu1 %v8848_v26  ;;  %8458 = vmatmul.mubr.msk.bf16.vlgmr.msra.gmra.mxu0 %vm1839_vm5, %v1823_v52 }
 0x267   : > { %1726 = vmatprep.subr.bf16.mxu1 %v8849_v27  ;;  %v1891_v27 = vld [vmem:[%s13099_s15 + $0x8] sm:$0xff] }
 0x26a   : > { %1727 = vmatpush2.bf16.msra.mxu1 %v8851_v28  ;;  %v1893_v28 = vld [vmem:[%s13099_s15 + $0x18] sm:$0x1] }
 0x26b   : > { %1728 = vmatprep.subr.bf16.mxu1 %v8852_v29  ;;  %v1903_v33 = vrot.slane %v1893_v28, 1 }
 0x26e   : > { %1729 = vmatpush2.bf16.msra.mxu1 %v8854_v30 }
 0x26f   : > { %1730 = vmatprep.subr.bf16.mxu1 %v8855_v31 }
 0x272   : > { %1731 = vmatpush2.bf16.msra.mxu1 %v8857_v32  ;;  %v1902_v32 = vrot.slane %v1891_v27, 1 }
 0x273   : > { %1732 = vmatprep.subr.bf16.mxu1 %v8858_v35 }
 0x274   : > { %v1904_v41 = vsel %vm1898_vm6, %v1902_v32, %v1903_v33 }
 0x276   : > { %1733 = vmatpush2.bf16.msra.mxu1 %v8860_v37  ;;  %v7884_v37 = vld [vmem:[#allocation10] ss:$0 sm:$0xff] }
 0x277   : > { %1734 = vmatprep.subr.bf16.mxu1 %v8862_v43 }
 0x27a   : > { %1735 = vmatpush2.bf16.msra.mxu1 %v8864_v45 }
 0x27b   : > { %1736 = vmatprep.subr.bf16.mxu1 %v8865_v46 }
 0x27e   : > { %1737 = vmatpush2.bf16.msra.mxu1 %v8867_v47 }
 0x27f   : > { %1738 = vmatprep.subr.bf16.mxu1 %v8869_v51 }
 0x282   : > { %1739 = vmatpush2.bf16.msra.mxu1 %v8871_v53 }
 0x283   : > { %1740 = vmatprep.subr.bf16.mxu1 %v8872_v54 }
 0x286   : > { %1741 = vmatpush2.bf16.msra.mxu1 %v8874_v55  ;;  %v1536_v55 = vld [vmem:[#allocation16] sm:$0x3] }
 0x287   : > { %v1543_v56 = vrot.slane %v1536_v55, %v1399_v58 }
 0x316   : > { %v1485_v63 = vpop.f32.mrf.mxu0 }
 0x317   : > { %v1486_v0 = vadd.f32 %v1485_v63, %v1400_v61  ;;  %v1547_v61 = vrot.slane %v1536_v55, %v1403_v60 }
 0x318   : > { %v1487_v1 = vpop.f32.mrf.mxu0 }
 0x319   : > { %v1492_v2 = vsub.f32 0.0, %v1486_v0  ;;  %v1488_v3 = vadd.f32 %v1487_v1, %v1404_v62 }
 0x31a   : > { %v1489_v4 = vpop.f32.mrf.mxu0 }
 0x31b   : > { %v1494_v5 = vmul.f32 1.442695, %v1492_v2  ;;  %v1493_v6 = vsub.f32 0.0, %v1488_v3 }
 0x31c   : > { %v1490_v7 = vpop.f32.mrf.mxu0 }
 0x31d   : > { %8875 = vpow2.f32 %v1494_v5  ;;  %v1496_v8 = vmul.f32 1.442695, %v1493_v6 }
 0x31e   : > { %v1810_v24 = vpop.f32.mrf.mxu0 }
 0x31f   : > { %8877 = vpow2.f32 %v1496_v8  ;;  %v1811_v26 = vadd.f32 %v7881_v23, %v1810_v24 }
 0x320   : > { %v8451_v29 = vpop.f32.mrf.mxu0 }
 0x321   : > { %v1907_v30 = vadd.f32 %v1901_v25, %v1811_v26 }
 0x322   : > { %v1813_v31 = vpop.f32.mrf.mxu0 }
 0x323   : > { %v1913_v34 = vrot.slane %v1907_v30, 7  ;;  %v1814_v35 = vadd.f32 %v7881_v23, %v1813_v31 }
 0x324   : > { %v8452_v36 = vpop.f32.mrf.mxu0 }
 0x325   : > { %v1919_v38 = vsel %vm1843_vm1, %v1913_v34, 0.0  ;;  %v1925_v39 = vadd.f32 %v1901_v25, %v1814_v35 }
 0x326   : > { %1923 = vst [vmem:[#allocation2 + $0x18] sm:$0xff] %v1919_v38  ;;  %v1883_v40 = vpop.f32.mrf.mxu0 }
 0x327   : > { %v1941_v42 = vrot.slane %v1925_v39, 7  ;;  %v1884_v43 = vadd.f32 %v7884_v37, %v1883_v40 }
 0x328   : > { %v8459_v44 = vpop.f32.mrf.mxu0 }
 0x329   : > { %v1947_v45 = vsel %vm1843_vm1, %v1941_v42, 0.0  ;;  %v1908_v46 = vadd.f32 %v1904_v41, %v1884_v43 }
 0x32a   : > { %v8876_v9 = vpop.eup %8875  ;;  %1951 = vst [vmem:[#allocation2 + $0x28] sm:$0xff] %v1947_v45  ;;  %v1886_v47 = vpop.f32.mrf.mxu0 }
 0x32b   : > { %v1498_v10 = vadd.f32 1.0, %v8876_v9  ;;  %v1914_v48 = vrot.slane %v1908_v46, 7  ;;  %v1887_v49 = vadd.f32 %v7884_v37, %v1886_v47 }
 0x32c   : > { %v8878_v11 = vpop.eup %8877  ;;  %v8460_v50 = vpop.f32.mrf.mxu0 }
 0x32d   : > { %8879 = vrcp.f32 %v1498_v10  ;;  %v1499_v12 = vadd.f32 1.0, %v8878_v11  ;;  %v1920_v51 = vsel %vm1843_vm1, %v1914_v48, 0.0  ;;  %v1926_v52 = vadd.f32 %v1904_v41, %v1887_v49 }
 0x32e   : > { %1924 = vst [vmem:[#allocation2 + $0x10] sm:$0xff] %v1920_v51 }
 0x32f   : > { %8881 = vrcp.f32 %v1499_v12  ;;  %v1942_v53 = vrot.slane %v1926_v52, 7 }
 0x331   : > { %v1948_v54 = vsel %vm1843_vm1, %v1942_v53, 0.0 }
 0x332   : > { %1952 = vst [vmem:[#allocation2 + $0x38] sm:$0xff] %v1948_v54 }
 0x33a   : > { %v8880_v13 = vpop.eup %8879 }
 0x33b   : > { %v1502_v15 = vmul.f32 %v8880_v13, %v1486_v0  ;;  %v1928_v0 = vrot.slane %v1891_v27, 7 }
 0x33c   : > { %v8882_v14 = vpop.eup %8881 }
 0x33d   : > { %v1503_v16 = vmul.f32 %v8882_v14, %v1488_v3  ;;  %v1537_v18 = vpack.c.bf16 %v1502_v15, %v1502_v15 }
 0x33f   : > { %v1538_v17 = vpack.c.bf16 %v1503_v16, %v1503_v16 }
 0x341   : > { %1742 = vmatprep.mubr.bf16.mxu1 %v1538_v17 }
 0x342   : > { %1743 = vmatmul.mubr.bf16.vlgmr.msra.gmra.mxu1 %v1537_v18 }
 0x402   : > { %v1744_v62 = vpop.f32.mrf.mxu1 }
 0x403   : > { %v1745_v63 = vadd.f32 %v1744_v62, %v1543_v56 }
 0x404   : > { %v1746_v1 = vpop.f32.mrf.mxu1 }
 0x405   : > { %v1909_v2 = vadd.f32 %v1890_v19, %v1745_v63  ;;  %v1931_v3 = vadd.f32 %v1927_v59, %v1745_v63  ;;  %v1747_v4 = vadd.f32 %v1746_v1, %v1547_v61 }
 0x406   : > { %v1748_v5 = vpop.f32.mrf.mxu1 }
 0x407   : > { %v1917_v6 = vsel %vm1843_vm1, %v1909_v2, %v1913_v34  ;;  %v1935_v7 = vrot.slane %v1931_v3, 1  ;;  %v1910_v8 = vadd.f32 %v1891_v27, %v1747_v4  ;;  %v1932_v9 = vadd.f32 %v1928_v0, %v1747_v4 }
 0x408   : > { %1921 = vst [vmem:[#allocation2 + $0x30] sm:$0xff] %v1917_v6  ;;  %v1749_v10 = vpop.f32.mrf.mxu1 }
 0x409   : > { %v1945_v58 = vsel %vm1843_vm1, %v1935_v7, %v1941_v42  ;;  %v1918_v57 = vsel %vm1843_vm1, %v1910_v8, %v1914_v48  ;;  %v1936_v60 = vrot.slane %v1932_v9, 1 }
 0x40a   : > { %1949 = vst [vmem:[#allocation2 + $0x8] sm:$0xff] %v1945_v58  ;;  %1922 = vst [vmem:[#allocation2] sm:$0xff] %v1918_v57 }
 0x40b   : > { %v1946_v11 = vsel %vm1843_vm1, %v1936_v60, %v1942_v53 }
 0x40c   : > { %1950 = vst [vmem:[#allocation2 + $0x20] sm:$0xff] %v1946_v11 }
 0x40d PF: > { %v8903_v12 = vld [vmem:[%s10922_s22 + $0x15c] ss:$24 sps:$4 sm:$0xff]   ;;  %v8905_v13 = vld [vmem:[%s10922_s22 + $0x158] ss:$24 sps:$4 sm:$0xff]   ;;  %v8906_v14 = vld [vmem:[%s10922_s22 + $0x12c] ss:$24 sps:$4 sm:$0xff]  }
 0x40e   : > { %2626 = vmatprep.subr.bf16.mxu1 %v8903_v12  ;;  %v8908_v15 = vld [vmem:[%s10922_s22 + $0x128] ss:$24 sps:$4 sm:$0xff]   ;;  %v8909_v16 = vld [vmem:[%s10922_s22 + $0xfc] ss:$24 sps:$4 sm:$0xff]   ;;  %v8911_v17 = vld [vmem:[%s10922_s22 + $0xf8] ss:$24 sps:$4 sm:$0xff]  }
 0x40f   : > { %2627 = vmatpush1.bf16.msra.mxu1 %v8905_v13  ;;  %v8917_v18 = vld [vmem:[%s10922_s22 + $0x154] ss:$24 sps:$4 sm:$0xff]   ;;  %v8920_v19 = vld [vmem:[%s10922_s22 + $0x150] ss:$24 sps:$4 sm:$0xff]   ;;  %v8923_v21 = vld [vmem:[%s10922_s22 + $0x124] ss:$24 sps:$4 sm:$0xff]  }
 0x410   : > { %2628 = vmatprep.subr.bf16.mxu1 %v8906_v14  ;;  %v8912_v20 = vld [vmem:[%s10922_s22 + $0xcc] ss:$24 sps:$4 sm:$0xff]   ;;  %2573 = vmatprep.subr.bf16.mxu0 %v8917_v18  ;;  %v8926_v22 = vld [vmem:[%s10922_s22 + $0x120] ss:$24 sps:$4 sm:$0xff]   ;;  %v8915_v24 = vld [vmem:[%s10922_s22 + $0x9c] ss:$24 sps:$4 sm:$0xff]  }
 0x411   : > { %2574 = vmatpush1.bf16.msra.mxu0 %v8920_v19  ;;  %v8914_v23 = vld [vmem:[%s10922_s22 + $0xc8] ss:$24 sps:$4 sm:$0xff]   ;;  %v8929_v25 = vld [vmem:[%s10922_s22 + $0xf4] ss:$24 sps:$4 sm:$0xff]   ;;  %v8919_v27 = vld [vmem:[%s10922_s22 + $0x98] ss:$24 sps:$4 sm:$0xff]  }
 0x412   : > { %2575 = vmatprep.subr.bf16.mxu0 %v8923_v21  ;;  %v8932_v26 = vld [vmem:[%s10922_s22 + $0xf0] ss:$24 sps:$4 sm:$0xff]   ;;  %v8935_v28 = vld [vmem:[%s10922_s22 + $0xc4] ss:$24 sps:$4 sm:$0xff]   ;;  %v8938_v31 = vld [vmem:[%s10922_s22 + $0xc0] ss:$24 sps:$4 sm:$0xff]  }
 0x413   : > { %2629 = vmatpush1.bf16.msra.mxu1 %v8908_v15  ;;  %v8921_v29 = vld [vmem:[%s10922_s22 + $0x6c] ss:$24 sps:$4 sm:$0xff]   ;;  %v8925_v30 = vld [vmem:[%s10922_s22 + $0x68] ss:$24 sps:$4 sm:$0xff]   ;;  %v8927_v33 = vld [vmem:[%s10922_s22 + $0x3c] ss:$24 sps:$4 sm:$0xff]  }
 0x414   : > { %2630 = vmatprep.subr.bf16.mxu1 %v8909_v16  ;;  %v8941_v32 = vld [vmem:[%s10922_s22 + $0x94] ss:$24 sps:$4 sm:$0xff]   ;;  %v8944_v34 = vld [vmem:[%s10922_s22 + $0x90] ss:$24 sps:$4 sm:$0xff]   ;;  %v8947_v36 = vld [vmem:[%s10922_s22 + $0x64] ss:$24 sps:$4 sm:$0xff]  }
 0x415   : > { %2576 = vmatpush1.bf16.msra.mxu0 %v8926_v22  ;;  %v8931_v35 = vld [vmem:[%s10922_s22 + $0x38] ss:$24 sps:$4 sm:$0xff]   ;;  %v8933_v37 = vld [vmem:[%s10922_s22 + $0xc] ss:$24 sps:$4 sm:$0xff]   ;;  %v8937_v38 = vld [vmem:[%s10922_s22 + $0x8] ss:$24 sps:$4 sm:$0xff]  }
 0x416   : > { %2577 = vmatprep.subr.bf16.mxu0 %v8929_v25  ;;  %v8950_v39 = vld [vmem:[%s10922_s22 + $0x60] ss:$24 sps:$4 sm:$0xff]   ;;  %v8953_v40 = vld [vmem:[%s10922_s22 + $0x34] ss:$24 sps:$4 sm:$0xff]   ;;  %v8956_v42 = vld [vmem:[%s10922_s22 + $0x30] ss:$24 sps:$4 sm:$0xff]  }
 0x417   : > { %2631 = vmatpush1.bf16.msra.mxu1 %v8911_v17  ;;  %v8939_v41 = vld [vmem:[%s10922_s22 + $0x2dc] ss:$24 sps:$4 sm:$0xff]   ;;  %v8943_v43 = vld [vmem:[%s10922_s22 + $0x2d8] ss:$24 sps:$4 sm:$0xff]   ;;  %v8945_v45 = vld [vmem:[%s10922_s22 + $0x2ac] ss:$24 sps:$4 sm:$0xff]  }
 0x418   : > { %2632 = vmatprep.subr.bf16.mxu1 %v8912_v20  ;;  %v8959_v44 = vld [vmem:[%s10922_s22 + $0x4] ss:$24 sps:$4 sm:$0xff]   ;;  %v8949_v46 = vld [vmem:[%s10922_s22 + $0x2a8] ss:$24 sps:$4 sm:$0xff]   ;;  %v8965_v48 = vld [vmem:[%s10922_s22 + $0x2d4] ss:$24 sps:$4 sm:$0xff]  }
 0x419   : > { %2578 = vmatpush1.bf16.msra.mxu0 %v8932_v26  ;;  %v8962_v47 = vld [vmem:[%s10922_s22] ss:$24 sps:$4 sm:$0xff]   ;;  %v8951_v49 = vld [vmem:[%s10922_s22 + $0x27c] ss:$24 sps:$4 sm:$0xff]   ;;  %v8968_v52 = vld [vmem:[%s10922_s22 + $0x2d0] ss:$24 sps:$4 sm:$0xff]  }
 0x41a   : > { %2579 = vmatprep.subr.bf16.mxu0 %v8935_v28  ;;  %v1954_v50 = vld [vmem:[#allocation2] sm:$0xff]  ;;  %v1956_v51 = vld [vmem:[#allocation2 + $0x10] sm:$0xff]  ;;  %v1955_v12 = vld [vmem:[#allocation2 + $0x18] sm:$0xff]  ;;  %vm2744_vm7 = vcmask 523264   ;;  %s13101_s17 = sld [smem:[#allocation89_spill]]  ;;  %vm2854_vm8 = vcmask 261120  }
 0x41b   : > { %2633 = vmatpush1.bf16.msra.mxu1 %v8914_v23  ;;  %v11058_v53 = vpack.c.bf16 %v1956_v51, %v1954_v50  ;;  %v8955_v54 = vld [vmem:[%s10922_s22 + $0x278] ss:$24 sps:$4 sm:$0xff]   ;;  %v8971_v55 = vld [vmem:[%s10922_s22 + $0x2a4] ss:$24 sps:$4 sm:$0xff]   ;;  %v8961_v61 = vld [vmem:[%s10922_s22 + $0x248] ss:$24 sps:$4 sm:$0xff]  }
 0x41c   : > { %2634 = vmatprep.subr.bf16.mxu1 %v8915_v24  ;;  %v8957_v56 = vld [vmem:[%s10922_s22 + $0x24c] ss:$24 sps:$4 sm:$0xff]   ;;  %v8974_v59 = vld [vmem:[%s10922_s22 + $0x2a0] ss:$24 sps:$4 sm:$0xff]   ;;  %v8963_v63 = vld [vmem:[%s10922_s22 + $0x21c] ss:$24 sps:$4 sm:$0xff]   ;;  %v2063_v24 = vlaneseq }
 0x41d   : > { %2580 = vmatpush1.bf16.msra.mxu0 %v8938_v31  ;;  %2658 = vmatprep.mubr.bf16.mxu1 %v11058_v53  ;;  %v8977_v62 = vld [vmem:[%s10922_s22 + $0x274] ss:$24 sps:$4 sm:$0xff]   ;;  %v8967_v0 = vld [vmem:[%s10922_s22 + $0x218] ss:$24 sps:$4 sm:$0xff]   ;;  %v8983_v2 = vld [vmem:[%s10922_s22 + $0x244] ss:$24 sps:$4 sm:$0xff]  }
 0x41e   : > { %2581 = vmatprep.subr.bf16.mxu0 %v8941_v32  ;;  %2605 = vmatprep.mubr.bf16.mxu0 %v11058_v53  ;;  %v8980_v1 = vld [vmem:[%s10922_s22 + $0x270] ss:$24 sps:$4 sm:$0xff]   ;;  %v8969_v3 = vld [vmem:[%s10922_s22 + $0x1ec] ss:$24 sps:$4 sm:$0xff]   ;;  %v8986_v4 = vld [vmem:[%s10922_s22 + $0x240] ss:$24 sps:$4 sm:$0xff]  }
 0x41f   : > { %2635 = vmatpush1.bf16.msra.mxu1 %v8919_v27  ;;  %v8973_v5 = vld [vmem:[%s10922_s22 + $0x1e8] ss:$24 sps:$4 sm:$0xff]   ;;  %v8987_v6 = vld [vmem:[%s10922_s22 + $0x214] ss:$24 sps:$4 sm:$0xff]   ;;  %v8979_v9 = vld [vmem:[%s10922_s22 + $0x1b8] ss:$24 sps:$4 sm:$0xff]  }
 0x420   : > { %2636 = vmatprep.subr.bf16.mxu1 %v8921_v29  ;;  %v8975_v7 = vld [vmem:[%s10922_s22 + $0x1bc] ss:$24 sps:$4 sm:$0xff]   ;;  %v8989_v8 = vld [vmem:[%s10922_s22 + $0x210] ss:$24 sps:$4 sm:$0xff]   ;;  %v8981_v58 = vld [vmem:[%s10922_s22 + $0x18c] ss:$24 sps:$4 sm:$0xff]  }
 0x421   : > { %2582 = vmatpush1.bf16.msra.mxu0 %v8944_v34  ;;  %v8990_v10 = vld [vmem:[%s10922_s22 + $0x1e4] ss:$24 sps:$4 sm:$0xff]   ;;  %v8992_v57 = vld [vmem:[%s10922_s22 + $0x1e0] ss:$24 sps:$4 sm:$0xff]   ;;  %v8993_v13 = vld [vmem:[%s10922_s22 + $0x1b4] ss:$24 sps:$4 sm:$0xff]  }
 0x422   : > { %2583 = vmatprep.subr.bf16.mxu0 %v8947_v36  ;;  %v8985_v60 = vld [vmem:[%s10922_s22 + $0x188] ss:$24 sps:$4 sm:$0xff]   ;;  %v1958_v14 = vld [vmem:[#allocation2 + $0x20] sm:$0xff]  ;;  %v8996_v17 = vld [vmem:[%s10922_s22 + $0x184] ss:$24 sps:$4 sm:$0xff]   ;;  %v11100_v25 = vshrl.u32 %v2063_v24, 7 }
 0x423   : > { %2637 = vmatpush1.bf16.msra.mxu1 %v8925_v30  ;;  %v1953_v11 = vld [vmem:[#allocation2 + $0x30] sm:$0xff]  ;;  %v1960_v15 = vld [vmem:[#allocation2 + $0x38] sm:$0xff]  ;;  %v1957_v21 = vld [vmem:[#allocation2 + $0x8] sm:$0xff]  ;;  %s10255_s8 = smov 64  }
 0x424   : > { %2638 = vmatprep.subr.bf16.mxu1 %v8927_v33  ;;  %v8995_v16 = vld [vmem:[%s10922_s22 + $0x1b0] ss:$24 sps:$4 sm:$0xff]   ;;  %v11086_v18 = vpack.c.bf16 %v1955_v12, %v1953_v11  ;;  %v11088_v19 = vpack.c.bf16 %v1960_v15, %v1958_v14  ;;  %v8998_v20 = vld [vmem:[%s10922_s22 + $0x180] ss:$24 sps:$4 sm:$0xff]   ;;  %v11103_v27 = vsub.s32 0, %v11100_v25  ;;  %v2073_v33 = vsub.s32 2, %v11100_v25 }
 0x425   : > { %2584 = vmatpush1.bf16.msra.mxu0 %v8950_v39  ;;  %v1959_v22 = vld [vmem:[#allocation2 + $0x28] sm:$0xff]  ;;  %v9028_v11 = vld [vmem:[%s10922_s22 + $0x2b4] ss:$24 sps:$4 sm:$0xff]   ;;  %v9026_v12 = vld [vmem:[%s10922_s22 + $0x2b0] ss:$24 sps:$4 sm:$0xff]  }
 0x426   : > { %2585 = vmatprep.subr.bf16.mxu0 %v8953_v40  ;;  %v11093_v23 = vpack.c.bf16 %v1959_v22, %v1957_v21  ;;  %13100 = vst [vmem:[#allocation57_spill] sm:$0xff] %v11103_v27  ;;  %v11108_v29 = vld [vmem:[%s10928_s13] sm:$0x3f]  ;;  %v9034_v15 = vld [vmem:[%s10922_s22 + $0x254] ss:$24 sps:$4 sm:$0xff]  }
 0x427   : > { %2639 = vmatpush1.bf16.msra.mxu1 %v8931_v35  ;;  %v2066_v31 = vrot.slane %v11108_v29, %v11103_v27  ;;  %v2074_v40 = vrot.slane %v11108_v29, %v2073_v33  ;;  %v9029_v14 = vld [vmem:[%s10922_s22 + $0x280] ss:$24 sps:$4 sm:$0xff]   ;;  %v9040_v21 = vld [vmem:[%s10922_s22 + $0x1f4] ss:$24 sps:$4 sm:$0xff]   ;;  %v9038_v22 = vld [vmem:[%s10922_s22 + $0x1f0] ss:$24 sps:$4 sm:$0xff]  }
 0x428   : > { %2640 = vmatprep.subr.bf16.mxu1 %v8933_v37  ;;  %v9043_v24 = vld [vmem:[%s10922_s22 + $0x1c4] ss:$24 sps:$4 sm:$0xff]  }
 0x429   : > { %2586 = vmatpush1.bf16.msra.mxu0 %v8956_v42 }
 0x42a   : > { %2587 = vmatprep.subr.bf16.mxu0 %v8959_v44 }
 0x42b   : > { %2641 = vmatpush1.bf16.msra.mxu1 %v8937_v38 }
 0x42c   : > { %2642 = vmatprep.subr.bf16.mxu1 %v8939_v41 }
 0x42d   : > { %2588 = vmatpush1.bf16.msra.mxu0 %v8962_v47 }
 0x42e   : > { %2589 = vmatprep.subr.bf16.mxu0 %v8965_v48 }
 0x42f   : > { %2643 = vmatpush2.bf16.msra.mxu1 %v8943_v43 }
 0x430   : > { %2644 = vmatprep.subr.bf16.mxu1 %v8945_v45 }
 0x431   : > { %2590 = vmatpush2.bf16.msra.mxu0 %v8968_v52 }
 0x432   : > { %2591 = vmatprep.subr.bf16.mxu0 %v8971_v55 }
 0x433   : > { %2645 = vmatpush2.bf16.msra.mxu1 %v8949_v46 }
 0x434   : > { %2646 = vmatprep.subr.bf16.mxu1 %v8951_v49 }
 0x435   : > { %2592 = vmatpush2.bf16.msra.mxu0 %v8974_v59  ;;  %v8999_v59 = vld [vmem:[%s10922_s22 + $0x160] ss:$24 sps:$4 sm:$0xff]  }
 0x436   : > { %2593 = vmatprep.subr.bf16.mxu0 %v8977_v62  ;;  %v9004_v62 = vld [vmem:[%s10922_s22 + $0x134] ss:$24 sps:$4 sm:$0xff]  }
 0x437   : > { %2647 = vmatpush2.bf16.msra.mxu1 %v8955_v54 }
 0x438   : > { %2648 = vmatprep.subr.bf16.mxu1 %v8957_v56 }
 0x439   : > { %2594 = vmatpush2.bf16.msra.mxu0 %v8980_v1  ;;  %v9005_v1 = vld [vmem:[%s10922_s22 + $0x100] ss:$24 sps:$4 sm:$0xff]  }
 0x43a   : > { %2595 = vmatprep.subr.bf16.mxu0 %v8983_v2  ;;  %v9010_v2 = vld [vmem:[%s10922_s22 + $0xd4] ss:$24 sps:$4 sm:$0xff]  }
 0x43b   : > { %2649 = vmatpush2.bf16.msra.mxu1 %v8961_v61  ;;  %v9001_v61 = vld [vmem:[%s10922_s22 + $0x164] ss:$24 sps:$4 sm:$0xff]  }
 0x43c   : > { %2650 = vmatprep.subr.bf16.mxu1 %v8963_v63  ;;  %v9002_v63 = vld [vmem:[%s10922_s22 + $0x130] ss:$24 sps:$4 sm:$0xff]  }
 0x43d   : > { %2596 = vmatpush2.bf16.msra.mxu0 %v8986_v4  ;;  %v9013_v4 = vld [vmem:[%s10922_s22 + $0xa4] ss:$24 sps:$4 sm:$0xff]  }
 0x43e   : > { %2597 = vmatprep.subr.bf16.mxu0 %v8987_v6  ;;  %v9016_v6 = vld [vmem:[%s10922_s22 + $0x74] ss:$24 sps:$4 sm:$0xff]  }
 0x43f   : > { %2651 = vmatpush2.bf16.msra.mxu1 %v8967_v0  ;;  %v9007_v0 = vld [vmem:[%s10922_s22 + $0x104] ss:$24 sps:$4 sm:$0xff]  }
 0x440   : > { %2652 = vmatprep.subr.bf16.mxu1 %v8969_v3  ;;  %v9008_v3 = vld [vmem:[%s10922_s22 + $0xd0] ss:$24 sps:$4 sm:$0xff]  }
 0x441   : > { %2598 = vmatpush2.bf16.msra.mxu0 %v8989_v8  ;;  %v9019_v8 = vld [vmem:[%s10922_s22 + $0x44] ss:$24 sps:$4 sm:$0xff]  }
 0x442   : > { %2599 = vmatprep.subr.bf16.mxu0 %v8990_v10  ;;  %v9022_v10 = vld [vmem:[%s10922_s22 + $0x14] ss:$24 sps:$4 sm:$0xff]  }
 0x443   : > { %2653 = vmatpush2.bf16.msra.mxu1 %v8973_v5  ;;  %v9011_v5 = vld [vmem:[%s10922_s22 + $0xa0] ss:$24 sps:$4 sm:$0xff]  }
 0x444   : > { %2654 = vmatprep.subr.bf16.mxu1 %v8975_v7  ;;  %v9014_v7 = vld [vmem:[%s10922_s22 + $0x70] ss:$24 sps:$4 sm:$0xff]  }
 0x445   : > { %2600 = vmatpush2.bf16.msra.mxu0 %v8992_v57  ;;  %v9025_v57 = vld [vmem:[%s10922_s22 + $0x2e4] ss:$24 sps:$4 sm:$0xff]  }
 0x446   : > { %2601 = vmatprep.subr.bf16.mxu0 %v8993_v13  ;;  %v9031_v13 = vld [vmem:[%s10922_s22 + $0x284] ss:$24 sps:$4 sm:$0xff]  }
 0x447   : > { %2655 = vmatpush2.bf16.msra.mxu1 %v8979_v9  ;;  %v9017_v9 = vld [vmem:[%s10922_s22 + $0x40] ss:$24 sps:$4 sm:$0xff]  }
 0x448   : > { %2656 = vmatprep.subr.bf16.mxu1 %v8981_v58  ;;  %v9020_v58 = vld [vmem:[%s10922_s22 + $0x10] ss:$24 sps:$4 sm:$0xff]  }
 0x449   : > { %2602 = vmatpush2.bf16.msra.mxu0 %v8995_v16  ;;  %v9032_v16 = vld [vmem:[%s10922_s22 + $0x250] ss:$24 sps:$4 sm:$0xff]  }
 0x44a   : > { %2603 = vmatprep.subr.bf16.mxu0 %v8996_v17  ;;  %v9037_v17 = vld [vmem:[%s10922_s22 + $0x224] ss:$24 sps:$4 sm:$0xff]  }
 0x44b   : > { %2657 = vmatpush2.bf16.msra.mxu1 %v8985_v60  ;;  %v9023_v60 = vld [vmem:[%s10922_s22 + $0x2e0] ss:$24 sps:$4 sm:$0xff]  }
 0x44d   : > { %2604 = vmatpush2.bf16.msra.mxu0 %v8998_v20  ;;  %v9035_v20 = vld [vmem:[%s10922_s22 + $0x220] ss:$24 sps:$4 sm:$0xff]  }
 0x44e   : > { %2659 = vmatmul.mubr.bf16.vlgmr.msra.gmra.mxu1 %v11086_v18  ;;  %2679 = vmatprep.subr.bf16.mxu0 %v9001_v61 }
 0x44f   : > { %2668 = vmatprep.mubr.bf16.mxu1 %v11088_v19 }
 0x450   : > { %2606 = vmatmul.mubr.bf16.vlgmr.msra.gmra.mxu0 %v11086_v18 }
 0x451   : > { %2615 = vmatprep.mubr.bf16.mxu0 %v11088_v19  ;;  %2680 = vmatpush1.bf16.msra.mxu0 %v8999_v59 }
 0x452   : > { %2681 = vmatprep.subr.bf16.mxu0 %v9004_v62 }
 0x455   : > { %2682 = vmatpush1.bf16.msra.mxu0 %v9002_v63 }
 0x456   : > { %2669 = vmatmul.mubr.bf16.gmra.mxu1 %v11093_v23  ;;  %2683 = vmatprep.subr.bf16.mxu0 %v9007_v0 }
 0x458   : > { %2616 = vmatmul.mubr.bf16.gmra.mxu0 %v11093_v23 }
 0x459   : > { %2711 = vmatprep.mubr.bf16.mxu0 %v11058_v53  ;;  %2684 = vmatpush1.bf16.msra.mxu0 %v9005_v1 }
 0x45a   : > { %2685 = vmatprep.subr.bf16.mxu0 %v9010_v2 }
 0x45d   : > { %2686 = vmatpush1.bf16.msra.mxu0 %v9008_v3 }
 0x45e   : > { %2687 = vmatprep.subr.bf16.mxu0 %v9013_v4 }
 0x461   : > { %2688 = vmatpush1.bf16.msra.mxu0 %v9011_v5 }
 0x462   : > { %2689 = vmatprep.subr.bf16.mxu0 %v9016_v6 }
 0x465   : > { %2690 = vmatpush1.bf16.msra.mxu0 %v9014_v7 }
 0x466   : > { %2691 = vmatprep.subr.bf16.mxu0 %v9019_v8 }
 0x469   : > { %2692 = vmatpush1.bf16.msra.mxu0 %v9017_v9 }
 0x46a   : > { %2693 = vmatprep.subr.bf16.mxu0 %v9022_v10  ;;  %v12977_v10 = vsub.s32 4, %v11100_v25 }
 0x46d   : > { %2694 = vmatpush1.bf16.msra.mxu0 %v9020_v58 }
 0x46e   : > { %2695 = vmatprep.subr.bf16.mxu0 %v9025_v57 }
 0x471   : > { %2696 = vmatpush2.bf16.msra.mxu0 %v9023_v60 }
 0x472   : > { %2697 = vmatprep.subr.bf16.mxu0 %v9028_v11 }
 0x475   : > { %2698 = vmatpush2.bf16.msra.mxu0 %v9026_v12 }
 0x476   : > { %2699 = vmatprep.subr.bf16.mxu0 %v9031_v13 }
 0x479   : > { %2700 = vmatpush2.bf16.msra.mxu0 %v9029_v14  ;;  %v2082_v14 = vrot.slane %v11108_v29, %v12977_v10 }
 0x47a   : > { %2701 = vmatprep.subr.bf16.mxu0 %v9034_v15 }
 0x47d   : > { %2702 = vmatpush2.bf16.msra.mxu0 %v9032_v16 }
 0x47e   : > { %2703 = vmatprep.subr.bf16.mxu0 %v9037_v17 }
 0x481   : > { %2704 = vmatpush2.bf16.msra.mxu0 %v9035_v20 }
 0x482   : > { %2705 = vmatprep.subr.bf16.mxu0 %v9040_v21 }
 0x485   : > { %2706 = vmatpush2.bf16.msra.mxu0 %v9038_v22 }
 0x486   : > { %2707 = vmatprep.subr.bf16.mxu0 %v9043_v24 }
 0x50e   : > { %v2660_v26 = vpop.f32.mrf.mxu1 }
 0x50f   : > { %v11146_v49 = vadd.f32 %v2660_v26, %v2074_v40  ;;  %v9041_v26 = vld [vmem:[%s10922_s22 + $0x1c0] ss:$24 sps:$4 sm:$0xff]  }
 0x510   : > { %v11105_v28 = vpop.f32.mrf.mxu1  ;;  %v2607_v34 = vpop.f32.mrf.mxu0  ;;  %2708 = vmatpush2.bf16.msra.mxu0 %v9041_v26 }
 0x511   : > { %v2608_v36 = vadd.f32 %v2607_v34, %v2066_v31 }
 0x512   : > { %v2664_v30 = vpop.f32.mrf.mxu1  ;;  %v11115_v37 = vpop.f32.mrf.mxu0 }
 0x513   : > { %v11119_v39 = vmul.f32 0.125, %v2608_v36  ;;  %v11138_v47 = vadd.f32 %v2664_v30, %v2074_v40  ;;  %v9046_v30 = vld [vmem:[%s10922_s22 + $0x194] ss:$24 sps:$4 sm:$0xff]  }
 0x514   : > { %v11112_v32 = vpop.f32.mrf.mxu1  ;;  %v2611_v41 = vpop.f32.mrf.mxu0  ;;  %2709 = vmatprep.subr.bf16.mxu0 %v9046_v30  ;;  %v11206_v36 = vld [vmem:[%s13101_s17] sm:$0xff] }
 0x515   : > { %8469 = vmatprep.mubr.msk.f32.mxu1 %vm2744_vm7, %v11119_v39  ;;  %v2612_v52 = vadd.f32 %v2611_v41, %v2066_v31 }
 0x516   : > { %v2670_v35 = vpop.f32.mrf.mxu1  ;;  %v11128_v44 = vpop.f32.mrf.mxu0 }
 0x517   : > { %v11130_v45 = vadd.f32 %v2670_v35, %v2074_v40  ;;  %v11156_v55 = vmul.f32 0.125, %v2612_v52 }
 0x518   : > { %v11117_v38 = vpop.f32.mrf.mxu1  ;;  %v2617_v46 = vpop.f32.mrf.mxu0 }
 0x519   : > { %v2618_v50 = vadd.f32 %v2617_v46, %v2066_v31 }
 0x51a   : > { %v2674_v42 = vpop.f32.mrf.mxu1  ;;  %v11142_v48 = vpop.f32.mrf.mxu0 }
 0x51b   : > { %v11126_v43 = vadd.f32 %v2674_v42, %v2074_v40  ;;  %v11152_v54 = vmul.f32 0.125, %v2618_v50  ;;  %v11211_v40 = vld [vmem:[%s13101_s17 + $0x8] sm:$0xff]  ;;  %v11224_v50 = vld [vmem:[%s13101_s17 + $0x18] sm:$0xff] }
 0x51c   : > { %v2621_v51 = vpop.f32.mrf.mxu0  ;;  %v11201_v34 = vpop.f32.mrf.mxu1 }
 0x51d   : > { %8461 = vmatprep.subr.msk.mxu1 %vm2744_vm7, %v11126_v43  ;;  %v2622_v53 = vadd.f32 %v2621_v51, %v2066_v31  ;;  %v9044_v31 = vld [vmem:[%s10922_s22 + $0x190] ss:$24 sps:$4 sm:$0xff]  }
 0x51e   : > { %8462 = vmatpush3.xpose.msk.msra.mxu1 %vm2744_vm7, %v11126_v43  ;;  %2710 = vmatpush2.bf16.msra.mxu0 %v9044_v31  ;;  %v11231_v63 = vpop.f32.mrf.mxu0 }
 0x51f   : > { %8463 = vmatprep.subr.msk.mxu1 %vm2744_vm7, %v11130_v45  ;;  %v11158_v56 = vmul.f32 0.125, %v2622_v53 }
 0x521   : > { %2712 = vmatmul.mubr.bf16.vlgmr.msra.gmra.mxu0 %v11086_v18 }
 0x522   : > { %8464 = vmatpush3.xpose.msk.msra.mxu1 %vm2744_vm7, %v11130_v45  ;;  %2721 = vmatprep.mubr.bf16.mxu0 %v11088_v19  ;;  %v11217_v19 = vld [vmem:[%s13101_s17 + $0x10] sm:$0xff] }
 0x523   : > { %8465 = vmatprep.subr.msk.mxu1 %vm2744_vm7, %v11138_v47 }
 0x526   : > { %8466 = vmatpush3.xpose.msk.msra.mxu1 %vm2744_vm7, %v11138_v47 }
 0x527   : > { %8467 = vmatprep.subr.msk.mxu1 %vm2744_vm7, %v11146_v49 }
 0x529   : > { %2722 = vmatmul.mubr.bf16.gmra.mxu0 %v11093_v23 }
 0x52a   : > { %8468 = vmatpush3.xpose.msk.msra.mxu1 %vm2744_vm7, %v11146_v49 }
 0x52d   : > { %8470 = vmatmul.mubr.msk.f32.vlgmr.msra.gmra.mxu1 %vm2744_vm7, %v11156_v55 }
 0x52e   : > { %8472 = vmatprep.mubr.msk.f32.mxu1 %vm2744_vm7, %v11152_v54 }
 0x531   : > { %8473 = vmatmul.mubr.msk.f32.gmra.mxu1 %vm2744_vm7, %v11158_v56 }
 0x5e1   : > { %v2713_v2 = vpop.f32.mrf.mxu0 }
 0x5e2   : > { %v11251_v26 = vadd.f32 %v2713_v2, %v2082_v14 }
 0x5e3   : > { %v11233_v4 = vpop.f32.mrf.mxu0 }
 0x5e5   : > { %v2717_v9 = vpop.f32.mrf.mxu0 }
 0x5e6   : > { %v11247_v22 = vadd.f32 %v2717_v9, %v2082_v14 }
 0x5e7   : > { %v11236_v60 = vpop.f32.mrf.mxu0 }
 0x5e9   : > { %v2723_v13 = vpop.f32.mrf.mxu0 }
 0x5ea   : > { %v11243_v20 = vadd.f32 %v2723_v13, %v2082_v14 }
 0x5eb   : > { %v11241_v16 = vpop.f32.mrf.mxu0 }
 0x5ed   : > { %v8471_v35 = vpop.f32.mrf.mxu1  ;;  %v2727_v17 = vpop.f32.mrf.mxu0 }
 0x5ee   : > { %v2841_v23 = vadd.f32 %v8471_v35, %v11211_v40  ;;  %v11245_v21 = vadd.f32 %v2727_v17, %v2082_v14 }
 0x5ef   : > { %v2835_v41 = vpop.f32.mrf.mxu1 }
 0x5f0   : > { %v2836_v18 = vadd.f32 %v2835_v41, %v11206_v36  ;;  %v2858_v61 = vsel %vm2854_vm8, %v2841_v23, -inf  ;;  %8475 = vmatprep.subr.mxu1 %v11245_v21 }
 0x5f1   : > { %v8474_v42 = vpop.f32.mrf.mxu1  ;;  %8476 = vmatpush3.msra.mxu1 %v11245_v21 }
 0x5f2   : > { %v2855_v46 = vsel %vm2854_vm8, %v2836_v18, -inf  ;;  %v2851_v53 = vadd.f32 %v8474_v42, %v11224_v50  ;;  %8477 = vmatprep.subr.mxu1 %v11243_v20 }
 0x5f3   : > { %v2845_v51 = vpop.f32.mrf.mxu1  ;;  %2856 = vmax.xlane.f32.xlu0 %v2855_v46  ;;  %8478 = vmatpush3.msra.mxu1 %v11243_v20 }
 0x5f4   : > { %v2846_v52 = vadd.f32 %v2845_v51, %v11217_v19  ;;  %v2864_v62 = vsel %vm2854_vm8, %v2851_v53, -inf  ;;  %8479 = vmatprep.subr.mxu1 %v11247_v22 }
 0x5f5   : > { %8480 = vmatpush3.msra.mxu1 %v11247_v22 }
 0x5f6   : > { %v2861_v59 = vsel %vm2854_vm8, %v2846_v52, -inf  ;;  %8481 = vmatprep.subr.mxu1 %v11251_v26 }
 0x5f7   : > { %2862 = vmax.xlane.f32.xlu1 %v2861_v59  ;;  %2859 = vmax.xlane.f32.xlu0 %v2858_v61 }
 0x5f8   : > { %8482 = vmatpush3.msra.mxu1 %v11251_v26 }
 0x5fb   : > { %2865 = vmax.xlane.f32.xlu1 %v2864_v62 }
 0x67c   : > { %v2857_v0 = vpop.xlane.xlu0 %2856 }
 0x67d   : > { %v2867_v1 = vsub.f32 %v2836_v18, %v2857_v0 }
 0x67f   : > { %v2871_v3 = vmul.f32 1.442695, %v2867_v1 }
 0x680   : > { %v2863_v5 = vpop.xlane.xlu1 %2862  ;;  %v2860_v6 = vpop.xlane.xlu0 %2859 }
 0x681   : > { %9287 = vpow2.f32 %v2871_v3  ;;  %v2869_v7 = vsub.f32 %v2846_v52, %v2863_v5  ;;  %v2868_v8 = vsub.f32 %v2841_v23, %v2860_v6 }
 0x683   : > { %v2875_v58 = vmul.f32 1.442695, %v2869_v7  ;;  %v2873_v57 = vmul.f32 1.442695, %v2868_v8 }
 0x684   : > { %v2866_v11 = vpop.xlane.xlu1 %2865 }
 0x685   : > { %9289 = vpow2.f32 %v2875_v58  ;;  %v2870_v12 = vsub.f32 %v2851_v53, %v2866_v11 }
 0x686   : > { %9291 = vpow2.f32 %v2873_v57 }
 0x687   : > { %v2877_v15 = vmul.f32 1.442695, %v2870_v12 }
 0x689   : > { %9293 = vpow2.f32 %v2877_v15 }
 0x68e   : > { %v9288_v24 = vpop.eup %9287 }
 0x68f   : > { %v2879_v30 = vsel %vm2854_vm8, %v9288_v24, 0.0 }
 0x690   : > { %2880 = vadd.xlane.f32.xlu0 %v2879_v30 }
 0x692   : > { %v9290_v31 = vpop.eup %9289 }
 0x693   : > { %v9292_v35 = vpop.eup %9291  ;;  %v2885_v41 = vsel %vm2854_vm8, %v9290_v31, 0.0 }
 0x694   : > { %2886 = vadd.xlane.f32.xlu0 %v2885_v41  ;;  %v2882_v18 = vsel %vm2854_vm8, %v9292_v35, 0.0 }
 0x695   : > { %2883 = vadd.xlane.f32.xlu1 %v2882_v18 }
 0x696   : > { %v9294_v42 = vpop.eup %9293 }
 0x697   : > { %v2888_v23 = vsel %vm2854_vm8, %v9294_v42, 0.0 }
 0x699   : > { %2889 = vadd.xlane.f32.xlu1 %v2888_v23 }
 0x6aa   : > { %3008 = vrot.lane.b32.xlu1 %v11130_v45, %s10255_s8  ;;  %3010 = vrot.lane.b32.xlu0 %v11126_v43, %s10255_s8 }
 0x6ae   : > { %3006 = vrot.lane.b32.xlu1 %v11138_v47, %s10255_s8  ;;  %2996 = vrot.lane.b32.xlu0 %v11119_v39, %s10255_s8 }
 0x6b2   : > { %3004 = vrot.lane.b32.xlu1 %v11146_v49, %s10255_s8  ;;  %3000 = vrot.lane.b32.xlu0 %v11152_v54, %s10255_s8 }
 0x6b6   : > { %2998 = vrot.lane.b32.xlu1 %v11156_v55, %s10255_s8 }
 0x6ba   : > { %3002 = vrot.lane.b32.xlu1 %v11158_v56, %s10255_s8 }
 0x719   : > { %v2881_v45 = vpop.xlane.xlu0 %2880 }
 0x71a   : > { %9295 = vrcp.f32 %v2881_v45 }
 0x71d   : > { %v2887_v43 = vpop.xlane.xlu0 %2886 }
 0x71e   : > { %v2884_v46 = vpop.xlane.xlu1 %2883  ;;  %9297 = vrcp.f32 %v2887_v43 }
 0x71f   : > { %9299 = vrcp.f32 %v2884_v46 }
 0x721   : > { %v3011_v47 = vpop.permute.xlu0 %3010 }
 0x722   : > { %v2890_v39 = vpop.xlane.xlu1 %2889  ;;  %8489 = vmatprep.subr.msk.mxu1 %vm2744_vm7, %v3011_v47 }
 0x723   : > { %9301 = vrcp.f32 %v2890_v39 }
 0x725   : > { %v2997_v0 = vpop.permute.xlu0 %2996 }
 0x726   : > { %v3009_v54 = vpop.permute.xlu1 %3008 }
 0x727   : > { %v9296_v49 = vpop.eup %9295 }
 0x728   : > { %v2895_v51 = vmul.f32 %v9296_v49, %v9288_v24 }
 0x729   : > { %v3001_v3 = vpop.permute.xlu0 %3000 }
 0x72a   : > { %8483 = vmatprep.mubr.msk.f32.mxu1 %vm2854_vm8, %v2895_v51  ;;  %v3007_v61 = vpop.permute.xlu1 %3006 }
 0x72b   : > { %v9298_v55 = vpop.eup %9297 }
 0x72c   : > { %v9300_v52 = vpop.eup %9299  ;;  %v2897_v53 = vmul.f32 %v9298_v55, %v9290_v31 }
 0x72d   : > { %v2896_v56 = vmul.f32 %v9300_v52, %v9292_v35 }
 0x72e   : > { %v3005_v1 = vpop.permute.xlu1 %3004 }
 0x72f   : > { %8484 = vmatmul.mubr.msk.f32.vlgmr.msra.gmra.mxu1 %vm2854_vm8, %v2896_v56 }
 0x730   : > { %v9302_v59 = vpop.eup %9301  ;;  %8490 = vmatpush3.xpose.msk.msra.mxu1 %vm2744_vm7, %v3011_v47  ;;  %8486 = vmatprep.mubr.msk.f32.mxu1 %vm2854_vm8, %v2897_v53 }
 0x731   : > { %8491 = vmatprep.subr.msk.mxu1 %vm2744_vm7, %v3009_v54  ;;  %v2898_v62 = vmul.f32 %v9302_v59, %v9294_v42 }
 0x732   : > { %v2999_v2 = vpop.permute.xlu1 %2998 }
 0x733   : > { %8487 = vmatmul.mubr.msk.f32.gmra.mxu1 %vm2854_vm8, %v2898_v62 }
 0x734   : > { %8492 = vmatpush3.xpose.msk.msra.mxu1 %vm2744_vm7, %v3009_v54  ;;  %8497 = vmatprep.mubr.msk.f32.mxu1 %vm2744_vm7, %v2997_v0 }
 0x735   : > { %8493 = vmatprep.subr.msk.mxu1 %vm2744_vm7, %v3007_v61 }
 0x736   : > { %v3003_v5 = vpop.permute.xlu1 %3002 }
 0x738   : > { %8494 = vmatpush3.xpose.msk.msra.mxu1 %vm2744_vm7, %v3007_v61 }
 0x739   : > { %8495 = vmatprep.subr.msk.mxu1 %vm2744_vm7, %v3005_v1 }
 0x73c   : > { %8496 = vmatpush3.xpose.msk.msra.mxu1 %vm2744_vm7, %v3005_v1 }
 0x73f   : > { %8498 = vmatmul.mubr.msk.f32.vlgmr.msra.gmra.mxu1 %vm2744_vm7, %v2999_v2 }
 0x740   : > { %8500 = vmatprep.mubr.msk.f32.mxu1 %vm2744_vm7, %v3001_v3 }
 0x743   : > { %8501 = vmatmul.mubr.msk.f32.gmra.mxu1 %vm2744_vm7, %v3003_v5 }
 0x7ef   : > { %v11295_v6 = vpop.f32.mrf.mxu1 }
 0x7f1   : > { %v11297_v7 = vpop.f32.mrf.mxu1 }
 0x7f3   : > { %v11299_v8 = vpop.f32.mrf.mxu1 }
 0x7f5   : > { %v11301_v9 = vpop.f32.mrf.mxu1 }
 0x7ff   : > { %v8499_v58 = vpop.f32.mrf.mxu1 }
 0x800   : > { %v3100_v57 = vadd.f32 %v8499_v58, %v11211_v40 }
 0x801   : > { %v3094_v11 = vpop.f32.mrf.mxu1 }
 0x802   : > { %v3095_v12 = vadd.f32 %v3094_v11, %v11206_v36  ;;  %v3116_v13 = vsel %vm2854_vm8, %v3100_v57, -inf }
 0x803   : > { %3117 = vmax.xlane.f32.xlu1 %v3116_v13  ;;  %v8502_v14 = vpop.f32.mrf.mxu1 }
 0x804   : > { %v3113_v15 = vsel %vm2854_vm8, %v3095_v12, -inf  ;;  %v3110_v30 = vadd.f32 %v8502_v14, %v11224_v50 }
 0x805   : > { %3114 = vmax.xlane.f32.xlu0 %v3113_v15  ;;  %v3104_v17 = vpop.f32.mrf.mxu1 }
 0x806   : > { %v3105_v24 = vadd.f32 %v3104_v17, %v11217_v19  ;;  %v3122_v35 = vsel %vm2854_vm8, %v3110_v30, -inf }
 0x808   : > { %v3119_v31 = vsel %vm2854_vm8, %v3105_v24, -inf }
 0x809   : > { %3120 = vmax.xlane.f32.xlu0 %v3119_v31 }
 0x80d   : > { %3123 = vmax.xlane.f32.xlu0 %v3122_v35 }
 0x88c   : > { %v3118_v41 = vpop.xlane.xlu1 %3117 }
 0x88d   : > { %v3126_v18 = vsub.f32 %v3100_v57, %v3118_v41  ;;  %v11324_v57 = vsub.s32 1, %v11100_v25 }
 0x88e   : > { %v3115_v42 = vpop.xlane.xlu0 %3114 }
 0x88f   : > { %v3131_v23 = vmul.f32 1.442695, %v3126_v18  ;;  %v3125_v45 = vsub.f32 %v3095_v12, %v3115_v42  ;;  %13102 = vst [vmem:[#allocation58_spill] sm:$0xff] %v11324_v57  ;;  %v2070_v13 = vrot.slane %v11108_v29, %v11324_v57 }
 0x891   : > { %9303 = vpow2.f32 %v3131_v23  ;;  %v3129_v43 = vmul.f32 1.442695, %v3125_v45  ;;  %v2610_v35 = vadd.f32 %v11115_v37, %v2070_v13  ;;  %v2729_v45 = vpop.f32.mrf.mxu0 }
 0x892   : > { %v3121_v46 = vpop.xlane.xlu0 %3120 }
 0x893   : > { %9305 = vpow2.f32 %v3129_v43  ;;  %v3127_v47 = vsub.f32 %v3105_v24, %v3121_v46  ;;  %v11348_v37 = vmul.f32 0.125, %v2610_v35  ;;  %v2620_v46 = vadd.f32 %v11142_v48, %v2070_v13 }
 0x895   : > { %v3133_v39 = vmul.f32 1.442695, %v3127_v47 }
 0x896   : > { %v3124_v49 = vpop.xlane.xlu0 %3123 }
 0x897   : > { %9307 = vpow2.f32 %v3133_v39  ;;  %v3128_v51 = vsub.f32 %v3110_v30, %v3124_v49  ;;  %v2624_v39 = vadd.f32 %v11231_v63, %v2070_v13 }
 0x899   : > { %v3135_v54 = vmul.f32 1.442695, %v3128_v51  ;;  %v11391_v48 = vmul.f32 0.125, %v2624_v39 }
 0x89b   : > { %9309 = vpow2.f32 %v3135_v54 }
 0x89e   : > { %v9304_v55 = vpop.eup %9303 }
 0x89f   : > { %v3140_v52 = vsel %vm2854_vm8, %v9304_v55, 0.0 }
 0x8a0   : > { %v9306_v53 = vpop.eup %9305  ;;  %3141 = vadd.xlane.f32.xlu1 %v3140_v52 }
 0x8a1   : > { %v3137_v56 = vsel %vm2854_vm8, %v9306_v53, 0.0 }
 0x8a2   : > { %3138 = vadd.xlane.f32.xlu0 %v3137_v56 }
 0x8a4   : > { %v9308_v59 = vpop.eup %9307 }
 0x8a5   : > { %v3143_v61 = vsel %vm2854_vm8, %v9308_v59, 0.0 }
 0x8a6   : > { %3144 = vadd.xlane.f32.xlu0 %v3143_v61 }
 0x8a8   : > { %v9310_v62 = vpop.eup %9309 }
 0x8a9   : > { %v3146_v0 = vsel %vm2854_vm8, %v9310_v62, 0.0 }
 0x8aa   : > { %3147 = vadd.xlane.f32.xlu1 %v3146_v0 }
 0x8bb   : > { %3165 = vrot.lane.b32.xlu1 %v11243_v20, %s10255_s8 }
 0x8bc   : > { %3167 = vrot.lane.b32.xlu0 %v11245_v21, %s10255_s8 }
 0x8bf   : > { %3163 = vrot.lane.b32.xlu1 %v11247_v22, %s10255_s8  ;;  %v2077_v22 = vsub.s32 3, %v11100_v25 }
 0x8c1   : > { %v2078_v15 = vrot.slane %v11108_v29, %v2077_v22 }
 0x8c3   : > { %3161 = vrot.lane.b32.xlu1 %v11251_v26, %s10255_s8  ;;  %v11334_v24 = vadd.f32 %v11201_v34, %v2078_v15  ;;  %v11338_v18 = vadd.f32 %v11117_v38, %v2078_v15  ;;  %v11351_v42 = vadd.f32 %v11112_v32, %v2078_v15  ;;  %v12976_v38 = vsub.s32 5, %v11100_v25 }
 0x8c4   : > { %v11362_v23 = vadd.f32 %v11105_v28, %v2078_v15  ;;  %v2614_v32 = vadd.f32 %v11128_v44, %v2070_v13  ;;  %v11381_v44 = vmul.f32 0.125, %v2620_v46 }
 0x8c5   : > { %v2086_v43 = vrot.slane %v11108_v29, %v12976_v38 }
 0x8c6   : > { %v11377_v28 = vmul.f32 0.125, %v2614_v32 }
 0x8c7   : > { %v11373_v47 = vadd.f32 %v2729_v45, %v2086_v43  ;;  %v11384_v29 = vadd.f32 %v11241_v16, %v2086_v43  ;;  %v11394_v49 = vadd.f32 %v11236_v60, %v2086_v43  ;;  %v11399_v63 = vadd.f32 %v11233_v4, %v2086_v43 }
 0x929   : > { %v3142_v2 = vpop.xlane.xlu1 %3141 }
 0x92b   : > { %v3139_v1 = vpop.xlane.xlu0 %3138 }
 0x92c   : > { %9311 = vrcp.f32 %v3139_v1 }
 0x92d   : > { %9313 = vrcp.f32 %v3142_v2 }
 0x92f   : > { %v3145_v3 = vpop.xlane.xlu0 %3144 }
 0x930   : > { %9315 = vrcp.f32 %v3145_v3 }
 0x933   : > { %v3148_v5 = vpop.xlane.xlu1 %3147  ;;  %v3168_v58 = vpop.permute.xlu0 %3167 }
 0x934   : > { %9317 = vrcp.f32 %v3148_v5  ;;  %8503 = vmatprep.subr.mxu1 %v3168_v58 }
 0x935   : > { %8504 = vmatpush3.msra.mxu1 %v3168_v58 }
 0x937   : > { %v3166_v20 = vpop.permute.xlu1 %3165 }
 0x938   : > { %8505 = vmatprep.subr.mxu1 %v3166_v20 }
 0x939   : > { %v9312_v21 = vpop.eup %9311  ;;  %8506 = vmatpush3.msra.mxu1 %v3166_v20 }
 0x93a   : > { %v3153_v26 = vmul.f32 %v9312_v21, %v9306_v53  ;;  %v9314_v12 = vpop.eup %9313 }
 0x93b   : > { %v3164_v11 = vpop.permute.xlu1 %3163  ;;  %v3154_v30 = vmul.f32 %v9314_v12, %v9304_v55 }
 0x93c   : > { %8507 = vmatprep.subr.mxu1 %v3164_v11  ;;  %8511 = vmatprep.mubr.msk.f32.mxu1 %vm2854_vm8, %v3153_v26 }
 0x93d   : > { %8508 = vmatpush3.msra.mxu1 %v3164_v11  ;;  %v9316_v14 = vpop.eup %9315 }
 0x93e   : > { %v3155_v41 = vmul.f32 %v9316_v14, %v9308_v59 }
 0x93f   : > { %v3162_v17 = vpop.permute.xlu1 %3161 }
 0x940   : > { %8509 = vmatprep.subr.mxu1 %v3162_v17 }
 0x941   : > { %v9318_v31 = vpop.eup %9317  ;;  %8510 = vmatpush3.msra.mxu1 %v3162_v17 }
 0x942   : > { %8512 = vmatmul.mubr.msk.f32.vlgmr.msra.gmra.mxu1 %vm2854_vm8, %v3154_v30  ;;  %8517 = vmatprep.subr.msk.mxu1 %vm2744_vm7, %v11334_v24  ;;  %v3156_v34 = vmul.f32 %v9318_v31, %v9310_v62 }
 0x943   : > { %8514 = vmatprep.mubr.msk.f32.mxu1 %vm2854_vm8, %v3155_v41  ;;  %8518 = vmatpush3.xpose.msk.msra.mxu1 %vm2744_vm7, %v11334_v24 }
 0x944   : > { %8519 = vmatprep.subr.msk.mxu1 %vm2744_vm7, %v11338_v18 }
 0x946   : > { %8515 = vmatmul.mubr.msk.f32.gmra.mxu1 %vm2854_vm8, %v3156_v34 }
 0x947   : > { %8520 = vmatpush3.xpose.msk.msra.mxu1 %vm2744_vm7, %v11338_v18  ;;  %8525 = vmatprep.mubr.msk.f32.mxu1 %vm2744_vm7, %v11348_v37 }
 0x948   : > { %8521 = vmatprep.subr.msk.mxu1 %vm2744_vm7, %v11351_v42 }
 0x94b   : > { %8522 = vmatpush3.xpose.msk.msra.mxu1 %vm2744_vm7, %v11351_v42 }
 0x94c   : > { %8523 = vmatprep.subr.msk.mxu1 %vm2744_vm7, %v11362_v23 }
 0x94f   : > { %8524 = vmatpush3.xpose.msk.msra.mxu1 %vm2744_vm7, %v11362_v23 }
 0x950   : > { %8531 = vmatprep.subr.mxu1 %v11373_v47 }
 0x952   : > { %8526 = vmatmul.mubr.msk.f32.vlgmr.msra.gmra.mxu1 %vm2744_vm7, %v11377_v28 }
 0x953   : > { %8528 = vmatprep.mubr.msk.f32.mxu1 %vm2744_vm7, %v11381_v44  ;;  %8532 = vmatpush3.msra.mxu1 %v11373_v47 }
 0x954   : > { %8533 = vmatprep.subr.mxu1 %v11384_v29 }
 0x955   : > { %8534 = vmatpush3.msra.mxu1 %v11384_v29 }
 0x956   : > { %8529 = vmatmul.mubr.msk.f32.gmra.mxu1 %vm2744_vm7, %v11391_v48  ;;  %8535 = vmatprep.subr.mxu1 %v11394_v49 }
 0x957   : > { %8536 = vmatpush3.msra.mxu1 %v11394_v49 }
 0x958   : > { %8537 = vmatprep.subr.mxu1 %v11399_v63 }
 0x959   : > { %8538 = vmatpush3.msra.mxu1 %v11399_v63 }
 0xa02   : > { %v11407_v60 = vpop.f32.mrf.mxu1 }
 0xa04   : > { %v11409_v16 = vpop.f32.mrf.mxu1 }
 0xa05   : > { %v8888_v51 = vpack.i.bf16 %v11407_v60, %v11409_v16 }
 0xa06   : > { %v11413_v4 = vpop.f32.mrf.mxu1 }
 0xa08   : > { %v11415_v54 = vpop.f32.mrf.mxu1 }
 0xa09   : > { %v8898_v55 = vpack.i.bf16 %v11413_v4, %v11415_v54 }
 0xa12   : > { %v8527_v52 = vpop.f32.mrf.mxu1 }
 0xa13   : > { %v3366_v53 = vadd.f32 %v8527_v52, %v11211_v40 }
 0xa14   : > { %v3360_v56 = vpop.f32.mrf.mxu1 }
 0xa15   : > { %v3361_v59 = vadd.f32 %v3360_v56, %v11206_v36  ;;  %v3382_v61 = vsel %vm2854_vm8, %v3366_v53, -inf }
 0xa16   : > { %3383 = vmax.xlane.f32.xlu1 %v3382_v61  ;;  %v8530_v62 = vpop.f32.mrf.mxu1 }
 0xa17   : > { %v3379_v0 = vsel %vm2854_vm8, %v3361_v59, -inf  ;;  %v3376_v3 = vadd.f32 %v8530_v62, %v11224_v50 }
 0xa18   : > { %v3370_v1 = vpop.f32.mrf.mxu1  ;;  %3380 = vmax.xlane.f32.xlu0 %v3379_v0 }
 0xa19   : > { %v3371_v2 = vadd.f32 %v3370_v1, %v11217_v19  ;;  %v3388_v58 = vsel %vm2854_vm8, %v3376_v3, -inf }
 0xa1b   : > { %v3385_v5 = vsel %vm2854_vm8, %v3371_v2, -inf }
 0xa1c   : > { %3386 = vmax.xlane.f32.xlu0 %v3385_v5 }
 0xa20   : > { %3389 = vmax.xlane.f32.xlu0 %v3388_v58 }
 0xa9f   : > { %v3384_v20 = vpop.xlane.xlu1 %3383 }
 0xaa0   : > { %v3392_v21 = vsub.f32 %v3366_v53, %v3384_v20 }
 0xaa1   : > { %v3381_v26 = vpop.xlane.xlu0 %3380 }
 0xaa2   : > { %v3397_v11 = vmul.f32 1.442695, %v3392_v21  ;;  %v3391_v12 = vsub.f32 %v3361_v59, %v3381_v26 }
 0xaa4   : > { %9319 = vpow2.f32 %v3397_v11  ;;  %v3395_v13 = vmul.f32 1.442695, %v3391_v12 }
 0xaa5   : > { %v3387_v14 = vpop.xlane.xlu0 %3386 }
 0xaa6   : > { %9321 = vpow2.f32 %v3395_v13  ;;  %v3393_v15 = vsub.f32 %v3371_v2, %v3387_v14 }
 0xaa8   : > { %v3399_v17 = vmul.f32 1.442695, %v3393_v15 }
 0xaa9   : > { %v3390_v30 = vpop.xlane.xlu0 %3389 }
 0xaaa   : > { %9323 = vpow2.f32 %v3399_v17  ;;  %v3394_v31 = vsub.f32 %v3376_v3, %v3390_v30 }
 0xaac   : > { %v3401_v35 = vmul.f32 1.442695, %v3394_v31 }
 0xaae   : > { %9325 = vpow2.f32 %v3401_v35 }
 0xab1   : > { %v9320_v41 = vpop.eup %9319 }
 0xab2   : > { %v3406_v34 = vsel %vm2854_vm8, %v9320_v41, 0.0 }
 0xab3   : > { %v9322_v45 = vpop.eup %9321  ;;  %3407 = vadd.xlane.f32.xlu1 %v3406_v34 }
 0xab4   : > { %v3403_v32 = vsel %vm2854_vm8, %v9322_v45, 0.0 }
 0xab5   : > { %3404 = vadd.xlane.f32.xlu0 %v3403_v32 }
 0xab7   : > { %v9324_v43 = vpop.eup %9323 }
 0xab8   : > { %v3409_v46 = vsel %vm2854_vm8, %v9324_v43, 0.0 }
 0xab9   : > { %3410 = vadd.xlane.f32.xlu0 %v3409_v46 }
 0xabb   : > { %v9326_v39 = vpop.eup %9325 }
 0xabc   : > { %v3412_v52 = vsel %vm2854_vm8, %v9326_v39, 0.0 }
 0xabd   : > { %3413 = vadd.xlane.f32.xlu1 %v3412_v52 }
 0xace   : > { %3532 = vrot.lane.b32.xlu1 %v11338_v18, %s10255_s8 }
 0xacf   : > { %3534 = vrot.lane.b32.xlu0 %v11334_v24, %s10255_s8 }
 0xad2   : > { %3530 = vrot.lane.b32.xlu1 %v11351_v42, %s10255_s8 }
 0xad3   : > { %3520 = vrot.lane.b32.xlu0 %v11348_v37, %s10255_s8 }
 0xad6   : > { %3528 = vrot.lane.b32.xlu1 %v11362_v23, %s10255_s8 }
 0xad7   : > { %3524 = vrot.lane.b32.xlu0 %v11381_v44, %s10255_s8 }
 0xada   : > { %3522 = vrot.lane.b32.xlu1 %v11377_v28, %s10255_s8 }
 0xade   : > { %3526 = vrot.lane.b32.xlu1 %v11391_v48, %s10255_s8 }
 0xb3c   : > { %v3408_v18 = vpop.xlane.xlu1 %3407 }
 0xb3d   : > { %9327 = vrcp.f32 %v3408_v18 }
 0xb3e   : > { %v3405_v24 = vpop.xlane.xlu0 %3404 }
 0xb3f   : > { %9329 = vrcp.f32 %v3405_v24 }
 0xb42   : > { %v3411_v42 = vpop.xlane.xlu0 %3410 }
 0xb43   : > { %9331 = vrcp.f32 %v3411_v42 }
 0xb46   : > { %v3414_v53 = vpop.xlane.xlu1 %3413  ;;  %v3535_v37 = vpop.permute.xlu0 %3534 }
 0xb47   : > { %9333 = vrcp.f32 %v3414_v53  ;;  %8545 = vmatprep.subr.msk.mxu1 %vm2744_vm7, %v3535_v37 }
 0xb4a   : > { %v9328_v23 = vpop.eup %9327  ;;  %v3533_v56 = vpop.permute.xlu1 %3532 }
 0xb4b   : > { %v3420_v61 = vmul.f32 %v9328_v23, %v9320_v41  ;;  %v3521_v2 = vpop.permute.xlu0 %3520 }
 0xb4c   : > { %v9330_v44 = vpop.eup %9329 }
 0xb4d   : > { %v3419_v59 = vmul.f32 %v9330_v44, %v9322_v45 }
 0xb4e   : > { %v3531_v48 = vpop.permute.xlu1 %3530 }
 0xb4f   : > { %8539 = vmatprep.mubr.msk.f32.mxu1 %vm2854_vm8, %v3419_v59  ;;  %v3525_v58 = vpop.permute.xlu0 %3524 }
 0xb50   : > { %v9332_v28 = vpop.eup %9331  ;;  %8540 = vmatmul.mubr.msk.f32.vlgmr.msra.gmra.mxu1 %vm2854_vm8, %v3420_v61 }
 0xb51   : > { %8546 = vmatpush3.xpose.msk.msra.mxu1 %vm2744_vm7, %v3535_v37  ;;  %v3421_v62 = vmul.f32 %v9332_v28, %v9324_v43 }
 0xb52   : > { %8547 = vmatprep.subr.msk.mxu1 %vm2744_vm7, %v3533_v56  ;;  %v3529_v3 = vpop.permute.xlu1 %3528 }
 0xb53   : > { %8542 = vmatprep.mubr.msk.f32.mxu1 %vm2854_vm8, %v3421_v62 }
 0xb54   : > { %v9334_v0 = vpop.eup %9333 }
 0xb55   : > { %8548 = vmatpush3.xpose.msk.msra.mxu1 %vm2744_vm7, %v3533_v56  ;;  %v3422_v1 = vmul.f32 %v9334_v0, %v9326_v39 }
 0xb56   : > { %8549 = vmatprep.subr.msk.mxu1 %vm2744_vm7, %v3531_v48  ;;  %v3523_v5 = vpop.permute.xlu1 %3522 }
 0xb57   : > { %8543 = vmatmul.mubr.msk.f32.gmra.mxu1 %vm2854_vm8, %v3422_v1 }
 0xb58   : > { %8553 = vmatprep.mubr.msk.f32.mxu1 %vm2744_vm7, %v3521_v2 }
 0xb59   : > { %8550 = vmatpush3.xpose.msk.msra.mxu1 %vm2744_vm7, %v3531_v48 }
 0xb5a   : > { %8551 = vmatprep.subr.msk.mxu1 %vm2744_vm7, %v3529_v3  ;;  %v3527_v20 = vpop.permute.xlu1 %3526 }
 0xb5d   : > { %8552 = vmatpush3.xpose.msk.msra.mxu1 %vm2744_vm7, %v3529_v3 }
 0xb60   : > { %8554 = vmatmul.mubr.msk.f32.vlgmr.msra.gmra.mxu1 %vm2744_vm7, %v3523_v5 }
 0xb61   : > { %8556 = vmatprep.mubr.msk.f32.mxu1 %vm2744_vm7, %v3525_v58 }
 0xb64   : > { %8557 = vmatmul.mubr.msk.f32.gmra.mxu1 %vm2744_vm7, %v3527_v20  ;;  %v9049_v20 = vld [vmem:[%s10931_s11 + $0x74] ss:$8 sps:$4 sm:$0xff]  }
 0xb65   : > { %4042 = vmatprep.subr.bf16.mxu0 %v9049_v20 }
 0xc10   : > { %v11463_v21 = vpop.f32.mrf.mxu1 }
 0xc12   : > { %v11465_v26 = vpop.f32.mrf.mxu1 }
 0xc17   : > { %v11467_v11 = vpop.f32.mrf.mxu1 }
 0xc19   : > { %v11469_v12 = vpop.f32.mrf.mxu1 }
 0xc20   : > { %v8555_v13 = vpop.f32.mrf.mxu1 }
 0xc21   : > { %v3624_v14 = vadd.f32 %v8555_v13, %v11211_v40  ;;  %v9047_v13 = vld [vmem:[%s10931_s11 + $0x70] ss:$8 sps:$4 sm:$0xff]  }
 0xc22   : > { %v3618_v15 = vpop.f32.mrf.mxu1  ;;  %4043 = vmatpush1.bf16.msra.mxu0 %v9047_v13 }
 0xc23   : > { %v3619_v17 = vadd.f32 %v3618_v15, %v11206_v36  ;;  %v3640_v30 = vsel %vm2854_vm8, %v3624_v14, -inf  ;;  %v9052_v15 = vld [vmem:[%s10931_s11 + $0x64] ss:$8 sps:$4 sm:$0xff]  }
 0xc24   : > { %3641 = vmax.xlane.f32.xlu1 %v3640_v30  ;;  %v8558_v31 = vpop.f32.mrf.mxu1  ;;  %4044 = vmatprep.subr.bf16.mxu0 %v9052_v15  ;;  %v9053_v30 = vld [vmem:[%s10931_s11 + $0x50] ss:$8 sps:$4 sm:$0xff]  }
 0xc25   : > { %v3637_v35 = vsel %vm2854_vm8, %v3619_v17, -inf  ;;  %v3634_v45 = vadd.f32 %v8558_v31, %v11224_v50  ;;  %v9058_v31 = vld [vmem:[%s10931_s11 + $0x44] ss:$8 sps:$4 sm:$0xff]  }
 0xc26   : > { %3638 = vmax.xlane.f32.xlu0 %v3637_v35  ;;  %v3628_v41 = vpop.f32.mrf.mxu1  ;;  %v9056_v35 = vld [vmem:[%s10931_s11 + $0x40] ss:$8 sps:$4 sm:$0xff]  }
 0xc27   : > { %v3629_v34 = vadd.f32 %v3628_v41, %v11217_v19  ;;  %v3646_v40 = vsel %vm2854_vm8, %v3634_v45, -inf  ;;  %v9061_v41 = vld [vmem:[%s10931_s11 + $0x34] ss:$8 sps:$4 sm:$0xff]  }
 0xc29   : > { %v3643_v32 = vsel %vm2854_vm8, %v3629_v34, -inf }
 0xc2a   : > { %3644 = vmax.xlane.f32.xlu0 %v3643_v32  ;;  %v9062_v32 = vld [vmem:[%s10931_s11 + $0x20] ss:$8 sps:$4 sm:$0xff]  }
 0xc2e   : > { %3647 = vmax.xlane.f32.xlu0 %v3646_v40  ;;  %v9067_v40 = vld [vmem:[%s10931_s11 + $0x14] ss:$8 sps:$4 sm:$0xff]  }
 0xcad   : > { %v3642_v43 = vpop.xlane.xlu1 %3641 }
 0xcae   : > { %v3650_v36 = vsub.f32 %v3624_v14, %v3642_v43  ;;  %v9050_v14 = vld [vmem:[%s10931_s11 + $0x60] ss:$8 sps:$4 sm:$0xff]   ;;  %v9065_v43 = vld [vmem:[%s10931_s11 + $0x10] ss:$8 sps:$4 sm:$0xff]  }
 0xcaf   : > { %v3639_v46 = vpop.xlane.xlu0 %3638  ;;  %4045 = vmatpush1.bf16.msra.mxu0 %v9050_v14 }
 0xcb0   : > { %v3655_v39 = vmul.f32 1.442695, %v3650_v36  ;;  %v3649_v52 = vsub.f32 %v3619_v17, %v3639_v46  ;;  %v9055_v17 = vld [vmem:[%s10931_s11 + $0x54] ss:$8 sps:$4 sm:$0xff]   ;;  %v9070_v36 = vld [vmem:[%s10931_s11 + $0x4] ss:$8 sps:$4 sm:$0xff]  }
 0xcb1   : > { %4046 = vmatprep.subr.bf16.mxu0 %v9055_v17  ;;  %v9068_v46 = vld [vmem:[%s10931_s11] ss:$8 sps:$4 sm:$0xff]  }
 0xcb2   : > { %9335 = vpow2.f32 %v3655_v39  ;;  %v3653_v18 = vmul.f32 1.442695, %v3649_v52  ;;  %v9073_v39 = vld [vmem:[%s10931_s11 + $0xf4] ss:$8 sps:$4 sm:$0xff]   ;;  %v9071_v52 = vld [vmem:[%s10931_s11 + $0xf0] ss:$8 sps:$4 sm:$0xff]  }
 0xcb3   : > { %v3645_v53 = vpop.xlane.xlu0 %3644  ;;  %4047 = vmatpush1.bf16.msra.mxu0 %v9053_v30 }
 0xcb4   : > { %9337 = vpow2.f32 %v3653_v18  ;;  %v3651_v37 = vsub.f32 %v3629_v34, %v3645_v53  ;;  %4048 = vmatprep.subr.bf16.mxu0 %v9058_v31  ;;  %v9059_v34 = vld [vmem:[%s10931_s11 + $0x30] ss:$8 sps:$4 sm:$0xff]   ;;  %v9076_v18 = vld [vmem:[%s10931_s11 + $0xe4] ss:$8 sps:$4 sm:$0xff]   ;;  %v9080_v53 = vld [vmem:[%s10931_s11 + $0xc0] ss:$8 sps:$4 sm:$0xff]  }
 0xcb6   : > { %v3657_v56 = vmul.f32 1.442695, %v3651_v37  ;;  %v9085_v37 = vld [vmem:[%s10931_s11 + $0xb4] ss:$8 sps:$4 sm:$0xff]  }
 0xcb7   : > { %v3648_v23 = vpop.xlane.xlu0 %3647  ;;  %4049 = vmatpush1.bf16.msra.mxu0 %v9056_v35 }
 0xcb8   : > { %v3652_v44 = vsub.f32 %v3634_v45, %v3648_v23  ;;  %9339 = vpow2.f32 %v3657_v56  ;;  %4050 = vmatprep.subr.bf16.mxu0 %v9061_v41  ;;  %v9064_v45 = vld [vmem:[%s10931_s11 + $0x24] ss:$8 sps:$4 sm:$0xff]   ;;  %v9083_v23 = vld [vmem:[%s10931_s11 + $0xb0] ss:$8 sps:$4 sm:$0xff]  }
 0xcb9   : > { %v9088_v56 = vld [vmem:[%s10931_s11 + $0xa4] ss:$8 sps:$4 sm:$0xff]  }
 0xcba   : > { %v3659_v59 = vmul.f32 1.442695, %v3652_v44  ;;  %v9086_v44 = vld [vmem:[%s10931_s11 + $0xa0] ss:$8 sps:$4 sm:$0xff]  }
 0xcbb   : > { %4051 = vmatpush1.bf16.msra.mxu0 %v9059_v34  ;;  %v3866_v34 = vld [vmem:[%s1187_s20] sm:$0x3]  ;;  %s13168_s20 = scalar_lea.vmem [#allocation35], %s10937_s19 }
 0xcbc   : > { %9341 = vpow2.f32 %v3659_v59  ;;  %4052 = vmatprep.subr.bf16.mxu0 %v9064_v45  ;;  %v9091_v59 = vld [vmem:[%s10931_s11 + $0x94] ss:$8 sps:$4 sm:$0xff]   ;;  %v3875_v45 = vrot.slane %v3866_v34, %v11103_v27 }
 0xcbf   : > { %v9336_v24 = vpop.eup %9335  ;;  %4053 = vmatpush1.bf16.msra.mxu0 %v9062_v32  ;;  %v3879_v32 = vrot.slane %v3866_v34, %v11324_v57 }
 0xcc0   : > { %v3664_v42 = vsel %vm2854_vm8, %v9336_v24, 0.0  ;;  %4054 = vmatprep.subr.bf16.mxu0 %v9067_v40 }
 0xcc1   : > { %v9338_v19 = vpop.eup %9337  ;;  %3665 = vadd.xlane.f32.xlu1 %v3664_v42  ;;  %v9079_v42 = vld [vmem:[%s10931_s11 + $0xd4] ss:$8 sps:$4 sm:$0xff]  }
 0xcc2   : > { %v3661_v50 = vsel %vm2854_vm8, %v9338_v19, 0.0 }
 0xcc3   : > { %3662 = vadd.xlane.f32.xlu0 %v3661_v50  ;;  %4055 = vmatpush1.bf16.msra.mxu0 %v9065_v43  ;;  %v9082_v50 = vld [vmem:[%s10931_s11 + $0xc4] ss:$8 sps:$4 sm:$0xff]  }
 0xcc4   : > { %4056 = vmatprep.subr.bf16.mxu0 %v9070_v36 }
 0xcc5   : > { %v9340_v61 = vpop.eup %9339 }
 0xcc7   : > { %4057 = vmatpush1.bf16.msra.mxu0 %v9068_v46  ;;  %v9495_v46 = vld [vmem:[#allocation2 + $0x30] sm:$0xff] }
 0xcc8   : > { %4058 = vmatprep.subr.bf16.mxu0 %v9073_v39  ;;  %v9496_v39 = vld [vmem:[#allocation2] sm:$0xff] }
 0xcc9   : > { %v9342_v28 = vpop.eup %9341 }
 0xccb   : > { %4059 = vmatpush2.bf16.msra.mxu0 %v9071_v52 }
 0xccc   : > { %4060 = vmatprep.subr.bf16.mxu0 %v9076_v18 }
 0xcd2   : > { %3689 = vrot.lane.b32.xlu1 %v11384_v29, %s10255_s8  ;;  %v3667_v29 = vsel %vm2854_vm8, %v9340_v61, 0.0 }
 0xcd6   : > { %3687 = vrot.lane.b32.xlu1 %v11394_v49, %s10255_s8  ;;  %v3670_v49 = vsel %vm2854_vm8, %v9342_v28, 0.0 }
 0xcd9   : > { %3691 = vrot.lane.b32.xlu0 %v11373_v47, %s10255_s8 }
 0xcda   : > { %3685 = vrot.lane.b32.xlu1 %v11399_v63, %s10255_s8 }
 0xcf8   : > { %3668 = vadd.xlane.f32.xlu0 %v3667_v29  ;;  %v9092_v29 = vld [vmem:[%s10931_s11 + $0x80] ss:$8 sps:$4 sm:$0xff]  }
 0xcfe   : > { %3671 = vadd.xlane.f32.xlu1 %v3670_v49 }
 0xd0f   : > { %8889 = vrot.lane.b32.xlu1 %v8888_v51, %s10255_s8 }
 0xd13   : > { %8899 = vrot.lane.b32.xlu1 %v8898_v55, %s10255_s8 }
 0xd4a   : > { %v3666_v47 = vpop.xlane.xlu1 %3665 }
 0xd4b   : > { %9343 = vrcp.f32 %v3666_v47 }
 0xd4c   : > { %v3663_v63 = vpop.xlane.xlu0 %3662 }
 0xd4d   : > { %9345 = vrcp.f32 %v3663_v63 }
 0xd4e   : > { %v3690_v48 = vpop.permute.xlu1 %3689 }
 0xd50   : > { %v3692_v62 = vpop.permute.xlu0 %3691 }
 0xd51   : > { %8559 = vmatprep.subr.mxu1 %v3692_v62 }
 0xd52   : > { %v3688_v0 = vpop.permute.xlu1 %3687  ;;  %8560 = vmatpush3.msra.mxu1 %v3692_v62 }
 0xd53   : > { %8561 = vmatprep.subr.mxu1 %v3690_v48 }
 0xd54   : > { %8562 = vmatpush3.msra.mxu1 %v3690_v48 }
 0xd55   : > { %8563 = vmatprep.subr.mxu1 %v3688_v0 }
 0xd56   : > { %v3686_v1 = vpop.permute.xlu1 %3685  ;;  %8564 = vmatpush3.msra.mxu1 %v3688_v0 }
 0xd57   : > { %8565 = vmatprep.subr.mxu1 %v3686_v1 }
 0xd58   : > { %8566 = vmatpush3.msra.mxu1 %v3686_v1  ;;  %v9344_v60 = vpop.eup %9343 }
 0xd59   : > { %v3678_v4 = vmul.f32 %v9344_v60, %v9336_v24  ;;  %v9074_v24 = vld [vmem:[%s10931_s11 + $0xe0] ss:$8 sps:$4 sm:$0xff]  }
 0xd5a   : > { %v9346_v16 = vpop.eup %9345  ;;  %4061 = vmatpush2.bf16.msra.mxu0 %v9074_v24 }
 0xd5b   : > { %v3677_v51 = vmul.f32 %v9346_v16, %v9338_v19  ;;  %v9077_v19 = vld [vmem:[%s10931_s11 + $0xd0] ss:$8 sps:$4 sm:$0xff]   ;;  %4062 = vmatprep.subr.bf16.mxu0 %v9079_v42 }
 0xd5d   : > { %8567 = vmatprep.mubr.msk.f32.mxu1 %vm2854_vm8, %v3677_v51 }
 0xd5e   : > { %8568 = vmatmul.mubr.msk.f32.vlgmr.msra.gmra.mxu1 %vm2854_vm8, %v3678_v4  ;;  %4063 = vmatpush2.bf16.msra.mxu0 %v9077_v19  ;;  %v9497_v19 = vld [vmem:[#allocation2 + $0x18] sm:$0xff] }
 0xd5f   : > { %4064 = vmatprep.subr.bf16.mxu0 %v9082_v50 }
 0xd62   : > { %4065 = vmatpush2.bf16.msra.mxu0 %v9080_v53  ;;  %v9498_v53 = vld [vmem:[#allocation2 + $0x10] sm:$0xff] }
 0xd63   : > { %4066 = vmatprep.subr.bf16.mxu0 %v9085_v37 }
 0xd66   : > { %4067 = vmatpush2.bf16.msra.mxu0 %v9083_v23 }
 0xd67   : > { %4068 = vmatprep.subr.bf16.mxu0 %v9088_v56 }
 0xd6a   : > { %4069 = vmatpush2.bf16.msra.mxu0 %v9086_v44 }
 0xd6b   : > { %4070 = vmatprep.subr.bf16.mxu0 %v9091_v59 }
 0xd81   : > { %v3669_v54 = vpop.xlane.xlu0 %3668 }
 0xd82   : > { %9347 = vrcp.f32 %v3669_v54 }
 0xd87   : > { %v3672_v55 = vpop.xlane.xlu1 %3671 }
 0xd88   : > { %9349 = vrcp.f32 %v3672_v55 }
 0xd8b   : > { %v8890_v1 = vpop.permute.xlu1 %8889 }
 0xd8c   : > { %v8892_v60 = vunpack.i.h.bf16 %v8890_v1  ;;  %v8891_v16 = vunpack.i.l.bf16 %v8890_v1 }
 0xd8e   : > { %v3827_v55 = vsel %vm2744_vm7, %v11295_v6, %v8892_v60  ;;  %v9501_v60 = vld [vmem:[#allocation2 + $0x28] sm:$0xff] }
 0xd8f   : > { %v9348_v2 = vpop.eup %9347  ;;  %v8900_v13 = vpop.permute.xlu1 %8899 }
 0xd90   : > { %v3679_v3 = vmul.f32 %v9348_v2, %v9340_v61  ;;  %v9089_v61 = vld [vmem:[%s10931_s11 + $0x90] ss:$8 sps:$4 sm:$0xff]   ;;  %v3826_v2 = vsel %vm2744_vm7, %v11297_v7, %v8891_v16  ;;  %v8902_v14 = vunpack.i.h.bf16 %v8900_v13  ;;  %v8901_v15 = vunpack.i.l.bf16 %v8900_v13  ;;  %v4256_v13 = vld [vmem:[%s10941_s24 + $0x180] sm:$0xff] }
 0xd91   : > { %4071 = vmatpush2.bf16.msra.mxu0 %v9089_v61  ;;  %v3867_v20 = vpack.c.bf16 %v3827_v55, %v3826_v2  ;;  %v4264_v55 = vld [vmem:[%s10941_s24 + $0x1c0] sm:$0xff] }
 0xd92   : > { %8570 = vmatprep.mubr.msk.f32.mxu1 %vm2854_vm8, %v3679_v3  ;;  %v3828_v7 = vsel %vm2744_vm7, %v11301_v9, %v8901_v15  ;;  %v4268_v2 = vld [vmem:[%s10941_s24 + $0x1e0] sm:$0xff] }
 0xd95   : > { %v9350_v5 = vpop.eup %9349 }
 0xd96   : > { %v3680_v58 = vmul.f32 %v9350_v5, %v9342_v28  ;;  %v9094_v28 = vld [vmem:[%s10931_s11 + $0x84] ss:$8 sps:$4 sm:$0xff]   ;;  %s13157_s11 = scalar_lea.vmem [#allocation31], %s10937_s19 }
 0xd97   : > { %4072 = vmatprep.subr.bf16.mxu0 %v9094_v28  ;;  %v9499_v28 = vld [vmem:[#allocation2 + $0x8] sm:$0xff] }
 0xd98   : > { %8571 = vmatmul.mubr.msk.f32.gmra.mxu1 %vm2854_vm8, %v3680_v58  ;;  %4073 = vmatpush2.bf16.msra.mxu0 %v9092_v29 }
 0xe1e   : > { %v8569_v49 = vpop.f32.mrf.mxu1 }
 0xe20   : > { %v3775_v47 = vpop.f32.mrf.mxu1 }
 0xe21   : > { %v8883_v63 = vpack.i.bf16 %v8569_v49, %v3775_v47  ;;  %v9500_v47 = vld [vmem:[#allocation2 + $0x20] sm:$0xff] }
 0xe23   : > { %8884 = vrot.lane.b32.xlu0 %v8883_v63, %s10255_s8 }
 0xe58   : > { %v8572_v48 = vpop.f32.mrf.mxu1 }
 0xe5a   : > { %v3785_v62 = vpop.f32.mrf.mxu1 }
 0xe5b   : > { %v8893_v0 = vpack.i.bf16 %v8572_v48, %v3785_v62 }
 0xe5d   : > { %8894 = vrot.lane.b32.xlu0 %v8893_v0, %s10255_s8 }
 0xe95   : > { %v8885_v51 = vpop.permute.xlu0 %8884 }
 0xe96   : > { %v8887_v4 = vunpack.i.h.bf16 %v8885_v51  ;;  %v8886_v54 = vunpack.i.l.bf16 %v8885_v51  ;;  %v9502_v51 = vld [vmem:[#allocation2 + $0x38] sm:$0xff] }
 0xe98   : > { %v3830_v3 = vsel %vm2744_vm7, %v11465_v26, %v8886_v54  ;;  %v3831_v5 = vsel %vm2744_vm7, %v11463_v21, %v8887_v4  ;;  %v3829_v26 = vsel %vm2744_vm7, %v11299_v8, %v8902_v14  ;;  %v4260_v14 = vld [vmem:[%s10941_s24 + $0x1a0] sm:$0xff] }
 0xe99   : > { %v3868_v58 = vpack.c.bf16 %v3831_v5, %v3830_v3  ;;  %v3869_v41 = vpack.c.bf16 %v3829_v26, %v3828_v7  ;;  %v4265_v3 = vld [vmem:[%s10941_s24 + $0x1c8] sm:$0xff]  ;;  %v8120_v5 = vcombine.low %v4264_v55, %v4268_v2  ;;  %v4248_v26 = vld [vmem:[%s10941_s24 + $0x140] sm:$0xff]  ;;  %v8112_v34 = vcombine.low %v4256_v13, %v4260_v14 }
 0xe9a   : > { %v4261_v7 = vld [vmem:[%s10941_s24 + $0x1a8] sm:$0xff] }
 0xe9b   : > { %4074 = vmatprep.mubr.bf16.mxu0 %v3868_v58  ;;  %v8121_v58 = vcombine.high %v4264_v55, %v4268_v2  ;;  %v4221_v55 = vld [vmem:[%s10941_s24 + $0x68] sm:$0xff] }
 0xe9c   : > { %4075 = vmatmul.mubr.bf16.vlgmr.msra.gmra.mxu0 %v3867_v20  ;;  %v4269_v20 = vld [vmem:[%s10941_s24 + $0x1e8] sm:$0xff] }
 0xe9d   : > { %v8122_v15 = vcombine.low %v4265_v3, %v4269_v20  ;;  %5022 = vmatprep.subr.bf16.mxu1 %v8121_v58 }
 0xe9e   : > { %5023 = vmatpush1.bf16.msra.mxu1 %v8120_v5 }
 0xecf   : > { %v8895_v17 = vpop.permute.xlu0 %8894 }
 0xed0   : > { %v8897_v30 = vunpack.i.h.bf16 %v8895_v17  ;;  %v8896_v6 = vunpack.i.l.bf16 %v8895_v17  ;;  %v8123_v17 = vcombine.high %v4265_v3, %v4269_v20  ;;  %v4208_v20 = vld [vmem:[%s10941_s24] sm:$0xff] }
 0xed2   : > { %v3832_v21 = vsel %vm2744_vm7, %v11469_v12, %v8896_v6  ;;  %v3833_v31 = vsel %vm2744_vm7, %v11467_v11, %v8897_v30  ;;  %v8113_v30 = vcombine.high %v4256_v13, %v4260_v14  ;;  %v4257_v6 = vld [vmem:[%s10941_s24 + $0x188] sm:$0xff]  ;;  %5075 = vmatprep.subr.bf16.mxu0 %v8123_v17  ;;  %v4212_v13 = vld [vmem:[%s10941_s24 + $0x20] sm:$0xff] }
 0xed3   : > { %v3870_v35 = vpack.c.bf16 %v3833_v31, %v3832_v21  ;;  %v8115_v21 = vcombine.high %v4257_v6, %v4261_v7  ;;  %v4252_v31 = vld [vmem:[%s10941_s24 + $0x160] sm:$0xff]  ;;  %5076 = vmatpush1.bf16.msra.mxu0 %v8122_v15  ;;  %v4209_v14 = vld [vmem:[%s10941_s24 + $0x8] sm:$0xff] }
 0xed4   : > { %5024 = vmatprep.subr.bf16.mxu1 %v8113_v30  ;;  %v4213_v15 = vld [vmem:[%s10941_s24 + $0x28] sm:$0xff] }
 0xed5   : > { %4084 = vmatprep.mubr.bf16.mxu0 %v3870_v35  ;;  %v4249_v35 = vld [vmem:[%s10941_s24 + $0x148] sm:$0xff]  ;;  %5077 = vmatprep.subr.bf16.mxu0 %v8115_v21  ;;  %v4332_v21 = vld [vmem:[%s10941_s24 + $0x3e0] sm:$0xff] }
 0xed6   : > { %4085 = vmatmul.mubr.bf16.gmra.mxu0 %v3869_v41  ;;  %v4253_v41 = vld [vmem:[%s10941_s24 + $0x168] sm:$0xff]  ;;  %5025 = vmatpush1.bf16.msra.mxu1 %v8112_v34  ;;  %v8066_v34 = vcombine.low %v4209_v14, %v4213_v15 }
 0xf5c   : > { %v4076_v9 = vpop.f32.mrf.mxu0 }
 0xf5d   : > { %v4077_v40 = vadd.f32 %v4076_v9, %v3875_v45  ;;  %v8107_v9 = vcombine.high %v4249_v35, %v4253_v41 }
 0xf5e   : > { %v4078_v43 = vpop.f32.mrf.mxu0 }
 0xf5f   : > { %v4079_v8 = vadd.f32 %v4078_v43, %v3879_v32  ;;  %v11557_v12 = vadd.f32 %v9495_v46, %v4077_v40  ;;  %v4240_v40 = vld [vmem:[%s10941_s24 + $0x100] sm:$0xff]  ;;  %v8104_v46 = vcombine.low %v4248_v26, %v4252_v31 }
 0xf60   : > { %v4080_v36 = vpop.f32.mrf.mxu0  ;;  %v4244_v43 = vld [vmem:[%s10941_s24 + $0x120] sm:$0xff] }
 0xf61   : > { %v11559_v11 = vadd.f32 %v9496_v39, %v4079_v8  ;;  %v4081_v52 = vadd.f32 %v4080_v36, %v3875_v45  ;;  %v4241_v8 = vld [vmem:[%s10941_s24 + $0x108] sm:$0xff]  ;;  %v8106_v39 = vcombine.low %v4249_v35, %v4253_v41  ;;  %v8064_v41 = vcombine.low %v4208_v20, %v4212_v13 }
 0xf62   : > { %v4082_v18 = vpop.f32.mrf.mxu0  ;;  %v4245_v36 = vld [vmem:[%s10941_s24 + $0x128] sm:$0xff] }
 0xf63   : > { %v4083_v24 = vadd.f32 %v4082_v18, %v3879_v32  ;;  %v4105_v42 = vadd.f32 %v11559_v11, %v11557_v12  ;;  %v11563_v50 = vadd.f32 %v9497_v19, %v4081_v52  ;;  %v8097_v52 = vcombine.high %v4240_v40, %v4244_v43  ;;  %v4233_v19 = vld [vmem:[%s10941_s24 + $0xc8] sm:$0xff] }
 0xf64   : > { %v8099_v18 = vcombine.high %v4241_v8, %v4245_v36  ;;  %v4333_v35 = vld [vmem:[%s10941_s24 + $0x3e8] sm:$0xff] }
 0xf65   : > { %v11565_v37 = vadd.f32 %v9498_v53, %v4083_v24  ;;  %4106 = vadd.xlane.f32.xlu0 %v4105_v42  ;;  %v4232_v24 = vld [vmem:[%s10941_s24 + $0xc0] sm:$0xff]  ;;  %v4237_v53 = vld [vmem:[%s10941_s24 + $0xe8] sm:$0xff] }
 0xf66   : > { %v4236_v42 = vld [vmem:[%s10941_s24 + $0xe0] sm:$0xff] }
 0xf67   : > { %v4108_v23 = vadd.f32 %v11565_v37, %v11563_v50 }
 0xf69   : > { %4109 = vadd.xlane.f32.xlu1 %v4108_v23  ;;  %v8096_v23 = vcombine.low %v4240_v40, %v4244_v43 }
 0xf96   : > { %v4086_v56 = vpop.f32.mrf.mxu0 }
 0xf97   : > { %v4087_v44 = vadd.f32 %v4086_v56, %v3875_v45  ;;  %v8098_v56 = vcombine.low %v4241_v8, %v4245_v36 }
 0xf98   : > { %v4088_v59 = vpop.f32.mrf.mxu0 }
 0xf99   : > { %v4089_v61 = vadd.f32 %v4088_v59, %v3879_v32  ;;  %v11569_v49 = vadd.f32 %v9499_v28, %v4087_v44  ;;  %v8089_v44 = vcombine.high %v4232_v24, %v4236_v42  ;;  %v8091_v59 = vcombine.high %v4233_v19, %v4237_v53  ;;  %v4225_v28 = vld [vmem:[%s10941_s24 + $0x88] sm:$0xff] }
 0xf9a   : > { %v4090_v29 = vpop.f32.mrf.mxu0 }
 0xf9b   : > { %v11571_v63 = vadd.f32 %v9500_v47, %v4089_v61  ;;  %v4091_v48 = vadd.f32 %v4090_v29, %v3875_v45  ;;  %v8114_v45 = vcombine.low %v4257_v6, %v4261_v7  ;;  %v4224_v61 = vld [vmem:[%s10941_s24 + $0x80] sm:$0xff]  ;;  %v4229_v47 = vld [vmem:[%s10941_s24 + $0xa8] sm:$0xff]  ;;  %v8065_v6 = vcombine.high %v4208_v20, %v4212_v13 }
 0xf9c   : > { %v4092_v62 = vpop.f32.mrf.mxu0  ;;  %v4228_v29 = vld [vmem:[%s10941_s24 + $0xa0] sm:$0xff]  ;;  %v8082_v3 = vcombine.low %v4225_v28, %v4229_v47  ;;  %v8067_v7 = vcombine.high %v4209_v14, %v4213_v15 }
 0xf9d   : > { %v4093_v0 = vadd.f32 %v4092_v62, %v3879_v32  ;;  %v4111_v1 = vadd.f32 %v11571_v63, %v11569_v49  ;;  %v11575_v16 = vadd.f32 %v9501_v60, %v4091_v48  ;;  %v8105_v32 = vcombine.high %v4248_v26, %v4252_v31  ;;  %5078 = vmatpush1.bf16.msra.mxu0 %v8114_v45  ;;  %v4216_v60 = vld [vmem:[%s10941_s24 + $0x40] sm:$0xff]  ;;  %v4329_v31 = vld [vmem:[%s10941_s24 + $0x3c8] sm:$0xff] }
 0xf9e   : > { %5079 = vmatprep.subr.bf16.mxu0 %v8107_v9  ;;  %v8088_v48 = vcombine.low %v4232_v24, %v4236_v42  ;;  %v8090_v62 = vcombine.low %v4233_v19, %v4237_v53  ;;  %v8080_v2 = vcombine.low %v4224_v61, %v4228_v29  ;;  %v4328_v26 = vld [vmem:[%s10941_s24 + $0x3c0] sm:$0xff]  ;;  %v8186_v40 = vcombine.low %v4329_v31, %v4333_v35 }
 0xf9f   : > { %v11577_v4 = vadd.f32 %v9502_v51, %v4093_v0  ;;  %4112 = vadd.xlane.f32.xlu0 %v4111_v1  ;;  %5026 = vmatprep.subr.bf16.mxu1 %v8105_v32  ;;  %v8081_v0 = vcombine.high %v4224_v61, %v4228_v29  ;;  %v8083_v1 = vcombine.high %v4225_v28, %v4229_v47  ;;  %v4220_v51 = vld [vmem:[%s10941_s24 + $0x60] sm:$0xff] }
 0xfa0   : > { %5027 = vmatpush1.bf16.msra.mxu1 %v8104_v46  ;;  %v8073_v5 = vcombine.high %v4216_v60, %v4220_v51  ;;  %v8072_v17 = vcombine.low %v4216_v60, %v4220_v51  ;;  %v8185_v45 = vcombine.high %v4328_v26, %v4332_v21  ;;  %v8187_v32 = vcombine.high %v4329_v31, %v4333_v35  ;;  %v4312_v47 = vld [vmem:[%s10941_s24 + $0x340] sm:$0xff] }
 0xfa1   : > { %v4114_v54 = vadd.f32 %v11577_v4, %v11575_v16  ;;  %5080 = vmatpush1.bf16.msra.mxu0 %v8106_v39  ;;  %5028 = vmatprep.subr.bf16.mxu1 %v8097_v52  ;;  %v8184_v9 = vcombine.low %v4328_v26, %v4332_v21  ;;  %v4296_v15 = vld [vmem:[%s10941_s24 + $0x2c0] sm:$0xff] }
 0xfa2   : > { %5081 = vmatprep.subr.bf16.mxu0 %v8099_v18  ;;  %v4288_v35 = vld [vmem:[%s10941_s24 + $0x280] sm:$0xff] }
 0xfa3   : > { %4115 = vadd.xlane.f32.xlu0 %v4114_v54  ;;  %v4217_v54 = vld [vmem:[%s10941_s24 + $0x48] sm:$0xff] }
 0xfa4   : > { %5029 = vmatpush1.bf16.msra.mxu1 %v8096_v23  ;;  %v8075_v58 = vcombine.high %v4217_v54, %v4221_v55  ;;  %v8074_v30 = vcombine.low %v4217_v54, %v4221_v55  ;;  %v4304_v55 = vld [vmem:[%s10941_s24 + $0x300] sm:$0xff] }
 0xfa5   : > { %5082 = vmatpush1.bf16.msra.mxu0 %v8098_v56  ;;  %5030 = vmatprep.subr.bf16.mxu1 %v8089_v44  ;;  %v4320_v56 = vld [vmem:[%s10941_s24 + $0x380] sm:$0xff]  ;;  %v4321_v44 = vld [vmem:[%s10941_s24 + $0x388] sm:$0xff] }
 0xfa6   : > { %5083 = vmatprep.subr.bf16.mxu0 %v8091_v59 }
 0xfa8   : > { %5031 = vmatpush1.bf16.msra.mxu1 %v8088_v48  ;;  %v4316_v48 = vld [vmem:[%s10941_s24 + $0x360] sm:$0xff] }
 0xfa9   : > { %5084 = vmatpush1.bf16.msra.mxu0 %v8090_v62  ;;  %5032 = vmatprep.subr.bf16.mxu1 %v8081_v0  ;;  %v4313_v62 = vld [vmem:[%s10941_s24 + $0x348] sm:$0xff]  ;;  %v8169_v0 = vcombine.high %v4312_v47, %v4316_v48  ;;  %v8168_v60 = vcombine.low %v4312_v47, %v4316_v48  ;;  %v11669_v47 = vld [vmem:[%s10941_s24 + $0x1f0] sm:$0xff]  ;;  %v11672_v48 = vld [vmem:[%s10941_s24 + $0x1d8] sm:$0xff] }
 0xfaa   : > { %5085 = vmatprep.subr.bf16.mxu0 %v8083_v1  ;;  %v4317_v1 = vld [vmem:[%s10941_s24 + $0x368] sm:$0xff] }
 0xfab   : > { %v8170_v51 = vcombine.low %v4313_v62, %v4317_v1  ;;  %v8171_v54 = vcombine.high %v4313_v62, %v4317_v1  ;;  %v11679_v1 = vld [vmem:[%s10941_s24 + $0x1f8] sm:$0xff] }
 0xfac   : > { %5033 = vmatpush1.bf16.msra.mxu1 %v8080_v2  ;;  %v4308_v2 = vld [vmem:[%s10941_s24 + $0x320] sm:$0xff] }
 0xfad   : > { %5086 = vmatpush1.bf16.msra.mxu0 %v8082_v3  ;;  %5034 = vmatprep.subr.bf16.mxu1 %v8073_v5  ;;  %v4305_v3 = vld [vmem:[%s10941_s24 + $0x308] sm:$0xff]  ;;  %v8161_v5 = vcombine.high %v4304_v55, %v4308_v2  ;;  %v8160_v20 = vcombine.low %v4304_v55, %v4308_v2 }
 0xfae   : > { %5087 = vmatprep.subr.bf16.mxu0 %v8075_v58  ;;  %v4309_v58 = vld [vmem:[%s10941_s24 + $0x328] sm:$0xff] }
 0xfaf   : > { %v8162_v13 = vcombine.low %v4305_v3, %v4309_v58  ;;  %v8163_v14 = vcombine.high %v4305_v3, %v4309_v58 }
 0xfb0   : > { %5035 = vmatpush1.bf16.msra.mxu1 %v8072_v17  ;;  %v4300_v17 = vld [vmem:[%s10941_s24 + $0x2e0] sm:$0xff] }
 0xfb1   : > { %5088 = vmatpush1.bf16.msra.mxu0 %v8074_v30  ;;  %5036 = vmatprep.subr.bf16.mxu1 %v8065_v6  ;;  %v4297_v30 = vld [vmem:[%s10941_s24 + $0x2c8] sm:$0xff]  ;;  %v8153_v6 = vcombine.high %v4296_v15, %v4300_v17  ;;  %v8152_v26 = vcombine.low %v4296_v15, %v4300_v17 }
 0xfb2   : > { %5089 = vmatprep.subr.bf16.mxu0 %v8067_v7  ;;  %v4301_v7 = vld [vmem:[%s10941_s24 + $0x2e8] sm:$0xff] }
 0xfb3   : > { %v8154_v21 = vcombine.low %v4297_v30, %v4301_v7  ;;  %v8155_v31 = vcombine.high %v4297_v30, %v4301_v7 }
 0xfb4   : > { %5037 = vmatpush1.bf16.msra.mxu1 %v8064_v41  ;;  %v4292_v41 = vld [vmem:[%s10941_s24 + $0x2a0] sm:$0xff] }
 0xfb5   : > { %5090 = vmatpush1.bf16.msra.mxu0 %v8066_v34  ;;  %5038 = vmatprep.subr.bf16.mxu1 %v8185_v45  ;;  %v4289_v34 = vld [vmem:[%s10941_s24 + $0x288] sm:$0xff]  ;;  %v8145_v45 = vcombine.high %v4288_v35, %v4292_v41 }
 0xfb6   : > { %5091 = vmatprep.subr.bf16.mxu0 %v8187_v32  ;;  %v4293_v32 = vld [vmem:[%s10941_s24 + $0x2a8] sm:$0xff] }
 0xfb8   : > { %5039 = vmatpush2.bf16.msra.mxu1 %v8184_v9  ;;  %v8144_v9 = vcombine.low %v4288_v35, %v4292_v41 }
 0xfb9   : > { %5092 = vmatpush2.bf16.msra.mxu0 %v8186_v40  ;;  %v8146_v40 = vcombine.low %v4289_v34, %v4293_v32 }
 0xfee   : > { %v4107_v43 = vpop.xlane.xlu0 %4106 }
 0xfef   : > { %v4118_v8 = vmul.f32 0.00390625, %v4107_v43  ;;  %v8147_v43 = vcombine.high %v4289_v34, %v4293_v32  ;;  %v4104_v34 = vld [vmem:[%s1241_s4] sm:$0x3] }
 0xff1   : > { %v11618_v36 = vsub.f32 %v11557_v12, %v4118_v8  ;;  %v11621_v46 = vsub.f32 %v11559_v11, %v4118_v8  ;;  %v4280_v8 = vld [vmem:[%s10941_s24 + $0x240] sm:$0xff] }
 0xff2   : > { %v4110_v39 = vpop.xlane.xlu1 %4109 }
 0xff3   : > { %v4119_v52 = vmul.f32 0.00390625, %v4110_v39  ;;  %v4130_v18 = vmul.f32 %v11618_v36, %v11618_v36  ;;  %v4131_v24 = vmul.f32 %v11621_v46, %v11621_v46  ;;  %v4284_v39 = vld [vmem:[%s10941_s24 + $0x260] sm:$0xff] }
 0xff5   : > { %v11628_v42 = vsub.f32 %v11563_v50, %v4119_v52  ;;  %v11631_v19 = vsub.f32 %v11565_v37, %v4119_v52  ;;  %v4138_v12 = vadd.f32 %v4131_v24, %v4130_v18  ;;  %v4324_v50 = vld [vmem:[%s10941_s24 + $0x3a0] sm:$0xff]  ;;  %v4325_v37 = vld [vmem:[%s10941_s24 + $0x3a8] sm:$0xff]  ;;  %v8137_v18 = vcombine.high %v4280_v8, %v4284_v39 }
 0xff6   : > { %v8177_v59 = vcombine.high %v4320_v56, %v4324_v50  ;;  %v8176_v61 = vcombine.low %v4320_v56, %v4324_v50  ;;  %v8178_v29 = vcombine.low %v4321_v44, %v4325_v37  ;;  %v8179_v28 = vcombine.high %v4321_v44, %v4325_v37  ;;  %v4281_v52 = vld [vmem:[%s10941_s24 + $0x248] sm:$0xff]  ;;  %v4276_v56 = vld [vmem:[%s10941_s24 + $0x220] sm:$0xff] }
 0xff7   : > { %4139 = vadd.xlane.f32.xlu0 %v4138_v12  ;;  %v4132_v11 = vmul.f32 %v11628_v42, %v11628_v42  ;;  %v4133_v53 = vmul.f32 %v11631_v19, %v11631_v19  ;;  %v4285_v24 = vld [vmem:[%s10941_s24 + $0x268] sm:$0xff]  ;;  %v8136_v12 = vcombine.low %v4280_v8, %v4284_v39  ;;  %v11721_v8 = vrot.slane %v4104_v34, %v11324_v57 }
 0xff8   : > { %5040 = vmatprep.subr.bf16.mxu1 %v8177_v59  ;;  %5093 = vmatprep.subr.bf16.mxu0 %v8179_v28  ;;  %v4273_v50 = vld [vmem:[%s10941_s24 + $0x208] sm:$0xff]  ;;  %v11666_v28 = vld [vmem:[%s10941_s24 + $0x1d0] sm:$0xff] }
 0xff9   : > { %v4141_v23 = vadd.f32 %v4133_v53, %v4132_v11  ;;  %5041 = vmatpush2.bf16.msra.mxu1 %v8176_v61  ;;  %5094 = vmatpush2.bf16.msra.mxu0 %v8178_v29  ;;  %v8138_v11 = vcombine.low %v4281_v52, %v4285_v24  ;;  %v8139_v53 = vcombine.high %v4281_v52, %v4285_v24  ;;  %v4277_v59 = vld [vmem:[%s10941_s24 + $0x228] sm:$0xff] }
 0xffa   : > { %5042 = vmatprep.subr.bf16.mxu1 %v8169_v0  ;;  %5095 = vmatprep.subr.bf16.mxu0 %v8171_v54  ;;  %v8131_v61 = vcombine.high %v4273_v50, %v4277_v59  ;;  %v8130_v29 = vcombine.low %v4273_v50, %v4277_v59  ;;  %v8124_v62 = vcombine.low %v11666_v28, %v11669_v47  ;;  %v4263_v50 = vld [vmem:[%s10941_s24 + $0x1b8] sm:$0xff] }
 0xffb   : > { %4142 = vadd.xlane.f32.xlu1 %v4141_v23  ;;  %v4272_v23 = vld [vmem:[%s10941_s24 + $0x200] sm:$0xff]  ;;  %v8125_v0 = vcombine.high %v11666_v28, %v11669_v47 }
 0xffc   : > { %v8129_v44 = vcombine.high %v4272_v23, %v4276_v56  ;;  %v8128_v37 = vcombine.low %v4272_v23, %v4276_v56  ;;  %v4262_v23 = vld [vmem:[%s10941_s24 + $0x1b0] sm:$0xff]  ;;  %v4259_v56 = vld [vmem:[%s10941_s24 + $0x198] sm:$0xff] }
 0xffd   : > { %5043 = vmatpush2.bf16.msra.mxu1 %v8168_v60  ;;  %5096 = vmatpush2.bf16.msra.mxu0 %v8170_v51  ;;  %v8126_v60 = vcombine.low %v11672_v48, %v11679_v1  ;;  %v8127_v51 = vcombine.high %v11672_v48, %v11679_v1  ;;  %v4234_v1 = vld [vmem:[%s10941_s24 + $0xd0] sm:$0xff] }
 0xffe   : > { %5044 = vmatprep.subr.bf16.mxu1 %v8161_v5  ;;  %5097 = vmatprep.subr.bf16.mxu0 %v8163_v14 }
0x1001   : > { %5045 = vmatpush2.bf16.msra.mxu1 %v8160_v20  ;;  %5098 = vmatpush2.bf16.msra.mxu0 %v8162_v13 }
0x1002   : > { %5046 = vmatprep.subr.bf16.mxu1 %v8153_v6  ;;  %5099 = vmatprep.subr.bf16.mxu0 %v8155_v31 }
0x1005   : > { %5047 = vmatpush2.bf16.msra.mxu1 %v8152_v26  ;;  %5100 = vmatpush2.bf16.msra.mxu0 %v8154_v21 }
0x1006   : > { %5048 = vmatprep.subr.bf16.mxu1 %v8145_v45  ;;  %5101 = vmatprep.subr.bf16.mxu0 %v8147_v43  ;;  %v11718_v43 = vrot.slane %v4104_v34, %v11103_v27 }
0x1009   : > { %5049 = vmatpush2.bf16.msra.mxu1 %v8144_v9  ;;  %5102 = vmatpush2.bf16.msra.mxu0 %v8146_v40 }
0x100a   : > { %5050 = vmatprep.subr.bf16.mxu1 %v8137_v18  ;;  %5103 = vmatprep.subr.bf16.mxu0 %v8139_v53 }
0x100d   : > { %5051 = vmatpush2.bf16.msra.mxu1 %v8136_v12  ;;  %5104 = vmatpush2.bf16.msra.mxu0 %v8138_v11  ;;  %v4258_v12 = vld [vmem:[%s10941_s24 + $0x190] sm:$0xff] }
0x100e   : > { %5052 = vmatprep.subr.bf16.mxu1 %v8129_v44  ;;  %5105 = vmatprep.subr.bf16.mxu0 %v8131_v61  ;;  %v8119_v61 = vcombine.high %v4259_v56, %v4263_v50 }
0x1011   : > { %5053 = vmatpush2.bf16.msra.mxu1 %v8128_v37  ;;  %5106 = vmatpush2.bf16.msra.mxu0 %v8130_v29  ;;  %v8117_v37 = vcombine.high %v4258_v12, %v4262_v23  ;;  %v4250_v29 = vld [vmem:[%s10941_s24 + $0x150] sm:$0xff] }
0x1012   : > { %5128 = vmatprep.subr.bf16.mxu1 %v8125_v0  ;;  %5181 = vmatprep.subr.bf16.mxu0 %v8127_v51  ;;  %v4254_v0 = vld [vmem:[%s10941_s24 + $0x170] sm:$0xff]  ;;  %v4251_v51 = vld [vmem:[%s10941_s24 + $0x158] sm:$0xff] }
0x1013   : > { %v8108_v28 = vcombine.low %v4250_v29, %v4254_v0 }
0x1028   : > { %v4113_v54 = vpop.xlane.xlu0 %4112 }
0x1029   : > { %v4120_v55 = vmul.f32 0.00390625, %v4113_v54  ;;  %v4255_v54 = vld [vmem:[%s10941_s24 + $0x178] sm:$0xff] }
0x102a   : > { %v8110_v47 = vcombine.low %v4251_v51, %v4255_v54 }
0x102b   : > { %v11686_v2 = vsub.f32 %v11569_v49, %v4120_v55  ;;  %v11689_v3 = vsub.f32 %v11571_v63, %v4120_v55  ;;  %v8116_v55 = vcombine.low %v4258_v12, %v4262_v23 }
0x102c   : > { %v4116_v5 = vpop.xlane.xlu0 %4115 }
0x102d   : > { %v4121_v58 = vmul.f32 0.00390625, %v4116_v5  ;;  %v4134_v20 = vmul.f32 %v11686_v2, %v11686_v2  ;;  %v4135_v13 = vmul.f32 %v11689_v3, %v11689_v3  ;;  %v8118_v5 = vcombine.low %v4259_v56, %v4263_v50  ;;  %v4210_v50 = vld [vmem:[%s10941_s24 + $0x10] sm:$0xff] }
0x102f   : > { %v11696_v14 = vsub.f32 %v11575_v16, %v4121_v58  ;;  %v11699_v15 = vsub.f32 %v11577_v4, %v4121_v58  ;;  %v4144_v49 = vadd.f32 %v4135_v13, %v4134_v20  ;;  %v4103_v4 = vld [vmem:[%s1232_s5] sm:$0x3]  ;;  %v8109_v58 = vcombine.high %v4250_v29, %v4254_v0  ;;  %v4215_v29 = vld [vmem:[%s10941_s24 + $0x38] sm:$0xff] }
0x1030   : > { %v11712_v32 = vrot.slane %v4103_v4, %v11103_v27  ;;  %v11715_v9 = vrot.slane %v4103_v4, %v11324_v57  ;;  %v8111_v20 = vcombine.high %v4251_v51, %v4255_v54  ;;  %v4242_v13 = vld [vmem:[%s10941_s24 + $0x110] sm:$0xff] }
0x1031   : > { %4145 = vadd.xlane.f32.xlu0 %v4144_v49  ;;  %v4136_v63 = vmul.f32 %v11696_v14, %v11696_v14  ;;  %v4137_v17 = vmul.f32 %v11699_v15, %v11699_v15  ;;  %v4246_v49 = vld [vmem:[%s10941_s24 + $0x130] sm:$0xff] }
0x1032   : > { %v8101_v48 = vcombine.high %v4242_v13, %v4246_v49  ;;  %v4230_v4 = vld [vmem:[%s10941_s24 + $0xb0] sm:$0xff] }
0x1033   : > { %v4147_v30 = vadd.f32 %v4137_v17, %v4136_v63  ;;  %v4243_v63 = vld [vmem:[%s10941_s24 + $0x118] sm:$0xff] }
0x1034   : > { %v4247_v17 = vld [vmem:[%s10941_s24 + $0x138] sm:$0xff] }
0x1035   : > { %4148 = vadd.xlane.f32.xlu1 %v4147_v30  ;;  %v4235_v30 = vld [vmem:[%s10941_s24 + $0xd8] sm:$0xff] }
0x1080   : > { %v4140_v6 = vpop.xlane.xlu0 %4139 }
0x1081   : > { %v4150_v7 = vmul.f32 0.00390625, %v4140_v6  ;;  %v4239_v6 = vld [vmem:[%s10941_s24 + $0xf8] sm:$0xff] }
0x1083   : > { %v4154_v26 = vadd.f32 1e-05, %v4150_v7  ;;  %v8100_v7 = vcombine.low %v4242_v13, %v4246_v49  ;;  %v4335_v13 = vld [vmem:[%s10941_s24 + $0x3f8] sm:$0xff] }
0x1084   : > { %v4143_v16 = vpop.xlane.xlu1 %4142 }
0x1085   : > { %9351 = vrsqrt.f32 %v4154_v26  ;;  %v4151_v21 = vmul.f32 0.00390625, %v4143_v16  ;;  %v8102_v26 = vcombine.low %v4243_v63, %v4247_v17 }
0x1087   : > { %v4155_v31 = vadd.f32 1e-05, %v4151_v21  ;;  %v8095_v21 = vcombine.high %v4235_v30, %v4239_v6 }
0x1089   : > { %9353 = vrsqrt.f32 %v4155_v31  ;;  %v4226_v31 = vld [vmem:[%s10941_s24 + $0x90] sm:$0xff] }
0x1092   : > { %v9352_v35 = vpop.eup %9351 }
0x1093   : > { %v4162_v41 = vmul.f32 %v9352_v35, %v11618_v36  ;;  %v4163_v45 = vmul.f32 %v9352_v35, %v11621_v46  ;;  %v4227_v35 = vld [vmem:[%s10941_s24 + $0x98] sm:$0xff] }
0x1095   : > { %v4182_v39 = vmul.f32 %v11715_v9, %v4163_v45  ;;  %v4181_v52 = vmul.f32 %v11712_v32, %v4162_v41  ;;  %v4231_v41 = vld [vmem:[%s10941_s24 + $0xb8] sm:$0xff]  ;;  %v8094_v45 = vcombine.low %v4235_v30, %v4239_v6 }
0x1096   : > { %v9354_v40 = vpop.eup %9353  ;;  %v8086_v12 = vcombine.low %v4227_v35, %v4231_v41  ;;  %v4327_v30 = vld [vmem:[%s10941_s24 + $0x3b8] sm:$0xff] }
0x1097   : > { %v4164_v36 = vmul.f32 %v9354_v40, %v11628_v42  ;;  %v4165_v46 = vmul.f32 %v9354_v40, %v11631_v19  ;;  %v11731_v11 = vadd.f32 %v11721_v8, %v4182_v39  ;;  %v11737_v19 = vadd.f32 %v11718_v43, %v4181_v52  ;;  %v4222_v39 = vld [vmem:[%s10941_s24 + $0x70] sm:$0xff]  ;;  %v4219_v52 = vld [vmem:[%s10941_s24 + $0x58] sm:$0xff] }
0x1098   : > { %v8085_v40 = vcombine.high %v4226_v31, %v4230_v4 }
0x1099   : > { %v4184_v18 = vmul.f32 %v11715_v9, %v4165_v46  ;;  %v4183_v24 = vmul.f32 %v11712_v32, %v4164_v36  ;;  %13103 = vst [vmem:[#allocation59_spill] sm:$0xff] %v11731_v11  ;;  %13105 = vst [vmem:[#allocation61_spill] sm:$0xff] %v11737_v19  ;;  %v8087_v36 = vcombine.high %v4227_v35, %v4231_v41  ;;  %v4218_v46 = vld [vmem:[%s10941_s24 + $0x50] sm:$0xff] }
0x109a   : > { %v8077_v23 = vcombine.high %v4218_v46, %v4222_v39  ;;  %v8076_v0 = vcombine.low %v4218_v46, %v4222_v39  ;;  %v4318_v41 = vld [vmem:[%s10941_s24 + $0x370] sm:$0xff] }
0x109b   : > { %v11734_v42 = vadd.f32 %v11721_v8, %v4184_v18  ;;  %v11740_v53 = vadd.f32 %v11718_v43, %v4183_v24  ;;  %v4223_v18 = vld [vmem:[%s10941_s24 + $0x78] sm:$0xff]  ;;  %v8084_v24 = vcombine.low %v4226_v31, %v4230_v4  ;;  %v4314_v4 = vld [vmem:[%s10941_s24 + $0x350] sm:$0xff] }
0x109c   : > { %v8079_v56 = vcombine.high %v4219_v52, %v4223_v18  ;;  %v8078_v51 = vcombine.low %v4219_v52, %v4223_v18  ;;  %v8173_v39 = vcombine.high %v4314_v4, %v4318_v41  ;;  %v4306_v18 = vld [vmem:[%s10941_s24 + $0x310] sm:$0xff] }
0x109d   : > { %13104 = vst [vmem:[#allocation60_spill] sm:$0xff] %v11734_v42  ;;  %13106 = vst [vmem:[#allocation62_spill] sm:$0xff] %v11740_v53  ;;  %v11747_v44 = vpack.c.bf16 %v11734_v42, %v11731_v11  ;;  %v11751_v59 = vpack.c.bf16 %v11740_v53, %v11737_v19  ;;  %v9242_v53 = vld [vmem:[%s10950_s30 + $0x3f0] ss:$8 sps:$4 sm:$0xff]   ;;  %v9250_v19 = vld [vmem:[%s10950_s30 + $0x3e4] ss:$8 sps:$4 sm:$0xff]  }
0x109f   : > { %5054 = vmatprep.mubr.bf16.mxu1 %v11747_v44  ;;  %5107 = vmatprep.mubr.bf16.mxu0 %v11747_v44 }
0x10a0   : > { %5055 = vmatmul.mubr.bf16.vlgmr.msra.gmra.mxu1 %v11751_v59  ;;  %5108 = vmatmul.mubr.bf16.vlgmr.msra.gmra.mxu0 %v11751_v59 }
0x10a1   : > { %5129 = vmatpush1.bf16.msra.mxu1 %v8124_v62  ;;  %5182 = vmatpush1.bf16.msra.mxu0 %v8126_v60  ;;  %v8103_v62 = vcombine.high %v4243_v63, %v4247_v17  ;;  %v4238_v60 = vld [vmem:[%s10941_s24 + $0xf0] sm:$0xff] }
0x10a2   : > { %5130 = vmatprep.subr.bf16.mxu1 %v8117_v37  ;;  %5183 = vmatprep.subr.bf16.mxu0 %v8119_v61  ;;  %v8093_v16 = vcombine.high %v4234_v1, %v4238_v60  ;;  %v8092_v34 = vcombine.low %v4234_v1, %v4238_v60  ;;  %v4214_v37 = vld [vmem:[%s10941_s24 + $0x30] sm:$0xff]  ;;  %v4211_v61 = vld [vmem:[%s10941_s24 + $0x18] sm:$0xff] }
0x10a3   : > { %v8069_v54 = vcombine.high %v4210_v50, %v4214_v37  ;;  %v8068_v49 = vcombine.low %v4210_v50, %v4214_v37  ;;  %v8070_v63 = vcombine.low %v4211_v61, %v4215_v29  ;;  %v4326_v1 = vld [vmem:[%s10941_s24 + $0x3b0] sm:$0xff]  ;;  %v4323_v60 = vld [vmem:[%s10941_s24 + $0x398] sm:$0xff] }
0x10a4   : > { %v8183_v31 = vcombine.high %v4323_v60, %v4327_v30  ;;  %v8182_v46 = vcombine.low %v4323_v60, %v4327_v30 }
0x10a5   : > { %5131 = vmatpush1.bf16.msra.mxu1 %v8116_v55  ;;  %5184 = vmatpush1.bf16.msra.mxu0 %v8118_v5  ;;  %v8071_v55 = vcombine.high %v4211_v61, %v4215_v29  ;;  %v4330_v5 = vld [vmem:[%s10941_s24 + $0x3d0] sm:$0xff] }
0x10a6   : > { %5132 = vmatprep.subr.bf16.mxu1 %v8109_v58  ;;  %5185 = vmatprep.subr.bf16.mxu0 %v8111_v20  ;;  %v4334_v58 = vld [vmem:[%s10941_s24 + $0x3f0] sm:$0xff]  ;;  %v4331_v20 = vld [vmem:[%s10941_s24 + $0x3d8] sm:$0xff] }
0x10a7   : > { %v4298_v29 = vld [vmem:[%s10941_s24 + $0x2d0] sm:$0xff] }
0x10a9   : > { %5133 = vmatpush1.bf16.msra.mxu1 %v8108_v28  ;;  %5186 = vmatpush1.bf16.msra.mxu0 %v8110_v47  ;;  %v8189_v28 = vcombine.high %v4330_v5, %v4334_v58  ;;  %v8191_v47 = vcombine.high %v4331_v20, %v4335_v13 }
0x10aa   : > { %5134 = vmatprep.subr.bf16.mxu1 %v8101_v48  ;;  %5187 = vmatprep.subr.bf16.mxu0 %v8103_v62  ;;  %v4322_v48 = vld [vmem:[%s10941_s24 + $0x390] sm:$0xff] }
0x10ad   : > { %5135 = vmatpush1.bf16.msra.mxu1 %v8100_v7  ;;  %5188 = vmatpush1.bf16.msra.mxu0 %v8102_v26  ;;  %v8188_v7 = vcombine.low %v4330_v5, %v4334_v58  ;;  %v8190_v26 = vcombine.low %v4331_v20, %v4335_v13  ;;  %v4290_v13 = vld [vmem:[%s10941_s24 + $0x290] sm:$0xff] }
0x10ae   : > { %5136 = vmatprep.subr.bf16.mxu1 %v8093_v16  ;;  %5189 = vmatprep.subr.bf16.mxu0 %v8095_v21  ;;  %v8181_v21 = vcombine.high %v4322_v48, %v4326_v1 }
0x10b1   : > { %5137 = vmatpush1.bf16.msra.mxu1 %v8092_v34  ;;  %5190 = vmatpush1.bf16.msra.mxu0 %v8094_v45  ;;  %v4315_v34 = vld [vmem:[%s10941_s24 + $0x358] sm:$0xff] }
0x10b2   : > { %5138 = vmatprep.subr.bf16.mxu1 %v8085_v40  ;;  %5191 = vmatprep.subr.bf16.mxu0 %v8087_v36  ;;  %v4319_v45 = vld [vmem:[%s10941_s24 + $0x378] sm:$0xff]  ;;  %v8180_v36 = vcombine.low %v4322_v48, %v4326_v1 }
0x10b3   : > { %v8175_v52 = vcombine.high %v4315_v34, %v4319_v45  ;;  %v8174_v50 = vcombine.low %v4315_v34, %v4319_v45 }
0x10b5   : > { %5139 = vmatpush1.bf16.msra.mxu1 %v8084_v24  ;;  %5192 = vmatpush1.bf16.msra.mxu0 %v8086_v12  ;;  %v4310_v24 = vld [vmem:[%s10941_s24 + $0x330] sm:$0xff]  ;;  %v4307_v12 = vld [vmem:[%s10941_s24 + $0x318] sm:$0xff] }
0x10b6   : > { %5140 = vmatprep.subr.bf16.mxu1 %v8077_v23  ;;  %5193 = vmatprep.subr.bf16.mxu0 %v8079_v56  ;;  %v4311_v23 = vld [vmem:[%s10941_s24 + $0x338] sm:$0xff]  ;;  %v8172_v56 = vcombine.low %v4314_v4, %v4318_v41  ;;  %v8165_v37 = vcombine.high %v4306_v18, %v4310_v24 }
0x10b7   : > { %v8167_v61 = vcombine.high %v4307_v12, %v4311_v23  ;;  %v8166_v5 = vcombine.low %v4307_v12, %v4311_v23 }
0x10b9   : > { %5141 = vmatpush1.bf16.msra.mxu1 %v8076_v0  ;;  %5194 = vmatpush1.bf16.msra.mxu0 %v8078_v51  ;;  %v4302_v0 = vld [vmem:[%s10941_s24 + $0x2f0] sm:$0xff]  ;;  %v4299_v51 = vld [vmem:[%s10941_s24 + $0x2d8] sm:$0xff] }
0x10ba   : > { %v4146_v17 = vpop.xlane.xlu0 %4145  ;;  %5142 = vmatprep.subr.bf16.mxu1 %v8069_v54  ;;  %5195 = vmatprep.subr.bf16.mxu0 %v8071_v55  ;;  %v4303_v54 = vld [vmem:[%s10941_s24 + $0x2f8] sm:$0xff]  ;;  %v8164_v55 = vcombine.low %v4306_v18, %v4310_v24  ;;  %v8157_v58 = vcombine.high %v4298_v29, %v4302_v0 }
0x10bb   : > { %v4152_v62 = vmul.f32 0.00390625, %v4146_v17  ;;  %v8159_v20 = vcombine.high %v4299_v51, %v4303_v54  ;;  %v4295_v17 = vld [vmem:[%s10941_s24 + $0x2b8] sm:$0xff]  ;;  %v8158_v48 = vcombine.low %v4299_v51, %v4303_v54  ;;  %v9098_v51 = vld [vmem:[%s10950_s30 + $0x170] ss:$8 sps:$4 sm:$0xff]  }
0x10bc   : > { %v4275_v18 = vld [vmem:[%s10941_s24 + $0x218] sm:$0xff] }
0x10bd   : > { %v4156_v6 = vadd.f32 1e-05, %v4152_v62  ;;  %5143 = vmatpush1.bf16.msra.mxu1 %v8068_v49  ;;  %5196 = vmatpush1.bf16.msra.mxu0 %v8070_v63  ;;  %v4294_v49 = vld [vmem:[%s10941_s24 + $0x2b0] sm:$0xff]  ;;  %v4291_v63 = vld [vmem:[%s10941_s24 + $0x298] sm:$0xff] }
0x10be   : > { %v4149_v16 = vpop.xlane.xlu1 %4148  ;;  %5144 = vmatprep.subr.bf16.mxu1 %v8189_v28  ;;  %5197 = vmatprep.subr.bf16.mxu0 %v8191_v47  ;;  %v8156_v47 = vcombine.low %v4298_v29, %v4302_v0  ;;  %v8149_v60 = vcombine.high %v4290_v13, %v4294_v49  ;;  %v8151_v30 = vcombine.high %v4291_v63, %v4295_v17  ;;  %v9100_v29 = vld [vmem:[%s10950_s30 + $0x174] ss:$8 sps:$4 sm:$0xff]   ;;  %v9095_v0 = vld [vmem:[%s10950_s30 + $0x70] ss:$8 sps:$4 sm:$0xff]   ;;  %v9106_v54 = vld [vmem:[%s10950_s30 + $0x164] ss:$8 sps:$4 sm:$0xff]  }
0x10bf   : > { %9355 = vrsqrt.f32 %v4156_v6  ;;  %v4153_v35 = vmul.f32 0.00390625, %v4149_v16  ;;  %v4282_v6 = vld [vmem:[%s10941_s24 + $0x250] sm:$0xff]  ;;  %v4287_v16 = vld [vmem:[%s10941_s24 + $0x278] sm:$0xff]  ;;  %v8150_v4 = vcombine.low %v4291_v63, %v4295_v17 }
0x10c0   : > { %v9118_v63 = vld [vmem:[%s10950_s30 + $0x144] ss:$8 sps:$4 sm:$0xff]   ;;  %v9113_v17 = vld [vmem:[%s10950_s30 + $0x40] ss:$8 sps:$4 sm:$0xff]  }
0x10c1   : > { %v4157_v40 = vadd.f32 1e-05, %v4153_v35  ;;  %5145 = vmatpush2.bf16.msra.mxu1 %v8188_v7  ;;  %5198 = vmatpush2.bf16.msra.mxu0 %v8190_v26  ;;  %v4286_v7 = vld [vmem:[%s10941_s24 + $0x270] sm:$0xff]  ;;  %v4283_v26 = vld [vmem:[%s10941_s24 + $0x258] sm:$0xff] }
0x10c2   : > { %5146 = vmatprep.subr.bf16.mxu1 %v8181_v21  ;;  %5199 = vmatprep.subr.bf16.mxu0 %v8183_v31  ;;  %v8148_v31 = vcombine.low %v4290_v13, %v4294_v49  ;;  %v8141_v34 = vcombine.high %v4282_v6, %v4286_v7  ;;  %v8143_v45 = vcombine.high %v4283_v26, %v4287_v16  ;;  %v9110_v13 = vld [vmem:[%s10950_s30 + $0x150] ss:$8 sps:$4 sm:$0xff]   ;;  %v9115_v49 = vld [vmem:[%s10950_s30 + $0x44] ss:$8 sps:$4 sm:$0xff]  }
0x10c3   : > { %9357 = vrsqrt.f32 %v4157_v40  ;;  %v8140_v12 = vcombine.low %v4282_v6, %v4286_v7  ;;  %v8142_v23 = vcombine.low %v4283_v26, %v4287_v16  ;;  %v9125_v6 = vld [vmem:[%s10950_s30 + $0x20] ss:$8 sps:$4 sm:$0xff]   ;;  %v9133_v26 = vld [vmem:[%s10950_s30 + $0x14] ss:$8 sps:$4 sm:$0xff]  }
0x10c4   : > { %v9128_v7 = vld [vmem:[%s10950_s30 + $0x120] ss:$8 sps:$4 sm:$0xff]   ;;  %v9136_v16 = vld [vmem:[%s10950_s30 + $0x114] ss:$8 sps:$4 sm:$0xff]  }
0x10c5   : > { %5147 = vmatpush2.bf16.msra.mxu1 %v8180_v36  ;;  %5200 = vmatpush2.bf16.msra.mxu0 %v8182_v46 }
0x10c6   : > { %5148 = vmatprep.subr.bf16.mxu1 %v8173_v39  ;;  %5201 = vmatprep.subr.bf16.mxu0 %v8175_v52  ;;  %v4274_v52 = vld [vmem:[%s10941_s24 + $0x210] sm:$0xff] }
0x10c9   : > { %5149 = vmatpush2.bf16.msra.mxu1 %v8172_v56  ;;  %5202 = vmatpush2.bf16.msra.mxu0 %v8174_v50 }
0x10ca   : > { %5150 = vmatprep.subr.bf16.mxu1 %v8165_v37  ;;  %5203 = vmatprep.subr.bf16.mxu0 %v8167_v61  ;;  %v9097_v61 = vld [vmem:[%s10950_s30 + $0x74] ss:$8 sps:$4 sm:$0xff]  }
0x10cc   : > { %v9356_v28 = vpop.eup %9355 }
0x10cd   : > { %5151 = vmatpush2.bf16.msra.mxu1 %v8164_v55  ;;  %5204 = vmatpush2.bf16.msra.mxu0 %v8166_v5  ;;  %v4167_v62 = vmul.f32 %v9356_v28, %v11689_v3  ;;  %v4166_v1 = vmul.f32 %v9356_v28, %v11686_v2  ;;  %v9101_v55 = vld [vmem:[%s10950_s30 + $0x60] ss:$8 sps:$4 sm:$0xff]  }
0x10ce   : > { %5152 = vmatprep.subr.bf16.mxu1 %v8157_v58  ;;  %5205 = vmatprep.subr.bf16.mxu0 %v8159_v20  ;;  %v9104_v5 = vld [vmem:[%s10950_s30 + $0x160] ss:$8 sps:$4 sm:$0xff]   ;;  %v9112_v58 = vld [vmem:[%s10950_s30 + $0x154] ss:$8 sps:$4 sm:$0xff]   ;;  %v9107_v20 = vld [vmem:[%s10950_s30 + $0x50] ss:$8 sps:$4 sm:$0xff]  }
0x10cf   : > { %v4186_v35 = vmul.f32 %v11715_v9, %v4167_v62  ;;  %v4185_v41 = vmul.f32 %v11712_v32, %v4166_v1  ;;  %v9116_v28 = vld [vmem:[%s10950_s30 + $0x140] ss:$8 sps:$4 sm:$0xff]   ;;  %v9119_v62 = vld [vmem:[%s10950_s30 + $0x30] ss:$8 sps:$4 sm:$0xff]  }
0x10d0   : > { %v9358_v21 = vpop.eup %9357  ;;  %v9122_v1 = vld [vmem:[%s10950_s30 + $0x130] ss:$8 sps:$4 sm:$0xff]  }
0x10d1   : > { %5153 = vmatpush2.bf16.msra.mxu1 %v8156_v47  ;;  %5206 = vmatpush2.bf16.msra.mxu0 %v8158_v48  ;;  %v4169_v3 = vmul.f32 %v9358_v21, %v11699_v15  ;;  %v4168_v2 = vmul.f32 %v9358_v21, %v11696_v14  ;;  %v11824_v46 = vadd.f32 %v11721_v8, %v4186_v35  ;;  %v9121_v47 = vld [vmem:[%s10950_s30 + $0x34] ss:$8 sps:$4 sm:$0xff]   ;;  %v9131_v21 = vld [vmem:[%s10950_s30 + $0x10] ss:$8 sps:$4 sm:$0xff]   ;;  %v9142_v35 = vld [vmem:[%s10950_s30 + $0x104] ss:$8 sps:$4 sm:$0xff]  }
0x10d2   : > { %5154 = vmatprep.subr.bf16.mxu1 %v8149_v60  ;;  %5207 = vmatprep.subr.bf16.mxu0 %v8151_v30  ;;  %v11830_v15 = vadd.f32 %v11718_v43, %v4185_v41  ;;  %v9124_v48 = vld [vmem:[%s10950_s30 + $0x134] ss:$8 sps:$4 sm:$0xff]   ;;  %v9127_v60 = vld [vmem:[%s10950_s30 + $0x24] ss:$8 sps:$4 sm:$0xff]  }
0x10d3   : > { %v4188_v40 = vmul.f32 %v11715_v9, %v4169_v3  ;;  %v4187_v36 = vmul.f32 %v11712_v32, %v4168_v2  ;;  %13107 = vst [vmem:[#allocation63_spill] sm:$0xff] %v11824_v46  ;;  %v4278_v9 = vld [vmem:[%s10941_s24 + $0x230] sm:$0xff]  ;;  %v4279_v32 = vld [vmem:[%s10941_s24 + $0x238] sm:$0xff]  ;;  %v9145_v41 = vld [vmem:[%s10950_s30 + $0xf4] ss:$8 sps:$4 sm:$0xff]   ;;  %s13169_s24 = scalar_lea.vmem [#allocation37], %s10937_s19 }
0x10d4   : > { %13109 = vst [vmem:[#allocation65_spill] sm:$0xff] %v11830_v15  ;;  %v8135_v56 = vcombine.high %v4275_v18, %v4279_v32  ;;  %v8132_v50 = vcombine.low %v4274_v52, %v4278_v9  ;;  %v8134_v37 = vcombine.low %v4275_v18, %v4279_v32  ;;  %v9130_v30 = vld [vmem:[%s10950_s30 + $0x124] ss:$8 sps:$4 sm:$0xff]   ;;  %v9137_v3 = vld [vmem:[%s10950_s30] ss:$8 sps:$4 sm:$0xff]   ;;  %s13170_s19 = sld [smem:[#allocation52_spill]] }
0x10d5   : > { %5155 = vmatpush2.bf16.msra.mxu1 %v8148_v31  ;;  %5208 = vmatpush2.bf16.msra.mxu0 %v8150_v4  ;;  %v11827_v14 = vadd.f32 %v11721_v8, %v4188_v40  ;;  %v11833_v39 = vadd.f32 %v11718_v43, %v4187_v36  ;;  %v8133_v43 = vcombine.high %v4274_v52, %v4278_v9  ;;  %v9134_v31 = vld [vmem:[%s10950_s30 + $0x110] ss:$8 sps:$4 sm:$0xff]   ;;  %v9139_v4 = vld [vmem:[%s10950_s30 + $0x4] ss:$8 sps:$4 sm:$0xff]   ;;  %v9140_v2 = vld [vmem:[%s10950_s30 + $0x100] ss:$8 sps:$4 sm:$0xff]  }
0x10d6   : > { %5156 = vmatprep.subr.bf16.mxu1 %v8141_v34  ;;  %5209 = vmatprep.subr.bf16.mxu0 %v8143_v45  ;;  %v9148_v34 = vld [vmem:[%s10950_s30 + $0x1f4] ss:$8 sps:$4 sm:$0xff]   ;;  %v9143_v45 = vld [vmem:[%s10950_s30 + $0xf0] ss:$8 sps:$4 sm:$0xff]   ;;  %v9151_v36 = vld [vmem:[%s10950_s30 + $0xe4] ss:$8 sps:$4 sm:$0xff]  }
0x10d7   : > { %13108 = vst [vmem:[#allocation64_spill] sm:$0xff] %v11827_v14  ;;  %13110 = vst [vmem:[#allocation66_spill] sm:$0xff] %v11833_v39  ;;  %v4340_v24 = vpack.c.bf16 %v11827_v14, %v11824_v46  ;;  %v4339_v8 = vpack.c.bf16 %v11833_v39, %v11830_v15  ;;  %v9146_v40 = vld [vmem:[%s10950_s30 + $0x1f0] ss:$8 sps:$4 sm:$0xff]   ;;  %v9154_v52 = vld [vmem:[%s10950_s30 + $0x1e4] ss:$8 sps:$4 sm:$0xff]  }
0x10d8   : > { %v9149_v9 = vld [vmem:[%s10950_s30 + $0xe0] ss:$8 sps:$4 sm:$0xff]   ;;  %v9157_v32 = vld [vmem:[%s10950_s30 + $0xd4] ss:$8 sps:$4 sm:$0xff]   ;;  %v9227_v46 = vld [vmem:[%s10950_s30 + $0x210] ss:$8 sps:$4 sm:$0xff]  }
0x10d9   : > { %5064 = vmatprep.mubr.bf16.mxu1 %v4340_v24  ;;  %5117 = vmatprep.mubr.bf16.mxu0 %v4340_v24  ;;  %v9152_v18 = vld [vmem:[%s10950_s30 + $0x1e0] ss:$8 sps:$4 sm:$0xff]  }
0x10da   : > { %5065 = vmatmul.mubr.bf16.gmra.mxu1 %v4339_v8  ;;  %5118 = vmatmul.mubr.bf16.gmra.mxu0 %v4339_v8  ;;  %p8320_p11 = scmp.ne.s32.totalorder %s13170_s19, 7 }
0x10db   : > { %5157 = vmatpush2.bf16.msra.mxu1 %v8140_v12  ;;  %5160 = vmatprep.mubr.bf16.mxu1 %v11747_v44  ;;  %v9158_v12 = vld [vmem:[%s10950_s30 + $0x1d0] ss:$8 sps:$4 sm:$0xff]   ;;  %s13171_s5 = sld [smem:[#allocation105_spill]] (!%p8320_p11) }
0x10dc   : > { %5210 = vmatpush2.bf16.msra.mxu0 %v8142_v23  ;;  %5213 = vmatprep.mubr.bf16.mxu0 %v11747_v44  ;;  %v9103_v44 = vld [vmem:[%s10950_s30 + $0x64] ss:$8 sps:$4 sm:$0xff]  }
0x10dd   : > { %5158 = vmatprep.subr.bf16.mxu1 %v8133_v43  ;;  %5211 = vmatprep.subr.bf16.mxu0 %v8135_v56  ;;  %v9163_v23 = vld [vmem:[%s10950_s30 + $0xc4] ss:$8 sps:$4 sm:$0xff]   ;;  %v9161_v56 = vld [vmem:[%s10950_s30 + $0xc0] ss:$8 sps:$4 sm:$0xff]  }
0x10de   : > { %v9166_v43 = vld [vmem:[%s10950_s30 + $0x1c4] ss:$8 sps:$4 sm:$0xff]  }
0x10df   : > { %5159 = vmatpush2.bf16.msra.mxu1 %v8132_v50  ;;  %v9164_v50 = vld [vmem:[%s10950_s30 + $0x1c0] ss:$8 sps:$4 sm:$0xff]  }
0x10e0   : > { %5212 = vmatpush2.bf16.msra.mxu0 %v8134_v37  ;;  %6862 = vmatprep.subr.bf16.mxu1 %v9097_v61  ;;  %v9169_v37 = vld [vmem:[%s10950_s30 + $0xb4] ss:$8 sps:$4 sm:$0xff]  }
0x10e1   : > { %6915 = vmatprep.subr.bf16.mxu0 %v9100_v29  ;;  %v9172_v61 = vld [vmem:[%s10950_s30 + $0x1b4] ss:$8 sps:$4 sm:$0xff]   ;;  %v9167_v29 = vld [vmem:[%s10950_s30 + $0xb0] ss:$8 sps:$4 sm:$0xff]  }
0x10e2   : > { %5161 = vmatmul.mubr.bf16.vlgmr.msra.gmra.mxu1 %v11751_v59 }
0x10e3   : > { %5214 = vmatmul.mubr.bf16.vlgmr.msra.gmra.mxu0 %v11751_v59  ;;  %5170 = vmatprep.mubr.bf16.mxu1 %v4340_v24  ;;  %v9109_v59 = vld [vmem:[%s10950_s30 + $0x54] ss:$8 sps:$4 sm:$0xff]  }
0x10e4   : > { %5223 = vmatprep.mubr.bf16.mxu0 %v4340_v24  ;;  %6863 = vmatpush1.bf16.msra.mxu1 %v9095_v0  ;;  %v9160_v24 = vld [vmem:[%s10950_s30 + $0x1d4] ss:$8 sps:$4 sm:$0xff]   ;;  %v9170_v0 = vld [vmem:[%s10950_s30 + $0x1b0] ss:$8 sps:$4 sm:$0xff]  }
0x10e5   : > { %6916 = vmatpush1.bf16.msra.mxu0 %v9098_v51  ;;  %6864 = vmatprep.subr.bf16.mxu1 %v9103_v44  ;;  %v9175_v51 = vld [vmem:[%s10950_s30 + $0xa4] ss:$8 sps:$4 sm:$0xff]  }
0x10e6   : > { %6917 = vmatprep.subr.bf16.mxu0 %v9106_v54  ;;  %v9178_v44 = vld [vmem:[%s10950_s30 + $0x1a4] ss:$8 sps:$4 sm:$0xff]   ;;  %v9173_v54 = vld [vmem:[%s10950_s30 + $0xa0] ss:$8 sps:$4 sm:$0xff]  }
0x10e8   : > { %6865 = vmatpush1.bf16.msra.mxu1 %v9101_v55  ;;  %v9176_v55 = vld [vmem:[%s10950_s30 + $0x1a0] ss:$8 sps:$4 sm:$0xff]  }
0x10e9   : > { %6918 = vmatpush1.bf16.msra.mxu0 %v9104_v5  ;;  %6866 = vmatprep.subr.bf16.mxu1 %v9109_v59  ;;  %v9181_v5 = vld [vmem:[%s10950_s30 + $0x94] ss:$8 sps:$4 sm:$0xff]  }
0x10ea   : > { %5171 = vmatmul.mubr.bf16.gmra.mxu1 %v4339_v8  ;;  %6919 = vmatprep.subr.bf16.mxu0 %v9112_v58  ;;  %v9184_v59 = vld [vmem:[%s10950_s30 + $0x194] ss:$8 sps:$4 sm:$0xff]   ;;  %v9179_v58 = vld [vmem:[%s10950_s30 + $0x90] ss:$8 sps:$4 sm:$0xff]  }
0x10eb   : > { %5224 = vmatmul.mubr.bf16.gmra.mxu0 %v4339_v8  ;;  %v9155_v8 = vld [vmem:[%s10950_s30 + $0xd0] ss:$8 sps:$4 sm:$0xff]  }
0x10ec   : > { %6867 = vmatpush1.bf16.msra.mxu1 %v9107_v20  ;;  %v9182_v20 = vld [vmem:[%s10950_s30 + $0x190] ss:$8 sps:$4 sm:$0xff]  }
0x10ed   : > { %6920 = vmatpush1.bf16.msra.mxu0 %v9110_v13  ;;  %6868 = vmatprep.subr.bf16.mxu1 %v9115_v49  ;;  %v9187_v13 = vld [vmem:[%s10950_s30 + $0x84] ss:$8 sps:$4 sm:$0xff]  }
0x10ee   : > { %6921 = vmatprep.subr.bf16.mxu0 %v9118_v63  ;;  %v9190_v49 = vld [vmem:[%s10950_s30 + $0x184] ss:$8 sps:$4 sm:$0xff]   ;;  %v9185_v63 = vld [vmem:[%s10950_s30 + $0x80] ss:$8 sps:$4 sm:$0xff]  }
0x10f0   : > { %6869 = vmatpush1.bf16.msra.mxu1 %v9113_v17  ;;  %v9188_v17 = vld [vmem:[%s10950_s30 + $0x180] ss:$8 sps:$4 sm:$0xff]  }
0x10f1   : > { %6922 = vmatpush1.bf16.msra.mxu0 %v9116_v28  ;;  %6870 = vmatprep.subr.bf16.mxu1 %v9121_v47  ;;  %v9193_v28 = vld [vmem:[%s10950_s30 + $0x274] ss:$8 sps:$4 sm:$0xff]  }
0x10f2   : > { %6923 = vmatprep.subr.bf16.mxu0 %v9124_v48  ;;  %v9196_v47 = vld [vmem:[%s10950_s30 + $0x374] ss:$8 sps:$4 sm:$0xff]  }
0x10f3   : > { %v11914_v48 = vld [vmem:[%s10947_s2] sm:$0xff] }
0x10f4   : > { %6871 = vmatpush1.bf16.msra.mxu1 %v9119_v62  ;;  %v11918_v62 = vrot.slane %v11914_v48, %v11103_v27 }
0x10f5   : > { %6924 = vmatpush1.bf16.msra.mxu0 %v9122_v1  ;;  %6872 = vmatprep.subr.bf16.mxu1 %v9127_v60  ;;  %v11923_v1 = vrot.slane %v11914_v48, %v2073_v33 }
0x10f6   : > { %6925 = vmatprep.subr.bf16.mxu0 %v9130_v30 }
0x10f8   : > { %6873 = vmatpush1.bf16.msra.mxu1 %v9125_v6  ;;  %v11927_v6 = vrot.slane %v11914_v48, %v11324_v57 }
0x10f9   : > { %6926 = vmatpush1.bf16.msra.mxu0 %v9128_v7  ;;  %6874 = vmatprep.subr.bf16.mxu1 %v9133_v26  ;;  %v11932_v7 = vrot.slane %v11914_v48, %v2077_v22 }
0x10fa   : > { %6927 = vmatprep.subr.bf16.mxu0 %v9136_v16 }
0x10fc   : > { %6875 = vmatpush1.bf16.msra.mxu1 %v9131_v21 }
0x10fd   : > { %6928 = vmatpush1.bf16.msra.mxu0 %v9134_v31  ;;  %6876 = vmatprep.subr.bf16.mxu1 %v9139_v4 }
0x10fe   : > { %6929 = vmatprep.subr.bf16.mxu0 %v9142_v35 }
0x1100   : > { %6877 = vmatpush1.bf16.msra.mxu1 %v9137_v3 }
0x1101   : > { %6930 = vmatpush1.bf16.msra.mxu0 %v9140_v2  ;;  %6878 = vmatprep.subr.bf16.mxu1 %v9145_v41 }
0x1102   : > { %6931 = vmatprep.subr.bf16.mxu0 %v9148_v34 }
0x1104   : > { %6879 = vmatpush2.bf16.msra.mxu1 %v9143_v45 }
0x1105   : > { %6932 = vmatpush2.bf16.msra.mxu0 %v9146_v40  ;;  %6880 = vmatprep.subr.bf16.mxu1 %v9151_v36 }
0x1106   : > { %6933 = vmatprep.subr.bf16.mxu0 %v9154_v52 }
0x1108   : > { %6881 = vmatpush2.bf16.msra.mxu1 %v9149_v9 }
0x1109   : > { %6934 = vmatpush2.bf16.msra.mxu0 %v9152_v18  ;;  %6882 = vmatprep.subr.bf16.mxu1 %v9157_v32 }
0x110a   : > { %6935 = vmatprep.subr.bf16.mxu0 %v9160_v24 }
0x110c   : > { %6883 = vmatpush2.bf16.msra.mxu1 %v9155_v8 }
0x110d   : > { %6936 = vmatpush2.bf16.msra.mxu0 %v9158_v12  ;;  %6884 = vmatprep.subr.bf16.mxu1 %v9163_v23 }
0x110e   : > { %6937 = vmatprep.subr.bf16.mxu0 %v9166_v43 }
0x1110   : > { %6885 = vmatpush2.bf16.msra.mxu1 %v9161_v56 }
0x1111   : > { %6938 = vmatpush2.bf16.msra.mxu0 %v9164_v50  ;;  %6886 = vmatprep.subr.bf16.mxu1 %v9169_v37 }
0x1112   : > { %6939 = vmatprep.subr.bf16.mxu0 %v9172_v61 }
0x1114   : > { %6887 = vmatpush2.bf16.msra.mxu1 %v9167_v29 }
0x1115   : > { %6940 = vmatpush2.bf16.msra.mxu0 %v9170_v0  ;;  %6888 = vmatprep.subr.bf16.mxu1 %v9175_v51 }
0x1116   : > { %6941 = vmatprep.subr.bf16.mxu0 %v9178_v44 }
0x1118   : > { %6889 = vmatpush2.bf16.msra.mxu1 %v9173_v54 }
0x1119   : > { %6942 = vmatpush2.bf16.msra.mxu0 %v9176_v55  ;;  %6890 = vmatprep.subr.bf16.mxu1 %v9181_v5 }
0x111a   : > { %6943 = vmatprep.subr.bf16.mxu0 %v9184_v59 }
0x111c   : > { %6891 = vmatpush2.bf16.msra.mxu1 %v9179_v58 }
0x111d   : > { %6944 = vmatpush2.bf16.msra.mxu0 %v9182_v20  ;;  %6892 = vmatprep.subr.bf16.mxu1 %v9187_v13 }
0x111e   : > { %6945 = vmatprep.subr.bf16.mxu0 %v9190_v49 }
0x1120   : > { %6893 = vmatpush2.bf16.msra.mxu1 %v9185_v63 }
0x1121   : > { %6946 = vmatpush2.bf16.msra.mxu0 %v9188_v17  ;;  %6968 = vmatprep.subr.bf16.mxu1 %v9193_v28 }
0x1122   : > { %7021 = vmatprep.subr.bf16.mxu0 %v9196_v47 }
0x1160   : > { %v5056_v60 = vpop.f32.mrf.mxu1  ;;  %v5109_v30 = vpop.f32.mrf.mxu0 }
0x1161   : > { %v11935_v26 = vadd.f32 %v5056_v60, %v11918_v62  ;;  %v11938_v16 = vadd.f32 %v5109_v30, %v11923_v1 }
0x1162   : > { %v5058_v21 = vpop.f32.mrf.mxu1  ;;  %v5111_v33 = vpop.f32.mrf.mxu0 }
0x1163   : > { %v11941_v31 = vmul.f32 0.70710677, %v11935_v26  ;;  %v11944_v4 = vmul.f32 0.70710677, %v11938_v16  ;;  %v11947_v35 = vadd.f32 %v5058_v21, %v11927_v6  ;;  %v11950_v22 = vadd.f32 %v5111_v33, %v11932_v7 }
0x1164   : > { %v5060_v36 = vpop.f32.mrf.mxu1  ;;  %v5113_v23 = vpop.f32.mrf.mxu0 }
0x1165   : > { %v5298_v3 = vand.u32 2147483647, %v11941_v31  ;;  %v5300_v2 = vand.u32 2147483647, %v11944_v4  ;;  %v11955_v41 = vmul.f32 0.70710677, %v11947_v35  ;;  %v11963_v12 = vadd.f32 %v5060_v36, %v11918_v62 }
0x1166   : > { %v11958_v34 = vmul.f32 0.70710677, %v11950_v22  ;;  %v5062_v43 = vpop.f32.mrf.mxu1  ;;  %v11969_v61 = vadd.f32 %v5113_v23, %v11923_v1  ;;  %v5115_v51 = vpop.f32.mrf.mxu0  ;;  %vm5906_vm9 = vcmp.ge.f32.partialorder %v11941_v31, 0.0  ;;  %vm5908_vm13 = vcmp.ge.f32.partialorder %v11944_v4, 0.0 }
0x1167   : > { %v5330_v45 = vmul.f32 0.3275911, %v5298_v3  ;;  %v5332_v40 = vmul.f32 0.3275911, %v5300_v2  ;;  %v5299_v52 = vand.u32 2147483647, %v11955_v41  ;;  %v11972_v29 = vadd.f32 %v5062_v43, %v11927_v6 }
0x1168   : > { %v5301_v9 = vand.u32 2147483647, %v11958_v34  ;;  %v11966_v37 = vmul.f32 0.70710677, %v11963_v12  ;;  %v11976_v44 = vmul.f32 0.70710677, %v11969_v61  ;;  %v11983_v59 = vadd.f32 %v5115_v51, %v11932_v7 }
0x1169   : > { %v5362_v18 = vadd.f32 1.0, %v5330_v45  ;;  %v5364_v32 = vadd.f32 1.0, %v5332_v40  ;;  %v5331_v24 = vmul.f32 0.3275911, %v5299_v52  ;;  %v11979_v55 = vmul.f32 0.70710677, %v11972_v29 }
0x116a   : > { %v5333_v8 = vmul.f32 0.3275911, %v5301_v9  ;;  %v5306_v0 = vand.u32 2147483647, %v11966_v37  ;;  %v5308_v5 = vand.u32 2147483647, %v11976_v44 }
0x116b   : > { %9359 = vrcp.f32 %v5362_v18  ;;  %v5363_v56 = vadd.f32 1.0, %v5331_v24  ;;  %v5714_v58 = vsub.f32 0.0, %v5298_v3  ;;  %v5307_v13 = vand.u32 2147483647, %v11979_v55 }
0x116c   : > { %9361 = vrcp.f32 %v5364_v32  ;;  %v5365_v50 = vadd.f32 1.0, %v5333_v8  ;;  %v5338_v54 = vmul.f32 0.3275911, %v5306_v0  ;;  %v5340_v49 = vmul.f32 0.3275911, %v5308_v5 }
0x116d   : > { %9363 = vrcp.f32 %v5363_v56  ;;  %v11987_v63 = vmul.f32 0.70710677, %v11983_v59  ;;  %v5716_v17 = vsub.f32 0.0, %v5300_v2  ;;  %v5339_v28 = vmul.f32 0.3275911, %v5307_v13 }
0x116e   : > { %9365 = vrcp.f32 %v5365_v50  ;;  %v5370_v20 = vadd.f32 1.0, %v5338_v54  ;;  %v5715_v47 = vsub.f32 0.0, %v5299_v52  ;;  %v5372_v60 = vadd.f32 1.0, %v5340_v49 }
0x116f   : > { %v11990_v30 = vand.u32 2147483647, %v11987_v63  ;;  %v5746_v21 = vmul.f32 %v5714_v58, %v5298_v3  ;;  %v5371_v33 = vadd.f32 1.0, %v5339_v28  ;;  %v5717_v40 = vsub.f32 0.0, %v5301_v9 }
0x1170   : > { %9367 = vrcp.f32 %v5370_v20  ;;  %v5748_v24 = vmul.f32 %v5716_v17, %v5300_v2  ;;  %v5747_v23 = vmul.f32 %v5715_v47, %v5299_v52  ;;  %v5722_v43 = vsub.f32 0.0, %v5306_v0 }
0x1171   : > { %9369 = vrcp.f32 %v5372_v60  ;;  %v5341_v36 = vmul.f32 0.3275911, %v11990_v30  ;;  %v5778_v3 = vmul.f32 1.442695, %v5746_v21  ;;  %v5749_v58 = vmul.f32 %v5717_v40, %v5301_v9 }
0x1172   : > { %9371 = vrcp.f32 %v5371_v33  ;;  %v5724_v20 = vsub.f32 0.0, %v5308_v5  ;;  %v5782_v28 = vmul.f32 1.442695, %v5748_v24  ;;  %v5780_v52 = vmul.f32 1.442695, %v5747_v23 }
0x1173   : > { %v5373_v56 = vadd.f32 1.0, %v5341_v36  ;;  %v5754_v47 = vmul.f32 %v5722_v43, %v5306_v0  ;;  %v5723_v33 = vsub.f32 0.0, %v5307_v13  ;;  %v5784_v9 = vmul.f32 1.442695, %v5749_v58 }
0x1174   : > { %v5756_v40 = vmul.f32 %v5724_v20, %v5308_v5  ;;  %v5725_v5 = vsub.f32 0.0, %v11990_v30  ;;  %vm5907_vm10 = vcmp.ge.f32.partialorder %v11955_v41, 0.0  ;;  %vm5914_vm11 = vcmp.ge.f32.partialorder %v11966_v37, 0.0 }
0x1175   : > { %9373 = vrcp.f32 %v5373_v56  ;;  %v5794_v23 = vmul.f32 1.442695, %v5754_v47  ;;  %vm5909_vm12 = vcmp.ge.f32.partialorder %v11958_v34, 0.0  ;;  %vm5916_vm14 = vcmp.ge.f32.partialorder %v11976_v44, 0.0 }
0x1176   : > { %9375 = vpow2.f32 %v5778_v3  ;;  %v5798_v3 = vmul.f32 1.442695, %v5756_v40  ;;  %vm5915_vm15 = vcmp.ge.f32.partialorder %v11979_v55, 0.0  ;;  %vm5917_vm0 = vcmp.ge.f32.partialorder %v11987_v63, 0.0 }
0x1177   : > { %9377 = vpow2.f32 %v5782_v28 }
0x1178   : > { %v11992_v45 = vpop.eup %9359  ;;  %9379 = vpow2.f32 %v5780_v52 }
0x1179   : > { %v11995_v18 = vpop.eup %9361  ;;  %v5426_v32 = vmul.f32 1.0614054, %v11992_v45  ;;  %9381 = vpow2.f32 %v5784_v9 }
0x117a   : > { %v5428_v8 = vmul.f32 1.0614054, %v11995_v18  ;;  %v11999_v51 = vpop.eup %9363  ;;  %9383 = vpow2.f32 %v5794_v23 }
0x117b   : > { %v5458_v50 = vadd.f32 -1.4531521, %v5426_v32  ;;  %v5427_v60 = vmul.f32 1.0614054, %v11999_v51  ;;  %v12003_v2 = vpop.eup %9365  ;;  %9385 = vpow2.f32 %v5798_v3 }
0x117c   : > { %v5460_v54 = vadd.f32 -1.4531521, %v5428_v8  ;;  %v5429_v32 = vmul.f32 1.0614054, %v12003_v2 }
0x117d   : > { %v5490_v49 = vmul.f32 %v11992_v45, %v5458_v50  ;;  %v5459_v21 = vadd.f32 -1.4531521, %v5427_v60  ;;  %v12008_v50 = vpop.eup %9367 }
0x117e   : > { %v5492_v17 = vmul.f32 %v11995_v18, %v5460_v54  ;;  %v5461_v56 = vadd.f32 -1.4531521, %v5429_v32  ;;  %v5434_v54 = vmul.f32 1.0614054, %v12008_v50  ;;  %v12014_v58 = vpop.eup %9369 }
0x117f   : > { %v5522_v36 = vadd.f32 1.4214138, %v5490_v49  ;;  %v5491_v24 = vmul.f32 %v11999_v51, %v5459_v21  ;;  %v5755_v49 = vmul.f32 %v5723_v33, %v5307_v13  ;;  %v12018_v52 = vpop.eup %9371 }
0x1180   : > { %v5524_v8 = vadd.f32 1.4214138, %v5492_v17  ;;  %v5493_v43 = vmul.f32 %v12003_v2, %v5461_v56  ;;  %v5466_v17 = vadd.f32 -1.4531521, %v5434_v54  ;;  %v5435_v40 = vmul.f32 1.0614054, %v12018_v52 }
0x1181   : > { %v5554_v38 = vmul.f32 %v11992_v45, %v5522_v36  ;;  %v5523_v0 = vadd.f32 1.4214138, %v5491_v24  ;;  %v5436_v36 = vmul.f32 1.0614054, %v12014_v58  ;;  %v5796_v32 = vmul.f32 1.442695, %v5755_v49 }
0x1182   : > { %v5556_v20 = vmul.f32 %v11995_v18, %v5524_v8  ;;  %v5525_v60 = vadd.f32 1.4214138, %v5493_v43  ;;  %v5498_v33 = vmul.f32 %v12008_v50, %v5466_v17  ;;  %v12024_v8 = vpop.eup %9373  ;;  %v5467_v54 = vadd.f32 -1.4531521, %v5435_v40 }
0x1183   : > { %v5555_v28 = vmul.f32 %v11999_v51, %v5523_v0  ;;  %v5586_v47 = vadd.f32 -0.28449672, %v5554_v38  ;;  %v5468_v9 = vadd.f32 -1.4531521, %v5436_v36  ;;  %v5757_v38 = vmul.f32 %v5725_v5, %v11990_v30 }
0x1184   : > { %v5557_v13 = vmul.f32 %v12003_v2, %v5525_v60  ;;  %v5588_v24 = vadd.f32 -0.28449672, %v5556_v20  ;;  %v5530_v0 = vadd.f32 1.4214138, %v5498_v33  ;;  %9387 = vpow2.f32 %v5796_v32 }
0x1185   : > { %v5587_v21 = vadd.f32 -0.28449672, %v5555_v28  ;;  %v5618_v23 = vmul.f32 %v11992_v45, %v5586_v47  ;;  %v5500_v43 = vmul.f32 %v12014_v58, %v5468_v9  ;;  %v5437_v28 = vmul.f32 1.0614054, %v12024_v8 }
0x1186   : > { %v5589_v56 = vadd.f32 -0.28449672, %v5557_v13  ;;  %v5562_v3 = vmul.f32 %v12008_v50, %v5530_v0  ;;  %v5499_v20 = vmul.f32 %v12018_v52, %v5467_v54  ;;  %v9376_v13 = vpop.eup %9375  ;;  %v5620_v30 = vmul.f32 %v11995_v18, %v5588_v24 }
0x1187   : > { %v5619_v49 = vmul.f32 %v11999_v51, %v5587_v21  ;;  %v5532_v17 = vadd.f32 1.4214138, %v5500_v43  ;;  %v5469_v36 = vadd.f32 -1.4531521, %v5437_v28  ;;  %v5800_v47 = vmul.f32 1.442695, %v5757_v38  ;;  %v9378_v33 = vpop.eup %9377 }
0x1188   : > { %v5621_v60 = vmul.f32 %v12003_v2, %v5589_v56  ;;  %v5594_v5 = vadd.f32 -0.28449672, %v5562_v3  ;;  %v5650_v9 = vadd.f32 0.2548296, %v5618_v23  ;;  %v5531_v10 = vadd.f32 1.4214138, %v5499_v20  ;;  %v9380_v0 = vpop.eup %9379 }
0x1189   : > { %v5564_v40 = vmul.f32 %v12014_v58, %v5532_v17  ;;  %v5501_v21 = vmul.f32 %v12024_v8, %v5469_v36  ;;  %v5651_v32 = vadd.f32 0.2548296, %v5619_v49  ;;  %v9382_v39 = vpop.eup %9381  ;;  %v5652_v24 = vadd.f32 0.2548296, %v5620_v30 }
0x118a   : > { %v5626_v56 = vmul.f32 %v12008_v50, %v5594_v5  ;;  %v5653_v43 = vadd.f32 0.2548296, %v5621_v60  ;;  %v5563_v54 = vmul.f32 %v12018_v52, %v5531_v10  ;;  %9389 = vpow2.f32 %v5800_v47  ;;  %v9384_v20 = vpop.eup %9383 }
0x118b   : > { %v5596_v14 = vadd.f32 -0.28449672, %v5564_v40  ;;  %v5533_v28 = vadd.f32 1.4214138, %v5501_v21  ;;  %v5682_v38 = vmul.f32 %v11992_v45, %v5650_v9  ;;  %v5683_v36 = vmul.f32 %v11999_v51, %v5651_v32  ;;  %v9386_v30 = vpop.eup %9385 }
0x118c   : > { %v5658_v3 = vadd.f32 0.2548296, %v5626_v56  ;;  %v5595_v17 = vadd.f32 -0.28449672, %v5563_v54  ;;  %v5685_v60 = vmul.f32 %v12003_v2, %v5653_v43  ;;  %v5684_v47 = vmul.f32 %v11995_v18, %v5652_v24 }
0x118d   : > { %v5628_v23 = vmul.f32 %v12014_v58, %v5596_v14  ;;  %v5565_v40 = vmul.f32 %v12024_v8, %v5533_v28  ;;  %v5842_v45 = vmul.f32 %v9376_v13, %v5682_v38  ;;  %v12049_v51 = vmul.f32 0.5, %v11935_v26 }
0x118e   : > { %v5690_v49 = vmul.f32 %v12008_v50, %v5658_v3  ;;  %v5627_v10 = vmul.f32 %v12018_v52, %v5595_v17  ;;  %v5843_v50 = vmul.f32 %v9380_v0, %v5683_v36  ;;  %v12052_v2 = vmul.f32 0.5, %v11947_v35 }
0x118f   : > { %v5660_v5 = vadd.f32 0.2548296, %v5628_v23  ;;  %v5597_v56 = vadd.f32 -0.28449672, %v5565_v40  ;;  %v5845_v43 = vmul.f32 %v9382_v39, %v5685_v60  ;;  %v12057_v18 = vmul.f32 0.5, %v11950_v22 }
0x1190   : > { %v5850_v21 = vmul.f32 %v9384_v20, %v5690_v49  ;;  %v5659_v9 = vadd.f32 0.2548296, %v5627_v10  ;;  %v5874_v0 = vsub.f32 1.0, %v5842_v45  ;;  %v5844_v24 = vmul.f32 %v9378_v33, %v5684_v47 }
0x1191   : > { %v5692_v14 = vmul.f32 %v12014_v58, %v5660_v5  ;;  %v9388_v32 = vpop.eup %9387  ;;  %v12060_v58 = vmul.f32 0.5, %v11963_v12  ;;  %v5629_v26 = vmul.f32 %v12024_v8, %v5597_v56  ;;  %v5875_v3 = vsub.f32 1.0, %v5843_v50 }
0x1192   : > { %v5691_v28 = vmul.f32 %v12018_v52, %v5659_v9  ;;  %v5882_v13 = vsub.f32 1.0, %v5850_v21  ;;  %v5877_v23 = vsub.f32 1.0, %v5845_v43  ;;  %v12073_v33 = vmul.f32 0.5, %v11969_v61 }
0x1193   : > { %v5852_v54 = vmul.f32 %v9386_v30, %v5692_v14  ;;  %v5661_v22 = vadd.f32 0.2548296, %v5629_v26  ;;  %v5243_v49 = vmul.f32 0.5, %v11972_v29  ;;  %v5938_v40 = vsub.f32 0.0, %v5874_v0 }
0x1194   : > { %v5851_v39 = vmul.f32 %v9388_v32, %v5691_v28  ;;  %v5946_v36 = vsub.f32 0.0, %v5882_v13  ;;  %v5876_v30 = vsub.f32 1.0, %v5844_v24  ;;  %v5939_v61 = vsub.f32 0.0, %v5875_v3 }
0x1195   : > { %v5884_v17 = vsub.f32 1.0, %v5852_v54  ;;  %v5693_v60 = vmul.f32 %v12024_v8, %v5661_v22  ;;  %v5941_v9 = vsub.f32 0.0, %v5877_v23  ;;  %v5970_v28 = vsel %vm5906_vm9, %v5874_v0, %v5938_v40 }
0x1196   : > { %v5883_v20 = vsub.f32 1.0, %v5851_v39  ;;  %v5978_v50 = vsel %vm5914_vm11, %v5882_v13, %v5946_v36  ;;  %v5940_v26 = vsub.f32 0.0, %v5876_v30  ;;  %v5971_v39 = vsel %vm5907_vm10, %v5875_v3, %v5939_v61 }
0x1197   : > { %v9390_v10 = vpop.eup %9389  ;;  %v5948_v8 = vsub.f32 0.0, %v5884_v17  ;;  %v6010_v22 = vadd.f32 1.0, %v5978_v50  ;;  %v6002_v36 = vadd.f32 1.0, %v5970_v28  ;;  %v6003_v34 = vadd.f32 1.0, %v5971_v39  ;;  %v9191_v39 = vld [vmem:[%s10950_s30 + $0x270] ss:$8 sps:$4 sm:$0xff]  }
0x1198   : > { %v5947_v47 = vsub.f32 0.0, %v5883_v20  ;;  %v5853_v45 = vmul.f32 %v9390_v10, %v5693_v60  ;;  %v5972_v60 = vsel %vm5908_vm13, %v5876_v30, %v5940_v26  ;;  %v5236_v28 = vmul.f32 0.5, %v11938_v16 }
0x1199   : > { %v5980_v31 = vsel %vm5916_vm14, %v5884_v17, %v5948_v8  ;;  %v6042_v4 = vmul.f32 %v6010_v22, %v12060_v58  ;;  %v6034_v50 = vmul.f32 %v6002_v36, %v12049_v51  ;;  %v9202_v36 = vld [vmem:[%s10950_s30 + $0x364] ss:$8 sps:$4 sm:$0xff]  }
0x119a   : > { %v5066_v35 = vpop.f32.mrf.mxu1  ;;  %v5119_v52 = vpop.f32.mrf.mxu0  ;;  %v5979_v32 = vsel %vm5915_vm15, %v5883_v20, %v5947_v47  ;;  %v5885_v43 = vsub.f32 1.0, %v5853_v45  ;;  %v6012_v45 = vadd.f32 1.0, %v5980_v31 }
0x119b   : > { %v12067_v38 = vadd.f32 %v5066_v35, %v11918_v62  ;;  %v12070_v12 = vadd.f32 %v5119_v52, %v11923_v1  ;;  %v5973_v52 = vsel %vm5909_vm12, %v5877_v23, %v5941_v9  ;;  %v6011_v0 = vadd.f32 1.0, %v5979_v32 }
0x119c   : > { %v5068_v29 = vpop.f32.mrf.mxu1  ;;  %v5121_v55 = vpop.f32.mrf.mxu0  ;;  %v5949_v35 = vsub.f32 0.0, %v5885_v43  ;;  %v5245_v23 = vmul.f32 0.5, %v11983_v59  ;;  %v6005_v61 = vadd.f32 1.0, %v5973_v52  ;;  %v6004_v32 = vadd.f32 1.0, %v5972_v60 }
0x119d   : > { %v12079_v5 = vmul.f32 0.70710677, %v12067_v38  ;;  %v12082_v21 = vmul.f32 0.70710677, %v12070_v12  ;;  %v12099_v24 = vadd.f32 %v5068_v29, %v11927_v6  ;;  %v12112_v41 = vadd.f32 %v5121_v55, %v11932_v7 }
0x119e   : > { %v5981_v63 = vsel %vm5917_vm0, %v5885_v43, %v5949_v35  ;;  %v5070_v3 = vpop.f32.mrf.mxu1  ;;  %v5123_v10 = vpop.f32.mrf.mxu0  ;;  %v6043_v29 = vmul.f32 %v6011_v0, %v5243_v49  ;;  %v6035_v49 = vmul.f32 %v6003_v34, %v12052_v2  ;;  %v6044_v26 = vmul.f32 %v6012_v45, %v12073_v33 }
0x119f   : > { %v12086_v14 = vand.u32 2147483647, %v12079_v5  ;;  %v12090_v56 = vand.u32 2147483647, %v12082_v21  ;;  %v12109_v20 = vmul.f32 0.70710677, %v12099_v24  ;;  %v12124_v9 = vadd.f32 %v5070_v3, %v11918_v62 }
0x11a0   : > { %v6013_v44 = vadd.f32 1.0, %v5981_v63  ;;  %v12121_v47 = vmul.f32 0.70710677, %v12112_v41  ;;  %v12132_v8 = vadd.f32 %v5123_v10, %v11923_v1  ;;  %v6196_v51 = vpack.c.bf16 %v6043_v29, %v6035_v49  ;;  %v5072_v55 = vpop.f32.mrf.mxu1  ;;  %v5125_v63 = vpop.f32.mrf.mxu0  ;;  %v9197_v3 = vld [vmem:[%s10950_s30 + $0x260] ss:$8 sps:$4 sm:$0xff]  }
0x11a1   : > { %v5346_v54 = vmul.f32 0.3275911, %v12086_v14  ;;  %v5348_v13 = vmul.f32 0.3275911, %v12090_v56  ;;  %v12118_v40 = vand.u32 2147483647, %v12109_v20  ;;  %v6037_v2 = vmul.f32 %v6005_v61, %v12057_v18 }
0x11a2   : > { %v12129_v59 = vand.u32 2147483647, %v12121_v47  ;;  %v12137_v62 = vmul.f32 0.70710677, %v12124_v9  ;;  %v6045_v43 = vmul.f32 %v6013_v44, %v5245_v23  ;;  %v6195_v35 = vpack.c.bf16 %v6042_v4, %v6034_v50  ;;  %6894 = vmatprep.mubr.bf16.mxu1 %v6196_v51  ;;  %v9194_v18 = vld [vmem:[%s10950_s30 + $0x370] ss:$8 sps:$4 sm:$0xff]   ;;  %v5162_v4 = vpop.f32.mrf.mxu1 }
0x11a3   : > { %v5378_v37 = vadd.f32 1.0, %v5346_v54  ;;  %v5380_v17 = vadd.f32 1.0, %v5348_v13  ;;  %v5347_v30 = vmul.f32 0.3275911, %v12118_v40  ;;  %v9199_v13 = vld [vmem:[%s10950_s30 + $0x264] ss:$8 sps:$4 sm:$0xff]   ;;  %v6036_v52 = vmul.f32 %v6004_v32, %v5236_v28 }
0x11a4   : > { %v5349_v54 = vmul.f32 0.3275911, %v12129_v59  ;;  %v12143_v1 = vand.u32 2147483647, %v12137_v62  ;;  %v6198_v22 = vpack.c.bf16 %v6045_v43, %v6037_v2  ;;  %6895 = vmatmul.mubr.bf16.vlgmr.msra.gmra.mxu1 %v6195_v35  ;;  %v12153_v31 = vadd.f32 %v5072_v55, %v11927_v6  ;;  %v9205_v6 = vld [vmem:[%s10950_s30 + $0x254] ss:$8 sps:$4 sm:$0xff]  }
0x11a5   : > { %9391 = vrcp.f32 %v5378_v37  ;;  %v5379_v58 = vadd.f32 1.0, %v5347_v30  ;;  %v12148_v37 = vmul.f32 0.70710677, %v12132_v8  ;;  %v6197_v0 = vpack.c.bf16 %v6044_v26, %v6036_v52  ;;  %6969 = vmatpush1.bf16.msra.mxu1 %v9191_v39  ;;  %v9200_v29 = vld [vmem:[%s10950_s30 + $0x360] ss:$8 sps:$4 sm:$0xff]  }
0x11a6   : > { %9393 = vrcp.f32 %v5380_v17  ;;  %v5354_v16 = vmul.f32 0.3275911, %v12143_v1  ;;  %v5381_v33 = vadd.f32 1.0, %v5349_v54  ;;  %6947 = vmatprep.mubr.bf16.mxu0 %v6198_v22  ;;  %v12162_v34 = vmul.f32 0.70710677, %v12153_v31  ;;  %6970 = vmatprep.subr.bf16.mxu1 %v9199_v13 }
0x11a7   : > { %9395 = vrcp.f32 %v5379_v58  ;;  %v12159_v60 = vand.u32 2147483647, %v12148_v37  ;;  %6948 = vmatmul.mubr.bf16.vlgmr.msra.gmra.mxu0 %v6197_v0  ;;  %v12169_v17 = vadd.f32 %v5125_v63, %v11932_v7  ;;  %v13111_v61 = vsub.s32 4, %v11100_v25  ;;  %v9203_v30 = vld [vmem:[%s10950_s30 + $0x250] ss:$8 sps:$4 sm:$0xff]  }
0x11a8   : > { %v5386_v10 = vadd.f32 1.0, %v5354_v16  ;;  %9397 = vrcp.f32 %v5381_v33  ;;  %7022 = vmatpush1.bf16.msra.mxu0 %v9194_v18  ;;  %v9208_v50 = vld [vmem:[%s10950_s30 + $0x354] ss:$8 sps:$4 sm:$0xff]   ;;  %v9211_v32 = vld [vmem:[%s10950_s30 + $0x244] ss:$8 sps:$4 sm:$0xff]   ;;  %v5730_v2 = vsub.f32 0.0, %v12086_v14 }
0x11a9   : > { %v12174_v45 = vrot.slane %v11914_v48, %v13111_v61  ;;  %7023 = vmatprep.subr.bf16.mxu0 %v9202_v36  ;;  %6971 = vmatpush1.bf16.msra.mxu1 %v9197_v3  ;;  %v5356_v7 = vmul.f32 0.3275911, %v12159_v60  ;;  %v12182_v43 = vand.u32 2147483647, %v12162_v34  ;;  %v12185_v58 = vmul.f32 0.70710677, %v12169_v17 }
0x11aa   : > { %6972 = vmatprep.subr.bf16.mxu1 %v9205_v6  ;;  %9399 = vrcp.f32 %v5386_v10  ;;  %v9206_v28 = vld [vmem:[%s10950_s30 + $0x350] ss:$8 sps:$4 sm:$0xff]   ;;  %v9209_v51 = vld [vmem:[%s10950_s30 + $0x240] ss:$8 sps:$4 sm:$0xff]   ;;  %v9214_v55 = vld [vmem:[%s10950_s30 + $0x344] ss:$8 sps:$4 sm:$0xff]  }
0x11ab   : > { %v12188_v54 = vadd.f32 %v5162_v4, %v12174_v45  ;;  %v5388_v35 = vadd.f32 1.0, %v5356_v7  ;;  %v5355_v13 = vmul.f32 0.3275911, %v12182_v43  ;;  %v9217_v52 = vld [vmem:[%s10950_s30 + $0x234] ss:$8 sps:$4 sm:$0xff]   ;;  %v5732_v63 = vsub.f32 0.0, %v12090_v56 }
0x11ac   : > { %7024 = vmatpush1.bf16.msra.mxu0 %v9200_v29  ;;  %v12204_v22 = vand.u32 2147483647, %v12185_v58  ;;  %v9212_v18 = vld [vmem:[%s10950_s30 + $0x340] ss:$8 sps:$4 sm:$0xff]   ;;  %v4368_v3 = vsub.s32 6, %v11100_v25  ;;  %vm5922_vm1 = vcmp.ge.f32.partialorder %v12079_v5, 0.0 }
0x11ad   : > { %7025 = vmatprep.subr.bf16.mxu0 %v9208_v50  ;;  %6973 = vmatpush1.bf16.msra.mxu1 %v9203_v30  ;;  %v12200_v16 = vmul.f32 0.70710677, %v12188_v54  ;;  %v9215_v36 = vld [vmem:[%s10950_s30 + $0x230] ss:$8 sps:$4 sm:$0xff]   ;;  %v9220_v6 = vld [vmem:[%s10950_s30 + $0x334] ss:$8 sps:$4 sm:$0xff]   ;;  %9401 = vrcp.f32 %v5388_v35 }
0x11ae   : > { %6974 = vmatprep.subr.bf16.mxu1 %v9211_v32  ;;  %v5387_v61 = vadd.f32 1.0, %v5355_v13  ;;  %v9223_v29 = vld [vmem:[%s10950_s30 + $0x224] ss:$8 sps:$4 sm:$0xff]   ;;  %v9218_v30 = vld [vmem:[%s10950_s30 + $0x330] ss:$8 sps:$4 sm:$0xff]   ;;  %v5764_v13 = vmul.f32 %v5732_v63, %v12090_v56  ;;  %vm5924_vm2 = vcmp.ge.f32.partialorder %v12082_v21, 0.0 }
0x11af   : > { %v12216_v4 = vand.u32 2147483647, %v12200_v16  ;;  %v9283_v5 = vld [vmem:[%s10950_s30 + $0x284] ss:$8 sps:$4 sm:$0xff]   ;;  %vm5923_vm3 = vcmp.ge.f32.partialorder %v12109_v20, 0.0  ;;  %vm5925_vm4 = vcmp.ge.f32.partialorder %v12121_v47, 0.0 }
0x11b0   : > { %7026 = vmatpush1.bf16.msra.mxu0 %v9206_v28  ;;  %v12227_v28 = vrot.slane %v11914_v48, %v4368_v3  ;;  %9403 = vrcp.f32 %v5387_v61  ;;  %v12244_v61 = vmul.f32 0.5, %v12070_v12  ;;  %vm5930_vm5 = vcmp.ge.f32.partialorder %v12137_v62, 0.0 }
0x11b1   : > { %7027 = vmatprep.subr.bf16.mxu0 %v9214_v55  ;;  %6975 = vmatpush1.bf16.msra.mxu1 %v9209_v51  ;;  %v9221_v55 = vld [vmem:[%s10950_s30 + $0x220] ss:$8 sps:$4 sm:$0xff]   ;;  %v5334_v3 = vmul.f32 0.3275911, %v12216_v4  ;;  %vm5932_vm6 = vcmp.ge.f32.partialorder %v12148_v37, 0.0  ;;  %vm5931_vm7 = vcmp.ge.f32.partialorder %v12162_v34, 0.0 }
0x11b2   : > { %v12165_v23 = vpop.eup %9391  ;;  %6976 = vmatprep.subr.bf16.mxu1 %v9217_v52  ;;  %v5215_v52 = vpop.f32.mrf.mxu0  ;;  %vm5933_vm8 = vcmp.ge.f32.partialorder %v12185_v58, 0.0  ;;  %vm5910_vm9 = vcmp.ge.f32.partialorder %v12200_v16, 0.0 }
0x11b3   : > { %v5442_v44 = vmul.f32 1.0614054, %v12165_v23  ;;  %v12191_v26 = vpop.eup %9393  ;;  %v12250_v51 = vadd.f32 %v5215_v52, %v12227_v28  ;;  %v5366_v52 = vadd.f32 1.0, %v5334_v3  ;;  %v9241_v3 = vld [vmem:[%s10950_s30 + $0x2f4] ss:$8 sps:$4 sm:$0xff]  }
0x11b4   : > { %v5444_v33 = vmul.f32 1.0614054, %v12191_v26  ;;  %v12207_v0 = vpop.eup %9395  ;;  %7028 = vmatpush1.bf16.msra.mxu0 %v9212_v18  ;;  %v5733_v18 = vsub.f32 0.0, %v12129_v59 }
0x11b5   : > { %v5474_v49 = vadd.f32 -1.4531521, %v5442_v44  ;;  %v5762_v44 = vmul.f32 %v5730_v2, %v12086_v14  ;;  %v5443_v32 = vmul.f32 1.0614054, %v12207_v0  ;;  %v12221_v7 = vpop.eup %9397  ;;  %v12224_v14 = vmul.f32 0.5, %v12067_v38  ;;  %7029 = vmatprep.subr.bf16.mxu0 %v9220_v6  ;;  %6977 = vmatpush1.bf16.msra.mxu1 %v9215_v36 }
0x11b6   : > { %v5476_v50 = vadd.f32 -1.4531521, %v5444_v33  ;;  %6978 = vmatprep.subr.bf16.mxu1 %v9223_v29  ;;  %v9229_v38 = vld [vmem:[%s10950_s30 + $0x214] ss:$8 sps:$4 sm:$0xff]   ;;  %v5731_v33 = vsub.f32 0.0, %v12118_v40  ;;  %v12247_v29 = vmul.f32 0.5, %v12099_v24  ;;  %v5765_v24 = vmul.f32 %v5733_v18, %v12129_v59 }
0x11b7   : > { %v5506_v39 = vmul.f32 %v12165_v23, %v5474_v49  ;;  %v5357_v49 = vmul.f32 0.3275911, %v12204_v22  ;;  %v5810_v35 = vmul.f32 1.442695, %v5762_v44  ;;  %v9224_v36 = vld [vmem:[%s10950_s30 + $0x320] ss:$8 sps:$4 sm:$0xff]   ;;  %v12239_v6 = vpop.eup %9399 }
0x11b8   : > { %v5475_v44 = vadd.f32 -1.4531521, %v5443_v32  ;;  %v5445_v56 = vmul.f32 1.0614054, %v12221_v7  ;;  %7030 = vmatpush1.bf16.msra.mxu0 %v9218_v30  ;;  %v5814_v32 = vmul.f32 1.442695, %v5764_v13  ;;  %v5763_v12 = vmul.f32 %v5731_v33, %v12118_v40 }
0x11b9   : > { %v5538_v10 = vadd.f32 1.4214138, %v5506_v39  ;;  %v9226_v39 = vld [vmem:[%s10950_s30 + $0x324] ss:$8 sps:$4 sm:$0xff]   ;;  %v5389_v63 = vadd.f32 1.0, %v5357_v49  ;;  %6979 = vmatpush1.bf16.msra.mxu1 %v9221_v55  ;;  %9405 = vpow2.f32 %v5810_v35  ;;  %v12270_v33 = vmul.f32 0.5, %v12124_v9 }
0x11ba   : > { %7031 = vmatprep.subr.bf16.mxu0 %v9226_v39  ;;  %6980 = vmatprep.subr.bf16.mxu1 %v9229_v38  ;;  %v9235_v30 = vld [vmem:[%s10950_s30 + $0x204] ss:$8 sps:$4 sm:$0xff]   ;;  %v5450_v49 = vmul.f32 1.0614054, %v12239_v6  ;;  %v5507_v55 = vmul.f32 %v12207_v0, %v5475_v44  ;;  %v5477_v39 = vadd.f32 -1.4531521, %v5445_v56 }
0x11bb   : > { %v5570_v2 = vmul.f32 %v12165_v23, %v5538_v10  ;;  %v5508_v10 = vmul.f32 %v12191_v26, %v5476_v50  ;;  %v9232_v50 = vld [vmem:[%s10950_s30 + $0x314] ss:$8 sps:$4 sm:$0xff]   ;;  %9407 = vrcp.f32 %v5389_v63  ;;  %v12261_v35 = vmul.f32 0.70710677, %v12250_v51  ;;  %v9233_v13 = vld [vmem:[%s10950_s30 + $0x200] ss:$8 sps:$4 sm:$0xff]  }
0x11bc   : > { %7032 = vmatpush1.bf16.msra.mxu0 %v9224_v36  ;;  %v9238_v40 = vld [vmem:[%s10950_s30 + $0x304] ss:$8 sps:$4 sm:$0xff]   ;;  %v12267_v38 = vmul.f32 0.5, %v12112_v41  ;;  %v12273_v18 = vmul.f32 0.5, %v12132_v8  ;;  %v12276_v36 = vpop.eup %9401  ;;  %9409 = vrcp.f32 %v5366_v52  ;;  %v5539_v44 = vadd.f32 1.4214138, %v5507_v55 }
0x11bd   : > { %v5602_v15 = vadd.f32 -0.28449672, %v5570_v2  ;;  %v5540_v42 = vadd.f32 1.4214138, %v5508_v10  ;;  %v9230_v2 = vld [vmem:[%s10950_s30 + $0x310] ss:$8 sps:$4 sm:$0xff]   ;;  %7033 = vmatprep.subr.bf16.mxu0 %v9232_v50  ;;  %6981 = vmatpush1.bf16.msra.mxu1 %v9227_v46  ;;  %v5509_v9 = vmul.f32 %v12221_v7, %v5477_v39  ;;  %v12291_v52 = vpop.eup %9403  ;;  %9411 = vpow2.f32 %v5814_v32 }
0x11be   : > { %13112 = vst [vmem:[#allocation67_spill] sm:$0xff] %v12273_v18  ;;  %6982 = vmatprep.subr.bf16.mxu1 %v9235_v30  ;;  %v5812_v46 = vmul.f32 1.442695, %v5763_v12  ;;  %v5482_v10 = vadd.f32 -1.4531521, %v5450_v49  ;;  %v5740_v55 = vsub.f32 0.0, %v12159_v60 }
0x11bf   : > { %v5634_v59 = vmul.f32 %v12165_v23, %v5602_v15  ;;  %v5738_v15 = vsub.f32 0.0, %v12143_v1  ;;  %v5572_v41 = vmul.f32 %v12191_v26, %v5540_v42  ;;  %v12281_v56 = vmul.f32 1.442695, %v5765_v24  ;;  %v9236_v8 = vld [vmem:[%s10950_s30 + $0x300] ss:$8 sps:$4 sm:$0xff]  }
0x11c0   : > { %7034 = vmatpush1.bf16.msra.mxu0 %v9230_v2  ;;  %v12285_v63 = vand.u32 2147483647, %v12261_v35  ;;  %v9239_v50 = vld [vmem:[%s10950_s30 + $0x2f0] ss:$8 sps:$4 sm:$0xff]   ;;  %v9244_v30 = vld [vmem:[%s10950_s30 + $0x3f4] ss:$8 sps:$4 sm:$0xff]   ;;  %v5514_v24 = vmul.f32 %v12239_v6, %v5482_v10  ;;  %9413 = vpow2.f32 %v5812_v46  ;;  %v5164_v46 = vpop.f32.mrf.mxu1 }
0x11c1   : > { %7035 = vmatprep.subr.bf16.mxu0 %v9238_v40  ;;  %6983 = vmatpush1.bf16.msra.mxu1 %v9233_v13  ;;  %v5666_v12 = vadd.f32 0.2548296, %v5634_v59  ;;  %v5452_v49 = vmul.f32 1.0614054, %v12276_v36  ;;  %v9247_v42 = vld [vmem:[%s10950_s30 + $0x2e4] ss:$8 sps:$4 sm:$0xff]   ;;  %v5571_v40 = vmul.f32 %v12207_v0, %v5539_v44 }
0x11c2   : > { %6984 = vmatprep.subr.bf16.mxu1 %v9241_v3  ;;  %v5739_v39 = vsub.f32 0.0, %v12182_v43  ;;  %v5741_v2 = vsub.f32 0.0, %v12204_v22  ;;  %v5604_v13 = vadd.f32 -0.28449672, %v5572_v41  ;;  %v5541_v59 = vadd.f32 1.4214138, %v5509_v9 }
0x11c3   : > { %v5770_v3 = vmul.f32 %v5738_v15, %v12143_v1  ;;  %v5336_v11 = vmul.f32 0.3275911, %v12285_v63  ;;  %v9245_v10 = vld [vmem:[%s10950_s30 + $0x2e0] ss:$8 sps:$4 sm:$0xff]   ;;  %v5698_v57 = vmul.f32 %v12165_v23, %v5666_v12  ;;  %v5484_v27 = vadd.f32 -1.4531521, %v5452_v49 }
0x11c4   : > { %7036 = vmatpush1.bf16.msra.mxu0 %v9236_v8  ;;  %v5451_v41 = vmul.f32 1.0614054, %v12291_v52  ;;  %v9253_v44 = vld [vmem:[%s10950_s30 + $0x2d4] ss:$8 sps:$4 sm:$0xff]   ;;  %v5546_v18 = vadd.f32 1.4214138, %v5514_v24  ;;  %v5772_v1 = vmul.f32 %v5740_v55, %v12159_v60  ;;  %v5771_v15 = vmul.f32 %v5739_v39, %v12182_v43 }
0x11c5   : > { %7037 = vmatprep.subr.bf16.mxu0 %v9244_v30  ;;  %6985 = vmatpush2.bf16.msra.mxu1 %v9239_v50  ;;  %v5773_v8 = vmul.f32 %v5741_v2, %v12204_v22  ;;  %v5636_v50 = vmul.f32 %v12191_v26, %v5604_v13  ;;  %v5603_v23 = vadd.f32 -0.28449672, %v5571_v40  ;;  %v5826_v30 = vmul.f32 1.442695, %v5770_v3  ;;  %v9248_v49 = vld [vmem:[%s10950_s30 + $0x3e0] ss:$8 sps:$4 sm:$0xff]  }
0x11c6   : > { %6986 = vmatprep.subr.bf16.mxu1 %v9247_v42  ;;  %v9406_v9 = vpop.eup %9405  ;;  %v13113_v32 = vsub.s32 5, %v11100_v25  ;;  %v5573_v60 = vmul.f32 %v12221_v7, %v5541_v59  ;;  %v12320_v43 = vmul.f32 0.5, %v12153_v31  ;;  %v5368_v22 = vadd.f32 1.0, %v5336_v11  ;;  %v9251_v24 = vld [vmem:[%s10950_s30 + $0x2d0] ss:$8 sps:$4 sm:$0xff]  }
0x11c7   : > { %v9256_v55 = vld [vmem:[%s10950_s30 + $0x3d4] ss:$8 sps:$4 sm:$0xff]   ;;  %v12324_v39 = vmul.f32 %v9406_v9, %v5698_v57  ;;  %v5516_v2 = vmul.f32 %v12276_v36, %v5484_v27  ;;  %v12328_v13 = vmul.f32 0.5, %v12169_v17  ;;  %v9259_v40 = vld [vmem:[%s10950_s30 + $0x2c4] ss:$8 sps:$4 sm:$0xff]   ;;  %v5578_v31 = vmul.f32 %v12239_v6, %v5546_v18 }
0x11c8   : > { %v12313_v12 = vrot.slane %v11914_v48, %v13113_v32  ;;  %7038 = vmatpush2.bf16.msra.mxu0 %v9242_v53  ;;  %v12316_v42 = vpop.eup %9407  ;;  %v5483_v53 = vadd.f32 -1.4531521, %v5451_v41  ;;  %v5830_v59 = vmul.f32 1.442695, %v5772_v1  ;;  %v5828_v11 = vmul.f32 1.442695, %v5771_v15  ;;  %v5217_v1 = vpop.f32.mrf.mxu0 }
0x11c9   : > { %7039 = vmatprep.subr.bf16.mxu0 %v9250_v19  ;;  %6987 = vmatpush2.bf16.msra.mxu1 %v9245_v10  ;;  %v12332_v19 = vmul.f32 1.442695, %v5773_v8  ;;  %v12334_v57 = vpop.eup %9409  ;;  %v5668_v3 = vadd.f32 0.2548296, %v5636_v50  ;;  %v5635_v27 = vmul.f32 %v12207_v0, %v5603_v23  ;;  %v5453_v10 = vmul.f32 1.0614054, %v12316_v42 }
0x11ca   : > { %6988 = vmatprep.subr.bf16.mxu1 %v9253_v44  ;;  %v13114_v17 = vsub.s32 7, %v11100_v25  ;;  %v9254_v18 = vld [vmem:[%s10950_s30 + $0x3d0] ss:$8 sps:$4 sm:$0xff]   ;;  %v5605_v44 = vadd.f32 -0.28449672, %v5573_v60  ;;  %9415 = vrcp.f32 %v5368_v22  ;;  %v12345_v9 = vadd.f32 %v5164_v46, %v12313_v12 }
0x11cb   : > { %v9257_v15 = vld [vmem:[%s10950_s30 + $0x2c0] ss:$8 sps:$4 sm:$0xff]   ;;  %v9262_v8 = vld [vmem:[%s10950_s30 + $0x3c4] ss:$8 sps:$4 sm:$0xff]   ;;  %v12992_v50 = vsub.f32 1.0, %v12324_v39  ;;  %v5718_v23 = vsub.f32 0.0, %v12216_v4  ;;  %9417 = vpow2.f32 %v12281_v56 }
0x11cc   : > { %v12341_v41 = vrot.slane %v11914_v48, %v13114_v17  ;;  %7040 = vmatpush2.bf16.msra.mxu0 %v9248_v49  ;;  %v5548_v25 = vadd.f32 1.4214138, %v5516_v2  ;;  %v5515_v48 = vmul.f32 %v12291_v52, %v5483_v53  ;;  %v9265_v32 = vld [vmem:[%s10950_s30 + $0x2b4] ss:$8 sps:$4 sm:$0xff]   ;;  %v5610_v49 = vadd.f32 -0.28449672, %v5578_v31 }
0x11cd   : > { %7041 = vmatprep.subr.bf16.mxu0 %v9256_v55  ;;  %6989 = vmatpush2.bf16.msra.mxu1 %v9251_v24  ;;  %v5430_v60 = vmul.f32 1.0614054, %v12334_v57  ;;  %v12356_v22 = vmul.f32 0.70710677, %v12345_v9  ;;  %v5700_v24 = vmul.f32 %v12191_v26, %v5668_v3  ;;  %v5667_v55 = vadd.f32 0.2548296, %v5635_v27 }
0x11ce   : > { %6990 = vmatprep.subr.bf16.mxu1 %v9259_v40  ;;  %v5485_v2 = vadd.f32 -1.4531521, %v5453_v10  ;;  %v12360_v53 = vadd.f32 %v5217_v1, %v12341_v41  ;;  %v9260_v46 = vld [vmem:[%s10950_s30 + $0x3c0] ss:$8 sps:$4 sm:$0xff]   ;;  %v5637_v56 = vmul.f32 %v12221_v7, %v5605_v44  ;;  %9419 = vpow2.f32 %v5826_v30  ;;  %v9263_v31 = vld [vmem:[%s10950_s30 + $0x2b0] ss:$8 sps:$4 sm:$0xff]  }
0x11cf   : > { %v12366_v40 = vand.u32 2147483647, %v12356_v22  ;;  %v9268_v26 = vld [vmem:[%s10950_s30 + $0x3b4] ss:$8 sps:$4 sm:$0xff]   ;;  %v5580_v3 = vmul.f32 %v12276_v36, %v5548_v25  ;;  %9421 = vpow2.f32 %v5830_v59  ;;  %v5547_v27 = vadd.f32 1.4214138, %v5515_v48 }
0x11d0   : > { %7042 = vmatpush2.bf16.msra.mxu0 %v9254_v18  ;;  %v12372_v10 = vmul.f32 0.70710677, %v12360_v53  ;;  %v9271_v17 = vld [vmem:[%s10950_s30 + $0x2a4] ss:$8 sps:$4 sm:$0xff]   ;;  %v9412_v18 = vpop.eup %9411  ;;  %v5642_v30 = vmul.f32 %v12239_v6, %v5610_v49  ;;  %9423 = vpow2.f32 %v5828_v11  ;;  %v5462_v44 = vadd.f32 -1.4531521, %v5430_v60 }
0x11d1   : > { %7043 = vmatprep.subr.bf16.mxu0 %v9262_v8  ;;  %6991 = vmatpush2.bf16.msra.mxu1 %v9257_v15  ;;  %v5335_v1 = vmul.f32 0.3275911, %v12366_v40  ;;  %v12377_v15 = vmul.f32 %v9412_v18, %v5700_v24  ;;  %v5699_v8 = vmul.f32 %v12207_v0, %v5667_v55  ;;  %v5517_v59 = vmul.f32 %v12316_v42, %v5485_v2  ;;  %v9266_v48 = vld [vmem:[%s10950_s30 + $0x3b0] ss:$8 sps:$4 sm:$0xff]   ;;  %v9274_v24 = vld [vmem:[%s10950_s30 + $0x3a4] ss:$8 sps:$4 sm:$0xff]   ;;  %v9414_v0 = vpop.eup %9413  ;;  %v5166_v18 = vpop.f32.mrf.mxu1 }
0x11d2   : > { %13115 = vst [vmem:[#allocation68_spill] sm:$0xff] %v12372_v10  ;;  %6992 = vmatprep.subr.bf16.mxu1 %v9265_v32  ;;  %v12382_v25 = vand.u32 2147483647, %v12372_v10  ;;  %v5954_v32 = vsub.f32 0.0, %v12992_v50  ;;  %v5669_v49 = vadd.f32 0.2548296, %v5637_v56  ;;  %v5750_v11 = vmul.f32 %v5718_v23, %v12216_v4 }
0x11d3   : > { %v5367_v60 = vadd.f32 1.0, %v5335_v1  ;;  %v5612_v55 = vadd.f32 -0.28449672, %v5580_v3  ;;  %v5579_v2 = vmul.f32 %v12291_v52, %v5547_v27  ;;  %9425 = vpow2.f32 %v12332_v19  ;;  %v9269_v10 = vld [vmem:[%s10950_s30 + $0x2a0] ss:$8 sps:$4 sm:$0xff]  }
0x11d4   : > { %7044 = vmatpush2.bf16.msra.mxu0 %v9260_v46  ;;  %v5337_v46 = vmul.f32 0.3275911, %v12382_v25  ;;  %v5674_v4 = vadd.f32 0.2548296, %v5642_v30  ;;  %v12395_v23 = vmul.f32 0.5, %v12188_v54  ;;  %v5494_v56 = vmul.f32 %v12334_v57, %v5462_v44  ;;  %v5219_v44 = vpop.f32.mrf.mxu0 }
0x11d5   : > { %7045 = vmatprep.subr.bf16.mxu0 %v9268_v26  ;;  %6993 = vmatpush2.bf16.msra.mxu1 %v9263_v31  ;;  %9427 = vrcp.f32 %v5367_v60  ;;  %v9277_v31 = vld [vmem:[%s10950_s30 + $0x294] ss:$8 sps:$4 sm:$0xff]   ;;  %v5892_v26 = vsub.f32 1.0, %v12377_v15  ;;  %v12400_v19 = vmul.f32 %v9414_v0, %v5699_v8  ;;  %v5549_v3 = vadd.f32 1.4214138, %v5517_v59  ;;  %v5168_v0 = vpop.f32.mrf.mxu1 }
0x11d6   : > { %6994 = vmatprep.subr.bf16.mxu1 %v9271_v17  ;;  %13116 = vst [vmem:[#allocation69_spill] sm:$0xff] %v12395_v23  ;;  %v5369_v27 = vadd.f32 1.0, %v5337_v46  ;;  %v9272_v17 = vld [vmem:[%s10950_s30 + $0x3a0] ss:$8 sps:$4 sm:$0xff]   ;;  %v5786_v1 = vmul.f32 1.442695, %v5750_v11  ;;  %v12408_v50 = vadd.f32 %v5166_v18, %v12174_v45  ;;  %v5701_v11 = vmul.f32 %v12221_v7, %v5669_v49 }
0x11d7   : > { %v12404_v30 = vmul.f32 0.5, %v12250_v51  ;;  %v5720_v54 = vsub.f32 0.0, %v12285_v63  ;;  %v9280_v15 = vld [vmem:[%s10950_s30 + $0x394] ss:$8 sps:$4 sm:$0xff]   ;;  %v12411_v8 = vpop.eup %9415  ;;  %v13118_v59 = vsub.f32 1.0, %v12324_v39  ;;  %v5644_v51 = vmul.f32 %v12276_v36, %v5612_v55 }
0x11d8   : > { %7046 = vmatpush2.bf16.msra.mxu0 %v9266_v48  ;;  %v5611_v60 = vadd.f32 -0.28449672, %v5579_v2  ;;  %v9275_v46 = vld [vmem:[%s10950_s30 + $0x290] ss:$8 sps:$4 sm:$0xff]   ;;  %v5706_v18 = vmul.f32 %v12239_v6, %v5674_v4  ;;  %9429 = vrcp.f32 %v5369_v27  ;;  %v9418_v39 = vpop.eup %9417  ;;  %v5891_v7 = vsub.f32 1.0, %v12400_v19 }
0x11d9   : > { %13117 = vst [vmem:[#allocation70_spill] sm:$0xff] %v12404_v30  ;;  %7047 = vmatprep.subr.bf16.mxu0 %v9274_v24  ;;  %v5986_v48 = vsel %vm5922_vm1, %v13118_v59, %v5954_v32  ;;  %6995 = vmatpush2.bf16.msra.mxu1 %v9269_v10  ;;  %v5526_v24 = vadd.f32 1.4214138, %v5494_v56  ;;  %v12422_v30 = vmul.f32 0.70710677, %v12408_v50  ;;  %v5956_v32 = vsub.f32 0.0, %v5892_v26 }
0x11da   : > { %6996 = vmatprep.subr.bf16.mxu1 %v9277_v31  ;;  %v5581_v49 = vmul.f32 %v12316_v42, %v5549_v3  ;;  %v12429_v10 = vadd.f32 %v5219_v44, %v12227_v28  ;;  %v9278_v6 = vld [vmem:[%s10950_s30 + $0x390] ss:$8 sps:$4 sm:$0xff]   ;;  %9431 = vpow2.f32 %v5786_v1  ;;  %v5432_v55 = vmul.f32 1.0614054, %v12411_v8  ;;  %v9286_v56 = vld [vmem:[%s10950_s30 + $0x384] ss:$8 sps:$4 sm:$0xff]  }
0x11db   : > { %13119 = vst [vmem:[#allocation71_spill] sm:$0xff] %v12422_v30  ;;  %v12434_v2 = vand.u32 2147483647, %v12422_v30  ;;  %v12437_v4 = vadd.f32 %v5168_v0, %v12313_v12  ;;  %v9420_v31 = vpop.eup %9419  ;;  %v12440_v19 = vadd.f32 1.0, %v5986_v48  ;;  %v12442_v3 = vmul.f32 %v9418_v39, %v5701_v11  ;;  %v9281_v1 = vld [vmem:[%s10950_s30 + $0x280] ss:$8 sps:$4 sm:$0xff]   ;;  %v5221_v48 = vpop.f32.mrf.mxu0 }
0x11dc   : > { %13120 = vst [vmem:[#allocation72_spill] sm:$0xff] %v12429_v10  ;;  %7048 = vmatpush2.bf16.msra.mxu0 %v9272_v17  ;;  %v5643_v27 = vmul.f32 %v12291_v52, %v5611_v60  ;;  %v12446_v17 = vmul.f32 0.70710677, %v12429_v10  ;;  %v9422_v44 = vpop.eup %9421  ;;  %v12449_v59 = vmul.f32 %v9420_v31, %v5706_v18  ;;  %v5676_v0 = vadd.f32 0.2548296, %v5644_v51 }
0x11dd   : > { %7049 = vmatprep.subr.bf16.mxu0 %v9280_v15  ;;  %6997 = vmatpush2.bf16.msra.mxu1 %v9275_v46  ;;  %v5558_v15 = vmul.f32 %v12334_v57, %v5526_v24  ;;  %v5342_v30 = vmul.f32 0.3275911, %v12434_v2  ;;  %v9424_v11 = vpop.eup %9423  ;;  %v5988_v60 = vsel %vm5924_vm2, %v5892_v26, %v5956_v32  ;;  %v5613_v39 = vadd.f32 -0.28449672, %v5581_v49  ;;  %v9284_v18 = vld [vmem:[%s10950_s30 + $0x380] ss:$8 sps:$4 sm:$0xff]  }
0x11de   : > { %13121 = vst [vmem:[#allocation73_spill] sm:$0xff] %v12446_v17  ;;  %6998 = vmatprep.subr.bf16.mxu1 %v9283_v5  ;;  %v5752_v23 = vmul.f32 %v5720_v54, %v12285_v63  ;;  %v12457_v46 = vand.u32 2147483647, %v12446_v17  ;;  %v5955_v31 = vsub.f32 0.0, %v5891_v7  ;;  %v5464_v51 = vadd.f32 -1.4531521, %v5432_v55 }
0x11df   : > { %v5374_v10 = vadd.f32 1.0, %v5342_v30  ;;  %v12461_v24 = vmul.f32 0.70710677, %v12437_v4  ;;  %v5893_v5 = vsub.f32 1.0, %v12442_v3  ;;  %v5675_v21 = vadd.f32 0.2548296, %v5643_v27 }
0x11e0   : > { %7050 = vmatpush2.bf16.msra.mxu0 %v9278_v6  ;;  %v5344_v26 = vmul.f32 0.3275911, %v12457_v46  ;;  %v12467_v63 = vadd.f32 %v5221_v48, %v12341_v41  ;;  %v12469_v54 = vpop.eup %9425  ;;  %v5898_v32 = vsub.f32 1.0, %v12449_v59  ;;  %v5590_v30 = vadd.f32 -0.28449672, %v5558_v15 }
0x11e1   : > { %7051 = vmatprep.subr.bf16.mxu0 %v9286_v56  ;;  %6999 = vmatpush2.bf16.msra.mxu1 %v9281_v1  ;;  %9433 = vrcp.f32 %v5374_v10  ;;  %v12474_v49 = vand.u32 2147483647, %v12461_v24  ;;  %v6020_v55 = vadd.f32 1.0, %v5988_v60  ;;  %v5708_v56 = vmul.f32 %v12276_v36, %v5676_v0 }
0x11e2   : > { %13122 = vst [vmem:[#allocation74_spill] sm:$0xff] %v12467_v63  ;;  %v12476_v6 = vpop.eup %9427  ;;  %v5645_v3 = vmul.f32 %v12316_v42, %v5613_v39  ;;  %v5376_v27 = vadd.f32 1.0, %v5344_v26  ;;  %v5987_v1 = vsel %vm5923_vm3, %v5891_v7, %v5955_v31  ;;  %v5496_v59 = vmul.f32 %v12411_v8, %v5464_v51 }
0x11e3   : > { %v5431_v15 = vmul.f32 1.0614054, %v12476_v6  ;;  %v5343_v10 = vmul.f32 0.3275911, %v12474_v49  ;;  %v5707_v48 = vmul.f32 %v12291_v52, %v5675_v21  ;;  %v5790_v17 = vmul.f32 1.442695, %v5752_v23 }
0x11e4   : > { %7052 = vmatpush2.bf16.msra.mxu0 %v9284_v18  ;;  %9435 = vrcp.f32 %v5376_v27  ;;  %v12487_v60 = vmul.f32 0.70710677, %v12467_v63  ;;  %v5957_v36 = vsub.f32 0.0, %v5893_v5  ;;  %v5962_v0 = vsub.f32 0.0, %v5898_v32  ;;  %v5172_v63 = vpop.f32.mrf.mxu1 }
0x11e5   : > { %v5622_v39 = vmul.f32 %v12334_v57, %v5590_v30  ;;  %v5375_v18 = vadd.f32 1.0, %v5343_v10  ;;  %v12490_v20 = vpop.eup %9429  ;;  %v12492_v7 = vmul.f32 %v9422_v44, %v5708_v56  ;;  %v5677_v31 = vadd.f32 0.2548296, %v5645_v3 }
0x11e6   : > { %13123 = vst [vmem:[#allocation75_spill] sm:$0xff] %v12487_v60  ;;  %v5463_v51 = vadd.f32 -1.4531521, %v5431_v15  ;;  %v12495_v26 = vand.u32 2147483647, %v12487_v60  ;;  %v5719_v23 = vsub.f32 0.0, %v12366_v40  ;;  %v12501_v30 = vmul.f32 %v12440_v19, %v12224_v14 }
0x11e7   : > { %v5528_v52 = vadd.f32 1.4214138, %v5496_v59  ;;  %v5433_v21 = vmul.f32 1.0614054, %v12490_v20  ;;  %9437 = vrcp.f32 %v5375_v18  ;;  %v9432_v27 = vpop.eup %9431  ;;  %v12504_v10 = vmul.f32 %v6020_v55, %v12244_v61 }
0x11e8   : > { %13124 = vst [vmem:[#allocation76_spill] sm:$0xff] %v12501_v30  ;;  %v12506_v44 = vmul.f32 %v9424_v11, %v5707_v48  ;;  %v5345_v56 = vmul.f32 0.3275911, %v12495_v26  ;;  %v6019_v3 = vadd.f32 1.0, %v5987_v1  ;;  %v5989_v59 = vsel %vm5925_vm4, %v5893_v5, %v5957_v36 }
0x11e9   : > { %13125 = vst [vmem:[#allocation77_spill] sm:$0xff] %v12504_v10  ;;  %v5654_v15 = vadd.f32 0.2548296, %v5622_v39  ;;  %v5465_v60 = vadd.f32 -1.4531521, %v5433_v21  ;;  %v5994_v18 = vsel %vm5930_vm5, %v5898_v32, %v5962_v0  ;;  %v13002_v14 = vsub.f32 1.0, %v12492_v7  ;;  %v5174_v0 = vpop.f32.mrf.mxu1 }
0x11ea   : > { %v5495_v19 = vmul.f32 %v12476_v6, %v5463_v51  ;;  %v5377_v61 = vadd.f32 1.0, %v5345_v56  ;;  %v5709_v11 = vmul.f32 %v12316_v42, %v5677_v31  ;;  %v5560_v55 = vmul.f32 %v12411_v8, %v5528_v52 }
0x11eb   : > { %9439 = vpow2.f32 %v5790_v17  ;;  %v5751_v1 = vmul.f32 %v5719_v23, %v12366_v40  ;;  %v13001_v47 = vsub.f32 1.0, %v12506_v44  ;;  %v5497_v5 = vmul.f32 %v12490_v20, %v5465_v60 }
0x11ec   : > { %v5721_v48 = vsub.f32 0.0, %v12382_v25  ;;  %9441 = vrcp.f32 %v5377_v61  ;;  %v12522_v62 = vmul.f32 %v6019_v3, %v12247_v29  ;;  %v6021_v32 = vadd.f32 1.0, %v5989_v59 }
0x11ed   : > { %v12524_v36 = vadd.f32 1.0, %v5994_v18  ;;  %v5686_v42 = vmul.f32 %v12334_v57, %v5654_v15  ;;  %v12531_v40 = vsub.f32 0.0, %v13002_v14  ;;  %v12534_v17 = vmul.f32 0.5, %v12345_v9  ;;  %v5225_v9 = vpop.f32.mrf.mxu0 }
0x11ee   : > { %v12527_v39 = vpop.eup %9433  ;;  %v5527_v60 = vadd.f32 1.4214138, %v5495_v19  ;;  %v12537_v31 = vadd.f32 %v5172_v63, %v12174_v45  ;;  %v12540_v29 = vmul.f32 %v12469_v54, %v5709_v11  ;;  %v5592_v51 = vadd.f32 -0.28449672, %v5560_v55 }
0x11ef   : > { %v5788_v52 = vmul.f32 1.442695, %v5751_v1  ;;  %v5438_v57 = vmul.f32 1.0614054, %v12527_v39  ;;  %v12545_v23 = vsub.f32 0.0, %v13001_v47  ;;  %v5753_v56 = vmul.f32 %v5721_v48, %v12382_v25 }
0x11f0   : > { %13126 = vst [vmem:[#allocation78_spill] sm:$0xff] %v12537_v31  ;;  %v5529_v21 = vadd.f32 1.4214138, %v5497_v5  ;;  %v12549_v3 = vadd.f32 %v5174_v0, %v12313_v12  ;;  %v12553_v59 = vmul.f32 %v9432_v27, %v5686_v42  ;;  %v5726_v15 = vsub.f32 0.0, %v12434_v2 }
0x11f1   : > { %v12551_v63 = vpop.eup %9435  ;;  %v5470_v54 = vadd.f32 -1.4531521, %v5438_v57  ;;  %v5727_v18 = vsub.f32 0.0, %v12474_v49  ;;  %v5559_v19 = vmul.f32 %v12476_v6, %v5527_v60  ;;  %v5729_v11 = vsub.f32 0.0, %v12495_v26 }
0x11f2   : > { %13127 = vst [vmem:[#allocation79_spill] sm:$0xff] %v12549_v3  ;;  %v5440_v61 = vmul.f32 1.0614054, %v12551_v63  ;;  %v12561_v25 = vmul.f32 0.70710677, %v12537_v31  ;;  %v5624_v1 = vmul.f32 %v12411_v8, %v5592_v51  ;;  %9443 = vpow2.f32 %v5788_v52 }
0x11f3   : > { %v12566_v27 = vadd.f32 %v5225_v9, %v12227_v28  ;;  %v5561_v48 = vmul.f32 %v12490_v20, %v5529_v21  ;;  %v5792_v42 = vmul.f32 1.442695, %v5753_v56  ;;  %v12572_v60 = vmul.f32 0.70710677, %v12549_v3 }
0x11f4   : > { %13128 = vst [vmem:[#allocation80_spill] sm:$0xff] %v12561_v25  ;;  %v12568_v5 = vpop.eup %9437  ;;  %v5472_v0 = vadd.f32 -1.4531521, %v5440_v61  ;;  %v5502_v57 = vmul.f32 %v12527_v39, %v5470_v54  ;;  %v5758_v47 = vmul.f32 %v5726_v15, %v12434_v2  ;;  %v5759_v51 = vmul.f32 %v5727_v18, %v12474_v49 }
0x11f5   : > { %13129 = vst [vmem:[#allocation81_spill] sm:$0xff] %v12566_v27  ;;  %13130 = vst [vmem:[#allocation82_spill] sm:$0xff] %v12572_v60  ;;  %v5439_v14 = vmul.f32 1.0614054, %v12568_v5  ;;  %v5591_v9 = vadd.f32 -0.28449672, %v5559_v19  ;;  %v5761_v55 = vmul.f32 %v5729_v11, %v12495_v26  ;;  %9445 = vpow2.f32 %v5792_v42 }
0x11f6   : > { %v12581_v21 = vand.u32 2147483647, %v12561_v25  ;;  %v5656_v56 = vadd.f32 0.2548296, %v5624_v1  ;;  %v5504_v61 = vmul.f32 %v12551_v63, %v5472_v0  ;;  %v12585_v54 = vmul.f32 0.70710677, %v12566_v27 }
0x11f7   : > { %v5471_v3 = vadd.f32 -1.4531521, %v5439_v14  ;;  %v5593_v15 = vadd.f32 -0.28449672, %v5561_v48  ;;  %v5728_v49 = vsub.f32 0.0, %v12457_v46  ;;  %v5623_v14 = vmul.f32 %v12476_v6, %v5591_v9 }
0x11f8   : > { %13131 = vst [vmem:[#allocation83_spill] sm:$0xff] %v12585_v54  ;;  %v9440_v2 = vpop.eup %9439  ;;  %v12589_v18 = vand.u32 2147483647, %v12572_v60  ;;  %v5534_v26 = vadd.f32 1.4214138, %v5502_v57  ;;  %v12598_v42 = vmul.f32 %v6021_v32, %v12267_v38  ;;  %vm5912_vm10 = vcmp.ge.f32.partialorder %v12261_v35, 0.0 }
0x11f9   : > { %v12591_v19 = vpop.eup %9441  ;;  %v5802_v11 = vmul.f32 1.442695, %v5758_v47  ;;  %v5503_v1 = vmul.f32 %v12568_v5, %v5471_v3  ;;  %v5804_v52 = vmul.f32 1.442695, %v5759_v51  ;;  %v5808_v27 = vmul.f32 1.442695, %v5761_v55  ;;  %v5227_v55 = vpop.f32.mrf.mxu0 }
0x11fa   : > { %v5441_v0 = vmul.f32 1.0614054, %v12591_v19  ;;  %v5350_v48 = vmul.f32 0.3275911, %v12581_v21  ;;  %v5536_v31 = vadd.f32 1.4214138, %v5504_v61  ;;  %v5688_v47 = vmul.f32 %v12411_v8, %v5656_v56 }
0x11fb   : > { %v5535_v25 = vadd.f32 1.4214138, %v5503_v1  ;;  %v12601_v60 = vand.u32 2147483647, %v12585_v54  ;;  %v5625_v3 = vmul.f32 %v12490_v20, %v5593_v15  ;;  %v5351_v51 = vmul.f32 0.3275911, %v12589_v18 }
0x11fc   : > { %v5473_v57 = vadd.f32 -1.4531521, %v5441_v0  ;;  %v5566_v38 = vmul.f32 %v12527_v39, %v5534_v26  ;;  %v5760_v32 = vmul.f32 %v5728_v49, %v12457_v46  ;;  %9447 = vpow2.f32 %v5804_v52 }
0x11fd   : > { %13132 = vst [vmem:[#allocation84_spill] sm:$0xff] %v12601_v60  ;;  %v5567_v9 = vmul.f32 %v12568_v5, %v5535_v25  ;;  %v5655_v8 = vadd.f32 0.2548296, %v5623_v14  ;;  %9449 = vpow2.f32 %v5808_v27  ;;  %v5382_v61 = vadd.f32 1.0, %v5350_v48 }
0x11fe   : > { %v5505_v56 = vmul.f32 %v12591_v19, %v5473_v57  ;;  %v5568_v15 = vmul.f32 %v12551_v63, %v5536_v31  ;;  %v5352_v0 = vmul.f32 0.3275911, %v12601_v60  ;;  %v12617_v54 = vadd.f32 %v5227_v55, %v12341_v41 }
0x11ff   : > { %v5599_v1 = vadd.f32 -0.28449672, %v5567_v9  ;;  %v9444_v10 = vpop.eup %9443  ;;  %v13133_v26 = vsub.f32 1.0, %v12540_v29  ;;  %v5657_v49 = vadd.f32 0.2548296, %v5625_v3  ;;  %v5383_v52 = vadd.f32 1.0, %v5351_v51 }
0x1200   : > { %v5537_v25 = vadd.f32 1.4214138, %v5505_v56  ;;  %v5598_v14 = vadd.f32 -0.28449672, %v5566_v38  ;;  %9451 = vpow2.f32 %v5802_v11  ;;  %v5806_v57 = vmul.f32 1.442695, %v5760_v32 }
0x1201   : > { %v5965_v46 = vsub.f32 0.0, %v13133_v26  ;;  %v5631_v27 = vmul.f32 %v12568_v5, %v5599_v1  ;;  %v13134_v31 = vsub.f32 1.0, %v12553_v59  ;;  %v12624_v9 = vmul.f32 %v9440_v2, %v5688_v47 }
0x1202   : > { %v5569_v55 = vmul.f32 %v12591_v19, %v5537_v25  ;;  %9453 = vrcp.f32 %v5382_v61  ;;  %v5687_v60 = vmul.f32 %v12476_v6, %v5655_v8  ;;  %v5600_v30 = vadd.f32 -0.28449672, %v5568_v15  ;;  %v9446_v32 = vpop.eup %9445 }
0x1203   : > { %v5942_v48 = vsub.f32 0.0, %v13134_v31  ;;  %v5384_v26 = vadd.f32 1.0, %v5352_v0  ;;  %v12629_v3 = vmul.f32 0.70710677, %v12617_v54  ;;  %v5689_v11 = vmul.f32 %v12490_v20, %v5657_v49 }
0x1204   : > { %v5663_v51 = vadd.f32 0.2548296, %v5631_v27  ;;  %v5601_v38 = vadd.f32 -0.28449672, %v5569_v55  ;;  %9455 = vrcp.f32 %v5383_v52  ;;  %v13135_v2 = vsub.f32 1.0, %v12492_v7 }
0x1205   : > { %v5630_v56 = vmul.f32 %v12527_v39, %v5598_v14  ;;  %9457 = vpow2.f32 %v5806_v57  ;;  %v12639_v6 = vand.u32 2147483647, %v12629_v3  ;;  %v13136_v8 = vsub.f32 1.0, %v12506_v44 }
0x1206   : > { %v5996_v47 = vsel %vm5932_vm6, %v13135_v2, %v12531_v40  ;;  %v13137_v61 = vsub.f32 1.0, %v12540_v29  ;;  %v13138_v37 = vmov %v13134_v31  ;;  %v5633_v15 = vmul.f32 %v12591_v19, %v5601_v38 }
0x1207   : > { %v5995_v20 = vsel %vm5931_vm7, %v13136_v8, %v12545_v23  ;;  %v5974_v40 = vsel %vm5910_vm9, %v13138_v37, %v5942_v48  ;;  %v5880_v1 = vsub.f32 1.0, %v12624_v9  ;;  %v5847_v44 = vmul.f32 %v9444_v10, %v5687_v60  ;;  %v5176_v10 = vpop.f32.mrf.mxu1  ;;  %v13139_v9 = vld [vmem:[#allocation67_spill] sm:$0xff]  ;;  %v13141_v8 = vld [vmem:[#allocation72_spill] sm:$0xff] }
0x1208   : > { %v5997_v7 = vsel %vm5933_vm8, %v13137_v61, %v5965_v46  ;;  %v5632_v34 = vmul.f32 %v12551_v63, %v5600_v30  ;;  %v5353_v23 = vmul.f32 0.3275911, %v12639_v6  ;;  %v5849_v29 = vmul.f32 %v9446_v32, %v5689_v11  ;;  %v13140_v32 = vld [vmem:[#allocation68_spill] sm:$0xff]  ;;  %v13142_v61 = vld [vmem:[#allocation69_spill] sm:$0xff] }
0x1209   : > { %v5695_v58 = vmul.f32 %v12568_v5, %v5663_v51  ;;  %v5665_v0 = vadd.f32 0.2548296, %v5633_v15  ;;  %9459 = vrcp.f32 %v5384_v26  ;;  %v12662_v16 = vmul.f32 %v12524_v36, %v12270_v33  ;;  %v9448_v25 = vpop.eup %9447 }
0x120a   : > { %v6028_v59 = vadd.f32 1.0, %v5996_v47  ;;  %v5662_v46 = vadd.f32 0.2548296, %v5630_v56  ;;  %v5385_v49 = vadd.f32 1.0, %v5353_v23  ;;  %v6027_v52 = vadd.f32 1.0, %v5995_v20  ;;  %v9450_v60 = vpop.eup %9449  ;;  %v5229_v47 = vpop.f32.mrf.mxu0  ;;  %v13143_v23 = vld [vmem:[#allocation74_spill] sm:$0xff] }
0x120b   : > { %v6029_v14 = vadd.f32 1.0, %v5997_v7  ;;  %vm5911_vm11 = vcmp.ge.f32.partialorder %v12356_v22, 0.0  ;;  %v5697_v30 = vmul.f32 %v12591_v19, %v5665_v0  ;;  %v6006_v57 = vadd.f32 1.0, %v5974_v40 }
0x120c   : > { %v5879_v5 = vsub.f32 1.0, %v5847_v44  ;;  %v12667_v27 = vmul.f32 0.5, %v12360_v53  ;;  %v5664_v31 = vadd.f32 0.2548296, %v5632_v34  ;;  %v5944_v33 = vsub.f32 0.0, %v5880_v1 }
0x120d   : > { %v5881_v36 = vsub.f32 1.0, %v5849_v29  ;;  %v5855_v48 = vmul.f32 %v9448_v25, %v5695_v58  ;;  %9461 = vrcp.f32 %v5385_v49  ;;  %v12670_v55 = vmul.f32 %v6028_v59, %v13139_v9  ;;  %v9452_v51 = vpop.eup %9451  ;;  %v13144_v58 = vld [vmem:[#allocation75_spill] sm:$0xff] }
0x120e   : > { %v5694_v26 = vmul.f32 %v12527_v39, %v5662_v46  ;;  %v5857_v11 = vmul.f32 %v9450_v60, %v5697_v30  ;;  %v12674_v19 = vadd.f32 %v5176_v10, %v12174_v45  ;;  %v12677_v38 = vmul.f32 %v6027_v52, %v12320_v43  ;;  %v13145_v25 = vld [vmem:[#allocation71_spill] sm:$0xff] }
0x120f   : > { %v12680_v53 = vmul.f32 %v6029_v14, %v12328_v13  ;;  %vm5913_vm12 = vcmp.ge.f32.partialorder %v13140_v32, 0.0  ;;  %v12684_v2 = vmul.f32 0.5, %v12408_v50  ;;  %v12686_v56 = vpop.eup %9453  ;;  %v5943_v39 = vsub.f32 0.0, %v5879_v5 }
0x1210   : > { %v12689_v20 = vmul.f32 0.5, %v13141_v8  ;;  %v5696_v45 = vmul.f32 %v12551_v63, %v5664_v31  ;;  %v12693_v43 = vmul.f32 0.5, %v12437_v4  ;;  %v12696_v13 = vmul.f32 %v6006_v57, %v13142_v61 }
0x1211   : > { %v5976_v7 = vsel %vm5912_vm10, %v5880_v1, %v5944_v33  ;;  %v5945_v50 = vsub.f32 0.0, %v5881_v36  ;;  %v5887_v37 = vsub.f32 1.0, %v5855_v48  ;;  %v12700_v40 = vpop.eup %9455  ;;  %v5854_v15 = vmul.f32 %v9452_v51, %v5694_v26  ;;  %v5178_v1 = vpop.f32.mrf.mxu1  ;;  %v13146_v33 = vld [vmem:[#allocation73_spill] sm:$0xff] }
0x1212   : > { %v5889_v44 = vsub.f32 1.0, %v5857_v11  ;;  %v12703_v34 = vmul.f32 0.70710677, %v12674_v19  ;;  %v12706_v63 = vadd.f32 %v5229_v47, %v12227_v28  ;;  %v9458_v4 = vpop.eup %9457  ;;  %vm5919_vm13 = vcmp.ge.f32.partialorder %v12461_v24, 0.0 }
0x1213   : > { %v5249_v29 = vmul.f32 0.5, %v13143_v23  ;;  %vm5921_vm14 = vcmp.ge.f32.partialorder %v13144_v58, 0.0  ;;  %v5446_v35 = vmul.f32 1.0614054, %v12686_v56  ;;  %v6008_v0 = vadd.f32 1.0, %v5976_v7 }
0x1214   : > { %v5975_v59 = vsel %vm5911_vm11, %v5879_v5, %v5943_v39  ;;  %v5856_v46 = vmul.f32 %v9458_v4, %v5696_v45  ;;  %v12715_v49 = vand.u32 2147483647, %v12703_v34  ;;  %v5977_v28 = vsel %vm5913_vm12, %v5881_v36, %v5945_v50 }
0x1215   : > { %vm5918_vm15 = vcmp.ge.f32.partialorder %v13145_v25, 0.0  ;;  %v5951_v52 = vsub.f32 0.0, %v5887_v37  ;;  %v5447_v14 = vmul.f32 1.0614054, %v12700_v40  ;;  %v12722_v30 = vmul.f32 0.70710677, %v12706_v63 }
0x1216   : > { %v12724_v10 = vpop.eup %9459  ;;  %v5886_v60 = vsub.f32 1.0, %v5854_v15  ;;  %v5953_v22 = vsub.f32 0.0, %v5889_v44  ;;  %v5358_v57 = vmul.f32 0.3275911, %v12715_v49  ;;  %v12728_v5 = vadd.f32 %v5178_v1, %v12313_v12  ;;  %v13147_v15 = vld [vmem:[#allocation70_spill] sm:$0xff] }
0x1217   : > { %v6007_v31 = vadd.f32 1.0, %v5975_v59  ;;  %vm5920_vm0 = vcmp.ge.f32.partialorder %v13146_v33, 0.0  ;;  %v5478_v36 = vadd.f32 -1.4531521, %v5446_v35  ;;  %v5734_v48 = vsub.f32 0.0, %v12581_v21  ;;  %v13148_v33 = vld [vmem:[#allocation76_spill] sm:$0xff] }
0x1218   : > { %v12733_v9 = vand.u32 2147483647, %v12722_v30  ;;  %v6009_v26 = vadd.f32 1.0, %v5977_v28  ;;  %v5888_v11 = vsub.f32 1.0, %v5856_v46  ;;  %v5735_v51 = vsub.f32 0.0, %v12589_v18 }
0x1219   : > { %v5390_v32 = vadd.f32 1.0, %v5358_v57  ;;  %v5983_v47 = vsel %vm5919_vm13, %v5887_v37, %v5951_v52  ;;  %v5448_v12 = vmul.f32 1.0614054, %v12724_v10  ;;  %v5479_v39 = vadd.f32 -1.4531521, %v5447_v14 }
0x121a   : > { %v5360_v8 = vmul.f32 0.3275911, %v12733_v9  ;;  %v12740_v45 = vpop.eup %9461  ;;  %v5950_v61 = vsub.f32 0.0, %v5886_v60  ;;  %v5985_v7 = vsel %vm5921_vm14, %v5889_v44, %v5953_v22  ;;  %v12745_v50 = vmul.f32 0.70710677, %v12728_v5  ;;  %v5231_v44 = vpop.f32.mrf.mxu0 }
0x121b   : > { %9463 = vrcp.f32 %v5390_v32  ;;  %v12748_v4 = vmul.f32 %v6008_v0, %v13147_v15  ;;  %v5510_v24 = vmul.f32 %v12686_v56, %v5478_v36  ;;  %v5766_v37 = vmul.f32 %v5734_v48, %v12581_v21 }
0x121c   : > { %v5449_v23 = vmul.f32 1.0614054, %v12740_v45  ;;  %v5952_v35 = vsub.f32 0.0, %v5888_v11  ;;  %v6015_v1 = vadd.f32 1.0, %v5983_v47  ;;  %v5392_v59 = vadd.f32 1.0, %v5360_v8 }
0x121d   : > { %v12754_v46 = vand.u32 2147483647, %v12745_v50  ;;  %v6039_v58 = vmul.f32 %v6007_v31, %v12534_v17  ;;  %v6017_v28 = vadd.f32 1.0, %v5985_v7  ;;  %v5511_v52 = vmul.f32 %v12700_v40, %v5479_v39 }
0x121e   : > { %v5767_v0 = vmul.f32 %v5735_v51, %v12589_v18  ;;  %v6041_v14 = vmul.f32 %v6009_v26, %v12667_v27  ;;  %v5982_v21 = vsel %vm5918_vm15, %v5886_v60, %v5950_v61  ;;  %v5480_v22 = vadd.f32 -1.4531521, %v5448_v12 }
0x121f   : > { %9465 = vrcp.f32 %v5392_v59  ;;  %v5542_v57 = vadd.f32 1.4214138, %v5510_v24  ;;  %v5481_v36 = vadd.f32 -1.4531521, %v5449_v23  ;;  %v5359_v48 = vmul.f32 0.3275911, %v12754_v46 }
0x1220   : > { %v12764_v32 = vadd.f32 %v5231_v44, %v12341_v41  ;;  %v5984_v17 = vsel %vm5920_vm0, %v5888_v11, %v5952_v35  ;;  %v6047_v31 = vmul.f32 %v6015_v1, %v12693_v43  ;;  %v5742_v18 = vsub.f32 0.0, %v12715_v49 }
0x1221   : > { %v6204_v27 = vpack.c.bf16 %v12677_v38, %v12522_v62  ;;  %v6014_v25 = vadd.f32 1.0, %v5982_v21  ;;  %v6049_v60 = vmul.f32 %v6017_v28, %v5249_v29  ;;  %v5543_v26 = vadd.f32 1.4214138, %v5511_v52  ;;  %v13149_v62 = vld [vmem:[#allocation77_spill] sm:$0xff] }
0x1222   : > { %v5391_v51 = vadd.f32 1.0, %v5359_v48  ;;  %v5512_v47 = vmul.f32 %v12724_v10, %v5480_v22  ;;  %v12774_v12 = vmul.f32 0.70710677, %v12764_v32  ;;  %v6206_v41 = vpack.c.bf16 %v12680_v53, %v12598_v42 }
0x1223   : > { %6904 = vmatprep.mubr.bf16.mxu1 %v6204_v27  ;;  %v6203_v43 = vpack.c.bf16 %v12662_v16, %v13148_v33  ;;  %v6016_v11 = vadd.f32 1.0, %v5984_v17  ;;  %v5513_v39 = vmul.f32 %v12740_v45, %v5481_v36  ;;  %v6205_v38 = vpack.c.bf16 %v12670_v55, %v13149_v62  ;;  %v13150_v55 = vld [vmem:[#allocation84_spill] sm:$0xff] }
0x1224   : > { %9467 = vrcp.f32 %v5391_v51  ;;  %v5818_v29 = vmul.f32 1.442695, %v5766_v37  ;;  %v5774_v8 = vmul.f32 %v5742_v18, %v12715_v49  ;;  %v12785_v61 = vand.u32 2147483647, %v12774_v12  ;;  %6957 = vmatprep.mubr.bf16.mxu0 %v6206_v41 }
0x1225   : > { %6905 = vmatmul.mubr.bf16.gmra.mxu1 %v6203_v43  ;;  %v6200_v7 = vpack.c.bf16 %v6047_v31, %v6039_v58  ;;  %v5574_v42 = vmul.f32 %v12686_v56, %v5542_v57  ;;  %v5575_v16 = vmul.f32 %v12700_v40, %v5543_v26  ;;  %v5744_v53 = vsub.f32 0.0, %v12733_v9  ;;  %6958 = vmatmul.mubr.bf16.gmra.mxu0 %v6205_v38 }
0x1226   : > { %v6202_v15 = vpack.c.bf16 %v6049_v60, %v6041_v14  ;;  %v6046_v24 = vmul.f32 %v6014_v25, %v12684_v2  ;;  %v5736_v37 = vsub.f32 0.0, %v13150_v55  ;;  %v5737_v49 = vsub.f32 0.0, %v12639_v6 }
0x1227   : > { %v5361_v23 = vmul.f32 0.3275911, %v12785_v61  ;;  %7000 = vmatprep.mubr.bf16.mxu1 %v6200_v7  ;;  %v6048_v1 = vmul.f32 %v6016_v11, %v12689_v20  ;;  %v5544_v59 = vadd.f32 1.4214138, %v5512_v47  ;;  %v5820_v44 = vmul.f32 1.442695, %v5767_v0 }
0x1228   : > { %v12794_v35 = vpop.eup %9463  ;;  %v5545_v58 = vadd.f32 1.4214138, %v5513_v39  ;;  %7053 = vmatprep.mubr.bf16.mxu0 %v6202_v15  ;;  %9469 = vpow2.f32 %v5818_v29  ;;  %v5834_v52 = vmul.f32 1.442695, %v5774_v8  ;;  %v5606_v14 = vadd.f32 -0.28449672, %v5574_v42 }
0x1229   : > { %v5454_v28 = vmul.f32 1.0614054, %v12794_v35  ;;  %v5393_v2 = vadd.f32 1.0, %v5361_v23  ;;  %v5607_v21 = vadd.f32 -0.28449672, %v5575_v16  ;;  %v5776_v22 = vmul.f32 %v5744_v53, %v12733_v9 }
0x122a   : > { %v5743_v57 = vsub.f32 0.0, %v12754_v46  ;;  %v6199_v36 = vpack.c.bf16 %v6046_v24, %v12696_v13  ;;  %v5769_v48 = vmul.f32 %v5737_v49, %v12639_v6  ;;  %v6201_v17 = vpack.c.bf16 %v6048_v1, %v12748_v4 }
0x122b   : > { %v5486_v20 = vadd.f32 -1.4531521, %v5454_v28  ;;  %9471 = vrcp.f32 %v5393_v2  ;;  %v5768_v31 = vmul.f32 %v5736_v37, %v13150_v55  ;;  %v5577_v18 = vmul.f32 %v12740_v45, %v5545_v58 }
0x122c   : > { %v12802_v0 = vpop.eup %9465  ;;  %9473 = vpow2.f32 %v5820_v44  ;;  %v5576_v27 = vmul.f32 %v12724_v10, %v5544_v59  ;;  %v5639_v6 = vmul.f32 %v12700_v40, %v5607_v21  ;;  %v5838_v25 = vmul.f32 1.442695, %v5776_v22 }
0x122d   : > { %v5518_v9 = vmul.f32 %v12794_v35, %v5486_v20  ;;  %9475 = vpow2.f32 %v5834_v52  ;;  %v5456_v13 = vmul.f32 1.0614054, %v12802_v0  ;;  %7001 = vmatmul.mubr.bf16.vlgmr.msra.gmra.mxu1 %v6199_v36  ;;  %v5775_v60 = vmul.f32 %v5743_v57, %v12754_v46  ;;  %7054 = vmatmul.mubr.bf16.vlgmr.msra.gmra.mxu0 %v6201_v17 }
0x122e   : > { %v5638_v4 = vmul.f32 %v12686_v56, %v5606_v14  ;;  %v5824_v26 = vmul.f32 1.442695, %v5769_v48  ;;  %v5822_v41 = vmul.f32 1.442695, %v5768_v31  ;;  %v5609_v33 = vadd.f32 -0.28449672, %v5577_v18 }
0x122f   : > { %v5550_v51 = vadd.f32 1.4214138, %v5518_v9  ;;  %v5488_v47 = vadd.f32 -1.4531521, %v5456_v13  ;;  %v5608_v11 = vadd.f32 -0.28449672, %v5576_v27  ;;  %9477 = vpow2.f32 %v5838_v25 }
0x1230   : > { %v5745_v38 = vsub.f32 0.0, %v12785_v61  ;;  %v5671_v29 = vadd.f32 0.2548296, %v5639_v6  ;;  %v5836_v8 = vmul.f32 1.442695, %v5775_v60  ;;  %9479 = vpow2.f32 %v5824_v26 }
0x1231   : > { %v12813_v43 = vpop.eup %9467  ;;  %v5582_v39 = vmul.f32 %v12794_v35, %v5550_v51  ;;  %v5520_v62 = vmul.f32 %v12802_v0, %v5488_v47  ;;  %v5670_v7 = vadd.f32 0.2548296, %v5638_v4  ;;  %9481 = vpow2.f32 %v5822_v41 }
0x1232   : > { %v5455_v46 = vmul.f32 1.0614054, %v12813_v43  ;;  %v5641_v53 = vmul.f32 %v12740_v45, %v5609_v33  ;;  %v5777_v37 = vmul.f32 %v5745_v38, %v12785_v61  ;;  %v5640_v23 = vmul.f32 %v12724_v10, %v5608_v11 }
0x1233   : > { %v5614_v42 = vadd.f32 -0.28449672, %v5582_v39  ;;  %v5552_v16 = vadd.f32 1.4214138, %v5520_v62  ;;  %v5703_v1 = vmul.f32 %v12700_v40, %v5671_v29  ;;  %9483 = vpow2.f32 %v5836_v8 }
0x1234   : > { %v5487_v15 = vadd.f32 -1.4531521, %v5455_v46  ;;  %v5702_v44 = vmul.f32 %v12686_v56, %v5670_v7  ;;  %v5673_v2 = vadd.f32 0.2548296, %v5641_v53  ;;  %v5840_v36 = vmul.f32 1.442695, %v5777_v37 }
0x1235   : > { %v5646_v24 = vmul.f32 %v12794_v35, %v5614_v42  ;;  %v5584_v55 = vmul.f32 %v12802_v0, %v5552_v16  ;;  %v9470_v49 = vpop.eup %9469  ;;  %v5672_v20 = vadd.f32 0.2548296, %v5640_v23  ;;  %vm5934_vm1 = vcmp.ge.f32.partialorder %v12703_v34, 0.0 }
0x1236   : > { %v5519_v59 = vmul.f32 %v12813_v43, %v5487_v15  ;;  %v5862_v31 = vmul.f32 %v9470_v49, %v5702_v44  ;;  %v5705_v9 = vmul.f32 %v12740_v45, %v5673_v2  ;;  %9485 = vpow2.f32 %v5840_v36  ;;  %v13151_v15 = vld [vmem:[#allocation82_spill] sm:$0xff]  ;;  %v13152_v49 = vld [vmem:[#allocation80_spill] sm:$0xff]  ;;  %v13154_v2 = vld [vmem:[#allocation79_spill] sm:$0xff] }
0x1237   : > { %v5678_v58 = vadd.f32 0.2548296, %v5646_v24  ;;  %v5616_v28 = vadd.f32 -0.28449672, %v5584_v55  ;;  %v5704_v60 = vmul.f32 %v12724_v10, %v5672_v20  ;;  %vm5927_vm2 = vcmp.ge.f32.partialorder %v13151_v15, 0.0  ;;  %v13153_v44 = vld [vmem:[#allocation78_spill] sm:$0xff] }
0x1238   : > { %v9472_v52 = vpop.eup %9471  ;;  %v5551_v14 = vadd.f32 1.4214138, %v5519_v59  ;;  %v5894_v47 = vsub.f32 1.0, %v5862_v31  ;;  %vm5926_vm3 = vcmp.ge.f32.partialorder %v13152_v49, 0.0  ;;  %vm5935_vm4 = vcmp.ge.f32.partialorder %v12745_v50, 0.0  ;;  %v13158_v15 = vld [vmem:[#allocation57_spill] sm:$0xff] }
0x1239   : > { %v9474_v21 = vpop.eup %9473  ;;  %v5710_v22 = vmul.f32 %v12794_v35, %v5678_v58  ;;  %v5648_v61 = vmul.f32 %v12802_v0, %v5616_v28  ;;  %v5457_v57 = vmul.f32 1.0614054, %v9472_v52  ;;  %v5254_v58 = vmul.f32 0.5, %v13153_v44  ;;  %v13159_v49 = vld [vmem:[#allocation58_spill] sm:$0xff] }
0x123a   : > { %v9476_v48 = vpop.eup %9475  ;;  %v5863_v40 = vmul.f32 %v9474_v21, %v5703_v1  ;;  %v5583_v17 = vmul.f32 %v12813_v43, %v5551_v14  ;;  %v5958_v42 = vsub.f32 0.0, %v5894_v47  ;;  %v5255_v14 = vmul.f32 0.5, %v13154_v2 }
0x123b   : > { %v5870_v18 = vmul.f32 %v9476_v48, %v5710_v22  ;;  %v5680_v56 = vadd.f32 0.2548296, %v5648_v61  ;;  %v5489_v27 = vadd.f32 -1.4531521, %v5457_v57  ;;  %vm5936_vm5 = vcmp.ge.f32.partialorder %v12722_v30, 0.0 }
0x123c   : > { %v5615_v13 = vadd.f32 -0.28449672, %v5583_v17  ;;  %v5895_v4 = vsub.f32 1.0, %v5863_v40  ;;  %v9478_v51 = vpop.eup %9477  ;;  %v5262_v17 = vmul.f32 0.5, %v12674_v19  ;;  %vm5929_vm7 = vcmp.ge.f32.partialorder %v12629_v3, 0.0 }
0x123d   : > { %v5902_v6 = vsub.f32 1.0, %v5870_v18  ;;  %v5712_v25 = vmul.f32 %v12802_v0, %v5680_v56  ;;  %v5521_v35 = vmul.f32 %v9472_v52, %v5489_v27  ;;  %v9480_v33 = vpop.eup %9479  ;;  %v5263_v18 = vmul.f32 0.5, %v12728_v5 }
0x123e   : > { %v5647_v26 = vmul.f32 %v12813_v43, %v5615_v13  ;;  %v9482_v62 = vpop.eup %9481  ;;  %v5865_v38 = vmul.f32 %v9480_v33, %v5705_v9  ;;  %v5959_v8 = vsub.f32 0.0, %v5895_v4  ;;  %v13155_v9 = vld [vmem:[#allocation83_spill] sm:$0xff]  ;;  %vm5937_vm8 = vcmp.ge.f32.partialorder %v12774_v12, 0.0 }
0x123f   : > { %v5553_v41 = vadd.f32 1.4214138, %v5521_v35  ;;  %v5872_v11 = vmul.f32 %v9478_v51, %v5712_v25  ;;  %v5966_v45 = vsub.f32 0.0, %v5902_v6  ;;  %v5864_v46 = vmul.f32 %v9482_v62, %v5704_v60  ;;  %v13156_v62 = vld [vmem:[#allocation81_spill] sm:$0xff] }
0x1240   : > { %v5679_v39 = vadd.f32 0.2548296, %v5647_v26  ;;  %v9484_v7 = vpop.eup %9483  ;;  %v5897_v24 = vsub.f32 1.0, %v5865_v38  ;;  %v5991_v1 = vsel %vm5927_vm2, %v5895_v4, %v5959_v8  ;;  %vm5928_vm6 = vcmp.ge.f32.partialorder %v13155_v9, 0.0 }
0x1241   : > { %v5585_v29 = vmul.f32 %v9472_v52, %v5553_v41  ;;  %v5904_v16 = vsub.f32 1.0, %v5872_v11  ;;  %v5998_v55 = vsel %vm5934_vm1, %v5902_v6, %v5966_v45  ;;  %v5896_v23 = vsub.f32 1.0, %v5864_v46 }
0x1242   : > { %v5711_v0 = vmul.f32 %v12813_v43, %v5679_v39  ;;  %v5990_v43 = vsel %vm5926_vm3, %v5894_v47, %v5958_v42  ;;  %v6030_v21 = vadd.f32 1.0, %v5998_v55  ;;  %v6023_v61 = vadd.f32 1.0, %v5991_v1 }
0x1243   : > { %v5617_v10 = vadd.f32 -0.28449672, %v5585_v29  ;;  %v5968_v34 = vsub.f32 0.0, %v5904_v16  ;;  %v5961_v57 = vsub.f32 0.0, %v5897_v24  ;;  %v9486_v48 = vpop.eup %9485  ;;  %v6022_v20 = vadd.f32 1.0, %v5990_v43 }
0x1244   : > { %v5871_v53 = vmul.f32 %v9484_v7, %v5711_v0  ;;  %v5960_v40 = vsub.f32 0.0, %v5896_v23  ;;  %v6062_v13 = vmul.f32 %v6030_v21, %v5262_v17  ;;  %v6055_v50 = vmul.f32 %v6023_v61, %v5255_v14 }
0x1245   : > { %v5649_v37 = vmul.f32 %v9472_v52, %v5617_v10  ;;  %v6000_v6 = vsel %vm5936_vm5, %v5904_v16, %v5968_v34  ;;  %v6054_v60 = vmul.f32 %v6022_v20, %v5254_v58  ;;  %v5264_v41 = vmul.f32 0.5, %v12706_v63 }
0x1246   : > { %v5903_v59 = vsub.f32 1.0, %v5871_v53  ;;  %v5992_v4 = vsel %vm5928_vm6, %v5896_v23, %v5960_v40  ;;  %v6032_v19 = vadd.f32 1.0, %v6000_v6  ;;  %v5257_v3 = vmul.f32 0.5, %v12617_v54 }
0x1247   : > { %v5681_v28 = vadd.f32 0.2548296, %v5649_v37  ;;  %v6207_v5 = vpack.c.bf16 %v6062_v13, %v6054_v60  ;;  %v6024_v47 = vadd.f32 1.0, %v5992_v4  ;;  %v5265_v11 = vmul.f32 0.5, %v12764_v32  ;;  %v6194_v32 = vld [vmem:[%s13157_s11] sm:$0x3] }
0x1248   : > { %v5967_v22 = vsub.f32 0.0, %v5903_v59  ;;  %v5256_v38 = vmul.f32 0.5, %v13156_v62  ;;  %v6064_v45 = vmul.f32 %v6032_v19, %v5264_v41  ;;  %v6219_v23 = vrot.slane %v6194_v32, %v13159_v49  ;;  %v13161_v60 = vld [vmem:[#allocation59_spill] sm:$0xff] }
0x1249   : > { %v5713_v36 = vmul.f32 %v9472_v52, %v5681_v28  ;;  %v5993_v52 = vsel %vm5929_vm7, %v5897_v24, %v5961_v57  ;;  %v6215_v24 = vrot.slane %v6194_v32, %v13158_v15 }
0x124a   : > { %v5999_v31 = vsel %vm5935_vm4, %v5903_v59, %v5967_v22  ;;  %v6025_v30 = vadd.f32 1.0, %v5993_v52  ;;  %v6056_v8 = vmul.f32 %v6024_v47, %v5256_v38  ;;  %v13162_v47 = vld [vmem:[#allocation62_spill] sm:$0xff] }
0x124b   : > { %v6031_v56 = vadd.f32 1.0, %v5999_v31  ;;  %v5873_v27 = vmul.f32 %v9486_v48, %v5713_v36 }
0x124c   : > { %v6057_v29 = vmul.f32 %v6025_v30, %v5257_v3  ;;  %v6209_v0 = vpack.c.bf16 %v6064_v45, %v6056_v8 }
0x124d   : > { %v6063_v25 = vmul.f32 %v6031_v56, %v5263_v18  ;;  %v5905_v35 = vsub.f32 1.0, %v5873_v27 }
0x124f   : > { %v5969_v26 = vsub.f32 0.0, %v5905_v35  ;;  %v6208_v51 = vpack.c.bf16 %v6063_v25, %v6055_v50  ;;  %v13160_v25 = vld [vmem:[#allocation61_spill] sm:$0xff] }
0x1251   : > { %v6001_v33 = vsel %vm5937_vm8, %v5905_v35, %v5969_v26  ;;  %7010 = vmatprep.mubr.bf16.mxu1 %v6208_v51 }
0x1252   : > { %v6033_v39 = vadd.f32 1.0, %v6001_v33  ;;  %7011 = vmatmul.mubr.bf16.gmra.mxu1 %v6207_v5  ;;  %v13163_v33 = vld [vmem:[#allocation60_spill] sm:$0xff] }
0x1254   : > { %v6065_v46 = vmul.f32 %v6033_v39, %v5265_v11 }
0x1256   : > { %v6210_v12 = vpack.c.bf16 %v6065_v46, %v6057_v29 }
0x1258   : > { %7063 = vmatprep.mubr.bf16.mxu0 %v6210_v12 }
0x1259   : > { %7064 = vmatmul.mubr.bf16.gmra.mxu0 %v6209_v0 }
0x1264   : > { %v6896_v63 = vpop.f32.mrf.mxu1 }
0x1265   : > { %v6897_v44 = vadd.f32 %v6896_v63, %v6215_v24 }
0x1266   : > { %v6898_v42 = vpop.f32.mrf.mxu1 }
0x1267   : > { %v6949_v7 = vpop.f32.mrf.mxu0  ;;  %v6899_v28 = vadd.f32 %v6898_v42, %v6219_v23 }
0x1268   : > { %v6900_v54 = vpop.f32.mrf.mxu1  ;;  %v6950_v21 = vadd.f32 %v6949_v7, %v6897_v44 }
0x1269   : > { %v6951_v10 = vpop.f32.mrf.mxu0  ;;  %v6901_v34 = vadd.f32 %v6900_v54, %v6215_v24 }
0x126a   : > { %v6902_v53 = vpop.f32.mrf.mxu1  ;;  %v6952_v57 = vadd.f32 %v6951_v10, %v6899_v28 }
0x126b   : > { %v6953_v16 = vpop.f32.mrf.mxu0  ;;  %v6903_v36 = vadd.f32 %v6902_v53, %v6219_v23 }
0x126c   : > { %v6954_v17 = vadd.f32 %v6953_v16, %v6901_v34  ;;  %v13166_v34 = vld [vmem:[#allocation66_spill] sm:$0xff] }
0x126d   : > { %v6955_v55 = vpop.f32.mrf.mxu0 }
0x126e   : > { %v6956_v9 = vadd.f32 %v6955_v55, %v6903_v36 }
0x12e5   : > { %v6906_v37 = vpop.f32.mrf.mxu1  ;;  %v6959_v1 = vpop.f32.mrf.mxu0 }
0x12e6   : > { %v6907_v39 = vadd.f32 %v6906_v37, %v6215_v24 }
0x12e7   : > { %v6908_v59 = vpop.f32.mrf.mxu1  ;;  %v6961_v58 = vpop.f32.mrf.mxu0 }
0x12e8   : > { %v6909_v62 = vadd.f32 %v6908_v59, %v6219_v23  ;;  %v6960_v45 = vadd.f32 %v6959_v1, %v6907_v39  ;;  %v13164_v59 = vld [vmem:[#allocation65_spill] sm:$0xff]  ;;  %v13165_v1 = vld [vmem:[#allocation63_spill] sm:$0xff] }
0x12e9   : > { %v6910_v43 = vpop.f32.mrf.mxu1  ;;  %v6963_v2 = vpop.f32.mrf.mxu0 }
0x12ea   : > { %v6911_v29 = vadd.f32 %v6910_v43, %v6215_v24  ;;  %v6962_v8 = vadd.f32 %v6961_v58, %v6909_v62 }
0x12eb   : > { %v6912_v14 = vpop.f32.mrf.mxu1  ;;  %v6965_v22 = vpop.f32.mrf.mxu0 }
0x12ec   : > { %v6913_v12 = vadd.f32 %v6912_v14, %v6219_v23  ;;  %v6964_v7 = vadd.f32 %v6963_v2, %v6911_v29 }
0x12ed   : > { %v7002_v61 = vpop.f32.mrf.mxu1  ;;  %v7055_v20 = vpop.f32.mrf.mxu0 }
0x12ee   : > { %v7003_v48 = vadd.f32 %v7002_v61, %v6950_v21  ;;  %v6966_v16 = vadd.f32 %v6965_v22, %v6913_v12  ;;  %v13167_v61 = vld [vmem:[#allocation64_spill] sm:$0xff] }
0x12ef   : > { %v7004_v40 = vpop.f32.mrf.mxu1  ;;  %v7057_v56 = vpop.f32.mrf.mxu0  ;;  %v7083_v12 = vld [vmem:[%s13169_s24] sm:$0x3] }
0x12f0   : > { %v7056_v31 = vadd.f32 %v7055_v20, %v7003_v48  ;;  %v7005_v18 = vadd.f32 %v7004_v40, %v6952_v57 }
0x12f1   : > { %v7006_v27 = vpop.f32.mrf.mxu1  ;;  %v7059_v50 = vpop.f32.mrf.mxu0 }
0x12f2   : > { %v7058_v13 = vadd.f32 %v7057_v56, %v7005_v18  ;;  %v7007_v6 = vadd.f32 %v7006_v27, %v6954_v17  ;;  %v7074_v35 = vadd.f32 %v7056_v31, %v13160_v25 }
0x12f3   : > { %v7008_v52 = vpop.f32.mrf.mxu1  ;;  %v7061_v51 = vpop.f32.mrf.mxu0 }
0x12f4   : > { %v7075_v4 = vadd.f32 %v7058_v13, %v13161_v60  ;;  %v7060_v19 = vadd.f32 %v7059_v50, %v7007_v6  ;;  %v7009_v26 = vadd.f32 %v7008_v52, %v6956_v9 }
0x12f6   : > { %v7062_v30 = vadd.f32 %v7061_v51, %v7009_v26  ;;  %v7084_v5 = vadd.f32 %v7075_v4, %v7074_v35  ;;  %v7076_v41 = vadd.f32 %v7060_v19, %v13162_v47 }
0x12f8   : > { %v7077_v3 = vadd.f32 %v7062_v30, %v13163_v33  ;;  %7085 = vadd.xlane.f32.xlu0 %v7084_v5 }
0x12fa   : > { %v7087_v11 = vadd.f32 %v7077_v3, %v7076_v41 }
0x12fc   : > { %7088 = vadd.xlane.f32.xlu1 %v7087_v11 }
0x1312   : > { %v7012_v38 = vpop.f32.mrf.mxu1 }
0x1313   : > { %v7013_v0 = vadd.f32 %v7012_v38, %v6960_v45 }
0x1314   : > { %v7014_v46 = vpop.f32.mrf.mxu1 }
0x1315   : > { %v7015_v42 = vadd.f32 %v7014_v46, %v6962_v8  ;;  %v7082_v8 = vld [vmem:[%s13168_s20] sm:$0x3] }
0x1316   : > { %v7016_v63 = vpop.f32.mrf.mxu1 }
0x1317   : > { %v7017_v53 = vadd.f32 %v7016_v63, %v6964_v7  ;;  %v7156_v63 = vrot.slane %v7082_v8, %v13159_v49 }
0x1318   : > { %v7018_v54 = vpop.f32.mrf.mxu1 }
0x1319   : > { %v7065_v10 = vpop.f32.mrf.mxu0  ;;  %v7019_v28 = vadd.f32 %v7018_v54, %v6966_v16 }
0x131a   : > { %v7066_v32 = vadd.f32 %v7065_v10, %v7013_v0  ;;  %v7152_v0 = vrot.slane %v7082_v8, %v13158_v15  ;;  %v7175_v10 = vrot.slane %v7083_v12, %v13159_v49 }
0x131b   : > { %v7067_v55 = vpop.f32.mrf.mxu0 }
0x131c   : > { %v7068_v44 = vadd.f32 %v7067_v55, %v7015_v42  ;;  %v7078_v21 = vadd.f32 %v7066_v32, %v13164_v59  ;;  %v7171_v42 = vrot.slane %v7083_v12, %v13158_v15 }
0x131d   : > { %v7069_v37 = vpop.f32.mrf.mxu0 }
0x131e   : > { %v7079_v24 = vadd.f32 %v7068_v44, %v13165_v1  ;;  %v7070_v43 = vadd.f32 %v7069_v37, %v7017_v53 }
0x131f   : > { %v7071_v58 = vpop.f32.mrf.mxu0 }
0x1320   : > { %v7072_v23 = vadd.f32 %v7071_v58, %v7019_v28  ;;  %v7090_v14 = vadd.f32 %v7079_v24, %v7078_v21  ;;  %v7080_v2 = vadd.f32 %v7070_v43, %v13166_v34 }
0x1322   : > { %v7081_v57 = vadd.f32 %v7072_v23, %v13167_v61  ;;  %7091 = vadd.xlane.f32.xlu0 %v7090_v14 }
0x1324   : > { %v7093_v22 = vadd.f32 %v7081_v57, %v7080_v2 }
0x1326   : > { %7094 = vadd.xlane.f32.xlu1 %v7093_v22 }
0x1381   : > { %v7086_v36 = vpop.xlane.xlu0 %7085 }
0x1382   : > { %v7096_v48 = vmul.f32 0.00390625, %v7086_v36 }
0x1384   : > { %v7100_v20 = vsub.f32 %v7074_v35, %v7096_v48  ;;  %v7101_v40 = vsub.f32 %v7075_v4, %v7096_v48 }
0x1385   : > { %v7089_v17 = vpop.xlane.xlu1 %7088 }
0x1386   : > { %v7097_v31 = vmul.f32 0.00390625, %v7089_v17  ;;  %v7108_v18 = vmul.f32 %v7100_v20, %v7100_v20  ;;  %v7109_v56 = vmul.f32 %v7101_v40, %v7101_v40 }
0x1388   : > { %v7102_v27 = vsub.f32 %v7076_v41, %v7097_v31  ;;  %v7103_v9 = vsub.f32 %v7077_v3, %v7097_v31  ;;  %v7116_v13 = vadd.f32 %v7109_v56, %v7108_v18 }
0x138a   : > { %7117 = vadd.xlane.f32.xlu0 %v7116_v13  ;;  %v7110_v6 = vmul.f32 %v7102_v27, %v7102_v27  ;;  %v7111_v50 = vmul.f32 %v7103_v9, %v7103_v9 }
0x138c   : > { %v7119_v52 = vadd.f32 %v7111_v50, %v7110_v6 }
0x138e   : > { %7120 = vadd.xlane.f32.xlu1 %v7119_v52 }
0x13ab   : > { %v7092_v25 = vpop.xlane.xlu0 %7091 }
0x13ac   : > { %v7098_v60 = vmul.f32 0.00390625, %v7092_v25 }
0x13ae   : > { %v7104_v19 = vsub.f32 %v7078_v21, %v7098_v60  ;;  %v7105_v26 = vsub.f32 %v7079_v24, %v7098_v60 }
0x13af   : > { %v7095_v51 = vpop.xlane.xlu1 %7094 }
0x13b0   : > { %v7099_v30 = vmul.f32 0.00390625, %v7095_v51  ;;  %v7112_v35 = vmul.f32 %v7104_v19, %v7104_v19  ;;  %v7113_v4 = vmul.f32 %v7105_v26, %v7105_v26 }
0x13b2   : > { %v7106_v5 = vsub.f32 %v7080_v2, %v7099_v30  ;;  %v7107_v47 = vsub.f32 %v7081_v57, %v7099_v30  ;;  %v7122_v41 = vadd.f32 %v7113_v4, %v7112_v35 }
0x13b4   : > { %7123 = vadd.xlane.f32.xlu0 %v7122_v41  ;;  %v7114_v33 = vmul.f32 %v7106_v5, %v7106_v5  ;;  %v7115_v3 = vmul.f32 %v7107_v47, %v7107_v47 }
0x13b6   : > { %v7125_v11 = vadd.f32 %v7115_v3, %v7114_v33 }
0x13b8   : > { %7126 = vadd.xlane.f32.xlu1 %v7125_v11 }
0x1413   : > { %v7118_v39 = vpop.xlane.xlu0 %7117 }
0x1414   : > { %v7128_v62 = vmul.f32 0.00390625, %v7118_v39 }
0x1416   : > { %v7132_v38 = vadd.f32 1e-05, %v7128_v62 }
0x1417   : > { %v7121_v45 = vpop.xlane.xlu1 %7120 }
0x1418   : > { %9487 = vrsqrt.f32 %v7132_v38  ;;  %v7129_v29 = vmul.f32 0.00390625, %v7121_v45 }
0x141a   : > { %v7133_v46 = vadd.f32 1e-05, %v7129_v29 }
0x141c   : > { %9489 = vrsqrt.f32 %v7133_v46 }
0x1425   : > { %v9488_v7 = vpop.eup %9487 }
0x1426   : > { %v7140_v54 = vmul.f32 %v9488_v7, %v7100_v20  ;;  %v7141_v16 = vmul.f32 %v9488_v7, %v7101_v40 }
0x1428   : > { %v7159_v32 = vmul.f32 %v7152_v0, %v7140_v54  ;;  %v7160_v53 = vmul.f32 %v7156_v63, %v7141_v16 }
0x1429   : > { %v9490_v55 = vpop.eup %9489 }
0x142a   : > { %v12871_v44 = vadd.f32 %v7171_v42, %v7159_v32  ;;  %v7179_v28 = vadd.f32 %v7175_v10, %v7160_v53  ;;  %v7142_v37 = vmul.f32 %v9490_v55, %v7102_v27  ;;  %v7143_v59 = vmul.f32 %v9490_v55, %v7103_v9 }
0x142c   : > { %7186 = vst [vmem:[#allocation2 + $0x30] sm:$0xff] %v12871_v44  ;;  %7187 = vst [vmem:[#allocation2] sm:$0xff] %v7179_v28  ;;  %v7161_v21 = vmul.f32 %v7152_v0, %v7142_v37  ;;  %v7162_v1 = vmul.f32 %v7156_v63, %v7143_v59 }
0x142e   : > { %v12874_v24 = vadd.f32 %v7171_v42, %v7161_v21  ;;  %v7181_v15 = vadd.f32 %v7175_v10, %v7162_v1 }
0x1430   : > { %7188 = vst [vmem:[#allocation2 + $0x18] sm:$0xff] %v12874_v24  ;;  %7189 = vst [vmem:[#allocation2 + $0x10] sm:$0xff] %v7181_v15 }
0x143d   : > { %v7124_v49 = vpop.xlane.xlu0 %7123 }
0x143e   : > { %v7130_v43 = vmul.f32 0.00390625, %v7124_v49 }
0x1440   : > { %v7134_v58 = vadd.f32 1e-05, %v7130_v43 }
0x1441   : > { %v7127_v23 = vpop.xlane.xlu1 %7126 }
0x1442   : > { %9491 = vrsqrt.f32 %v7134_v58  ;;  %v7131_v14 = vmul.f32 0.00390625, %v7127_v23 }
0x1444   : > { %v7135_v34 = vadd.f32 1e-05, %v7131_v14 }
0x1446   : > { %9493 = vrsqrt.f32 %v7135_v34 }
0x144f   : > { %v9492_v2 = vpop.eup %9491 }
0x1450   : > { %v7144_v61 = vmul.f32 %v9492_v2, %v7104_v19  ;;  %v7145_v57 = vmul.f32 %v9492_v2, %v7105_v26 }
0x1452   : > { %v7163_v22 = vmul.f32 %v7152_v0, %v7144_v61  ;;  %v7164_v36 = vmul.f32 %v7156_v63, %v7145_v57 }
0x1453   : > { %v9494_v48 = vpop.eup %9493 }
0x1454   : > { %v12877_v20 = vadd.f32 %v7171_v42, %v7163_v22  ;;  %v7183_v40 = vadd.f32 %v7175_v10, %v7164_v36  ;;  %v7146_v17 = vmul.f32 %v9494_v48, %v7106_v5  ;;  %v7147_v31 = vmul.f32 %v9494_v48, %v7107_v47 }
0x1456   : > { %7190 = vst [vmem:[#allocation2 + $0x8] sm:$0xff] %v12877_v20  ;;  %7191 = vst [vmem:[#allocation2 + $0x20] sm:$0xff] %v7183_v40  ;;  %v7165_v18 = vmul.f32 %v7152_v0, %v7146_v17  ;;  %v7166_v56 = vmul.f32 %v7156_v63, %v7147_v31  ;;  %7197 = sbr.rel (%p8320_p11) target bundleno = 5448 (0x1548), region = 228 }
0x1458   : > { %v7184_v27 = vadd.f32 %v7171_v42, %v7165_v18  ;;  %v7185_v9 = vadd.f32 %v7175_v10, %v7166_v56 }
0x145a   : > { %7192 = vst [vmem:[#allocation2 + $0x28] sm:$0xff] %v7184_v27  ;;  %7193 = vst [vmem:[#allocation2 + $0x38] sm:$0xff] %v7185_v9 }
0x145b   : > { %v9503_v13 = vld [vmem:[#allocation17 + $0x78] sm:$0xff]   ;;  %v7232_v50 = vpack.c.bf16 %v7181_v15, %v7179_v28  ;;  %v7234_v52 = vpack.c.bf16 %v7185_v9, %v7183_v40  ;;  %v9505_v25 = vld [vmem:[#allocation17 + $0x70] sm:$0xff]   ;;  %v9507_v19 = vld [vmem:[#allocation17 + $0x68] sm:$0xff]   ;;  %v7231_v39 = vpack.c.bf16 %v12874_v24, %v12871_v44  ;;  %v7233_v62 = vpack.c.bf16 %v7184_v27, %v12877_v20 }
0x145c   : > { %v9504_v6 = vld [vmem:[#allocation17 + $0x38] sm:$0xff]   ;;  %8419 = vmatprep.subr.bf16.mxu0 %v9503_v13  ;;  %8573 = vmatprep.subr.bf16.mxu1 %v9503_v13  ;;  %v9506_v60 = vld [vmem:[#allocation17 + $0x30] sm:$0xff]   ;;  %v9508_v26 = vld [vmem:[#allocation17 + $0x28] sm:$0xff]  }
0x145d   : > { %8420 = vmatpush3.bf16.msra.mxu0 %v9504_v6  ;;  %8581 = vmatpush3.bf16.msra.mxu1 %v9504_v6  ;;  %v9509_v51 = vld [vmem:[#allocation17 + $0x60] sm:$0xff]   ;;  %v9511_v35 = vld [vmem:[#allocation17 + $0x58] sm:$0xff]   ;;  %v9513_v5 = vld [vmem:[#allocation17 + $0x50] sm:$0xff]  }
0x145e   : > { %8421 = vmatprep.subr.bf16.mxu0 %v9505_v25  ;;  %8574 = vmatprep.subr.bf16.mxu1 %v9505_v25  ;;  %v9510_v30 = vld [vmem:[#allocation17 + $0x20] sm:$0xff]   ;;  %v9512_v4 = vld [vmem:[#allocation17 + $0x18] sm:$0xff]   ;;  %v9514_v47 = vld [vmem:[#allocation17 + $0x10] sm:$0xff]  }
0x145f   : > { %7369 = vmatprep.mubr.bf16.mxu0 %v7232_v50  ;;  %7377 = vmatprep.mubr.bf16.mxu1 %v7234_v52  ;;  %v9515_v41 = vld [vmem:[#allocation17 + $0x48] sm:$0xff]   ;;  %v9517_v3 = vld [vmem:[#allocation17 + $0x40] sm:$0xff]  }
0x1460   : > { %v9516_v33 = vld [vmem:[#allocation17 + $0x8] sm:$0xff]   ;;  %v9518_v11 = vld [vmem:[#allocation17] sm:$0xff]  }
0x1461   : > { %8422 = vmatpush3.bf16.msra.mxu0 %v9506_v60  ;;  %8582 = vmatpush3.bf16.msra.mxu1 %v9506_v60  ;;  %v8321_v29 = vld [vmem:[#allocation19] ss:$0 sm:$0xff] }
0x1462   : > { %8423 = vmatprep.subr.bf16.mxu0 %v9507_v19  ;;  %8575 = vmatprep.subr.bf16.mxu1 %v9507_v19 }
0x1465   : > { %8424 = vmatpush3.bf16.msra.mxu0 %v9508_v26  ;;  %8583 = vmatpush3.bf16.msra.mxu1 %v9508_v26 }
0x1466   : > { %8425 = vmatprep.subr.bf16.mxu0 %v9509_v51  ;;  %8576 = vmatprep.subr.bf16.mxu1 %v9509_v51 }
0x1469   : > { %8426 = vmatpush3.bf16.msra.mxu0 %v9510_v30  ;;  %8584 = vmatpush3.bf16.msra.mxu1 %v9510_v30 }
0x146a   : > { %8427 = vmatprep.subr.bf16.mxu0 %v9511_v35  ;;  %8577 = vmatprep.subr.bf16.mxu1 %v9511_v35 }
0x146d   : > { %8428 = vmatpush3.bf16.msra.mxu0 %v9512_v4  ;;  %8585 = vmatpush3.bf16.msra.mxu1 %v9512_v4 }
0x146e   : > { %8429 = vmatprep.subr.bf16.mxu0 %v9513_v5  ;;  %8578 = vmatprep.subr.bf16.mxu1 %v9513_v5 }
0x1471   : > { %8430 = vmatpush3.bf16.msra.mxu0 %v9514_v47  ;;  %8586 = vmatpush3.bf16.msra.mxu1 %v9514_v47 }
0x1472   : > { %8431 = vmatprep.subr.bf16.mxu0 %v9515_v41  ;;  %8579 = vmatprep.subr.bf16.mxu1 %v9515_v41 }
0x1475   : > { %8432 = vmatpush3.bf16.msra.mxu0 %v9516_v33  ;;  %8587 = vmatpush3.bf16.msra.mxu1 %v9516_v33 }
0x1476   : > { %8433 = vmatprep.subr.bf16.mxu0 %v9517_v3  ;;  %8580 = vmatprep.subr.bf16.mxu1 %v9517_v3 }
0x1479   : > { %8434 = vmatpush3.bf16.msra.mxu0 %v9518_v11  ;;  %8588 = vmatpush3.bf16.msra.mxu1 %v9518_v11 }
0x147c   : > { %7370 = vmatmul.mubr.bf16.vlgmr.msra.gmra.mxu0 %v7231_v39  ;;  %7378 = vmatmul.mubr.bf16.vlgmr.msra.gmra.mxu1 %v7233_v62 }
0x153c   : > { %v8435_v38 = vpop.f32.mrf.mxu0  ;;  %v8441_v45 = vpop.f32.mrf.mxu1 }
0x153e   : > { %v8436_v46 = vpop.f32.mrf.mxu0  ;;  %v8442_v8 = vpop.f32.mrf.mxu1 }
0x153f   : > { %v8437_v12 = vadd.f32 %v8436_v46, %v8435_v38  ;;  %v8443_v0 = vadd.f32 %v8442_v8, %v8441_v45 }
0x1540   : > { %v8438_v63 = vpop.f32.mrf.mxu0  ;;  %v8444_v7 = vpop.f32.mrf.mxu1 }
0x1541   : > { %v7372_v42 = vadd.f32 %v8437_v12, %v8321_v29  ;;  %v7380_v10 = vadd.f32 %v8443_v0, %v8321_v29 }
0x1542   : > { %v8439_v54 = vpop.f32.mrf.mxu0  ;;  %v8445_v16 = vpop.f32.mrf.mxu1 }
0x1543   : > { %7386 = vst [vmem:[%s13171_s5] sm:$0xff] %v7372_v42  ;;  %7388 = vst [vmem:[%s13171_s5 + $0x10] sm:$0xff] %v7380_v10  ;;  %v8440_v32 = vadd.f32 %v8439_v54, %v8438_v63  ;;  %v8446_v53 = vadd.f32 %v8445_v16, %v8444_v7 }
0x1545   : > { %v7375_v55 = vadd.f32 %v8440_v32, %v8321_v29  ;;  %v7383_v44 = vadd.f32 %v8446_v53, %v8321_v29 }
0x1547   : > { %7387 = vst [vmem:[%s13171_s5 + $0x8] sm:$0xff] %v7375_v55  ;;  %7389 = vst [vmem:[%s13171_s5 + $0x18] sm:$0xff] %v7383_v44 }
0x1548 PF: > { %s13172_s30 = sld [smem:[#allocation54_spill]] }
0x1549   : > { %s13173_s7 = sld [smem:[#allocation50_spill]] }
0x154a   : > { %s13174_s4 = sld [smem:[#allocation51_spill]] }
0x154b   : > { %s13175_s8 = sld [smem:[#allocation55_spill]] }
0x154e   : > { %p58_p9 = scmp.ge.s32.totalorder %s13172_s30, 10  }
0x1550   :  { %60 = sbr.rel (!%p58_p9) target bundleno = 41 (0x29), region = 348 }
0x1555   :  { %7401 = vsyncpa [#allocation4], 1 }
0x1556   :  { %7403 = vsyncpa [#allocation4 + $0x1], 1 }
0x1557   :  { %7404 = vsyncpa [#allocation6], 1 }
0x1558   :  { %7405 = vsyncpa [#allocation9], 1 }
0x1559   :  { %7406 = vsyncpa [#allocation12], 1 }
0x155a   :  { %7407 = vsyncpa [#allocation15], 1 }
0x155b   :  { %7408 = vsyncpa [#allocation18], 1 }
0x155c   :  { %7409 = vsyncpa [#allocation21], 1 }
0x155d   :  { %7411 = vsyncpa [#allocation21 + $0x1], 1 }
0x155e   :  { %7412 = vsyncpa [#allocation24], 1 }
0x155f   :  { %7414 = vsyncpa [#allocation24 + $0x1], 1 }
0x1560   :  { %7415 = vsyncpa [#allocation27], 1 }
0x1561   :  { %7417 = vsyncpa [#allocation27 + $0x1], 1 }
0x1562   :  { %7418 = vsyncpa [#allocation30], 1 }
0x1563   :  { %7420 = vsyncpa [#allocation30 + $0x1], 1 }
0x1564   :  { %7421 = vsyncpa [#allocation33], 1 }
0x1565   :  { %7423 = vsyncpa [#allocation33 + $0x1], 1 }
0x1566   :  { %7424 = vsyncpa [#allocation36], 1 }
0x1567   :  { %7426 = vsyncpa [#allocation36 + $0x1], 1 }

</bundles_post_ra>
